<compile_context>
chip_gen: v5e
topology: v5e:2x2
jax: 0.10.0
libtpu: 0.0.40
codegen_flags: <defaults>
</compile_context>

<pallas_src>
import jax
import jax.numpy as jnp
from jax.experimental import pallas as pl
from jax.experimental.pallas import tpu as pltpu

LEAKY_SLOPE = 0.2
BN_EPS = 1e-5


# ---------------------------------------------------------------------------
# Fused kernel: one grid step processes a (B_tile, H, W, C) batch tile through
# all three blocks and the final residual add, entirely in VMEM.
# ---------------------------------------------------------------------------
def _fused_kernel(x_ref, dwm_ref, pw_ref, bias_ref, o_ref, pad_ref):
    B, H, W, C = x_ref.shape
    M = B * H * W
    f32 = jnp.float32

    # Zero only the two H-halo rows of the scratch: full-width, vreg-aligned
    # stores (W % 8 == 0).  There is no W halo any more; the kx = +-1 shifts
    # use pltpu.roll and the wrapped columns are zeroed via the masks folded
    # into dwm.  Done every grid step so it is megacore-safe on v7x.
    pad_ref[:, 0:1, :, :] = jnp.zeros((B, 1, W, C), f32)
    pad_ref[:, H + 1:H + 2, :, :] = jnp.zeros((B, 1, W, C), f32)

    h = x_ref[...].astype(f32)                       # (B, H, W, C)
    for blk in range(3):
        # LeakyReLU(0.2)
        y = jnp.where(h > 0, h, LEAKY_SLOPE * h)

        # Depthwise 3x3 conv, padding=1 (cross-correlation, like nn.Conv2d).
        # H padding via scratch rows (every ky slice below starts on a vreg
        # boundary because W is a multiple of 8).  W shifts go through the
        # XLU: pltpu.roll on the flattened (B*H*W) sublane axis; the
        # cross-row / image-boundary wrap artifacts land exactly on the
        # columns that dwm zeroes (masks folded host-side).
        pad_ref[:, 1:H + 1, :, :] = y                # aligned interior store
        acc = None
        for ky in range(3):
            row = pad_ref[:, ky:ky + H, :, :].reshape(M, C)   # free view
            for kx, dx in ((0, -1), (1, 0), (2, 1)):          # dx: column offset read
                t = row if dx == 0 else pltpu.roll(row, shift=(-dx) % M, axis=0)
                term = t.reshape(B, H, W, C) * dwm_ref[blk, ky, kx]
                acc = term if acc is None else acc + term

        # Pointwise 1x1 conv == channel matmul on the MXU (bf16 in, f32 acc).
        # BN scale is already folded into pw; only the bias add remains.
        z = jnp.dot(acc.reshape(M, C).astype(jnp.bfloat16), pw_ref[blk],
                    preferred_element_type=f32)
        h = (z + bias_ref[blk]).reshape(B, H, W, C)

    # Final residual: out = x + conv3(conv2(conv1(x)))
    o_ref[...] = (x_ref[...].astype(f32) + h).astype(o_ref.dtype)


# ---------------------------------------------------------------------------
# Tile sizing / VMEM budgeting
# ---------------------------------------------------------------------------
def _pick_batch_tile(n, h, w):
    """Largest divisor of n with bt*H*W <= ~2048 (amortizes the ~0.35us/step
    overhead and the per-block 256x256 MXU weight pushes).  If that leaves a
    single grid step, split once more when M stays >= 512 so both v7x
    TensorCores get work."""
    target = max(1, 2048 // max(h * w, 1))
    bt = max(1, min(n, target))
    while n % bt:
        bt -= 1
    if n // bt == 1 and bt % 2 == 0 and (bt // 2) * h * w >= 512:
        bt //= 2
    return bt


def _vmem_limit_bytes(bt, h, w, c):
    """Explicit scoped-VMEM request: in/out double-buffered tiles, ~6 live
    tile-sized f32 temps, the H-padded scratch and double-buffered weights,
    capped at 96 MiB (leave headroom everywhere, incl. v7x's 64 MiB)."""
    tile = bt * h * w * c * 4
    scratch = bt * (h + 2) * w * c * 4
    weights = 2 * (27 * w * c * 4 + 3 * c * c * 2 + 3 * c * 4)
    est = 10 * tile + scratch + weights
    return int(min(96 * 2 ** 20, max(32 * 2 ** 20, est)))


def _fused_call(x_nhwc, dwm_all, pw_all, bias_all):
    N, H, W, C = x_nhwc.shape
    # TODO(synk): general W would need wrapper padding to a multiple of 8 plus
    #             per-block re-zeroing of the padded columns; not needed here.
    assert W % 8 == 0 and C % 128 == 0, "kernel assumes W % 8 == 0, C % 128 == 0"
    bt = _pick_batch_tile(N, H, W)
    feat = pl.BlockSpec((bt, H, W, C), lambda n: (n, 0, 0, 0))
    return pl.pallas_call(
        _fused_kernel,
        out_shape=jax.ShapeDtypeStruct((N, H, W, C), x_nhwc.dtype),
        grid_spec=pltpu.PrefetchScalarGridSpec(
            num_scalar_prefetch=0,
            grid=(N // bt,),
            in_specs=[
                feat,                                                      # x
                pl.BlockSpec((3, 3, 3, W, C), lambda n: (0, 0, 0, 0, 0)),  # masked depthwise w
                pl.BlockSpec((3, C, C), lambda n: (0, 0, 0)),              # pw * bn_scale (bf16)
                pl.BlockSpec((3, 1, C), lambda n: (0, 0, 0)),              # bn bias
            ],
            out_specs=feat,
            # TODO(synk): for large H on v7x (64 MiB VMEM) add spatial H
            #             tiling with a 1-row halo; unnecessary at demo sizes.
            scratch_shapes=[pltpu.VMEM((bt, H + 2, W, C), jnp.float32)],
        ),
        compiler_params=pltpu.CompilerParams(
            dimension_semantics=("parallel",),
            vmem_limit_bytes=_vmem_limit_bytes(bt, H, W, C)),
    )(x_nhwc, dwm_all, pw_all, bias_all)


# ---------------------------------------------------------------------------
# Module wrapper (NCHW in / NCHW out, like PyTorch)
# ---------------------------------------------------------------------------
def middle_basic_block(x_nchw, params):
    # TODO(synk): the two boundary transposes are full-tensor HBM passes; a
    #             caller that already holds NHWC activations can call
    #             _fused_call directly and skip them.
    x = jnp.transpose(x_nchw, (0, 2, 3, 1))                        # NCHW -> NHWC
    N, H, W, C = x.shape

    # Depthwise weights (3,3,3,C) = [block, ky, kx, C]; fold the W-boundary
    # zero-padding masks for the kx = +-1 taps into them (zero in-kernel cost).
    dw_all = jnp.stack([dw for dw, _, _, _ in params])             # (3, 3, 3, C)
    col = jnp.arange(W)
    mask_l = (col > 0).astype(jnp.float32)          # kx = 0 tap reads column w-1
    mask_r = (col < W - 1).astype(jnp.float32)      # kx = 2 tap reads column w+1
    col_mask = jnp.stack([mask_l, jnp.ones((W,), jnp.float32), mask_r])     # (3, W)
    dwm_all = dw_all[:, :, :, None, :] * col_mask[None, None, :, :, None]   # (3,3,3,W,C)

    # Fold BN scale into the pointwise weights; keep only the bias add in-kernel.
    pw_all = jnp.stack([pw * s[None, :] for _, pw, s, _ in params]).astype(jnp.bfloat16)  # (3,C,C)
    bias_all = jnp.stack([b.reshape(1, C) for _, _, _, b in params])                      # (3,1,C)

    out = _fused_call(x, dwm_all, pw_all, bias_all)
    return jnp.transpose(out, (0, 3, 1, 2))                        # NHWC -> NCHW


# ---------------------------------------------------------------------------
# Deterministic parameter init (shapes dictated by MiddleBasicBlock.__init__)
# ---------------------------------------------------------------------------
def init_params(key, C):
    params = []
    for i in range(3):
        k = jax.random.fold_in(key, i)
        kdw, kpw, kg, kb, km, kv = jax.random.split(k, 6)
        dw = 0.05 * jax.random.normal(kdw, (3, 3, C), jnp.float32)       # (C,1,3,3) -> (3,3,C)
        pw = jax.random.normal(kpw, (C, C), jnp.float32) / jnp.sqrt(C)   # (Co,Ci,1,1) -> (Ci,Co)
        gamma = 1.0 + 0.1 * jax.random.normal(kg, (C,), jnp.float32)
        beta = 0.1 * jax.random.normal(kb, (C,), jnp.float32)
        rmean = 0.1 * jax.random.normal(km, (C,), jnp.float32)
        rvar = jax.random.uniform(kv, (C,), jnp.float32, minval=0.5, maxval=1.5)
        scale = gamma / jnp.sqrt(rvar + BN_EPS)
        bias = beta - rmean * scale
        params.append((dw, pw, scale, bias))
    return params


# ---------------------------------------------------------------------------
# Pure-JAX reference (full f32) for correctness check
# ---------------------------------------------------------------------------
def _ref_block(h, dw, pw, scale, bias):
    y = jnp.where(h > 0, h, LEAKY_SLOPE * h)
    C = h.shape[-1]
    ydw = jax.lax.conv_general_dilated(
        y, dw.reshape(3, 3, 1, C), window_strides=(1, 1), padding="SAME",
        dimension_numbers=("NHWC", "HWIO", "NHWC"), feature_group_count=C)
    z = jnp.einsum("nhwc,cd->nhwd", ydw, pw)
    return z * scale + bias


def _ref_forward(x_nchw, params):
    x = jnp.transpose(x_nchw, (0, 2, 3, 1))
    h = x
    for dw, pw, scale, bias in params:
        h = _ref_block(h, dw, pw, scale, bias)
    return jnp.transpose(x + h, (0, 3, 1, 2))


if __name__ == "__main__":
    key = jax.random.PRNGKey(0)
    C = 256                      # fixed by MiddleBasicBlock (BatchNorm2d(256))
    N, H, W = 2, 8, 8            # small spatial/batch for the demo
    kx, kp = jax.random.split(key)
    x_nchw = jax.random.normal(kx, (N, C, H, W), jnp.float32)
    params = init_params(kp, C)

    fwd = jax.jit(middle_basic_block)
    out = jax.block_until_ready(fwd(x_nchw, params))
    assert out.shape == (N, C, H, W) and out.dtype == jnp.float32

    ref = jax.block_until_ready(_ref_forward(x_nchw, params))
    err = jnp.max(jnp.abs(out - ref))
    # 2e-2 tolerance: the pointwise matmul uses bf16 inputs (f32 accumulate).
    assert err < 2e-2, f"mismatch vs reference, max abs err = {err}"

    print("KERNEL_OK")
</pallas_src>

<mosaic_0001>
module attributes {stable_mosaic.version = 11 : i64} {
  func.func @_fused_kernel(%arg0: i32, %arg1: memref<2x8x8x256xf32, #tpu.memory_space<vmem>>, %arg2: memref<3x3x3x8x256xf32, #tpu.memory_space<vmem>>, %arg3: memref<3x256x256xbf16, #tpu.memory_space<vmem>>, %arg4: memref<3x1x256xf32, #tpu.memory_space<vmem>>, %arg5: memref<2x8x8x256xf32, #tpu.memory_space<vmem>>, %arg6: memref<2x10x8x256xf32, #tpu.memory_space<vmem>>) attributes {dimension_semantics = [#tpu.dimension_semantics<parallel>], iteration_bounds = array<i64: 1>, scalar_prefetch = 0 : i64, scratch_operands = 1 : i64, tpu.core_type = #tpu.core_type<tc>, window_params = [{transform_indices = @transform_0, window_bounds = array<i64: 2, 8, 8, 256>}, {pipeline_mode = #tpu.pipeline_mode<synchronous>, transform_indices = @transform_1, window_bounds = array<i64: 3, 3, 3, 8, 256>}, {pipeline_mode = #tpu.pipeline_mode<synchronous>, transform_indices = @transform_2, window_bounds = array<i64: 3, 256, 256>}, {pipeline_mode = #tpu.pipeline_mode<synchronous>, transform_indices = @transform_3, window_bounds = array<i64: 3, 1, 256>}, {transform_indices = @transform_4, window_bounds = array<i64: 2, 8, 8, 256>}]} {
    %cst = arith.constant 0.000000e+00 : f32
    %0 = vector.broadcast %cst : f32 to vector<2x1x8x256xf32>
    %c0 = arith.constant 0 : index
    %c0_0 = arith.constant 0 : index
    %c0_1 = arith.constant 0 : index
    %c0_2 = arith.constant 0 : index
    %1 = vector.load %arg6[%c0, %c0_0, %c0_1, %c0_2] : memref<2x10x8x256xf32, #tpu.memory_space<vmem>>, vector<2x1x8x256xf32>
    tpu.vector_store %arg6[%c0, %c0_0, %c0_1, %c0_2], %0 {strides = array<i32>} : memref<2x10x8x256xf32, #tpu.memory_space<vmem>>, vector<2x1x8x256xf32>,
    %cst_3 = arith.constant 0.000000e+00 : f32
    %2 = vector.broadcast %cst_3 : f32 to vector<2x1x8x256xf32>
    %c0_4 = arith.constant 0 : index
    %c9 = arith.constant 9 : index
    %c0_5 = arith.constant 0 : index
    %c0_6 = arith.constant 0 : index
    %3 = vector.load %arg6[%c0_4, %c9, %c0_5, %c0_6] : memref<2x10x8x256xf32, #tpu.memory_space<vmem>>, vector<2x1x8x256xf32>
    tpu.vector_store %arg6[%c0_4, %c9, %c0_5, %c0_6], %2 {strides = array<i32>} : memref<2x10x8x256xf32, #tpu.memory_space<vmem>>, vector<2x1x8x256xf32>,
    %c0_7 = arith.constant 0 : index
    %c0_8 = arith.constant 0 : index
    %c0_9 = arith.constant 0 : index
    %c0_10 = arith.constant 0 : index
    %4 = vector.load %arg1[%c0_7, %c0_8, %c0_9, %c0_10] : memref<2x8x8x256xf32, #tpu.memory_space<vmem>>, vector<2x8x8x256xf32>
    %cst_11 = arith.constant 0.000000e+00 : f32
    %5 = vector.broadcast %cst_11 : f32 to vector<2x8x8x256xf32>
    %6 = arith.cmpf ogt, %4, %5 : vector<2x8x8x256xf32>
    %cst_12 = arith.constant 2.000000e-01 : f32
    %7 = vector.broadcast %cst_12 : f32 to vector<2x8x8x256xf32>
    %8 = arith.mulf %7, %4 : vector<2x8x8x256xf32>
    %9 = arith.select %6, %4, %8 : vector<2x8x8x256xi1>, vector<2x8x8x256xf32>
    %c0_13 = arith.constant 0 : index
    %c1 = arith.constant 1 : index
    %c0_14 = arith.constant 0 : index
    %c0_15 = arith.constant 0 : index
    %10 = vector.load %arg6[%c0_13, %c1, %c0_14, %c0_15] : memref<2x10x8x256xf32, #tpu.memory_space<vmem>>, vector<2x8x8x256xf32>
    tpu.vector_store %arg6[%c0_13, %c1, %c0_14, %c0_15], %9 {strides = array<i32>} : memref<2x10x8x256xf32, #tpu.memory_space<vmem>>, vector<2x8x8x256xf32>,
    %c0_16 = arith.constant 0 : index
    %c0_17 = arith.constant 0 : index
    %c0_18 = arith.constant 0 : index
    %c0_19 = arith.constant 0 : index
    %11 = vector.load %arg6[%c0_16, %c0_17, %c0_18, %c0_19] : memref<2x10x8x256xf32, #tpu.memory_space<vmem>>, vector<2x8x8x256xf32>
    %12 = vector.shape_cast %11 : vector<2x8x8x256xf32> to vector<128x256xf32>
    %c1_i32 = arith.constant 1 : i32
    %13 = tpu.dynamic_rotate %12 by %c1_i32 dim 0 : vector<128x256xf32>, i32 -> vector<128x256xf32>
    %14 = vector.shape_cast %13 : vector<128x256xf32> to vector<2x8x8x256xf32>
    %c0_20 = arith.constant 0 : index
    %c0_21 = arith.constant 0 : index
    %c0_22 = arith.constant 0 : index
    %c0_23 = arith.constant 0 : index
    %c0_24 = arith.constant 0 : index
    %15 = vector.load %arg2[%c0_20, %c0_21, %c0_22, %c0_23, %c0_24] : memref<3x3x3x8x256xf32, #tpu.memory_space<vmem>>, vector<1x1x1x8x256xf32>
    %16 = vector.shape_cast %15 : vector<1x1x1x8x256xf32> to vector<8x256xf32>
    %17 = vector.shape_cast %16 : vector<8x256xf32> to vector<1x1x8x256xf32>
    %18 = vector.broadcast %17 : vector<1x1x8x256xf32> to vector<2x8x8x256xf32>
    %19 = arith.mulf %14, %18 : vector<2x8x8x256xf32>
    %20 = vector.shape_cast %12 : vector<128x256xf32> to vector<2x8x8x256xf32>
    %c0_25 = arith.constant 0 : index
    %c0_26 = arith.constant 0 : index
    %c1_27 = arith.constant 1 : index
    %c0_28 = arith.constant 0 : index
    %c0_29 = arith.constant 0 : index
    %21 = vector.load %arg2[%c0_25, %c0_26, %c1_27, %c0_28, %c0_29] : memref<3x3x3x8x256xf32, #tpu.memory_space<vmem>>, vector<1x1x1x8x256xf32>
    %22 = vector.shape_cast %21 : vector<1x1x1x8x256xf32> to vector<8x256xf32>
    %23 = vector.shape_cast %22 : vector<8x256xf32> to vector<1x1x8x256xf32>
    %24 = vector.broadcast %23 : vector<1x1x8x256xf32> to vector<2x8x8x256xf32>
    %25 = arith.mulf %20, %24 : vector<2x8x8x256xf32>
    %26 = arith.addf %19, %25 : vector<2x8x8x256xf32>
    %c127_i32 = arith.constant 127 : i32
    %27 = tpu.dynamic_rotate %12 by %c127_i32 dim 0 : vector<128x256xf32>, i32 -> vector<128x256xf32>
    %28 = vector.shape_cast %27 : vector<128x256xf32> to vector<2x8x8x256xf32>
    %c0_30 = arith.constant 0 : index
    %c0_31 = arith.constant 0 : index
    %c2 = arith.constant 2 : index
    %c0_32 = arith.constant 0 : index
    %c0_33 = arith.constant 0 : index
    %29 = vector.load %arg2[%c0_30, %c0_31, %c2, %c0_32, %c0_33] : memref<3x3x3x8x256xf32, #tpu.memory_space<vmem>>, vector<1x1x1x8x256xf32>
    %30 = vector.shape_cast %29 : vector<1x1x1x8x256xf32> to vector<8x256xf32>
    %31 = vector.shape_cast %30 : vector<8x256xf32> to vector<1x1x8x256xf32>
    %32 = vector.broadcast %31 : vector<1x1x8x256xf32> to vector<2x8x8x256xf32>
    %33 = arith.mulf %28, %32 : vector<2x8x8x256xf32>
    %34 = arith.addf %26, %33 : vector<2x8x8x256xf32>
    %c0_34 = arith.constant 0 : index
    %c1_35 = arith.constant 1 : index
    %c0_36 = arith.constant 0 : index
    %c0_37 = arith.constant 0 : index
    %35 = vector.load %arg6[%c0_34, %c1_35, %c0_36, %c0_37] : memref<2x10x8x256xf32, #tpu.memory_space<vmem>>, vector<2x8x8x256xf32>
    %36 = vector.shape_cast %35 : vector<2x8x8x256xf32> to vector<128x256xf32>
    %c1_i32_38 = arith.constant 1 : i32
    %37 = tpu.dynamic_rotate %36 by %c1_i32_38 dim 0 : vector<128x256xf32>, i32 -> vector<128x256xf32>
    %38 = vector.shape_cast %37 : vector<128x256xf32> to vector<2x8x8x256xf32>
    %c0_39 = arith.constant 0 : index
    %c1_40 = arith.constant 1 : index
    %c0_41 = arith.constant 0 : index
    %c0_42 = arith.constant 0 : index
    %c0_43 = arith.constant 0 : index
    %39 = vector.load %arg2[%c0_39, %c1_40, %c0_41, %c0_42, %c0_43] : memref<3x3x3x8x256xf32, #tpu.memory_space<vmem>>, vector<1x1x1x8x256xf32>
    %40 = vector.shape_cast %39 : vector<1x1x1x8x256xf32> to vector<8x256xf32>
    %41 = vector.shape_cast %40 : vector<8x256xf32> to vector<1x1x8x256xf32>
    %42 = vector.broadcast %41 : vector<1x1x8x256xf32> to vector<2x8x8x256xf32>
    %43 = arith.mulf %38, %42 : vector<2x8x8x256xf32>
    %44 = arith.addf %34, %43 : vector<2x8x8x256xf32>
    %45 = vector.shape_cast %36 : vector<128x256xf32> to vector<2x8x8x256xf32>
    %c0_44 = arith.constant 0 : index
    %c1_45 = arith.constant 1 : index
    %c1_46 = arith.constant 1 : index
    %c0_47 = arith.constant 0 : index
    %c0_48 = arith.constant 0 : index
    %46 = vector.load %arg2[%c0_44, %c1_45, %c1_46, %c0_47, %c0_48] : memref<3x3x3x8x256xf32, #tpu.memory_space<vmem>>, vector<1x1x1x8x256xf32>
    %47 = vector.shape_cast %46 : vector<1x1x1x8x256xf32> to vector<8x256xf32>
    %48 = vector.shape_cast %47 : vector<8x256xf32> to vector<1x1x8x256xf32>
    %49 = vector.broadcast %48 : vector<1x1x8x256xf32> to vector<2x8x8x256xf32>
    %50 = arith.mulf %45, %49 : vector<2x8x8x256xf32>
    %51 = arith.addf %44, %50 : vector<2x8x8x256xf32>
    %c127_i32_49 = arith.constant 127 : i32
    %52 = tpu.dynamic_rotate %36 by %c127_i32_49 dim 0 : vector<128x256xf32>, i32 -> vector<128x256xf32>
    %53 = vector.shape_cast %52 : vector<128x256xf32> to vector<2x8x8x256xf32>
    %c0_50 = arith.constant 0 : index
    %c1_51 = arith.constant 1 : index
    %c2_52 = arith.constant 2 : index
    %c0_53 = arith.constant 0 : index
    %c0_54 = arith.constant 0 : index
    %54 = vector.load %arg2[%c0_50, %c1_51, %c2_52, %c0_53, %c0_54] : memref<3x3x3x8x256xf32, #tpu.memory_space<vmem>>, vector<1x1x1x8x256xf32>
    %55 = vector.shape_cast %54 : vector<1x1x1x8x256xf32> to vector<8x256xf32>
    %56 = vector.shape_cast %55 : vector<8x256xf32> to vector<1x1x8x256xf32>
    %57 = vector.broadcast %56 : vector<1x1x8x256xf32> to vector<2x8x8x256xf32>
    %58 = arith.mulf %53, %57 : vector<2x8x8x256xf32>
    %59 = arith.addf %51, %58 : vector<2x8x8x256xf32>
    %c0_55 = arith.constant 0 : index
    %c2_56 = arith.constant 2 : index
    %c0_57 = arith.constant 0 : index
    %c0_58 = arith.constant 0 : index
    %60 = vector.load %arg6[%c0_55, %c2_56, %c0_57, %c0_58] : memref<2x10x8x256xf32, #tpu.memory_space<vmem>>, vector<2x8x8x256xf32>
    %61 = vector.shape_cast %60 : vector<2x8x8x256xf32> to vector<128x256xf32>
    %c1_i32_59 = arith.constant 1 : i32
    %62 = tpu.dynamic_rotate %61 by %c1_i32_59 dim 0 : vector<128x256xf32>, i32 -> vector<128x256xf32>
    %63 = vector.shape_cast %62 : vector<128x256xf32> to vector<2x8x8x256xf32>
    %c0_60 = arith.constant 0 : index
    %c2_61 = arith.constant 2 : index
    %c0_62 = arith.constant 0 : index
    %c0_63 = arith.constant 0 : index
    %c0_64 = arith.constant 0 : index
    %64 = vector.load %arg2[%c0_60, %c2_61, %c0_62, %c0_63, %c0_64] : memref<3x3x3x8x256xf32, #tpu.memory_space<vmem>>, vector<1x1x1x8x256xf32>
    %65 = vector.shape_cast %64 : vector<1x1x1x8x256xf32> to vector<8x256xf32>
    %66 = vector.shape_cast %65 : vector<8x256xf32> to vector<1x1x8x256xf32>
    %67 = vector.broadcast %66 : vector<1x1x8x256xf32> to vector<2x8x8x256xf32>
    %68 = arith.mulf %63, %67 : vector<2x8x8x256xf32>
    %69 = arith.addf %59, %68 : vector<2x8x8x256xf32>
    %70 = vector.shape_cast %61 : vector<128x256xf32> to vector<2x8x8x256xf32>
    %c0_65 = arith.constant 0 : index
    %c2_66 = arith.constant 2 : index
    %c1_67 = arith.constant 1 : index
    %c0_68 = arith.constant 0 : index
    %c0_69 = arith.constant 0 : index
    %71 = vector.load %arg2[%c0_65, %c2_66, %c1_67, %c0_68, %c0_69] : memref<3x3x3x8x256xf32, #tpu.memory_space<vmem>>, vector<1x1x1x8x256xf32>
    %72 = vector.shape_cast %71 : vector<1x1x1x8x256xf32> to vector<8x256xf32>
    %73 = vector.shape_cast %72 : vector<8x256xf32> to vector<1x1x8x256xf32>
    %74 = vector.broadcast %73 : vector<1x1x8x256xf32> to vector<2x8x8x256xf32>
    %75 = arith.mulf %70, %74 : vector<2x8x8x256xf32>
    %76 = arith.addf %69, %75 : vector<2x8x8x256xf32>
    %c127_i32_70 = arith.constant 127 : i32
    %77 = tpu.dynamic_rotate %61 by %c127_i32_70 dim 0 : vector<128x256xf32>, i32 -> vector<128x256xf32>
    %78 = vector.shape_cast %77 : vector<128x256xf32> to vector<2x8x8x256xf32>
    %c0_71 = arith.constant 0 : index
    %c2_72 = arith.constant 2 : index
    %c2_73 = arith.constant 2 : index
    %c0_74 = arith.constant 0 : index
    %c0_75 = arith.constant 0 : index
    %79 = vector.load %arg2[%c0_71, %c2_72, %c2_73, %c0_74, %c0_75] : memref<3x3x3x8x256xf32, #tpu.memory_space<vmem>>, vector<1x1x1x8x256xf32>
    %80 = vector.shape_cast %79 : vector<1x1x1x8x256xf32> to vector<8x256xf32>
    %81 = vector.shape_cast %80 : vector<8x256xf32> to vector<1x1x8x256xf32>
    %82 = vector.broadcast %81 : vector<1x1x8x256xf32> to vector<2x8x8x256xf32>
    %83 = arith.mulf %78, %82 : vector<2x8x8x256xf32>
    %84 = arith.addf %76, %83 : vector<2x8x8x256xf32>
    %85 = vector.shape_cast %84 : vector<2x8x8x256xf32> to vector<128x256xf32>
    %86 = arith.truncf %85 : vector<128x256xf32> to vector<128x256xbf16>
    %c0_76 = arith.constant 0 : index
    %c0_77 = arith.constant 0 : index
    %c0_78 = arith.constant 0 : index
    %87 = vector.load %arg3[%c0_76, %c0_77, %c0_78] : memref<3x256x256xbf16, #tpu.memory_space<vmem>>, vector<1x256x256xbf16>
    %88 = vector.shape_cast %87 : vector<1x256x256xbf16> to vector<256x256xbf16>
    %cst_79 = arith.constant dense<0.000000e+00> : vector<128x256xf32>
    %89 = tpu.matmul %86, %88, %cst_79 {dimension_numbers = #tpu.dot_dimension_numbers<[1], [0], [0], [1], [0, 0, 1, 1], [], []>} : vector<128x256xbf16>, vector<256x256xbf16>, vector<128x256xf32> -> vector<128x256xf32>
    %c0_80 = arith.constant 0 : index
    %c0_81 = arith.constant 0 : index
    %c0_82 = arith.constant 0 : index
    %90 = vector.load %arg4[%c0_80, %c0_81, %c0_82] : memref<3x1x256xf32, #tpu.memory_space<vmem>>, vector<1x1x256xf32>
    %91 = vector.shape_cast %90 : vector<1x1x256xf32> to vector<1x256xf32>
    %92 = vector.broadcast %91 : vector<1x256xf32> to vector<128x256xf32>
    %93 = arith.addf %89, %92 : vector<128x256xf32>
    %94 = vector.shape_cast %93 : vector<128x256xf32> to vector<2x8x8x256xf32>
    %cst_83 = arith.constant 0.000000e+00 : f32
    %95 = vector.broadcast %cst_83 : f32 to vector<2x8x8x256xf32>
    %96 = arith.cmpf ogt, %94, %95 : vector<2x8x8x256xf32>
    %cst_84 = arith.constant 2.000000e-01 : f32
    %97 = vector.broadcast %cst_84 : f32 to vector<2x8x8x256xf32>
    %98 = arith.mulf %97, %94 : vector<2x8x8x256xf32>
    %99 = arith.select %96, %94, %98 : vector<2x8x8x256xi1>, vector<2x8x8x256xf32>
    %c0_85 = arith.constant 0 : index
    %c1_86 = arith.constant 1 : index
    %c0_87 = arith.constant 0 : index
    %c0_88 = arith.constant 0 : index
    %100 = vector.load %arg6[%c0_85, %c1_86, %c0_87, %c0_88] : memref<2x10x8x256xf32, #tpu.memory_space<vmem>>, vector<2x8x8x256xf32>
    tpu.vector_store %arg6[%c0_85, %c1_86, %c0_87, %c0_88], %99 {strides = array<i32>} : memref<2x10x8x256xf32, #tpu.memory_space<vmem>>, vector<2x8x8x256xf32>,
    %c0_89 = arith.constant 0 : index
    %c0_90 = arith.constant 0 : index
    %c0_91 = arith.constant 0 : index
    %c0_92 = arith.constant 0 : index
    %101 = vector.load %arg6[%c0_89, %c0_90, %c0_91, %c0_92] : memref<2x10x8x256xf32, #tpu.memory_space<vmem>>, vector<2x8x8x256xf32>
    %102 = vector.shape_cast %101 : vector<2x8x8x256xf32> to vector<128x256xf32>
    %c1_i32_93 = arith.constant 1 : i32
    %103 = tpu.dynamic_rotate %102 by %c1_i32_93 dim 0 : vector<128x256xf32>, i32 -> vector<128x256xf32>
    %104 = vector.shape_cast %103 : vector<128x256xf32> to vector<2x8x8x256xf32>
    %c1_94 = arith.constant 1 : index
    %c0_95 = arith.constant 0 : index
    %c0_96 = arith.constant 0 : index
    %c0_97 = arith.constant 0 : index
    %c0_98 = arith.constant 0 : index
    %105 = vector.load %arg2[%c1_94, %c0_95, %c0_96, %c0_97, %c0_98] : memref<3x3x3x8x256xf32, #tpu.memory_space<vmem>>, vector<1x1x1x8x256xf32>
    %106 = vector.shape_cast %105 : vector<1x1x1x8x256xf32> to vector<8x256xf32>
    %107 = vector.shape_cast %106 : vector<8x256xf32> to vector<1x1x8x256xf32>
    %108 = vector.broadcast %107 : vector<1x1x8x256xf32> to vector<2x8x8x256xf32>
    %109 = arith.mulf %104, %108 : vector<2x8x8x256xf32>
    %110 = vector.shape_cast %102 : vector<128x256xf32> to vector<2x8x8x256xf32>
    %c1_99 = arith.constant 1 : index
    %c0_100 = arith.constant 0 : index
    %c1_101 = arith.constant 1 : index
    %c0_102 = arith.constant 0 : index
    %c0_103 = arith.constant 0 : index
    %111 = vector.load %arg2[%c1_99, %c0_100, %c1_101, %c0_102, %c0_103] : memref<3x3x3x8x256xf32, #tpu.memory_space<vmem>>, vector<1x1x1x8x256xf32>
    %112 = vector.shape_cast %111 : vector<1x1x1x8x256xf32> to vector<8x256xf32>
    %113 = vector.shape_cast %112 : vector<8x256xf32> to vector<1x1x8x256xf32>
    %114 = vector.broadcast %113 : vector<1x1x8x256xf32> to vector<2x8x8x256xf32>
    %115 = arith.mulf %110, %114 : vector<2x8x8x256xf32>
    %116 = arith.addf %109, %115 : vector<2x8x8x256xf32>
    %c127_i32_104 = arith.constant 127 : i32
    %117 = tpu.dynamic_rotate %102 by %c127_i32_104 dim 0 : vector<128x256xf32>, i32 -> vector<128x256xf32>
    %118 = vector.shape_cast %117 : vector<128x256xf32> to vector<2x8x8x256xf32>
    %c1_105 = arith.constant 1 : index
    %c0_106 = arith.constant 0 : index
    %c2_107 = arith.constant 2 : index
    %c0_108 = arith.constant 0 : index
    %c0_109 = arith.constant 0 : index
    %119 = vector.load %arg2[%c1_105, %c0_106, %c2_107, %c0_108, %c0_109] : memref<3x3x3x8x256xf32, #tpu.memory_space<vmem>>, vector<1x1x1x8x256xf32>
    %120 = vector.shape_cast %119 : vector<1x1x1x8x256xf32> to vector<8x256xf32>
    %121 = vector.shape_cast %120 : vector<8x256xf32> to vector<1x1x8x256xf32>
    %122 = vector.broadcast %121 : vector<1x1x8x256xf32> to vector<2x8x8x256xf32>
    %123 = arith.mulf %118, %122 : vector<2x8x8x256xf32>
    %124 = arith.addf %116, %123 : vector<2x8x8x256xf32>
    %c0_110 = arith.constant 0 : index
    %c1_111 = arith.constant 1 : index
    %c0_112 = arith.constant 0 : index
    %c0_113 = arith.constant 0 : index
    %125 = vector.load %arg6[%c0_110, %c1_111, %c0_112, %c0_113] : memref<2x10x8x256xf32, #tpu.memory_space<vmem>>, vector<2x8x8x256xf32>
    %126 = vector.shape_cast %125 : vector<2x8x8x256xf32> to vector<128x256xf32>
    %c1_i32_114 = arith.constant 1 : i32
    %127 = tpu.dynamic_rotate %126 by %c1_i32_114 dim 0 : vector<128x256xf32>, i32 -> vector<128x256xf32>
    %128 = vector.shape_cast %127 : vector<128x256xf32> to vector<2x8x8x256xf32>
    %c1_115 = arith.constant 1 : index
    %c1_116 = arith.constant 1 : index
    %c0_117 = arith.constant 0 : index
    %c0_118 = arith.constant 0 : index
    %c0_119 = arith.constant 0 : index
    %129 = vector.load %arg2[%c1_115, %c1_116, %c0_117, %c0_118, %c0_119] : memref<3x3x3x8x256xf32, #tpu.memory_space<vmem>>, vector<1x1x1x8x256xf32>
    %130 = vector.shape_cast %129 : vector<1x1x1x8x256xf32> to vector<8x256xf32>
    %131 = vector.shape_cast %130 : vector<8x256xf32> to vector<1x1x8x256xf32>
    %132 = vector.broadcast %131 : vector<1x1x8x256xf32> to vector<2x8x8x256xf32>
    %133 = arith.mulf %128, %132 : vector<2x8x8x256xf32>
    %134 = arith.addf %124, %133 : vector<2x8x8x256xf32>
    %135 = vector.shape_cast %126 : vector<128x256xf32> to vector<2x8x8x256xf32>
    %c1_120 = arith.constant 1 : index
    %c1_121 = arith.constant 1 : index
    %c1_122 = arith.constant 1 : index
    %c0_123 = arith.constant 0 : index
    %c0_124 = arith.constant 0 : index
    %136 = vector.load %arg2[%c1_120, %c1_121, %c1_122, %c0_123, %c0_124] : memref<3x3x3x8x256xf32, #tpu.memory_space<vmem>>, vector<1x1x1x8x256xf32>
    %137 = vector.shape_cast %136 : vector<1x1x1x8x256xf32> to vector<8x256xf32>
    %138 = vector.shape_cast %137 : vector<8x256xf32> to vector<1x1x8x256xf32>
    %139 = vector.broadcast %138 : vector<1x1x8x256xf32> to vector<2x8x8x256xf32>
    %140 = arith.mulf %135, %139 : vector<2x8x8x256xf32>
    %141 = arith.addf %134, %140 : vector<2x8x8x256xf32>
    %c127_i32_125 = arith.constant 127 : i32
    %142 = tpu.dynamic_rotate %126 by %c127_i32_125 dim 0 : vector<128x256xf32>, i32 -> vector<128x256xf32>
    %143 = vector.shape_cast %142 : vector<128x256xf32> to vector<2x8x8x256xf32>
    %c1_126 = arith.constant 1 : index
    %c1_127 = arith.constant 1 : index
    %c2_128 = arith.constant 2 : index
    %c0_129 = arith.constant 0 : index
    %c0_130 = arith.constant 0 : index
    %144 = vector.load %arg2[%c1_126, %c1_127, %c2_128, %c0_129, %c0_130] : memref<3x3x3x8x256xf32, #tpu.memory_space<vmem>>, vector<1x1x1x8x256xf32>
    %145 = vector.shape_cast %144 : vector<1x1x1x8x256xf32> to vector<8x256xf32>
    %146 = vector.shape_cast %145 : vector<8x256xf32> to vector<1x1x8x256xf32>
    %147 = vector.broadcast %146 : vector<1x1x8x256xf32> to vector<2x8x8x256xf32>
    %148 = arith.mulf %143, %147 : vector<2x8x8x256xf32>
    %149 = arith.addf %141, %148 : vector<2x8x8x256xf32>
    %c0_131 = arith.constant 0 : index
    %c2_132 = arith.constant 2 : index
    %c0_133 = arith.constant 0 : index
    %c0_134 = arith.constant 0 : index
    %150 = vector.load %arg6[%c0_131, %c2_132, %c0_133, %c0_134] : memref<2x10x8x256xf32, #tpu.memory_space<vmem>>, vector<2x8x8x256xf32>
    %151 = vector.shape_cast %150 : vector<2x8x8x256xf32> to vector<128x256xf32>
    %c1_i32_135 = arith.constant 1 : i32
    %152 = tpu.dynamic_rotate %151 by %c1_i32_135 dim 0 : vector<128x256xf32>, i32 -> vector<128x256xf32>
    %153 = vector.shape_cast %152 : vector<128x256xf32> to vector<2x8x8x256xf32>
    %c1_136 = arith.constant 1 : index
    %c2_137 = arith.constant 2 : index
    %c0_138 = arith.constant 0 : index
    %c0_139 = arith.constant 0 : index
    %c0_140 = arith.constant 0 : index
    %154 = vector.load %arg2[%c1_136, %c2_137, %c0_138, %c0_139, %c0_140] : memref<3x3x3x8x256xf32, #tpu.memory_space<vmem>>, vector<1x1x1x8x256xf32>
    %155 = vector.shape_cast %154 : vector<1x1x1x8x256xf32> to vector<8x256xf32>
    %156 = vector.shape_cast %155 : vector<8x256xf32> to vector<1x1x8x256xf32>
    %157 = vector.broadcast %156 : vector<1x1x8x256xf32> to vector<2x8x8x256xf32>
    %158 = arith.mulf %153, %157 : vector<2x8x8x256xf32>
    %159 = arith.addf %149, %158 : vector<2x8x8x256xf32>
    %160 = vector.shape_cast %151 : vector<128x256xf32> to vector<2x8x8x256xf32>
    %c1_141 = arith.constant 1 : index
    %c2_142 = arith.constant 2 : index
    %c1_143 = arith.constant 1 : index
    %c0_144 = arith.constant 0 : index
    %c0_145 = arith.constant 0 : index
    %161 = vector.load %arg2[%c1_141, %c2_142, %c1_143, %c0_144, %c0_145] : memref<3x3x3x8x256xf32, #tpu.memory_space<vmem>>, vector<1x1x1x8x256xf32>
    %162 = vector.shape_cast %161 : vector<1x1x1x8x256xf32> to vector<8x256xf32>
    %163 = vector.shape_cast %162 : vector<8x256xf32> to vector<1x1x8x256xf32>
    %164 = vector.broadcast %163 : vector<1x1x8x256xf32> to vector<2x8x8x256xf32>
    %165 = arith.mulf %160, %164 : vector<2x8x8x256xf32>
    %166 = arith.addf %159, %165 : vector<2x8x8x256xf32>
    %c127_i32_146 = arith.constant 127 : i32
    %167 = tpu.dynamic_rotate %151 by %c127_i32_146 dim 0 : vector<128x256xf32>, i32 -> vector<128x256xf32>
    %168 = vector.shape_cast %167 : vector<128x256xf32> to vector<2x8x8x256xf32>
    %c1_147 = arith.constant 1 : index
    %c2_148 = arith.constant 2 : index
    %c2_149 = arith.constant 2 : index
    %c0_150 = arith.constant 0 : index
    %c0_151 = arith.constant 0 : index
    %169 = vector.load %arg2[%c1_147, %c2_148, %c2_149, %c0_150, %c0_151] : memref<3x3x3x8x256xf32, #tpu.memory_space<vmem>>, vector<1x1x1x8x256xf32>
    %170 = vector.shape_cast %169 : vector<1x1x1x8x256xf32> to vector<8x256xf32>
    %171 = vector.shape_cast %170 : vector<8x256xf32> to vector<1x1x8x256xf32>
    %172 = vector.broadcast %171 : vector<1x1x8x256xf32> to vector<2x8x8x256xf32>
    %173 = arith.mulf %168, %172 : vector<2x8x8x256xf32>
    %174 = arith.addf %166, %173 : vector<2x8x8x256xf32>
    %175 = vector.shape_cast %174 : vector<2x8x8x256xf32> to vector<128x256xf32>
    %176 = arith.truncf %175 : vector<128x256xf32> to vector<128x256xbf16>
    %c1_152 = arith.constant 1 : index
    %c0_153 = arith.constant 0 : index
    %c0_154 = arith.constant 0 : index
    %177 = vector.load %arg3[%c1_152, %c0_153, %c0_154] : memref<3x256x256xbf16, #tpu.memory_space<vmem>>, vector<1x256x256xbf16>
    %178 = vector.shape_cast %177 : vector<1x256x256xbf16> to vector<256x256xbf16>
    %cst_155 = arith.constant dense<0.000000e+00> : vector<128x256xf32>
    %179 = tpu.matmul %176, %178, %cst_155 {dimension_numbers = #tpu.dot_dimension_numbers<[1], [0], [0], [1], [0, 0, 1, 1], [], []>} : vector<128x256xbf16>, vector<256x256xbf16>, vector<128x256xf32> -> vector<128x256xf32>
    %c1_156 = arith.constant 1 : index
    %c0_157 = arith.constant 0 : index
    %c0_158 = arith.constant 0 : index
    %180 = vector.load %arg4[%c1_156, %c0_157, %c0_158] : memref<3x1x256xf32, #tpu.memory_space<vmem>>, vector<1x1x256xf32>
    %181 = vector.shape_cast %180 : vector<1x1x256xf32> to vector<1x256xf32>
    %182 = vector.broadcast %181 : vector<1x256xf32> to vector<128x256xf32>
    %183 = arith.addf %179, %182 : vector<128x256xf32>
    %184 = vector.shape_cast %183 : vector<128x256xf32> to vector<2x8x8x256xf32>
    %cst_159 = arith.constant 0.000000e+00 : f32
    %185 = vector.broadcast %cst_159 : f32 to vector<2x8x8x256xf32>
    %186 = arith.cmpf ogt, %184, %185 : vector<2x8x8x256xf32>
    %cst_160 = arith.constant 2.000000e-01 : f32
    %187 = vector.broadcast %cst_160 : f32 to vector<2x8x8x256xf32>
    %188 = arith.mulf %187, %184 : vector<2x8x8x256xf32>
    %189 = arith.select %186, %184, %188 : vector<2x8x8x256xi1>, vector<2x8x8x256xf32>
    %c0_161 = arith.constant 0 : index
    %c1_162 = arith.constant 1 : index
    %c0_163 = arith.constant 0 : index
    %c0_164 = arith.constant 0 : index
    %190 = vector.load %arg6[%c0_161, %c1_162, %c0_163, %c0_164] : memref<2x10x8x256xf32, #tpu.memory_space<vmem>>, vector<2x8x8x256xf32>
    tpu.vector_store %arg6[%c0_161, %c1_162, %c0_163, %c0_164], %189 {strides = array<i32>} : memref<2x10x8x256xf32, #tpu.memory_space<vmem>>, vector<2x8x8x256xf32>,
    %c0_165 = arith.constant 0 : index
    %c0_166 = arith.constant 0 : index
    %c0_167 = arith.constant 0 : index
    %c0_168 = arith.constant 0 : index
    %191 = vector.load %arg6[%c0_165, %c0_166, %c0_167, %c0_168] : memref<2x10x8x256xf32, #tpu.memory_space<vmem>>, vector<2x8x8x256xf32>
    %192 = vector.shape_cast %191 : vector<2x8x8x256xf32> to vector<128x256xf32>
    %c1_i32_169 = arith.constant 1 : i32
    %193 = tpu.dynamic_rotate %192 by %c1_i32_169 dim 0 : vector<128x256xf32>, i32 -> vector<128x256xf32>
    %194 = vector.shape_cast %193 : vector<128x256xf32> to vector<2x8x8x256xf32>
    %c2_170 = arith.constant 2 : index
    %c0_171 = arith.constant 0 : index
    %c0_172 = arith.constant 0 : index
    %c0_173 = arith.constant 0 : index
    %c0_174 = arith.constant 0 : index
    %195 = vector.load %arg2[%c2_170, %c0_171, %c0_172, %c0_173, %c0_174] : memref<3x3x3x8x256xf32, #tpu.memory_space<vmem>>, vector<1x1x1x8x256xf32>
    %196 = vector.shape_cast %195 : vector<1x1x1x8x256xf32> to vector<8x256xf32>
    %197 = vector.shape_cast %196 : vector<8x256xf32> to vector<1x1x8x256xf32>
    %198 = vector.broadcast %197 : vector<1x1x8x256xf32> to vector<2x8x8x256xf32>
    %199 = arith.mulf %194, %198 : vector<2x8x8x256xf32>
    %200 = vector.shape_cast %192 : vector<128x256xf32> to vector<2x8x8x256xf32>
    %c2_175 = arith.constant 2 : index
    %c0_176 = arith.constant 0 : index
    %c1_177 = arith.constant 1 : index
    %c0_178 = arith.constant 0 : index
    %c0_179 = arith.constant 0 : index
    %201 = vector.load %arg2[%c2_175, %c0_176, %c1_177, %c0_178, %c0_179] : memref<3x3x3x8x256xf32, #tpu.memory_space<vmem>>, vector<1x1x1x8x256xf32>
    %202 = vector.shape_cast %201 : vector<1x1x1x8x256xf32> to vector<8x256xf32>
    %203 = vector.shape_cast %202 : vector<8x256xf32> to vector<1x1x8x256xf32>
    %204 = vector.broadcast %203 : vector<1x1x8x256xf32> to vector<2x8x8x256xf32>
    %205 = arith.mulf %200, %204 : vector<2x8x8x256xf32>
    %206 = arith.addf %199, %205 : vector<2x8x8x256xf32>
    %c127_i32_180 = arith.constant 127 : i32
    %207 = tpu.dynamic_rotate %192 by %c127_i32_180 dim 0 : vector<128x256xf32>, i32 -> vector<128x256xf32>
    %208 = vector.shape_cast %207 : vector<128x256xf32> to vector<2x8x8x256xf32>
    %c2_181 = arith.constant 2 : index
    %c0_182 = arith.constant 0 : index
    %c2_183 = arith.constant 2 : index
    %c0_184 = arith.constant 0 : index
    %c0_185 = arith.constant 0 : index
    %209 = vector.load %arg2[%c2_181, %c0_182, %c2_183, %c0_184, %c0_185] : memref<3x3x3x8x256xf32, #tpu.memory_space<vmem>>, vector<1x1x1x8x256xf32>
    %210 = vector.shape_cast %209 : vector<1x1x1x8x256xf32> to vector<8x256xf32>
    %211 = vector.shape_cast %210 : vector<8x256xf32> to vector<1x1x8x256xf32>
    %212 = vector.broadcast %211 : vector<1x1x8x256xf32> to vector<2x8x8x256xf32>
    %213 = arith.mulf %208, %212 : vector<2x8x8x256xf32>
    %214 = arith.addf %206, %213 : vector<2x8x8x256xf32>
    %c0_186 = arith.constant 0 : index
    %c1_187 = arith.constant 1 : index
    %c0_188 = arith.constant 0 : index
    %c0_189 = arith.constant 0 : index
    %215 = vector.load %arg6[%c0_186, %c1_187, %c0_188, %c0_189] : memref<2x10x8x256xf32, #tpu.memory_space<vmem>>, vector<2x8x8x256xf32>
    %216 = vector.shape_cast %215 : vector<2x8x8x256xf32> to vector<128x256xf32>
    %c1_i32_190 = arith.constant 1 : i32
    %217 = tpu.dynamic_rotate %216 by %c1_i32_190 dim 0 : vector<128x256xf32>, i32 -> vector<128x256xf32>
    %218 = vector.shape_cast %217 : vector<128x256xf32> to vector<2x8x8x256xf32>
    %c2_191 = arith.constant 2 : index
    %c1_192 = arith.constant 1 : index
    %c0_193 = arith.constant 0 : index
    %c0_194 = arith.constant 0 : index
    %c0_195 = arith.constant 0 : index
    %219 = vector.load %arg2[%c2_191, %c1_192, %c0_193, %c0_194, %c0_195] : memref<3x3x3x8x256xf32, #tpu.memory_space<vmem>>, vector<1x1x1x8x256xf32>
    %220 = vector.shape_cast %219 : vector<1x1x1x8x256xf32> to vector<8x256xf32>
    %221 = vector.shape_cast %220 : vector<8x256xf32> to vector<1x1x8x256xf32>
    %222 = vector.broadcast %221 : vector<1x1x8x256xf32> to vector<2x8x8x256xf32>
    %223 = arith.mulf %218, %222 : vector<2x8x8x256xf32>
    %224 = arith.addf %214, %223 : vector<2x8x8x256xf32>
    %225 = vector.shape_cast %216 : vector<128x256xf32> to vector<2x8x8x256xf32>
    %c2_196 = arith.constant 2 : index
    %c1_197 = arith.constant 1 : index
    %c1_198 = arith.constant 1 : index
    %c0_199 = arith.constant 0 : index
    %c0_200 = arith.constant 0 : index
    %226 = vector.load %arg2[%c2_196, %c1_197, %c1_198, %c0_199, %c0_200] : memref<3x3x3x8x256xf32, #tpu.memory_space<vmem>>, vector<1x1x1x8x256xf32>
    %227 = vector.shape_cast %226 : vector<1x1x1x8x256xf32> to vector<8x256xf32>
    %228 = vector.shape_cast %227 : vector<8x256xf32> to vector<1x1x8x256xf32>
    %229 = vector.broadcast %228 : vector<1x1x8x256xf32> to vector<2x8x8x256xf32>
    %230 = arith.mulf %225, %229 : vector<2x8x8x256xf32>
    %231 = arith.addf %224, %230 : vector<2x8x8x256xf32>
    %c127_i32_201 = arith.constant 127 : i32
    %232 = tpu.dynamic_rotate %216 by %c127_i32_201 dim 0 : vector<128x256xf32>, i32 -> vector<128x256xf32>
    %233 = vector.shape_cast %232 : vector<128x256xf32> to vector<2x8x8x256xf32>
    %c2_202 = arith.constant 2 : index
    %c1_203 = arith.constant 1 : index
    %c2_204 = arith.constant 2 : index
    %c0_205 = arith.constant 0 : index
    %c0_206 = arith.constant 0 : index
    %234 = vector.load %arg2[%c2_202, %c1_203, %c2_204, %c0_205, %c0_206] : memref<3x3x3x8x256xf32, #tpu.memory_space<vmem>>, vector<1x1x1x8x256xf32>
    %235 = vector.shape_cast %234 : vector<1x1x1x8x256xf32> to vector<8x256xf32>
    %236 = vector.shape_cast %235 : vector<8x256xf32> to vector<1x1x8x256xf32>
    %237 = vector.broadcast %236 : vector<1x1x8x256xf32> to vector<2x8x8x256xf32>
    %238 = arith.mulf %233, %237 : vector<2x8x8x256xf32>
    %239 = arith.addf %231, %238 : vector<2x8x8x256xf32>
    %c0_207 = arith.constant 0 : index
    %c2_208 = arith.constant 2 : index
    %c0_209 = arith.constant 0 : index
    %c0_210 = arith.constant 0 : index
    %240 = vector.load %arg6[%c0_207, %c2_208, %c0_209, %c0_210] : memref<2x10x8x256xf32, #tpu.memory_space<vmem>>, vector<2x8x8x256xf32>
    %241 = vector.shape_cast %240 : vector<2x8x8x256xf32> to vector<128x256xf32>
    %c1_i32_211 = arith.constant 1 : i32
    %242 = tpu.dynamic_rotate %241 by %c1_i32_211 dim 0 : vector<128x256xf32>, i32 -> vector<128x256xf32>
    %243 = vector.shape_cast %242 : vector<128x256xf32> to vector<2x8x8x256xf32>
    %c2_212 = arith.constant 2 : index
    %c2_213 = arith.constant 2 : index
    %c0_214 = arith.constant 0 : index
    %c0_215 = arith.constant 0 : index
    %c0_216 = arith.constant 0 : index
    %244 = vector.load %arg2[%c2_212, %c2_213, %c0_214, %c0_215, %c0_216] : memref<3x3x3x8x256xf32, #tpu.memory_space<vmem>>, vector<1x1x1x8x256xf32>
    %245 = vector.shape_cast %244 : vector<1x1x1x8x256xf32> to vector<8x256xf32>
    %246 = vector.shape_cast %245 : vector<8x256xf32> to vector<1x1x8x256xf32>
    %247 = vector.broadcast %246 : vector<1x1x8x256xf32> to vector<2x8x8x256xf32>
    %248 = arith.mulf %243, %247 : vector<2x8x8x256xf32>
    %249 = arith.addf %239, %248 : vector<2x8x8x256xf32>
    %250 = vector.shape_cast %241 : vector<128x256xf32> to vector<2x8x8x256xf32>
    %c2_217 = arith.constant 2 : index
    %c2_218 = arith.constant 2 : index
    %c1_219 = arith.constant 1 : index
    %c0_220 = arith.constant 0 : index
    %c0_221 = arith.constant 0 : index
    %251 = vector.load %arg2[%c2_217, %c2_218, %c1_219, %c0_220, %c0_221] : memref<3x3x3x8x256xf32, #tpu.memory_space<vmem>>, vector<1x1x1x8x256xf32>
    %252 = vector.shape_cast %251 : vector<1x1x1x8x256xf32> to vector<8x256xf32>
    %253 = vector.shape_cast %252 : vector<8x256xf32> to vector<1x1x8x256xf32>
    %254 = vector.broadcast %253 : vector<1x1x8x256xf32> to vector<2x8x8x256xf32>
    %255 = arith.mulf %250, %254 : vector<2x8x8x256xf32>
    %256 = arith.addf %249, %255 : vector<2x8x8x256xf32>
    %c127_i32_222 = arith.constant 127 : i32
    %257 = tpu.dynamic_rotate %241 by %c127_i32_222 dim 0 : vector<128x256xf32>, i32 -> vector<128x256xf32>
    %258 = vector.shape_cast %257 : vector<128x256xf32> to vector<2x8x8x256xf32>
    %c2_223 = arith.constant 2 : index
    %c2_224 = arith.constant 2 : index
    %c2_225 = arith.constant 2 : index
    %c0_226 = arith.constant 0 : index
    %c0_227 = arith.constant 0 : index
    %259 = vector.load %arg2[%c2_223, %c2_224, %c2_225, %c0_226, %c0_227] : memref<3x3x3x8x256xf32, #tpu.memory_space<vmem>>, vector<1x1x1x8x256xf32>
    %260 = vector.shape_cast %259 : vector<1x1x1x8x256xf32> to vector<8x256xf32>
    %261 = vector.shape_cast %260 : vector<8x256xf32> to vector<1x1x8x256xf32>
    %262 = vector.broadcast %261 : vector<1x1x8x256xf32> to vector<2x8x8x256xf32>
    %263 = arith.mulf %258, %262 : vector<2x8x8x256xf32>
    %264 = arith.addf %256, %263 : vector<2x8x8x256xf32>
    %265 = vector.shape_cast %264 : vector<2x8x8x256xf32> to vector<128x256xf32>
    %266 = arith.truncf %265 : vector<128x256xf32> to vector<128x256xbf16>
    %c2_228 = arith.constant 2 : index
    %c0_229 = arith.constant 0 : index
    %c0_230 = arith.constant 0 : index
    %267 = vector.load %arg3[%c2_228, %c0_229, %c0_230] : memref<3x256x256xbf16, #tpu.memory_space<vmem>>, vector<1x256x256xbf16>
    %268 = vector.shape_cast %267 : vector<1x256x256xbf16> to vector<256x256xbf16>
    %cst_231 = arith.constant dense<0.000000e+00> : vector<128x256xf32>
    %269 = tpu.matmul %266, %268, %cst_231 {dimension_numbers = #tpu.dot_dimension_numbers<[1], [0], [0], [1], [0, 0, 1, 1], [], []>} : vector<128x256xbf16>, vector<256x256xbf16>, vector<128x256xf32> -> vector<128x256xf32>
    %c2_232 = arith.constant 2 : index
    %c0_233 = arith.constant 0 : index
    %c0_234 = arith.constant 0 : index
    %270 = vector.load %arg4[%c2_232, %c0_233, %c0_234] : memref<3x1x256xf32, #tpu.memory_space<vmem>>, vector<1x1x256xf32>
    %271 = vector.shape_cast %270 : vector<1x1x256xf32> to vector<1x256xf32>
    %272 = vector.broadcast %271 : vector<1x256xf32> to vector<128x256xf32>
    %273 = arith.addf %269, %272 : vector<128x256xf32>
    %274 = vector.shape_cast %273 : vector<128x256xf32> to vector<2x8x8x256xf32>
    %c0_235 = arith.constant 0 : index
    %c0_236 = arith.constant 0 : index
    %c0_237 = arith.constant 0 : index
    %c0_238 = arith.constant 0 : index
    %275 = vector.load %arg1[%c0_235, %c0_236, %c0_237, %c0_238] : memref<2x8x8x256xf32, #tpu.memory_space<vmem>>, vector<2x8x8x256xf32>
    %276 = arith.addf %275, %274 : vector<2x8x8x256xf32>
    %c0_239 = arith.constant 0 : index
    %c0_240 = arith.constant 0 : index
    %c0_241 = arith.constant 0 : index
    %c0_242 = arith.constant 0 : index
    %277 = vector.load %arg5[%c0_239, %c0_240, %c0_241, %c0_242] : memref<2x8x8x256xf32, #tpu.memory_space<vmem>>, vector<2x8x8x256xf32>
    tpu.vector_store %arg5[%c0_239, %c0_240, %c0_241, %c0_242], %276 {strides = array<i32>} : memref<2x8x8x256xf32, #tpu.memory_space<vmem>>, vector<2x8x8x256xf32>,
    return
  }
  func.func @transform_0(%arg0: i32) -> (i32, i32, i32, i32) {
    %c0_i32 = arith.constant 0 : i32
    %c0_i32_0 = arith.constant 0 : i32
    %c0_i32_1 = arith.constant 0 : i32
    %c0_i32_2 = arith.constant 0 : i32
    return %arg0, %c0_i32, %c0_i32_0, %c0_i32_1 : i32, i32, i32, i32
  }
  func.func @transform_1(%arg0: i32) -> (i32, i32, i32, i32, i32) {
    %c0_i32 = arith.constant 0 : i32
    %c0_i32_0 = arith.constant 0 : i32
    %c0_i32_1 = arith.constant 0 : i32
    %c0_i32_2 = arith.constant 0 : i32
    %c0_i32_3 = arith.constant 0 : i32
    %c0_i32_4 = arith.constant 0 : i32
    return %c0_i32, %c0_i32_0, %c0_i32_1, %c0_i32_2, %c0_i32_3 : i32, i32, i32, i32, i32
  }
  func.func @transform_2(%arg0: i32) -> (i32, i32, i32) {
    %c0_i32 = arith.constant 0 : i32
    %c0_i32_0 = arith.constant 0 : i32
    %c0_i32_1 = arith.constant 0 : i32
    %c0_i32_2 = arith.constant 0 : i32
    return %c0_i32, %c0_i32_0, %c0_i32_1 : i32, i32, i32
  }
  func.func @transform_3(%arg0: i32) -> (i32, i32, i32) {
    %c0_i32 = arith.constant 0 : i32
    %c0_i32_0 = arith.constant 0 : i32
    %c0_i32_1 = arith.constant 0 : i32
    %c0_i32_2 = arith.constant 0 : i32
    return %c0_i32, %c0_i32_0, %c0_i32_1 : i32, i32, i32
  }
  func.func @transform_4(%arg0: i32) -> (i32, i32, i32, i32) {
    %c0_i32 = arith.constant 0 : i32
    %c0_i32_0 = arith.constant 0 : i32
    %c0_i32_1 = arith.constant 0 : i32
    %c0_i32_2 = arith.constant 0 : i32
    return %arg0, %c0_i32, %c0_i32_0, %c0_i32_1 : i32, i32, i32, i32
  }
}

</mosaic_0001>

<bundles_post_ra>
// kernel: middle_basic_block.1
= control target key start
LH: loop header
LB: loop body
LE: loop exit
PB: predicated region body
PF: predicated region fallthrough
CT: control target
= control target key end

     0   :  { %s11020_s0 = inlined_call_operand.vmem [shape: f32[2,8,8,256], index: 0, kind: input, shape index: {}]   ;;  %s11021_s1 = inlined_call_operand.vmem [shape: f32[3,3,3,8,256], index: 1, kind: input, shape index: {}]   ;;  %s11022_s2 = inlined_call_operand.vmem [shape: bf16[3,256,256], index: 2, kind: input, shape index: {}]   ;;  %s11023_s3 = inlined_call_operand.vmem [shape: f32[3,1,256], index: 3, kind: input, shape index: {}]   ;;  %s11024_s4 = inlined_call_operand.hbm [shape: f32[2,8,8,256], index: 4, kind: output, shape index: {}]  }
   0x1   :  { %v5023_v0 = vld [vmem:[%s11022_s2 + $0x70] sm:$0xf]  ;;  %v5466_v1 = vld [vmem:[%s11022_s2 + $0x74] sm:$0xf0]  ;;  %v5465_v5 = vld [vmem:[%s11022_s2 + $0x74] sm:$0xf] }
   0x2   :  { %v5087_v2 = vld [vmem:[%s11022_s2 + $0xf0] sm:$0xf]  ;;  %v5024_v3 = vor.u32 %v5466_v1, %v5023_v0  ;;  %v5482_v4 = vld [vmem:[%s11022_s2 + $0xf4] sm:$0xf0]  ;;  %v5025_v6 = vld [vmem:[%s11022_s2 + $0x78] sm:$0xf0] }
   0x3   :  { %v5088_v7 = vor.u32 %v5482_v4, %v5087_v2  ;;  %v5028_v8 = vor.u32 %v5465_v5, %v5025_v6  ;;  %v5481_v9 = vld [vmem:[%s11022_s2 + $0xf4] sm:$0xf]  ;;  %v5089_v10 = vld [vmem:[%s11022_s2 + $0xf8] sm:$0xf0]  ;;  %v5015_v11 = vld [vmem:[%s11022_s2 + $0x60] sm:$0xf] }
   0x4   :  { %1457 = vmatpush.bf16.msra.mxu0 %v5024_v3  ;;  %v5092_v12 = vor.u32 %v5481_v9, %v5089_v10  ;;  %v5464_v13 = vld [vmem:[%s11022_s2 + $0x64] sm:$0xf0]  ;;  %v5079_v14 = vld [vmem:[%s11022_s2 + $0xe0] sm:$0xf]  ;;  %v5463_v18 = vld [vmem:[%s11022_s2 + $0x64] sm:$0xf]  ;;  %v252_v10 = vlaneseq }
   0x5   :  { %v5480_v15 = vld [vmem:[%s11022_s2 + $0xe4] sm:$0xf0]  ;;  %1506 = vmatpush.bf16.msra.mxu1 %v5088_v7  ;;  %1555 = vmatpush.bf16.msra.mxu2 %v5028_v8  ;;  %v5016_v16 = vor.u32 %v5464_v13, %v5015_v11  ;;  %v5017_v19 = vld [vmem:[%s11022_s2 + $0x68] sm:$0xf0]  ;;  %v5479_v20 = vld [vmem:[%s11022_s2 + $0xe4] sm:$0xf] }
   0x6   :  { %v5080_v17 = vor.u32 %v5480_v15, %v5079_v14  ;;  %1604 = vmatpush.bf16.msra.mxu3 %v5092_v12  ;;  %v5020_v21 = vor.u32 %v5463_v18, %v5017_v19  ;;  %v5081_v22 = vld [vmem:[%s11022_s2 + $0xe8] sm:$0xf0]  ;;  %v5007_v23 = vld [vmem:[%s11022_s2 + $0x50] sm:$0xf]  ;;  %v5462_v24 = vld [vmem:[%s11022_s2 + $0x54] sm:$0xf0] }
   0x7   :  { %v5084_v25 = vor.u32 %v5479_v20, %v5081_v22  ;;  %v5071_v26 = vld [vmem:[%s11022_s2 + $0xd0] sm:$0xf]  ;;  %v5478_v27 = vld [vmem:[%s11022_s2 + $0xd4] sm:$0xf0]  ;;  %v5461_v28 = vld [vmem:[%s11022_s2 + $0x54] sm:$0xf]  ;;  %v5008_v29 = vor.u32 %v5462_v24, %v5007_v23 }
   0x8   :  { %1458 = vmatpush.bf16.msra.mxu0 %v5016_v16  ;;  %v5009_v30 = vld [vmem:[%s11022_s2 + $0x58] sm:$0xf0]  ;;  %v5477_v31 = vld [vmem:[%s11022_s2 + $0xd4] sm:$0xf]  ;;  %v5072_v33 = vor.u32 %v5478_v27, %v5071_v26  ;;  %v4999_v35 = vld [vmem:[%s11022_s2 + $0x40] sm:$0xf] }
   0x9   :  { %v5073_v32 = vld [vmem:[%s11022_s2 + $0xd8] sm:$0xf0]  ;;  %1507 = vmatpush.bf16.msra.mxu1 %v5080_v17  ;;  %1556 = vmatpush.bf16.msra.mxu2 %v5020_v21  ;;  %v5012_v34 = vor.u32 %v5461_v28, %v5009_v30  ;;  %v5460_v36 = vld [vmem:[%s11022_s2 + $0x44] sm:$0xf0]  ;;  %v5063_v37 = vld [vmem:[%s11022_s2 + $0xc0] sm:$0xf] }
   0xa   :  { %1605 = vmatpush.bf16.msra.mxu3 %v5084_v25  ;;  %v5076_v38 = vor.u32 %v5477_v31, %v5073_v32  ;;  %v5476_v39 = vld [vmem:[%s11022_s2 + $0xc4] sm:$0xf0]  ;;  %v5459_v40 = vld [vmem:[%s11022_s2 + $0x44] sm:$0xf]  ;;  %v5001_v41 = vld [vmem:[%s11022_s2 + $0x48] sm:$0xf0]  ;;  %v5000_v45 = vor.u32 %v5460_v36, %v4999_v35 }
   0xb   :  { %v5475_v42 = vld [vmem:[%s11022_s2 + $0xc4] sm:$0xf]  ;;  %v5065_v43 = vld [vmem:[%s11022_s2 + $0xc8] sm:$0xf0]  ;;  %v4991_v44 = vld [vmem:[%s11022_s2 + $0x30] sm:$0xf]  ;;  %v5064_v49 = vor.u32 %v5476_v39, %v5063_v37  ;;  %v5004_v50 = vor.u32 %v5459_v40, %v5001_v41 }
   0xc   :  { %1459 = vmatpush.bf16.msra.mxu0 %v5008_v29  ;;  %v5458_v46 = vld [vmem:[%s11022_s2 + $0x34] sm:$0xf0]  ;;  %v5055_v47 = vld [vmem:[%s11022_s2 + $0xb0] sm:$0xf]  ;;  %v5457_v51 = vld [vmem:[%s11022_s2 + $0x34] sm:$0xf]  ;;  %v5068_v54 = vor.u32 %v5475_v42, %v5065_v43 }
   0xd   :  { %v5474_v48 = vld [vmem:[%s11022_s2 + $0xb4] sm:$0xf0]  ;;  %1508 = vmatpush.bf16.msra.mxu1 %v5072_v33  ;;  %1557 = vmatpush.bf16.msra.mxu2 %v5012_v34  ;;  %v4993_v52 = vld [vmem:[%s11022_s2 + $0x38] sm:$0xf0]  ;;  %v5473_v53 = vld [vmem:[%s11022_s2 + $0xb4] sm:$0xf]  ;;  %v4992_v61 = vor.u32 %v5458_v46, %v4991_v44 }
   0xe   :  { %1606 = vmatpush.bf16.msra.mxu3 %v5076_v38  ;;  %v5057_v55 = vld [vmem:[%s11022_s2 + $0xb8] sm:$0xf0]  ;;  %v4983_v56 = vld [vmem:[%s11022_s2 + $0x20] sm:$0xf]  ;;  %v5456_v57 = vld [vmem:[%s11022_s2 + $0x24] sm:$0xf0]  ;;  %v5056_v1 = vor.u32 %v5474_v48, %v5055_v47  ;;  %v4996_v2 = vor.u32 %v5457_v51, %v4993_v52 }
   0xf   :  { %v5787_v58 = vld [vmem:[%s11022_s2 + $0xa0] sm:$0xf]  ;;  %v5472_v59 = vld [vmem:[%s11022_s2 + $0xa4] sm:$0xf0]  ;;  %v5455_v60 = vld [vmem:[%s11022_s2 + $0x24] sm:$0xf]  ;;  %v5060_v6 = vor.u32 %v5473_v53, %v5057_v55  ;;  %v4984_v11 = vor.u32 %v5456_v57, %v4983_v56 }
  0x10   :  { %1460 = vmatpush.bf16.msra.mxu0 %v5000_v45  ;;  %v4985_v62 = vld [vmem:[%s11022_s2 + $0x28] sm:$0xf0]  ;;  %v5801_v63 = vld [vmem:[%s11022_s2 + $0xa4] sm:$0xf]  ;;  %v5809_v3 = vld [vmem:[%s11022_s2 + $0x10] sm:$0xf]  ;;  %v5048_v12 = vor.u32 %v5472_v59, %v5787_v58 }
  0x11   :  { %v5049_v0 = vld [vmem:[%s11022_s2 + $0xa8] sm:$0xf0]  ;;  %1509 = vmatpush.bf16.msra.mxu1 %v5064_v49  ;;  %1558 = vmatpush.bf16.msra.mxu2 %v5004_v50  ;;  %v5814_v4 = vld [vmem:[%s11022_s2 + $0x14] sm:$0xf0]  ;;  %v5819_v5 = vld [vmem:[%s11022_s2 + $0x90] sm:$0xf]  ;;  %v4988_v16 = vor.u32 %v5455_v60, %v4985_v62 }
  0x12   :  { %1607 = vmatpush.bf16.msra.mxu3 %v5068_v54  ;;  %v5824_v7 = vld [vmem:[%s11022_s2 + $0x94] sm:$0xf0]  ;;  %v5829_v8 = vld [vmem:[%s11022_s2 + $0x14] sm:$0xf]  ;;  %v5834_v9 = vld [vmem:[%s11022_s2 + $0x18] sm:$0xf0]  ;;  %v5052_v17 = vor.u32 %v5801_v63, %v5049_v0  ;;  %v4976_v18 = vor.u32 %v5814_v4, %v5809_v3 }
  0x13   :  { %v5840_v13 = vld [vmem:[%s11022_s2 + $0x94] sm:$0xf]  ;;  %v5845_v14 = vld [vmem:[%s11022_s2 + $0x98] sm:$0xf0]  ;;  %v5850_v15 = vld [vmem:[%s11022_s2] sm:$0xf]  ;;  %v5040_v19 = vor.u32 %v5824_v7, %v5819_v5  ;;  %v4980_v23 = vor.u32 %v5829_v8, %v5834_v9 }
  0x14   :  { %1461 = vmatpush.bf16.msra.mxu0 %v4992_v61  ;;  %v5860_v20 = vld [vmem:[%s11022_s2 + $0x4] sm:$0xf0]  ;;  %v5865_v21 = vld [vmem:[%s11022_s2 + $0x80] sm:$0xf]  ;;  %v5044_v24 = vor.u32 %v5840_v13, %v5845_v14  ;;  %v5881_v26 = vld [vmem:[%s11022_s2 + $0x4] sm:$0xf] }
  0x15   :  { %v5870_v22 = vld [vmem:[%s11022_s2 + $0x84] sm:$0xf0]  ;;  %1510 = vmatpush.bf16.msra.mxu1 %v5056_v1  ;;  %1559 = vmatpush.bf16.msra.mxu2 %v4996_v2  ;;  %v4968_v25 = vor.u32 %v5860_v20, %v5850_v15  ;;  %v5886_v27 = vld [vmem:[%s11022_s2 + $0x8] sm:$0xf0]  ;;  %v5891_v28 = vld [vmem:[%s11022_s2 + $0x84] sm:$0xf] }
  0x16   :  { %1608 = vmatpush.bf16.msra.mxu3 %v5060_v6  ;;  %v5032_v29 = vor.u32 %v5870_v22, %v5865_v21  ;;  %v4972_v30 = vor.u32 %v5881_v26, %v5886_v27  ;;  %v5900_v31 = vld [vmem:[%s11022_s2 + $0x88] sm:$0xf0]  ;;  %v27_v32 = vld [vmem:[%s11020_s0] sm:$0xff]  ;;  %v29_v33 = vld [vmem:[%s11020_s0 + $0x10] sm:$0xff]  ;;  %v5908_v34 = vshrl.u32 %v252_v10, 7  ;;  %v5629_v39 = vmov 0.0  }
  0x17   :  { %v5036_v35 = vor.u32 %v5891_v28, %v5900_v31  ;;  %v31_v36 = vld [vmem:[%s11020_s0 + $0x20] sm:$0xff]  ;;  %v33_v37 = vld [vmem:[%s11020_s0 + $0x30] sm:$0xff]  ;;  %vm59_vm0 = vcmp.gt.f32.partialorder %v27_v32, 0.0  ;;  %vm61_vm1 = vcmp.gt.f32.partialorder %v29_v33, 0.0  ;;  %v5921_v40 = vrot.slane %v5629_v39, 7 }
  0x18   :  { %v55_v38 = vld [vmem:[%s11020_s0 + $0xe0] sm:$0xff]  ;;  %1462 = vmatpush.bf16.msra.mxu0 %v4984_v11  ;;  %v57_v41 = vld [vmem:[%s11020_s0 + $0xf0] sm:$0xff]  ;;  %vm63_vm2 = vcmp.gt.f32.partialorder %v31_v36, 0.0  ;;  %vm65_vm3 = vcmp.gt.f32.partialorder %v33_v37, 0.0  ;;  %v91_v42 = vmul.f32 0.2, %v27_v32 }
  0x19   :  { %11241 = vst [vmem:[#allocation6_spill] sm:$0xff] %v5921_v40  ;;  %vm87_vm4 = vcmp.gt.f32.partialorder %v55_v38, 0.0  ;;  %1511 = vmatpush.bf16.msra.mxu1 %v5048_v12  ;;  %1560 = vmatpush.bf16.msra.mxu2 %v4988_v16  ;;  %vm89_vm5 = vcmp.gt.f32.partialorder %v57_v41, 0.0  ;;  %v93_v43 = vmul.f32 0.2, %v29_v33  ;;  %vm254_vm6 = vcmp.lt.s32.totalorder %v5908_v34, 1 }
  0x1a   :  { %v95_v44 = vmul.f32 0.2, %v31_v36  ;;  %1609 = vmatpush.bf16.msra.mxu3 %v5052_v17  ;;  %v97_v45 = vmul.f32 0.2, %v33_v37  ;;  %v119_v46 = vmul.f32 0.2, %v55_v38  ;;  %v123_v48 = vsel %vm59_vm0, %v27_v32, %v91_v42 }
  0x1b   :  { %v121_v47 = vmul.f32 0.2, %v57_v41  ;;  %v5929_v49 = vsel %vm61_vm1, %v29_v33, %v93_v43  ;;  %v222_v51 = vrot.slane %v123_v48, 7  ;;  %v5937_v52 = vld [vmem:[%s11021_s1] sm:$0xff]  ;;  %v5942_v53 = vld [vmem:[%s11021_s1 + $0x10] sm:$0xff]  ;;  %v5944_v54 = vrot.slane %v5629_v39, 1 }
  0x1c   :  { %v5932_v50 = vsel %vm63_vm2, %v31_v36, %v95_v44  ;;  %1463 = vmatpush.bf16.msra.mxu0 %v4976_v18  ;;  %v5947_v55 = vsel %vm65_vm3, %v33_v37, %v97_v45  ;;  %v5950_v56 = vsel %vm87_vm4, %v55_v38, %v119_v46  ;;  %v5956_v58 = vrot.slane %v5929_v49, 7  ;;  %v5999_v15 = vld [vmem:[%s11021_s1 + $0x20] sm:$0xff] }
  0x1d   :  { %11242 = vst [vmem:[#allocation7_spill] sm:$0xff] %v5944_v54  ;;  %v5953_v57 = vsel %vm89_vm5, %v57_v41, %v121_v47  ;;  %1512 = vmatpush.bf16.msra.mxu1 %v5040_v19  ;;  %1561 = vmatpush.bf16.msra.mxu2 %v4980_v23  ;;  %v11028_v59 = vrot.slane %v5932_v50, 7  ;;  %v5960_v60 = vrot.slane %v5950_v56, 7  ;;  %v283_v61 = vsel %vm254_vm6, %v5921_v40, %v222_v51  ;;  %v6009_v19 = vld [vmem:[%s11021_s1 + $0x30] sm:$0xff]  ;;  %v6014_v20 = vld [vmem:[%s11021_s1 + $0x40] sm:$0xff] }
  0x1e   :  { %11243 = vst [vmem:[#allocation8_spill] sm:$0xff] %v5953_v57  ;;  %v5966_v62 = vmul.f32 0.0, %v5942_v53  ;;  %1610 = vmatpush.bf16.msra.mxu3 %v5044_v24  ;;  %v281_v63 = vsel %vm254_vm6, %v222_v51, %v5956_v58  ;;  %v291_v0 = vmul.f32 %v5937_v52, %v283_v61  ;;  %v326_v1 = vmul.f32 %v5942_v53, %v123_v48 }
  0x1f   :  { %11244 = vst [vmem:[#allocation9_spill] sm:$0xff] %v5960_v60  ;;  %v328_v2 = vmul.f32 %v5942_v53, %v5929_v49  ;;  %v279_v3 = vsel %vm254_vm6, %v5956_v58, %v11028_v59  ;;  %v285_v4 = vsel %vm254_vm6, %v5960_v60, %v5921_v40  ;;  %v293_v5 = vmul.f32 %v5937_v52, %v281_v63 }
  0x20   :  { %v330_v6 = vmul.f32 %v5942_v53, %v5932_v50  ;;  %1464 = vmatpush.bf16.msra.mxu0 %v4968_v25  ;;  %v289_v7 = vmul.f32 %v5937_v52, %v285_v4  ;;  %v295_v8 = vmul.f32 %v5937_v52, %v279_v3  ;;  %v358_v9 = vadd.f32 %v326_v1, %v291_v0 }
  0x21   :  { %v5989_v10 = vrot.slane %v123_v48, 1  ;;  %1513 = vmatpush.bf16.msra.mxu1 %v5032_v29  ;;  %1562 = vmatpush.bf16.msra.mxu2 %v4972_v30  ;;  %v360_v11 = vadd.f32 %v328_v2, %v293_v5  ;;  %v5992_v12 = vrot.slane %v5929_v49, 1  ;;  %v394_v13 = vrot.slane %v5932_v50, 1 }
  0x22   :  { %v11027_v14 = vrot.slane %v5947_v55, 1  ;;  %1611 = vmatpush.bf16.msra.mxu3 %v5036_v35  ;;  %v356_v16 = vadd.f32 %v5966_v62, %v289_v7  ;;  %v362_v17 = vadd.f32 %v330_v6, %v295_v8  ;;  %vm420_vm7 = vcmp.lt.s32.totalorder %v5908_v34, 7 }
  0x23   :  { %11245 = vst [vmem:[#allocation10_spill] sm:$0xff] %v5989_v10  ;;  %v6004_v18 = vrot.slane %v5953_v57, 7 }
  0x24   :  { %11246 = vst [vmem:[#allocation11_spill] sm:$0xff] %v5992_v12 }
  0x25   :  { %11247 = vst [vmem:[#allocation12_spill] sm:$0xff] %v6004_v18 }
  0x26   :  { %9 = vsyncpa [#allocation4], 0  ;;  %v443_v21 = vsel %vm420_vm7, %v394_v13, %v11027_v14  ;;  %v445_v22 = vsel %vm420_vm7, %v5992_v12, %v394_v13  ;;  %v447_v23 = vsel %vm420_vm7, %v5989_v10, %v5992_v12  ;;  %v449_v24 = vsel %vm420_vm7, %v5944_v54, %v5989_v10  ;;  %v6038_v29 = vld [vmem:[%s11021_s1 + $0x50] sm:$0xff]  ;;  %v6051_v35 = vld [vmem:[%s11021_s1 + $0x60] sm:$0xff]  ;;  %s5630_s6 = smov [#allocation3]   ;;  %s4937_s10 = sshll.u32 %s11024_s4, 4  ;;  %s4938_s10 = int_to_ptr.hbm [resolvable:$true] %s4937_s10 }
  0x27   :  { %v456_v25 = vmul.f32 %v5999_v15, %v449_v24  ;;  %v458_v26 = vmul.f32 %v5999_v15, %v447_v23  ;;  %v460_v27 = vmul.f32 %v5999_v15, %v445_v22  ;;  %v462_v28 = vmul.f32 %v5999_v15, %v443_v21  ;;  %v6060_v41 = vld [vmem:[%s11021_s1 + $0x70] sm:$0xff]  ;;  %v6070_v46 = vld [vmem:[%s11021_s1 + $0x80] sm:$0xff]  ;;  %v28_v47 = vld [vmem:[%s11020_s0 + $0x8] sm:$0xff]  ;;  %s4935_s7 = sshll.u32 %s5630_s6, 4  ;;  %s5631_s12 = smov 256   ;;  %s4936_s7 = int_to_ptr.vmem [resolvable:$true] %s4935_s7 }
  0x28   :  { %v614_v30 = vsel %vm254_vm6, %v6004_v18, %v222_v51  ;;  %v621_v31 = vmul.f32 %v6009_v19, %v281_v63  ;;  %v6045_v32 = vmul.f32 %v6009_v19, %v279_v3  ;;  %v686_v33 = vmul.f32 %v6014_v20, %v123_v48  ;;  %v30_v0 = vld [vmem:[%s11020_s0 + $0x18] sm:$0xff]  ;;  %v32_v1 = vld [vmem:[%s11020_s0 + $0x28] sm:$0xff]  ;;  %v5322_v34 = vld [vmem:[%s11023_s3 + $0x4] sm:$0x3]  ;;  %s5632_s13 = smov 16  }
  0x29   :  { %v488_v36 = vadd.f32 %v456_v25, %v356_v16  ;;  %v490_v37 = vadd.f32 %v458_v26, %v358_v9  ;;  %v6053_v38 = vadd.f32 %v460_v27, %v360_v11  ;;  %v6055_v39 = vadd.f32 %v462_v28, %v362_v17  ;;  %v34_v2 = vld [vmem:[%s11020_s0 + $0x38] sm:$0xff]  ;;  %v56_v6 = vld [vmem:[%s11020_s0 + $0xe8] sm:$0xff] }
  0x2a   :  { %v619_v42 = vmul.f32 %v6009_v19, %v614_v30  ;;  %v688_v43 = vmul.f32 %v6014_v20, %v5929_v49  ;;  %v817_v44 = vmul.f32 %v6038_v29, %v447_v23  ;;  %v819_v45 = vmul.f32 %v6038_v29, %v445_v22  ;;  %v58_v7 = vld [vmem:[%s11020_s0 + $0xf8] sm:$0xff] }
  0x2b   :  { %v653_v48 = vadd.f32 %v621_v31, %v490_v37  ;;  %v6076_v51 = vmul.f32 %v6038_v29, %v443_v21  ;;  %v976_v61 = vsel %vm254_vm6, %v5921_v40, %v5956_v58  ;;  %v983_v63 = vmul.f32 %v6051_v35, %v279_v3 }
  0x2c   :  { %v651_v4 = vadd.f32 %v619_v42, %v488_v36  ;;  %v981_v5 = vmul.f32 %v6051_v35, %v976_v61  ;;  %v1048_v58 = vmul.f32 %v6060_v41, %v5929_v49  ;;  %v1050_v3 = vmul.f32 %v6060_v41, %v5932_v50  ;;  %v6118_v36 = vld [vmem:[%s11021_s1 + $0x18] sm:$0xff] }
  0x2d   :  { %v720_v8 = vadd.f32 %v688_v43, %v653_v48  ;;  %v1179_v9 = vmul.f32 %v6070_v46, %v445_v22  ;;  %v1181_v11 = vmul.f32 %v6070_v46, %v443_v21  ;;  %vm60_vm8 = vcmp.gt.f32.partialorder %v28_v47, 0.0 }
  0x2e   :  { %v718_v13 = vadd.f32 %v686_v33, %v651_v4  ;;  %vm62_vm9 = vcmp.gt.f32.partialorder %v30_v0, 0.0  ;;  %vm64_vm10 = vcmp.gt.f32.partialorder %v32_v1, 0.0  ;;  %vm66_vm11 = vcmp.gt.f32.partialorder %v34_v2, 0.0 }
  0x2f   :  { %v851_v49 = vadd.f32 %v819_v45, %v720_v8  ;;  %vm88_vm12 = vcmp.gt.f32.partialorder %v56_v6, 0.0  ;;  %vm90_vm13 = vcmp.gt.f32.partialorder %v58_v7, 0.0  ;;  %v92_v16 = vmul.f32 0.2, %v28_v47 }
  0x30   :  { %v849_v17 = vadd.f32 %v817_v44, %v718_v13  ;;  %v94_v23 = vmul.f32 0.2, %v30_v0  ;;  %v96_v24 = vmul.f32 0.2, %v32_v1  ;;  %v98_v25 = vmul.f32 0.2, %v34_v2 }
  0x31   :  { %v1015_v26 = vadd.f32 %v983_v63, %v851_v49  ;;  %v120_v27 = vmul.f32 0.2, %v56_v6  ;;  %v122_v28 = vmul.f32 0.2, %v58_v7  ;;  %v124_v22 = vsel %vm60_vm8, %v28_v47, %v92_v16  ;;  %v6134_v63 = vld [vmem:[%s11021_s1 + $0x8] sm:$0xff] }
  0x32   :  { %v1013_v30 = vadd.f32 %v981_v5, %v849_v17  ;;  %v6107_v21 = vsel %vm62_vm9, %v30_v0, %v94_v23  ;;  %v6110_v31 = vsel %vm64_vm10, %v32_v1, %v96_v24  ;;  %v6113_v33 = vsel %vm66_vm11, %v34_v2, %v98_v25  ;;  %v6166_v23 = vld [vmem:[%s11021_s1 + $0x28] sm:$0xff] }
  0x33   :  { %v1082_v37 = vadd.f32 %v1050_v3, %v1015_v26  ;;  %v6121_v42 = vsel %vm88_vm12, %v56_v6, %v120_v27  ;;  %v6124_v43 = vsel %vm90_vm13, %v58_v7, %v122_v28  ;;  %v223_v44 = vrot.slane %v124_v22, 7  ;;  %v6176_v28 = vld [vmem:[%s11021_s1 + $0x38] sm:$0xff] }
  0x34   :  { %11248 = vst [vmem:[#allocation13_spill] sm:$0xff] %v6121_v42  ;;  %v1080_v45 = vadd.f32 %v1048_v58, %v1013_v30  ;;  %v225_v47 = vrot.slane %v6107_v21, 7  ;;  %v11025_v48 = vrot.slane %v6110_v31, 7  ;;  %v6129_v61 = vrot.slane %v6121_v42, 7 }
  0x35   :  { %11249 = vst [vmem:[#allocation14_spill] sm:$0xff] %v6124_v43  ;;  %v1213_v0 = vadd.f32 %v1181_v11, %v1082_v37  ;;  %v284_v1 = vsel %vm254_vm6, %v5921_v40, %v223_v44  ;;  %v6140_v2 = vmul.f32 0.0, %v6118_v36  ;;  %v327_v4 = vmul.f32 %v6118_v36, %v124_v22 }
  0x36   :  { %11250 = vst [vmem:[#allocation15_spill] sm:$0xff] %v6129_v61  ;;  %v1211_v5 = vadd.f32 %v1179_v9, %v1080_v45  ;;  %v280_v58 = vsel %vm254_vm6, %v225_v47, %v11025_v48  ;;  %v282_v3 = vsel %vm254_vm6, %v223_v44, %v225_v47  ;;  %v286_v6 = vsel %vm254_vm6, %v6129_v61, %v5921_v40 }
  0x37   :  { %v290_v7 = vmul.f32 %v6134_v63, %v286_v6  ;;  %v292_v8 = vmul.f32 %v6134_v63, %v284_v1  ;;  %v294_v11 = vmul.f32 %v6134_v63, %v282_v3  ;;  %v296_v9 = vmul.f32 %v6134_v63, %v280_v58 }
  0x38   :  { %v1243_v13 = vpack.c.bf16 %v1213_v0, %v1211_v5  ;;  %v329_v49 = vmul.f32 %v6118_v36, %v6107_v21  ;;  %v331_v16 = vmul.f32 %v6118_v36, %v6110_v31  ;;  %v6161_v17 = vrot.slane %v124_v22, 1 }
  0x39   :  { %v357_v24 = vadd.f32 %v6140_v2, %v290_v7  ;;  %v359_v25 = vadd.f32 %v327_v4, %v292_v8  ;;  %v6170_v26 = vrot.slane %v6107_v21, 1  ;;  %v395_v27 = vrot.slane %v6110_v31, 1  ;;  %v6197_v7 = vld [vmem:[%s11021_s1 + $0x48] sm:$0xff] }
  0x3a   :  { %11251 = vst [vmem:[#allocation16_spill] sm:$0xff] %v6161_v17  ;;  %1465 = vmatmul.bf16.vlgmr.msra.gmra.mxu0 %v1243_v13  ;;  %v361_v30 = vadd.f32 %v329_v49, %v294_v11  ;;  %v363_v37 = vadd.f32 %v331_v16, %v296_v9  ;;  %v11026_v45 = vrot.slane %v6113_v33, 1  ;;  %v450_v0 = vsel %vm420_vm7, %v5944_v54, %v6161_v17  ;;  %v6209_v49 = vld [vmem:[%s11021_s1 + $0x58] sm:$0xff] }
  0x3b   :  { %11252 = vst [vmem:[#allocation17_spill] sm:$0xff] %v6170_v26  ;;  %1563 = vmatmul.bf16.vlgmr.msra.gmra.mxu2 %v1243_v13  ;;  %v446_v1 = vsel %vm420_vm7, %v6170_v26, %v395_v27  ;;  %v448_v4 = vsel %vm420_vm7, %v6161_v17, %v6170_v26  ;;  %v457_v5 = vmul.f32 %v6166_v23, %v450_v0  ;;  %v6192_v6 = vrot.slane %v6124_v43, 7  ;;  %v6225_v26 = vld [vmem:[%s11021_s1 + $0x68] sm:$0xff] }
  0x3c   :  { %v444_v8 = vsel %vm420_vm7, %v395_v27, %v11026_v45  ;;  %v459_v11 = vmul.f32 %v6166_v23, %v448_v4  ;;  %v461_v9 = vmul.f32 %v6166_v23, %v446_v1  ;;  %v622_v13 = vmul.f32 %v6176_v28, %v282_v3 }
  0x3d   :  { %11253 = vst [vmem:[#allocation18_spill] sm:$0xff] %v6192_v6  ;;  %v463_v16 = vmul.f32 %v6166_v23, %v444_v8  ;;  %v489_v0 = vadd.f32 %v457_v5, %v357_v24  ;;  %v615_v48 = vsel %vm254_vm6, %v6192_v6, %v223_v44  ;;  %v6216_v27 = vmul.f32 %v6176_v28, %v280_v58  ;;  %v6230_v24 = vld [vmem:[%s11021_s1 + $0x78] sm:$0xff] }
  0x3e   :  { %v491_v45 = vadd.f32 %v459_v11, %v359_v25  ;;  %v6218_v14 = vadd.f32 %v461_v9, %v361_v30  ;;  %v620_v3 = vmul.f32 %v6176_v28, %v615_v48  ;;  %v687_v59 = vmul.f32 %v6197_v7, %v124_v22  ;;  %v6241_v22 = vld [vmem:[%s11021_s1 + $0x88] sm:$0xff] }
  0x3f   :  { %v6232_v44 = vadd.f32 %v463_v16, %v363_v37  ;;  %v689_v25 = vmul.f32 %v6197_v7, %v6107_v21  ;;  %v818_v30 = vmul.f32 %v6209_v49, %v448_v4  ;;  %v820_v48 = vmul.f32 %v6209_v49, %v446_v1  ;;  %v35_v4 = vld [vmem:[%s11020_s0 + $0x40] sm:$0xff]  ;;  %v37_v16 = vld [vmem:[%s11020_s0 + $0x50] sm:$0xff] }
  0x40   :  { %v652_v5 = vadd.f32 %v620_v3, %v489_v0  ;;  %v654_v11 = vadd.f32 %v622_v13, %v491_v45  ;;  %v6244_v9 = vmul.f32 %v6209_v49, %v444_v8  ;;  %v977_v37 = vsel %vm254_vm6, %v5921_v40, %v225_v47 }
  0x41   :  { %v982_v17 = vmul.f32 %v6225_v26, %v977_v37  ;;  %v984_v0 = vmul.f32 %v6225_v26, %v280_v58  ;;  %v1049_v45 = vmul.f32 %v6230_v24, %v6107_v21  ;;  %v1051_v13 = vmul.f32 %v6230_v24, %v6110_v31 }
  0x42   :  { %v719_v3 = vadd.f32 %v687_v59, %v652_v5  ;;  %v721_v47 = vadd.f32 %v689_v25, %v654_v11  ;;  %v1180_v6 = vmul.f32 %v6241_v22, %v446_v1  ;;  %v1182_v12 = vmul.f32 %v6241_v22, %v444_v8 }
  0x43   :  { %vm67_vm14 = vcmp.gt.f32.partialorder %v35_v4, 0.0  ;;  %vm69_vm15 = vcmp.gt.f32.partialorder %v37_v16, 0.0  ;;  %v99_v10 = vmul.f32 0.2, %v35_v4  ;;  %v101_v18 = vmul.f32 0.2, %v37_v16 }
  0x44   :  { %v850_v43 = vadd.f32 %v818_v30, %v719_v3  ;;  %v852_v37 = vadd.f32 %v820_v48, %v721_v47  ;;  %v228_v58 = vrot.slane %v5947_v55, 7  ;;  %v332_v21 = vmul.f32 %v5942_v53, %v5947_v55 }
  0x45   :  { %v6266_v61 = vsel %vm67_vm14, %v35_v4, %v99_v10  ;;  %v6268_v42 = vsel %vm69_vm15, %v37_v16, %v101_v18  ;;  %v655_v59 = vadd.f32 %v6045_v32, %v6053_v38  ;;  %v690_v1 = vmul.f32 %v6014_v20, %v5932_v50 }
  0x46   :  { %v1014_v8 = vadd.f32 %v982_v17, %v850_v43  ;;  %v1016_v25 = vadd.f32 %v984_v0, %v852_v37  ;;  %v230_v30 = vrot.slane %v6266_v61, 7  ;;  %v11254_v48 = vrot.slane %v5932_v50, 7 }
  0x47   :  { %v334_v18 = vmul.f32 %v5942_v53, %v6266_v61  ;;  %v398_v11 = vrot.slane %v6266_v61, 1  ;;  %v400_v32 = vrot.slane %v6268_v42, 1  ;;  %v11255_v3 = vrot.slane %v5947_v55, 1 }
  0x48   :  { %v277_v5 = vsel %vm254_vm6, %v11254_v48, %v228_v58  ;;  %v1081_v38 = vadd.f32 %v1049_v45, %v1014_v8  ;;  %v1083_v4 = vadd.f32 %v1051_v13, %v1016_v25  ;;  %v275_v43 = vsel %vm254_vm6, %v228_v58, %v230_v30 }
  0x49   :  { %v297_v10 = vmul.f32 %v5937_v52, %v277_v5  ;;  %v625_v50 = vmul.f32 %v6009_v19, %v277_v5  ;;  %v299_v17 = vmul.f32 %v5937_v52, %v275_v43  ;;  %v439_v0 = vsel %vm420_vm7, %v398_v11, %v400_v32 }
  0x4a   :  { %v441_v45 = vsel %vm420_vm7, %v11255_v3, %v398_v11  ;;  %v1212_v13 = vadd.f32 %v1180_v6, %v1081_v38  ;;  %v1214_v47 = vadd.f32 %v1182_v12, %v1083_v4  ;;  %v466_v58 = vmul.f32 %v5999_v15, %v439_v0 }
  0x4b   :  { %v364_v16 = vadd.f32 %v332_v21, %v297_v10  ;;  %v464_v37 = vmul.f32 %v5999_v15, %v441_v45  ;;  %v366_v8 = vadd.f32 %v334_v18, %v299_v17  ;;  %v6301_v25 = vmul.f32 %v6009_v19, %v275_v43  ;;  %v36_v10 = vld [vmem:[%s11020_s0 + $0x48] sm:$0xff] }
  0x4c   :  { %v657_v21 = vadd.f32 %v625_v50, %v6055_v39  ;;  %v692_v48 = vmul.f32 %v6014_v20, %v5947_v55  ;;  %v1244_v11 = vpack.c.bf16 %v1214_v47, %v1212_v13  ;;  %v722_v12 = vadd.f32 %v690_v1, %v655_v59  ;;  %v38_v50 = vld [vmem:[%s11020_s0 + $0x58] sm:$0xff] }
  0x4d   :  { %v6309_v6 = vadd.f32 %v464_v37, %v364_v16  ;;  %v823_v38 = vmul.f32 %v6038_v29, %v441_v45  ;;  %v6312_v4 = vadd.f32 %v466_v58, %v366_v8  ;;  %v6315_v17 = vmul.f32 %v6038_v29, %v439_v0 }
  0x4e   :  { %v724_v18 = vadd.f32 %v692_v48, %v657_v21  ;;  %v985_v39 = vmul.f32 %v6051_v35, %v277_v5  ;;  %1514 = vmatmul.bf16.vlgmr.msra.gmra.mxu1 %v1244_v11  ;;  %1612 = vmatmul.bf16.vlgmr.msra.gmra.mxu3 %v1244_v11  ;;  %v853_v16 = vadd.f32 %v6076_v51, %v722_v12  ;;  %vm68_vm0 = vcmp.gt.f32.partialorder %v36_v10, 0.0 }
  0x4f   :  { %v987_v59 = vmul.f32 %v6051_v35, %v275_v43  ;;  %v1052_v1 = vmul.f32 %v6060_v41, %v5947_v55  ;;  %v1054_v13 = vmul.f32 %v6060_v41, %v6266_v61  ;;  %v1183_v5 = vmul.f32 %v6070_v46, %v441_v45 }
  0x50   :  { %v855_v3 = vadd.f32 %v823_v38, %v724_v18  ;;  %v1185_v47 = vmul.f32 %v6070_v46, %v439_v0  ;;  %v1017_v37 = vadd.f32 %v985_v39, %v853_v16  ;;  %vm70_vm1 = vcmp.gt.f32.partialorder %v38_v50, 0.0 }
  0x51   :  { %v100_v58 = vmul.f32 0.2, %v36_v10  ;;  %v102_v8 = vmul.f32 0.2, %v38_v50  ;;  %v229_v51 = vrot.slane %v6113_v33, 7  ;;  %v333_v43 = vmul.f32 %v6118_v36, %v6113_v33 }
  0x52   :  { %v1019_v21 = vadd.f32 %v987_v59, %v855_v3  ;;  %v656_v55 = vadd.f32 %v6216_v27, %v6218_v14  ;;  %v1084_v48 = vadd.f32 %v1052_v1, %v1017_v37  ;;  %v691_v0 = vmul.f32 %v6197_v7, %v6110_v31 }
  0x53   :  { %v6334_v11 = vsel %vm68_vm0, %v36_v10, %v100_v58  ;;  %v6336_v12 = vsel %vm70_vm1, %v38_v50, %v102_v8  ;;  %v11256_v18 = vrot.slane %v6110_v31, 7  ;;  %v693_v3 = vmul.f32 %v6197_v7, %v6113_v33 }
  0x54   :  { %v1086_v45 = vadd.f32 %v1054_v13, %v1019_v21  ;;  %v231_v38 = vrot.slane %v6334_v11, 7  ;;  %v335_v16 = vmul.f32 %v6118_v36, %v6334_v11  ;;  %v1215_v14 = vadd.f32 %v1183_v5, %v1084_v48 }
  0x55   :  { %v278_v39 = vsel %vm254_vm6, %v11256_v18, %v229_v51  ;;  %v399_v10 = vrot.slane %v6334_v11, 1  ;;  %v11043_v50 = vrot.slane %v6336_v12, 1  ;;  %v723_v18 = vadd.f32 %v691_v0, %v656_v55 }
  0x56   :  { %v298_v27 = vmul.f32 %v6134_v63, %v278_v39  ;;  %v1217_v59 = vadd.f32 %v1185_v47, %v1086_v45  ;;  %v276_v1 = vsel %vm254_vm6, %v229_v51, %v231_v38  ;;  %v626_v31 = vmul.f32 %v6176_v28, %v278_v39 }
  0x57   :  { %v300_v13 = vmul.f32 %v6134_v63, %v276_v1  ;;  %v440_v37 = vsel %vm420_vm7, %v399_v10, %v11043_v50  ;;  %v11257_v47 = vrot.slane %v6113_v33, 1  ;;  %v6369_v48 = vmul.f32 %v6176_v28, %v276_v1  ;;  %v39_v50 = vld [vmem:[%s11020_s0 + $0x60] sm:$0xff] }
  0x58   :  { %v365_v5 = vadd.f32 %v333_v43, %v298_v27  ;;  %v1245_v8 = vpack.c.bf16 %v1217_v59, %v1215_v14  ;;  %v467_v51 = vmul.f32 %v6166_v23, %v440_v37  ;;  %v658_v43 = vadd.f32 %v626_v31, %v6232_v44  ;;  %v41_v44 = vld [vmem:[%s11020_s0 + $0x70] sm:$0xff] }
  0x59   :  { %v442_v58 = vsel %vm420_vm7, %v11257_v47, %v399_v10  ;;  %v367_v45 = vadd.f32 %v335_v16, %v300_v13  ;;  %v6379_v14 = vmul.f32 %v6209_v49, %v440_v37  ;;  %v986_v59 = vmul.f32 %v6225_v26, %v278_v39 }
  0x5a   :  { %v465_v21 = vmul.f32 %v6166_v23, %v442_v58  ;;  %v824_v27 = vmul.f32 %v6209_v49, %v442_v58  ;;  %1470 = vmatmul.bf16.gmra.mxu0 %v1245_v8  ;;  %v988_v47 = vmul.f32 %v6225_v26, %v276_v1  ;;  %v725_v0 = vadd.f32 %v693_v3, %v658_v43 }
  0x5b   :  { %v6386_v55 = vadd.f32 %v467_v51, %v367_v45  ;;  %v854_v16 = vadd.f32 %v6244_v9, %v723_v18  ;;  %v1053_v31 = vmul.f32 %v6230_v24, %v6113_v33  ;;  %1568 = vmatmul.bf16.gmra.mxu2 %v1245_v8  ;;  %v1055_v13 = vmul.f32 %v6230_v24, %v6334_v11 }
  0x5c   :  { %v6376_v10 = vadd.f32 %v465_v21, %v365_v5  ;;  %v1184_v39 = vmul.f32 %v6241_v22, %v442_v58  ;;  %v1186_v1 = vmul.f32 %v6241_v22, %v440_v37  ;;  %vm71_vm2 = vcmp.gt.f32.partialorder %v39_v50, 0.0 }
  0x5d   :  { %v856_v5 = vadd.f32 %v824_v27, %v725_v0  ;;  %v1018_v21 = vadd.f32 %v986_v59, %v854_v16  ;;  %vm73_vm3 = vcmp.gt.f32.partialorder %v41_v44, 0.0  ;;  %v103_v51 = vmul.f32 0.2, %v39_v50 }
  0x5e   :  { %v105_v45 = vmul.f32 0.2, %v41_v44  ;;  %v232_v3 = vrot.slane %v6268_v42, 7  ;;  %v336_v9 = vmul.f32 %v5942_v53, %v6268_v42  ;;  %v659_v33 = vadd.f32 %v6301_v25, %v6309_v6 }
  0x5f   :  { %v1020_v8 = vadd.f32 %v988_v47, %v856_v5  ;;  %v1085_v43 = vadd.f32 %v1053_v31, %v1018_v21  ;;  %v6400_v18 = vsel %vm71_vm2, %v39_v50, %v103_v51  ;;  %v694_v37 = vmul.f32 %v6014_v20, %v6266_v61 }
  0x60   :  { %v6404_v58 = vsel %vm73_vm3, %v41_v44, %v105_v45  ;;  %v6407_v27 = vrot.slane %v6400_v18, 7  ;;  %v273_v59 = vsel %vm254_vm6, %v230_v30, %v232_v3  ;;  %v338_v25 = vmul.f32 %v5942_v53, %v6400_v18 }
  0x61   :  { %v1087_v6 = vadd.f32 %v1055_v13, %v1020_v8  ;;  %v1216_v47 = vadd.f32 %v1184_v39, %v1085_v43  ;;  %v301_v50 = vmul.f32 %v5937_v52, %v273_v59  ;;  %v402_v0 = vrot.slane %v6400_v18, 1 }
  0x62   :  { %v271_v44 = vsel %vm254_vm6, %v232_v3, %v6407_v27  ;;  %v629_v16 = vmul.f32 %v6009_v19, %v273_v59  ;;  %v696_v61 = vmul.f32 %v6014_v20, %v6268_v42  ;;  %v726_v31 = vadd.f32 %v694_v37, %v659_v33  ;;  %v40_v3 = vld [vmem:[%s11020_s0 + $0x68] sm:$0xff] }
  0x63   :  { %v1218_v30 = vadd.f32 %v1186_v1, %v1087_v6  ;;  %v303_v5 = vmul.f32 %v5937_v52, %v271_v44  ;;  %v368_v21 = vadd.f32 %v336_v9, %v301_v50  ;;  %v435_v13 = vsel %vm420_vm7, %v402_v0, %v5944_v54 }
  0x64   :  { %v437_v39 = vsel %vm420_vm7, %v400_v32, %v402_v0  ;;  %v6432_v51 = vmul.f32 %v5999_v15, %v435_v13  ;;  %v6435_v45 = vmul.f32 %v6009_v19, %v271_v44  ;;  %v661_v1 = vadd.f32 %v629_v16, %v6312_v4  ;;  %v42_v4 = vld [vmem:[%s11020_s0 + $0x78] sm:$0xff] }
  0x65   :  { %v1246_v9 = vpack.c.bf16 %v1218_v30, %v1216_v47  ;;  %v6441_v33 = vadd.f32 %v338_v25, %v303_v5  ;;  %v468_v8 = vmul.f32 %v5999_v15, %v437_v39  ;;  %v6445_v43 = vrot.slane %v6404_v58, 1 }
  0x66   :  { %v728_v32 = vadd.f32 %v696_v61, %v661_v1  ;;  %v827_v37 = vmul.f32 %v6038_v29, %v437_v39  ;;  %v857_v6 = vadd.f32 %v6315_v17, %v726_v31  ;;  %v989_v50 = vmul.f32 %v6051_v35, %v273_v59 }
  0x67   :  { %1519 = vmatmul.bf16.gmra.mxu1 %v1246_v9  ;;  %1617 = vmatmul.bf16.gmra.mxu3 %v1246_v9  ;;  %v6453_v25 = vadd.f32 %v468_v8, %v368_v21  ;;  %v798_v47 = vsel %vm420_vm7, %v402_v0, %v6445_v43  ;;  %v991_v16 = vmul.f32 %v6051_v35, %v271_v44  ;;  %vm72_vm4 = vcmp.gt.f32.partialorder %v40_v3, 0.0 }
  0x68   :  { %v6460_v61 = vmul.f32 %v6038_v29, %v798_v47  ;;  %v859_v17 = vadd.f32 %v827_v37, %v728_v32  ;;  %v1021_v59 = vadd.f32 %v989_v50, %v857_v6  ;;  %v1056_v31 = vmul.f32 %v6060_v41, %v6268_v42 }
  0x69   :  { %v1058_v30 = vmul.f32 %v6060_v41, %v6400_v18  ;;  %v1187_v5 = vmul.f32 %v6070_v46, %v437_v39  ;;  %v1189_v21 = vmul.f32 %v6070_v46, %v798_v47  ;;  %vm74_vm5 = vcmp.gt.f32.partialorder %v42_v4, 0.0 }
  0x6a   :  { %v1023_v0 = vadd.f32 %v991_v16, %v859_v17  ;;  %v1088_v13 = vadd.f32 %v1056_v31, %v1021_v59  ;;  %v104_v44 = vmul.f32 0.2, %v40_v3  ;;  %v106_v1 = vmul.f32 0.2, %v42_v4 }
  0x6b   :  { %v233_v9 = vrot.slane %v6336_v12, 7  ;;  %v337_v8 = vmul.f32 %v6118_v36, %v6336_v12  ;;  %v660_v42 = vadd.f32 %v6369_v48, %v6376_v10  ;;  %v695_v32 = vmul.f32 %v6197_v7, %v6334_v11 }
  0x6c   :  { %v1090_v37 = vadd.f32 %v1058_v30, %v1023_v0  ;;  %v1219_v39 = vadd.f32 %v1187_v5, %v1088_v13  ;;  %v6476_v6 = vsel %vm72_vm4, %v40_v3, %v104_v44  ;;  %v6478_v50 = vsel %vm74_vm5, %v42_v4, %v106_v1 }
  0x6d   :  { %v6481_v47 = vrot.slane %v6476_v6, 7  ;;  %v274_v16 = vsel %vm254_vm6, %v231_v38, %v233_v9  ;;  %v339_v48 = vmul.f32 %v6118_v36, %v6476_v6  ;;  %v403_v10 = vrot.slane %v6476_v6, 1 }
  0x6e   :  { %v1221_v17 = vadd.f32 %v1189_v21, %v1090_v37  ;;  %v302_v59 = vmul.f32 %v6134_v63, %v274_v16  ;;  %v630_v3 = vmul.f32 %v6176_v28, %v274_v16  ;;  %v697_v4 = vmul.f32 %v6197_v7, %v6336_v12 }
  0x6f   :  { %v272_v11 = vsel %vm254_vm6, %v233_v9, %v6481_v47  ;;  %v436_v38 = vsel %vm420_vm7, %v403_v10, %v5944_v54  ;;  %v11258_v31 = vrot.slane %v6336_v12, 1  ;;  %v727_v5 = vadd.f32 %v695_v32, %v660_v42 }
  0x70   :  { %v1247_v21 = vpack.c.bf16 %v1221_v17, %v1219_v39  ;;  %v304_v0 = vmul.f32 %v6134_v63, %v272_v11  ;;  %v369_v13 = vadd.f32 %v337_v8, %v302_v59  ;;  %v6507_v1 = vmul.f32 %v6166_v23, %v436_v38  ;;  %v43_v39 = vld [vmem:[%s11020_s0 + $0x80] sm:$0xff] }
  0x71   :  { %v438_v30 = vsel %vm420_vm7, %v11258_v31, %v403_v10  ;;  %v6510_v9 = vmul.f32 %v6176_v28, %v272_v11  ;;  %v662_v37 = vadd.f32 %v630_v3, %v6386_v55  ;;  %v6514_v57 = vrot.slane %v6478_v50, 1  ;;  %v45_v3 = vld [vmem:[%s11020_s0 + $0x90] sm:$0xff] }
  0x72   :  { %v469_v44 = vmul.f32 %v6166_v23, %v438_v30  ;;  %1475 = vmatmul.bf16.gmra.mxu0 %v1247_v21  ;;  %v6516_v31 = vadd.f32 %v339_v48, %v304_v0  ;;  %v828_v8 = vmul.f32 %v6209_v49, %v438_v30  ;;  %v858_v32 = vadd.f32 %v6379_v14, %v727_v5 }
  0x73   :  { %v729_v17 = vadd.f32 %v697_v4, %v662_v37  ;;  %v799_v55 = vsel %vm420_vm7, %v403_v10, %v6514_v57  ;;  %v990_v59 = vmul.f32 %v6225_v26, %v274_v16  ;;  %v992_v48 = vmul.f32 %v6225_v26, %v272_v11  ;;  %1573 = vmatmul.bf16.gmra.mxu2 %v1247_v21 }
  0x74   :  { %v6518_v42 = vadd.f32 %v469_v44, %v369_v13  ;;  %v6534_v14 = vmul.f32 %v6209_v49, %v799_v55  ;;  %v1057_v38 = vmul.f32 %v6230_v24, %v6336_v12  ;;  %v1059_v4 = vmul.f32 %v6230_v24, %v6476_v6 }
  0x75   :  { %v1188_v10 = vmul.f32 %v6241_v22, %v438_v30  ;;  %v860_v5 = vadd.f32 %v828_v8, %v729_v17  ;;  %v1022_v16 = vadd.f32 %v990_v59, %v858_v32  ;;  %v1190_v11 = vmul.f32 %v6241_v22, %v799_v55 }
  0x76   :  { %vm75_vm8 = vcmp.gt.f32.partialorder %v43_v39, 0.0  ;;  %vm77_vm9 = vcmp.gt.f32.partialorder %v45_v3, 0.0  ;;  %v107_v21 = vmul.f32 0.2, %v43_v39  ;;  %v109_v0 = vmul.f32 0.2, %v45_v3 }
  0x77   :  { %v502_v13 = vadd.f32 %v6432_v51, %v6441_v33  ;;  %v1024_v44 = vadd.f32 %v992_v48, %v860_v5  ;;  %v1089_v37 = vadd.f32 %v1057_v38, %v1022_v16  ;;  %v6545_v12 = vrot.slane %v6404_v58, 7 }
  0x78   :  { %v663_v60 = vadd.f32 %v6435_v45, %v6453_v25  ;;  %v6549_v30 = vsel %vm75_vm8, %v43_v39, %v107_v21  ;;  %v6551_v8 = vsel %vm77_vm9, %v45_v3, %v109_v0  ;;  %v698_v32 = vmul.f32 %v6014_v20, %v6400_v18 }
  0x79   :  { %v700_v17 = vmul.f32 %v6014_v20, %v6404_v58  ;;  %v1091_v55 = vadd.f32 %v1059_v4, %v1024_v44  ;;  %v1220_v51 = vadd.f32 %v1188_v10, %v1089_v37  ;;  %v6558_v33 = vrot.slane %v6549_v30, 1 }
  0x7a   :  { %v6561_v59 = vrot.slane %v6551_v8, 1  ;;  %v600_v45 = vsel %vm254_vm6, %v6407_v27, %v6545_v12  ;;  %v730_v25 = vadd.f32 %v698_v32, %v663_v60  ;;  %v962_v18 = vsel %vm254_vm6, %v6545_v12, %v5921_v40  ;;  %v44_v60 = vld [vmem:[%s11020_s0 + $0x88] sm:$0xff] }
  0x7b   :  { %v1060_v39 = vmul.f32 %v6060_v41, %v6404_v58  ;;  %v1222_v48 = vadd.f32 %v1190_v11, %v1091_v55  ;;  %v633_v3 = vmul.f32 %v6009_v19, %v600_v45  ;;  %v796_v38 = vsel %vm420_vm7, %v6445_v43, %v6558_v33  ;;  %v46_v11 = vld [vmem:[%s11020_s0 + $0x98] sm:$0xff] }
  0x7c   :  { %v993_v4 = vmul.f32 %v6051_v35, %v600_v45  ;;  %v831_v10 = vmul.f32 %v6038_v29, %v796_v38  ;;  %v861_v5 = vadd.f32 %v6460_v61, %v730_v25  ;;  %v995_v58 = vmul.f32 %v6051_v35, %v962_v18 }
  0x7d   :  { %v6586_v16 = vmul.f32 0.0, %v6060_v41  ;;  %v1248_v21 = vpack.c.bf16 %v1222_v48, %v1220_v51  ;;  %v665_v0 = vadd.f32 %v633_v3, %v502_v13  ;;  %v1158_v44 = vsel %vm420_vm7, %v5944_v54, %v6561_v59 }
  0x7e   :  { %v1160_v61 = vsel %vm420_vm7, %v6445_v43, %v5944_v54  ;;  %v1025_v37 = vadd.f32 %v993_v4, %v861_v5  ;;  %v1193_v55 = vmul.f32 %v6070_v46, %v1158_v44  ;;  %vm76_vm10 = vcmp.gt.f32.partialorder %v44_v60, 0.0 }
  0x7f   :  { %11259 = vst [vmem:[#allocation19_spill] sm:$0xff] %v6586_v16  ;;  %v1191_v32 = vmul.f32 %v6070_v46, %v1160_v61  ;;  %1524 = vmatmul.bf16.gmra.mxu1 %v1248_v21  ;;  %1622 = vmatmul.bf16.gmra.mxu3 %v1248_v21  ;;  %v732_v51 = vadd.f32 %v700_v17, %v665_v0  ;;  %vm78_vm11 = vcmp.gt.f32.partialorder %v46_v11, 0.0  ;;  %v108_v13 = vmul.f32 0.2, %v44_v60 }
  0x80   :  { %v110_v45 = vmul.f32 0.2, %v46_v11  ;;  %v1092_v25 = vadd.f32 %v1060_v39, %v1025_v37  ;;  %v503_v18 = vadd.f32 %v6507_v1, %v6516_v31  ;;  %v6604_v48 = vrot.slane %v6478_v50, 7 }
  0x81   :  { %v664_v43 = vadd.f32 %v6510_v9, %v6518_v42  ;;  %v863_v3 = vadd.f32 %v831_v10, %v732_v51  ;;  %v6608_v38 = vsel %vm76_vm10, %v44_v60, %v108_v13  ;;  %v699_v17 = vmul.f32 %v6197_v7, %v6476_v6  ;;  %v49_v51 = vld [vmem:[%s11020_s0 + $0xb0] sm:$0xff] }
  0x82   :  { %v6610_v4 = vsel %vm78_vm11, %v46_v11, %v110_v45  ;;  %v1223_v5 = vadd.f32 %v1191_v32, %v1092_v25  ;;  %v6615_v39 = vrot.slane %v6608_v38, 1  ;;  %v601_v9 = vsel %vm254_vm6, %v6481_v47, %v6604_v48  ;;  %v47_v32 = vld [vmem:[%s11020_s0 + $0xa0] sm:$0xff] }
  0x83   :  { %v6618_v1 = vrot.slane %v6610_v4, 1  ;;  %v1027_v31 = vadd.f32 %v995_v58, %v863_v3  ;;  %v634_v42 = vmul.f32 %v6176_v28, %v601_v9  ;;  %v701_v60 = vmul.f32 %v6197_v7, %v6478_v50 }
  0x84   :  { %v731_v10 = vadd.f32 %v699_v17, %v664_v43  ;;  %v797_v6 = vsel %vm420_vm7, %v6514_v57, %v6615_v39  ;;  %v963_v11 = vsel %vm254_vm6, %v6604_v48, %v5921_v40  ;;  %v994_v21 = vmul.f32 %v6225_v26, %v601_v9 }
  0x85   :  { %v1061_v58 = vmul.f32 %v6230_v24, %v6478_v50  ;;  %v1094_v0 = vadd.f32 %v6586_v16, %v1027_v31  ;;  %v666_v44 = vadd.f32 %v634_v42, %v503_v18  ;;  %v832_v61 = vmul.f32 %v6209_v49, %v797_v6 }
  0x86   :  { %v862_v37 = vadd.f32 %v6534_v14, %v731_v10  ;;  %v996_v13 = vmul.f32 %v6225_v26, %v963_v11  ;;  %v6649_v45 = vmul.f32 0.0, %v6230_v24  ;;  %v1159_v50 = vsel %vm420_vm7, %v5944_v54, %v6618_v1 }
  0x87   :  { %v1161_v14 = vsel %vm420_vm7, %v6514_v57, %v5944_v54  ;;  %v1225_v25 = vadd.f32 %v1193_v55, %v1094_v0  ;;  %v733_v18 = vadd.f32 %v701_v60, %v666_v44  ;;  %v1194_v17 = vmul.f32 %v6241_v22, %v1159_v50 }
  0x88   :  { %v1026_v43 = vadd.f32 %v994_v21, %v862_v37  ;;  %v1192_v3 = vmul.f32 %v6241_v22, %v1161_v14  ;;  %vm79_vm12 = vcmp.gt.f32.partialorder %v47_v32, 0.0  ;;  %vm81_vm13 = vcmp.gt.f32.partialorder %v49_v51, 0.0 }
  0x89   :  { %v111_v9 = vmul.f32 0.2, %v47_v32  ;;  %v1249_v31 = vpack.c.bf16 %v1225_v25, %v1223_v5  ;;  %v864_v42 = vadd.f32 %v832_v61, %v733_v18  ;;  %v113_v6 = vmul.f32 0.2, %v49_v51 }
  0x8a   :  { %v1093_v10 = vadd.f32 %v1061_v58, %v1026_v43  ;;  %v238_v16 = vrot.slane %v6549_v30, 7  ;;  %v240_v57 = vrot.slane %v6551_v8, 7  ;;  %v269_v55 = vsel %vm254_vm6, %v6407_v27, %v5921_v40 }
  0x8b   :  { %v6661_v11 = vsel %vm79_vm12, %v47_v32, %v111_v9  ;;  %1480 = vmatmul.bf16.gmra.mxu0 %v1249_v31  ;;  %v1028_v60 = vadd.f32 %v996_v13, %v864_v42  ;;  %1578 = vmatmul.bf16.gmra.mxu2 %v1249_v31  ;;  %v6669_v0 = vsel %vm81_vm13, %v49_v51, %v113_v6 }
  0x8c   :  { %v1224_v21 = vadd.f32 %v1192_v3, %v1093_v10  ;;  %v242_v5 = vrot.slane %v6661_v11, 7  ;;  %v265_v58 = vsel %vm254_vm6, %v238_v16, %v240_v57  ;;  %v267_v44 = vsel %vm254_vm6, %v5921_v40, %v238_v16 }
  0x8d   :  { %v305_v61 = vmul.f32 %v5937_v52, %v269_v55  ;;  %v342_v27 = vmul.f32 %v5942_v53, %v6549_v30  ;;  %v1095_v37 = vadd.f32 %v6649_v45, %v1028_v60  ;;  %v307_v51 = vmul.f32 %v5937_v52, %v267_v44 }
  0x8e   :  { %v263_v32 = vsel %vm254_vm6, %v240_v57, %v242_v5  ;;  %v309_v13 = vmul.f32 %v5937_v52, %v265_v58  ;;  %v344_v14 = vmul.f32 %v5942_v53, %v6551_v8  ;;  %v346_v25 = vmul.f32 %v5942_v53, %v6661_v11 }
  0x8f   :  { %v311_v50 = vmul.f32 %v5937_v52, %v263_v32  ;;  %v372_v18 = vadd.f32 %v5966_v62, %v305_v61  ;;  %v1226_v43 = vadd.f32 %v1194_v17, %v1095_v37  ;;  %v374_v3 = vadd.f32 %v342_v27, %v307_v51  ;;  %v48_v62 = vld [vmem:[%s11020_s0 + $0xa8] sm:$0xff] }
  0x90   :  { %v410_v9 = vrot.slane %v6661_v11, 1  ;;  %v412_v31 = vrot.slane %v6669_v0, 1  ;;  %v376_v42 = vadd.f32 %v344_v14, %v309_v13  ;;  %v431_v52 = vsel %vm420_vm7, %v6558_v33, %v6561_v59 }
  0x91   :  { %v378_v10 = vadd.f32 %v346_v25, %v311_v50  ;;  %v433_v53 = vsel %vm420_vm7, %v5944_v54, %v6558_v33  ;;  %v1250_v17 = vpack.c.bf16 %v1226_v43, %v1224_v21  ;;  %v474_v44 = vmul.f32 %v5999_v15, %v431_v52 }
  0x92   :  { %v427_v6 = vsel %vm420_vm7, %v410_v9, %v412_v31  ;;  %v429_v55 = vsel %vm420_vm7, %v6561_v59, %v410_v9  ;;  %v472_v60 = vmul.f32 %v5999_v15, %v433_v53  ;;  %v598_v21 = vsel %vm254_vm6, %v6545_v12, %v238_v16 }
  0x93   :  { %v476_v33 = vmul.f32 %v5999_v15, %v429_v55  ;;  %v478_v61 = vmul.f32 %v5999_v15, %v427_v6  ;;  %1529 = vmatmul.bf16.gmra.mxu1 %v1250_v17  ;;  %1627 = vmatmul.bf16.gmra.mxu3 %v1250_v17  ;;  %v635_v37 = vmul.f32 %v6009_v19, %v598_v21  ;;  %vm80_vm14 = vcmp.gt.f32.partialorder %v48_v62, 0.0 }
  0x94   :  { %v504_v27 = vadd.f32 %v472_v60, %v372_v18  ;;  %v637_v51 = vmul.f32 %v6009_v19, %v265_v58  ;;  %v506_v59 = vadd.f32 %v474_v44, %v374_v3  ;;  %v6727_v14 = vmul.f32 %v6009_v19, %v263_v32  ;;  %v50_v3 = vld [vmem:[%s11020_s0 + $0xb8] sm:$0xff] }
  0x95   :  { %v6722_v13 = vadd.f32 %v476_v33, %v376_v42  ;;  %v6724_v50 = vadd.f32 %v478_v61, %v378_v10  ;;  %v702_v12 = vmul.f32 %v6014_v20, %v6549_v30  ;;  %v704_v16 = vmul.f32 %v6014_v20, %v6551_v8 }
  0x96   :  { %v667_v15 = vadd.f32 %v635_v37, %v504_v27  ;;  %v833_v25 = vmul.f32 %v6038_v29, %v431_v52  ;;  %v669_v18 = vadd.f32 %v637_v51, %v506_v59  ;;  %v835_v58 = vmul.f32 %v6038_v29, %v429_v55 }
  0x97   :  { %v6736_v43 = vmul.f32 %v6038_v29, %v427_v6  ;;  %v960_v19 = vsel %vm254_vm6, %v5921_v40, %v240_v57  ;;  %v999_v20 = vmul.f32 %v6051_v35, %v263_v32  ;;  %v1064_v42 = vmul.f32 %v6060_v41, %v6551_v8 }
  0x98   :  { %v734_v30 = vadd.f32 %v702_v12, %v667_v15  ;;  %v997_v9 = vmul.f32 %v6051_v35, %v960_v19  ;;  %v736_v10 = vadd.f32 %v704_v16, %v669_v18  ;;  %v1066_v29 = vmul.f32 %v6060_v41, %v6661_v11 }
  0x99   :  { %v1195_v52 = vmul.f32 %v6070_v46, %v429_v55  ;;  %v1197_v57 = vmul.f32 %v6070_v46, %v427_v6  ;;  %vm82_vm15 = vcmp.gt.f32.partialorder %v50_v3, 0.0  ;;  %v112_v17 = vmul.f32 0.2, %v48_v62 }
  0x9a   :  { %v865_v53 = vadd.f32 %v833_v25, %v734_v30  ;;  %v114_v60 = vmul.f32 0.2, %v50_v3  ;;  %v867_v44 = vadd.f32 %v835_v58, %v736_v10  ;;  %v239_v33 = vrot.slane %v6608_v38, 7 }
  0x9b   :  { %v241_v35 = vrot.slane %v6610_v4, 7  ;;  %v270_v8 = vsel %vm254_vm6, %v6481_v47, %v5921_v40  ;;  %v6759_v41 = vsel %vm80_vm14, %v48_v62, %v112_v17  ;;  %v343_v51 = vmul.f32 %v6118_v36, %v6608_v38 }
  0x9c   :  { %v1029_v32 = vadd.f32 %v997_v9, %v865_v53  ;;  %v6761_v55 = vsel %vm82_vm15, %v50_v3, %v114_v60  ;;  %v306_v46 = vmul.f32 %v6134_v63, %v270_v8  ;;  %v1031_v6 = vadd.f32 %v999_v20, %v867_v44 }
  0x9d   :  { %v243_v61 = vrot.slane %v6759_v41, 7  ;;  %v266_v21 = vsel %vm254_vm6, %v239_v33, %v241_v35  ;;  %v268_v27 = vsel %vm254_vm6, %v5921_v40, %v239_v33  ;;  %v345_v12 = vmul.f32 %v6118_v36, %v6610_v4 }
  0x9e   :  { %v1096_v37 = vadd.f32 %v1064_v42, %v1029_v32  ;;  %v308_v47 = vmul.f32 %v6134_v63, %v268_v27  ;;  %v310_v62 = vmul.f32 %v6134_v63, %v266_v21  ;;  %v1098_v59 = vadd.f32 %v1066_v29, %v1031_v6 }
  0x9f   :  { %v264_v15 = vsel %vm254_vm6, %v241_v35, %v243_v61  ;;  %v347_v16 = vmul.f32 %v6118_v36, %v6759_v41  ;;  %v373_v58 = vadd.f32 %v6140_v2, %v306_v46  ;;  %v411_v9 = vrot.slane %v6759_v41, 1 }
  0xa0   :  { %v1227_v25 = vadd.f32 %v1195_v52, %v1096_v37  ;;  %v312_v18 = vmul.f32 %v6134_v63, %v264_v15  ;;  %v375_v19 = vadd.f32 %v343_v51, %v308_v47  ;;  %v1229_v3 = vadd.f32 %v1197_v57, %v1098_v59  ;;  %v53_v37 = vld [vmem:[%s11020_s0 + $0xd0] sm:$0xff] }
  0xa1   :  { %v377_v30 = vadd.f32 %v345_v12, %v310_v62  ;;  %v413_v20 = vrot.slane %v6761_v55, 1  ;;  %v432_v10 = vsel %vm420_vm7, %v6615_v39, %v6618_v1  ;;  %v434_v36 = vsel %vm420_vm7, %v5944_v54, %v6615_v39 }
  0xa2   :  { %v379_v42 = vadd.f32 %v347_v16, %v312_v18  ;;  %v599_v63 = vsel %vm254_vm6, %v6604_v48, %v239_v33  ;;  %v1251_v2 = vpack.c.bf16 %v1229_v3, %v1227_v25  ;;  %v430_v52 = vsel %vm420_vm7, %v6618_v1, %v411_v9 }
  0xa3   :  { %v428_v29 = vsel %vm420_vm7, %v411_v9, %v413_v20  ;;  %v473_v57 = vmul.f32 %v6166_v23, %v434_v36  ;;  %v475_v53 = vmul.f32 %v6166_v23, %v432_v10  ;;  %v477_v39 = vmul.f32 %v6166_v23, %v430_v52 }
  0xa4   :  { %v479_v17 = vmul.f32 %v6166_v23, %v428_v29  ;;  %v636_v48 = vmul.f32 %v6176_v28, %v599_v63  ;;  %1485 = vmatmul.bf16.gmra.mxu0 %v1251_v2  ;;  %v638_v44 = vmul.f32 %v6176_v28, %v266_v21  ;;  %v6811_v33 = vmul.f32 %v6176_v28, %v264_v15 }
  0xa5   :  { %v505_v60 = vadd.f32 %v473_v57, %v373_v58  ;;  %v703_v1 = vmul.f32 %v6197_v7, %v6608_v38  ;;  %v507_v8 = vadd.f32 %v475_v53, %v375_v19  ;;  %v6815_v32 = vadd.f32 %v477_v39, %v377_v30  ;;  %1583 = vmatmul.bf16.gmra.mxu2 %v1251_v2  ;;  %v51_v38 = vld [vmem:[%s11020_s0 + $0xc0] sm:$0xff] }
  0xa6   :  { %v6817_v46 = vadd.f32 %v479_v17, %v379_v42  ;;  %v705_v23 = vmul.f32 %v6197_v7, %v6610_v4  ;;  %v834_v27 = vmul.f32 %v6209_v49, %v432_v10  ;;  %v836_v21 = vmul.f32 %v6209_v49, %v430_v52 }
  0xa7   :  { %v668_v6 = vadd.f32 %v636_v48, %v505_v60  ;;  %v6824_v28 = vmul.f32 %v6209_v49, %v428_v29  ;;  %v670_v47 = vadd.f32 %v638_v44, %v507_v8  ;;  %v961_v7 = vsel %vm254_vm6, %v5921_v40, %v241_v35 }
  0xa8   :  { %v1000_v62 = vmul.f32 %v6225_v26, %v264_v15  ;;  %v1065_v51 = vmul.f32 %v6230_v24, %v6610_v4  ;;  %v998_v59 = vmul.f32 %v6225_v26, %v961_v7  ;;  %v1067_v12 = vmul.f32 %v6230_v24, %v6759_v41  ;;  %v6847_v26 = vld [vmem:[%s11021_s1 + $0x10] sm:$0xff] }
  0xa9   :  { %v735_v49 = vadd.f32 %v703_v1, %v668_v6  ;;  %v1196_v16 = vmul.f32 %v6241_v22, %v430_v52  ;;  %v737_v25 = vadd.f32 %v705_v23, %v670_v47  ;;  %v1198_v18 = vmul.f32 %v6241_v22, %v428_v29  ;;  %v6856_v22 = vld [vmem:[%s11021_s1 + $0x40] sm:$0xff] }
  0xaa   :  { %vm83_vm0 = vcmp.gt.f32.partialorder %v51_v38, 0.0  ;;  %vm85_vm1 = vcmp.gt.f32.partialorder %v53_v37, 0.0  ;;  %v115_v35 = vmul.f32 0.2, %v51_v38  ;;  %v117_v19 = vmul.f32 0.2, %v53_v37 }
  0xab   :  { %v866_v58 = vadd.f32 %v834_v27, %v735_v49  ;;  %v244_v15 = vrot.slane %v6669_v0, 7  ;;  %v868_v3 = vadd.f32 %v836_v21, %v737_v25  ;;  %v348_v24 = vmul.f32 %v6847_v26, %v6669_v0  ;;  %v6903_v27 = vld [vmem:[%s11021_s1 + $0x20] sm:$0xff]  ;;  %v52_v49 = vld [vmem:[%s11020_s0 + $0xc8] sm:$0xff] }
  0xac   :  { %v671_v4 = vadd.f32 %v6727_v14, %v6722_v13  ;;  %v706_v30 = vmul.f32 %v6856_v22, %v6661_v11  ;;  %v6860_v42 = vsel %vm83_vm0, %v51_v38, %v115_v35  ;;  %v6862_v10 = vsel %vm85_vm1, %v53_v37, %v117_v19  ;;  %v6872_v14 = vld [vmem:[%s11021_s1] sm:$0xff] }
  0xad   :  { %v1030_v9 = vadd.f32 %v998_v59, %v866_v58  ;;  %v261_v36 = vsel %vm254_vm6, %v242_v5, %v244_v15  ;;  %v1032_v63 = vadd.f32 %v1000_v62, %v868_v3  ;;  %v246_v13 = vrot.slane %v6860_v42, 7  ;;  %v6882_v5 = vld [vmem:[%s11021_s1 + $0x30] sm:$0xff] }
  0xae   :  { %v313_v2 = vmul.f32 %v6872_v14, %v261_v36  ;;  %v350_v29 = vmul.f32 %v6847_v26, %v6860_v42  ;;  %v414_v57 = vrot.slane %v6860_v42, 1  ;;  %v416_v11 = vrot.slane %v6862_v10, 1  ;;  %v6941_v3 = vld [vmem:[%s11021_s1 + $0x70] sm:$0xff] }
  0xaf   :  { %v1097_v52 = vadd.f32 %v1065_v51, %v1030_v9  ;;  %v641_v53 = vmul.f32 %v6882_v5, %v261_v36  ;;  %v1099_v39 = vadd.f32 %v1067_v12, %v1032_v63  ;;  %v259_v17 = vsel %vm254_vm6, %v244_v15, %v246_v13 }
  0xb0   :  { %v380_v48 = vadd.f32 %v348_v24, %v313_v2  ;;  %v708_v60 = vmul.f32 %v6856_v22, %v6669_v0  ;;  %v315_v1 = vmul.f32 %v6872_v14, %v259_v17  ;;  %v423_v8 = vsel %vm420_vm7, %v414_v57, %v416_v11 }
  0xb1   :  { %v1228_v44 = vadd.f32 %v1196_v16, %v1097_v52  ;;  %v425_v23 = vsel %vm420_vm7, %v412_v31, %v414_v57  ;;  %v1230_v6 = vadd.f32 %v1198_v18, %v1099_v39  ;;  %v482_v38 = vmul.f32 %v6903_v27, %v423_v8  ;;  %v6914_v31 = vld [vmem:[%s11021_s1 + $0x50] sm:$0xff]  ;;  %v54_v18 = vld [vmem:[%s11020_s0 + $0xd8] sm:$0xff] }
  0xb2   :  { %v480_v21 = vmul.f32 %v6903_v27, %v425_v23  ;;  %v6908_v37 = vmul.f32 %v6882_v5, %v259_v17  ;;  %v382_v47 = vadd.f32 %v350_v29, %v315_v1  ;;  %v673_v7 = vadd.f32 %v641_v53, %v6724_v50  ;;  %v6928_v50 = vld [vmem:[%s11021_s1 + $0x60] sm:$0xff]  ;;  %v6958_v52 = vld [vmem:[%s11021_s1 + $0x18] sm:$0xff] }
  0xb3   :  { %v738_v62 = vadd.f32 %v706_v30, %v671_v4  ;;  %v839_v51 = vmul.f32 %v6914_v31, %v425_v23  ;;  %v1252_v59 = vpack.c.bf16 %v1230_v6, %v1228_v44  ;;  %v6923_v16 = vmul.f32 %v6914_v31, %v423_v8  ;;  %v6950_v30 = vld [vmem:[%s11021_s1 + $0x80] sm:$0xff] }
  0xb4   :  { %v6920_v12 = vadd.f32 %v480_v21, %v380_v48  ;;  %v1001_v25 = vmul.f32 %v6928_v50, %v261_v36  ;;  %v6934_v58 = vadd.f32 %v482_v38, %v382_v47  ;;  %v740_v35 = vadd.f32 %v708_v60, %v673_v7  ;;  %v6967_v48 = vld [vmem:[%s11021_s1 + $0x48] sm:$0xff]  ;;  %v6995_v7 = vld [vmem:[%s11021_s1 + $0x38] sm:$0xff] }
  0xb5   :  { %v869_v19 = vadd.f32 %v6736_v43, %v738_v62  ;;  %v1003_v15 = vmul.f32 %v6928_v50, %v259_v17  ;;  %1534 = vmatmul.bf16.gmra.mxu1 %v1252_v59  ;;  %1632 = vmatmul.bf16.gmra.mxu3 %v1252_v59  ;;  %v1068_v24 = vmul.f32 %v6941_v3, %v6669_v0  ;;  %vm84_vm2 = vcmp.gt.f32.partialorder %v52_v49, 0.0  ;;  %v6985_v21 = vld [vmem:[%s11021_s1 + $0x8] sm:$0xff] }
  0xb6   :  { %v1070_v4 = vmul.f32 %v6941_v3, %v6860_v42  ;;  %v1199_v43 = vmul.f32 %v6950_v30, %v425_v23  ;;  %v871_v9 = vadd.f32 %v839_v51, %v740_v35  ;;  %v1201_v63 = vmul.f32 %v6950_v30, %v423_v8 }
  0xb7   :  { %v1033_v36 = vadd.f32 %v1001_v25, %v869_v19  ;;  %vm86_vm3 = vcmp.gt.f32.partialorder %v54_v18, 0.0  ;;  %v116_v2 = vmul.f32 0.2, %v52_v49  ;;  %v118_v29 = vmul.f32 0.2, %v54_v18 }
  0xb8   :  { %v245_v0 = vrot.slane %v6761_v55, 7  ;;  %v349_v57 = vmul.f32 %v6958_v52, %v6761_v55  ;;  %v1035_v53 = vadd.f32 %v1003_v15, %v871_v9  ;;  %v672_v17 = vadd.f32 %v6811_v33, %v6815_v32 }
  0xb9   :  { %v1100_v39 = vadd.f32 %v1068_v24, %v1033_v36  ;;  %v707_v60 = vmul.f32 %v6967_v48, %v6759_v41  ;;  %v6971_v44 = vsel %vm84_vm2, %v52_v49, %v116_v2  ;;  %v6973_v1 = vsel %vm86_vm3, %v54_v18, %v118_v29 }
  0xba   :  { %v262_v8 = vsel %vm254_vm6, %v243_v61, %v245_v0  ;;  %v709_v33 = vmul.f32 %v6967_v48, %v6761_v55  ;;  %v1102_v32 = vadd.f32 %v1070_v4, %v1035_v53  ;;  %v247_v6 = vrot.slane %v6971_v44, 7  ;;  %v7017_v4 = vld [vmem:[%s11021_s1 + $0x28] sm:$0xff] }
  0xbb   :  { %v1231_v23 = vadd.f32 %v1199_v43, %v1100_v39  ;;  %v314_v38 = vmul.f32 %v6985_v21, %v262_v8  ;;  %v351_v41 = vmul.f32 %v6958_v52, %v6971_v44  ;;  %v415_v47 = vrot.slane %v6971_v44, 1 }
  0xbc   :  { %v417_v61 = vrot.slane %v6973_v1, 1  ;;  %v642_v62 = vmul.f32 %v6995_v7, %v262_v8  ;;  %v1233_v51 = vadd.f32 %v1201_v63, %v1102_v32  ;;  %v260_v49 = vsel %vm254_vm6, %v245_v0, %v247_v6  ;;  %v7046_v32 = vld [vmem:[%s11021_s1 + $0x78] sm:$0xff] }
  0xbd   :  { %v381_v59 = vadd.f32 %v349_v57, %v314_v38  ;;  %v739_v25 = vadd.f32 %v707_v60, %v672_v17  ;;  %v316_v18 = vmul.f32 %v6985_v21, %v260_v49  ;;  %v426_v19 = vsel %vm420_vm7, %v413_v20, %v415_v47  ;;  %v7025_v20 = vld [vmem:[%s11021_s1 + $0x58] sm:$0xff] }
  0xbe   :  { %v424_v35 = vsel %vm420_vm7, %v415_v47, %v417_v61  ;;  %v7012_v15 = vmul.f32 %v6995_v7, %v260_v49  ;;  %v1253_v24 = vpack.c.bf16 %v1233_v51, %v1231_v23  ;;  %v481_v43 = vmul.f32 %v7017_v4, %v426_v19  ;;  %v7055_v23 = vld [vmem:[%s11021_s1 + $0x88] sm:$0xff] }
  0xbf   :  { %v483_v9 = vmul.f32 %v7017_v4, %v424_v35  ;;  %v674_v36 = vadd.f32 %v642_v62, %v6817_v46  ;;  %v383_v63 = vadd.f32 %v351_v41, %v316_v18  ;;  %v840_v2 = vmul.f32 %v7025_v20, %v426_v19  ;;  %v7037_v46 = vld [vmem:[%s11021_s1 + $0x68] sm:$0xff] }
  0xc0   :  { %v7029_v29 = vmul.f32 %v7025_v20, %v424_v35  ;;  %v870_v0 = vadd.f32 %v6824_v28, %v739_v25  ;;  %1490 = vmatmul.bf16.gmra.mxu0 %v1253_v24  ;;  %v7032_v57 = vadd.f32 %v481_v43, %v381_v59  ;;  %v1002_v39 = vmul.f32 %v7037_v46, %v262_v8 }
  0xc1   :  { %v741_v53 = vadd.f32 %v709_v33, %v674_v36  ;;  %v1004_v17 = vmul.f32 %v7037_v46, %v260_v49  ;;  %v7041_v60 = vadd.f32 %v483_v9, %v383_v63  ;;  %v1069_v28 = vmul.f32 %v7046_v32, %v6761_v55  ;;  %1588 = vmatmul.bf16.gmra.mxu2 %v1253_v24 }
  0xc2   :  { %v1071_v33 = vmul.f32 %v7046_v32, %v6971_v44  ;;  %v1200_v8 = vmul.f32 %v7055_v23, %v426_v19  ;;  %v1034_v41 = vadd.f32 %v1002_v39, %v870_v0  ;;  %v1202_v47 = vmul.f32 %v7055_v23, %v424_v35  ;;  %v11260_v19 = vld [vmem:[#allocation9_spill] sm:$0xff] }
  0xc3   :  { %v872_v38 = vadd.f32 %v840_v2, %v741_v53  ;;  %v248_v62 = vrot.slane %v6862_v10, 7  ;;  %v352_v55 = vmul.f32 %v6847_v26, %v6862_v10  ;;  %v354_v51 = vmul.f32 %v6847_v26, %v5950_v56 }
  0xc4   :  { %v418_v49 = vrot.slane %v5950_v56, 1  ;;  %v675_v59 = vadd.f32 %v6908_v37, %v6920_v12  ;;  %v1101_v18 = vadd.f32 %v1069_v28, %v1034_v41  ;;  %v710_v39 = vmul.f32 %v6856_v22, %v6860_v42  ;;  %v11261_v28 = vld [vmem:[#allocation8_spill] sm:$0xff] }
  0xc5   :  { %v1036_v25 = vadd.f32 %v1004_v17, %v872_v38  ;;  %v255_v24 = vsel %vm254_vm6, %v248_v62, %v11260_v19  ;;  %v257_v35 = vsel %vm254_vm6, %v246_v13, %v248_v62  ;;  %v712_v17 = vmul.f32 %v6856_v22, %v6862_v10 }
  0xc6   :  { %v317_v43 = vmul.f32 %v6872_v14, %v257_v35  ;;  %v319_v26 = vmul.f32 %v6872_v14, %v255_v24  ;;  %v421_v37 = vsel %vm420_vm7, %v416_v11, %v418_v49  ;;  %v451_v12 = vsel %vm420_vm7, %v418_v49, %v5944_v54 }
  0xc7   :  { %v1103_v9 = vadd.f32 %v1071_v33, %v1036_v25  ;;  %v1232_v36 = vadd.f32 %v1200_v8, %v1101_v18  ;;  %v484_v63 = vmul.f32 %v6903_v27, %v421_v37  ;;  %v7085_v2 = vmul.f32 %v6903_v27, %v451_v12  ;;  %v11262_v12 = vld [vmem:[#allocation13_spill] sm:$0xff] }
  0xc8   :  { %v384_v13 = vadd.f32 %v352_v55, %v317_v43  ;;  %v7087_v0 = vadd.f32 %v354_v51, %v319_v26  ;;  %v645_v14 = vmul.f32 %v6882_v5, %v257_v35  ;;  %v7091_v53 = vmul.f32 %v6882_v5, %v255_v24 }
  0xc9   :  { %v1234_v11 = vadd.f32 %v1202_v47, %v1103_v9  ;;  %v7098_v33 = vrot.slane %v11261_v28, 1  ;;  %v843_v38 = vmul.f32 %v6914_v31, %v421_v37  ;;  %v1005_v41 = vmul.f32 %v6928_v50, %v257_v35 }
  0xca   :  { %v7100_v27 = vadd.f32 %v484_v63, %v384_v13  ;;  %v677_v8 = vadd.f32 %v645_v14, %v6934_v58  ;;  %v742_v55 = vadd.f32 %v710_v39, %v675_v59  ;;  %v1007_v47 = vmul.f32 %v6928_v50, %v255_v24  ;;  %v11263_v63 = vld [vmem:[#allocation15_spill] sm:$0xff] }
  0xcb   :  { %v1254_v62 = vpack.c.bf16 %v1234_v11, %v1232_v36  ;;  %v782_v42 = vsel %vm420_vm7, %v418_v49, %v7098_v33  ;;  %v1072_v18 = vmul.f32 %v6941_v3, %v6862_v10  ;;  %v1074_v58 = vmul.f32 %v6941_v3, %v5950_v56 }
  0xcc   :  { %v744_v51 = vadd.f32 %v712_v17, %v677_v8  ;;  %v7110_v25 = vmul.f32 %v6914_v31, %v782_v42  ;;  %v873_v59 = vadd.f32 %v6923_v16, %v742_v55  ;;  %v1203_v35 = vmul.f32 %v6950_v30, %v421_v37 }
  0xcd   :  { %1539 = vmatmul.bf16.gmra.mxu1 %v1254_v62  ;;  %1637 = vmatmul.bf16.gmra.mxu3 %v1254_v62  ;;  %v1205_v49 = vmul.f32 %v6950_v30, %v782_v42  ;;  %v249_v24 = vrot.slane %v6973_v1, 7  ;;  %v353_v26 = vmul.f32 %v6958_v52, %v6973_v1  ;;  %v355_v10 = vmul.f32 %v6958_v52, %v11262_v12 }
  0xce   :  { %v875_v43 = vadd.f32 %v843_v38, %v744_v51  ;;  %v419_v9 = vrot.slane %v11262_v12, 1  ;;  %v1037_v36 = vadd.f32 %v1005_v41, %v873_v59  ;;  %v676_v13 = vadd.f32 %v7012_v15, %v7032_v57  ;;  %v11264_v59 = vld [vmem:[#allocation14_spill] sm:$0xff] }
  0xcf   :  { %v256_v16 = vsel %vm254_vm6, %v249_v24, %v11263_v63  ;;  %v258_v37 = vsel %vm254_vm6, %v247_v6, %v249_v24  ;;  %v7157_v24 = vrot.slane %v11264_v59, 1 }
  0xd0   :  { %v1039_v14 = vadd.f32 %v1007_v47, %v875_v43  ;;  %v318_v11 = vmul.f32 %v6985_v21, %v258_v37  ;;  %v320_v52 = vmul.f32 %v6985_v21, %v256_v16  ;;  %v422_v39 = vsel %vm420_vm7, %v417_v61, %v419_v9  ;;  %v7146_v21 = vpop.f32.mrf.mxu0 }
  0xd1   :  { %v1104_v17 = vadd.f32 %v1072_v18, %v1037_v36  ;;  %v452_v8 = vsel %vm420_vm7, %v419_v9, %v5944_v54  ;;  %v485_v6 = vmul.f32 %v7017_v4, %v422_v39  ;;  %v646_v38 = vmul.f32 %v6995_v7, %v258_v37 }
  0xd2   :  { %v1106_v15 = vadd.f32 %v1074_v58, %v1039_v14  ;;  %v385_v57 = vadd.f32 %v353_v26, %v318_v11  ;;  %v387_v41 = vadd.f32 %v355_v10, %v320_v52  ;;  %v487_v62 = vmul.f32 %v7017_v4, %v452_v8 }
  0xd3   :  { %v1235_v55 = vadd.f32 %v1203_v35, %v1104_v17  ;;  %v7149_v42 = vmul.f32 %v6995_v7, %v256_v16  ;;  %v678_v61 = vadd.f32 %v646_v38, %v7041_v60  ;;  %v711_v47 = vmul.f32 %v6967_v48, %v6971_v44  ;;  %v1291_v60 = vld [vmem:[%s11023_s3] sm:$0x3]  ;;  %v7165_v44 = vpop.f32.mrf.mxu1  ;;  %v11265_v38 = vld [vmem:[#allocation12_spill] sm:$0xff] }
  0xd4   :  { %v1237_v51 = vadd.f32 %v1205_v49, %v1106_v15  ;;  %v517_v18 = vadd.f32 %v485_v6, %v385_v57  ;;  %v713_v58 = vmul.f32 %v6967_v48, %v6973_v1  ;;  %v844_v43 = vmul.f32 %v7025_v20, %v422_v39  ;;  %v7167_v49 = vpop.f32.mrf.mxu2 }
  0xd5   :  { %v743_v4 = vadd.f32 %v711_v47, %v676_v13  ;;  %v1006_v35 = vmul.f32 %v7037_v46, %v258_v37  ;;  %v1008_v26 = vmul.f32 %v7037_v46, %v256_v16  ;;  %v783_v13 = vsel %vm420_vm7, %v419_v9, %v7157_v24 }
  0xd6   :  { %v1255_v10 = vpack.c.bf16 %v1237_v51, %v1235_v55  ;;  %v745_v36 = vadd.f32 %v713_v58, %v678_v61  ;;  %v1073_v14 = vmul.f32 %v7046_v32, %v6973_v1  ;;  %v7175_v37 = vmul.f32 %v7025_v20, %v783_v13 }
  0xd7   :  { %v874_v16 = vadd.f32 %v7029_v29, %v743_v4  ;;  %v1075_v11 = vmul.f32 %v7046_v32, %v11262_v12  ;;  %v1204_v52 = vmul.f32 %v7055_v23, %v422_v39  ;;  %v1206_v8 = vmul.f32 %v7055_v23, %v783_v13  ;;  %v11267_v13 = vld [vmem:[#allocation11_spill] sm:$0xff] }
  0xd8   :  { %1495 = vmatmul.bf16.gmra.mxu0 %v1255_v10  ;;  %v876_v17 = vadd.f32 %v844_v43, %v745_v36  ;;  %1593 = vmatmul.bf16.gmra.mxu2 %v1255_v10  ;;  %v518_v9 = vadd.f32 %v7085_v2, %v7087_v0  ;;  %v7184_v6 = vperm.slane %v1291_v60, 0  ;;  %v584_v29 = vsel %vm254_vm6, %v11260_v19, %v11265_v38  ;;  %v11266_v0 = vld [vmem:[#allocation10_spill] sm:$0xff]  ;;  %v1468_v47 = vpop.f32.mrf.mxu0 }
  0xd9   :  { %v1038_v1 = vadd.f32 %v1006_v35, %v874_v16  ;;  %v679_v15 = vadd.f32 %v7091_v53, %v7100_v27  ;;  %v714_v39 = vmul.f32 %v6856_v22, %v5950_v56  ;;  %v649_v55 = vmul.f32 %v6882_v5, %v584_v29  ;;  %v1613_v53 = vpop.f32.mrf.mxu3 }
  0xda   :  { %v1040_v57 = vadd.f32 %v1008_v26, %v876_v17  ;;  %v716_v2 = vmul.f32 %v6856_v22, %v11261_v28  ;;  %v812_v61 = vsel %vm420_vm7, %v7098_v33, %v11266_v0  ;;  %v946_v56 = vsel %vm254_vm6, %v11265_v38, %v5921_v40 }
  0xdb   :  { %v1105_v51 = vadd.f32 %v1073_v14, %v1038_v1  ;;  %v746_v19 = vadd.f32 %v714_v39, %v679_v15  ;;  %v847_v58 = vmul.f32 %v6914_v31, %v812_v61  ;;  %v681_v27 = vadd.f32 %v649_v55, %v518_v9  ;;  %v11270_v55 = vld [vmem:[#allocation19_spill] sm:$0xff] }
  0xdc   :  { %v1107_v5 = vadd.f32 %v1075_v11, %v1040_v57  ;;  %v1009_v22 = vmul.f32 %v6928_v50, %v584_v29  ;;  %v1011_v4 = vmul.f32 %v6928_v50, %v946_v56  ;;  %v1076_v26 = vmul.f32 %v6941_v3, %v11261_v28  ;;  %v1517_v28 = vpop.f32.mrf.mxu1 }
  0xdd   :  { %v1236_v43 = vadd.f32 %v1204_v52, %v1105_v51  ;;  %v877_v35 = vadd.f32 %v7110_v25, %v746_v19  ;;  %v1144_v31 = vsel %vm420_vm7, %v7098_v33, %v5944_v54  ;;  %v748_v36 = vadd.f32 %v716_v2, %v681_v27  ;;  %v11268_v52 = vld [vmem:[#allocation18_spill] sm:$0xff]  ;;  %v1566_v33 = vpop.f32.mrf.mxu2  ;;  %v11271_v19 = vld [vmem:[#allocation17_spill] sm:$0xff] }
  0xde   :  { %v1238_v10 = vadd.f32 %v1206_v8, %v1107_v5  ;;  %v1174_v14 = vsel %vm420_vm7, %v5944_v54, %v11267_v13  ;;  %v1207_v50 = vmul.f32 %v6950_v30, %v1144_v31  ;;  %v519_v11 = vadd.f32 %v487_v62, %v387_v41  ;;  %v11269_v41 = vld [vmem:[#allocation16_spill] sm:$0xff] }
  0xdf   :  { %v1041_v16 = vadd.f32 %v1009_v22, %v877_v35  ;;  %v1209_v25 = vmul.f32 %v6950_v30, %v1174_v14  ;;  %v585_v3 = vsel %vm254_vm6, %v11263_v63, %v11268_v52  ;;  %v879_v8 = vadd.f32 %v847_v58, %v748_v36 }
  0xe0   :  { %v1256_v17 = vpack.c.bf16 %v1238_v10, %v1236_v43  ;;  %v650_v9 = vmul.f32 %v6995_v7, %v585_v3  ;;  %v680_v1 = vadd.f32 %v7149_v42, %v517_v18  ;;  %v715_v29 = vmul.f32 %v6967_v48, %v11262_v12  ;;  %v1471_v57 = vpop.f32.mrf.mxu0 }
  0xe1   :  { %v1108_v38 = vadd.f32 %v1076_v26, %v1041_v16  ;;  %v717_v30 = vmul.f32 %v6967_v48, %v11264_v59  ;;  %v813_v63 = vsel %vm420_vm7, %v7157_v24, %v11269_v41  ;;  %v1043_v62 = vadd.f32 %v1011_v4, %v879_v8  ;;  %v1615_v5 = vpop.f32.mrf.mxu3 }
  0xe2   :  { %1544 = vmatmul.bf16.gmra.mxu1 %v1256_v17  ;;  %1642 = vmatmul.bf16.gmra.mxu3 %v1256_v17  ;;  %v682_v15 = vadd.f32 %v650_v9, %v519_v11  ;;  %v848_v7 = vmul.f32 %v7025_v20, %v813_v63  ;;  %v7236_v39 = vperm.slane %v1291_v60, 1  ;;  %v747_v18 = vadd.f32 %v715_v29, %v680_v1  ;;  %v5513_v1 = vld [vmem:[%s11022_s2 + $0x1f4] sm:$0xf] }
  0xe3   :  { %v1239_v42 = vadd.f32 %v1207_v50, %v1108_v38  ;;  %v947_v48 = vsel %vm254_vm6, %v11268_v52, %v5921_v40  ;;  %v1010_v12 = vmul.f32 %v7037_v46, %v585_v3  ;;  %v1110_v2 = vadd.f32 %v11270_v55, %v1043_v62  ;;  %v5268_v38 = vld [vmem:[%s11022_s2 + $0x1f8] sm:$0xf0] }
  0xe4   :  { %v749_v0 = vadd.f32 %v717_v30, %v682_v15  ;;  %v1012_v61 = vmul.f32 %v7037_v46, %v947_v48  ;;  %v1077_v20 = vmul.f32 %v7046_v32, %v11264_v59  ;;  %v878_v60 = vadd.f32 %v7175_v37, %v747_v18  ;;  %v7304_v18 = vld [vmem:[%s11021_s1 + $0xa0] sm:$0xff]  ;;  %v7309_v48 = vld [vmem:[%s11021_s1 + $0xd0] sm:$0xff] }
  0xe5   :  { %v1145_v51 = vsel %vm420_vm7, %v7157_v24, %v5944_v54  ;;  %v1175_v58 = vsel %vm420_vm7, %v5944_v54, %v11271_v19  ;;  %v1467_v56 = vadd.f32 %v7146_v21, %v7184_v6  ;;  %v1241_v46 = vadd.f32 %v1209_v25, %v1110_v2  ;;  %v1520_v21 = vpop.f32.mrf.mxu1  ;;  %v1569_v10 = vpop.f32.mrf.mxu2  ;;  %v5202_v19 = vld [vmem:[%s11022_s2 + $0x170] sm:$0xf] }
  0xe6   :  { %v880_v27 = vadd.f32 %v848_v7, %v749_v0  ;;  %v1208_v32 = vmul.f32 %v7055_v23, %v1145_v51  ;;  %v1042_v59 = vadd.f32 %v1010_v12, %v878_v60  ;;  %v1565_v22 = vadd.f32 %v7167_v49, %v7236_v39  ;;  %v7323_v0 = vld [vmem:[%s11021_s1 + $0xb0] sm:$0xff] }
  0xe7   :  { %v1516_v37 = vadd.f32 %v7165_v44, %v1467_v56  ;;  %v1469_v24 = vadd.f32 %v1468_v47, %v7184_v6  ;;  %v1257_v4 = vpack.c.bf16 %v1241_v46, %v1239_v42  ;;  %v1210_v35 = vmul.f32 %v7055_v23, %v1175_v58  ;;  %v7299_v42 = vld [vmem:[%s11021_s1 + $0x90] sm:$0xff]  ;;  %v5498_v58 = vld [vmem:[%s11022_s2 + $0x174] sm:$0xf0] }
  0xe8   :  { %v1044_v43 = vadd.f32 %v1012_v61, %v880_v27  ;;  %v1109_v26 = vadd.f32 %v1077_v20, %v1042_v59  ;;  %v1614_v31 = vadd.f32 %v1613_v53, %v1565_v22  ;;  %v1567_v49 = vadd.f32 %v1566_v33, %v7236_v39  ;;  %v7266_v47 = vpop.f32.mrf.mxu0  ;;  %v5204_v33 = vld [vmem:[%s11022_s2 + $0x178] sm:$0xf0]  ;;  %v7330_v20 = vld [vmem:[%s11021_s1 + $0xa8] sm:$0xff]  ;;  %v5266_v59 = vld [vmem:[%s11022_s2 + $0x1f0] sm:$0xf] }
  0xe9   :  { %1500 = vmatmul.bf16.gmra.mxu0 %v1257_v4  ;;  %1598 = vmatmul.bf16.gmra.mxu2 %v1257_v4  ;;  %v1685_v13 = vmul.f32 0.2, %v1516_v37  ;;  %v1518_v14 = vadd.f32 %v1517_v28, %v1469_v24  ;;  %vm1653_vm4 = vcmp.gt.f32.partialorder %v1516_v37, 0.0  ;;  %v1472_v52 = vadd.f32 %v1471_v57, %v7184_v6  ;;  %v5497_v28 = vld [vmem:[%s11022_s2 + $0x174] sm:$0xf]  ;;  %v7361_v4 = vld [vmem:[%s11021_s1 + $0x98] sm:$0xff] }
  0xea   :  { %v1111_v36 = vadd.f32 %v6649_v45, %v1044_v43  ;;  %v1240_v44 = vadd.f32 %v1208_v32, %v1109_v26  ;;  %v1686_v23 = vmul.f32 0.2, %v1614_v31  ;;  %vm1654_vm5 = vcmp.gt.f32.partialorder %v1614_v31, 0.0  ;;  %v1618_v45 = vpop.f32.mrf.mxu3  ;;  %v7366_v43 = vld [vmem:[%s11021_s1 + $0xd8] sm:$0xff] }
  0xeb   :  { %v1717_v25 = vsel %vm1653_vm4, %v1516_v37, %v1685_v13  ;;  %v1687_v11 = vmul.f32 0.2, %v1518_v14  ;;  %vm1655_vm8 = vcmp.gt.f32.partialorder %v1518_v14, 0.0  ;;  %v1616_v53 = vadd.f32 %v1615_v5, %v1567_v49  ;;  %v5514_v37 = vld [vmem:[%s11022_s2 + $0x1f4] sm:$0xf0] }
  0xec   :  { %v1242_v50 = vadd.f32 %v1210_v35, %v1111_v36  ;;  %v7269_v3 = vrot.slane %v1717_v25, 7  ;;  %v7277_v17 = vrot.slane %v1717_v25, 1  ;;  %v1718_v8 = vsel %vm1654_vm5, %v1614_v31, %v1686_v23 }
  0xed   :  { %v7279_v9 = vsel %vm1655_vm8, %v1518_v14, %v1687_v11  ;;  %v1688_v29 = vmul.f32 0.2, %v1616_v53  ;;  %v1521_v30 = vadd.f32 %v1520_v21, %v1472_v52  ;;  %v7287_v41 = vpop.f32.mrf.mxu1  ;;  %v7289_v63 = vpop.f32.mrf.mxu2  ;;  %vm1656_vm9 = vcmp.gt.f32.partialorder %v1616_v53, 0.0  ;;  %v7381_v21 = vld [vmem:[%s11021_s1 + $0xb8] sm:$0xff]  ;;  %v5495_v11 = vld [vmem:[%s11022_s2 + $0x164] sm:$0xf] }
  0xee   :  { %v1258_v16 = vpack.c.bf16 %v1242_v50, %v1240_v44  ;;  %11272 = vst [vmem:[#allocation9_spill] sm:$0xff] %v7269_v3  ;;  %v1570_v62 = vadd.f32 %v1569_v10, %v7236_v39  ;;  %v5207_v15 = vor.u32 %v5497_v28, %v5204_v33  ;;  %v1873_v7 = vsel %vm254_vm6, %v5921_v40, %v7269_v3 }
  0xef   :  { %11273 = vst [vmem:[#allocation8_spill] sm:$0xff] %v7277_v17  ;;  %v7311_v12 = vrot.slane %v1718_v8, 7  ;;  %v7314_v57 = vrot.slane %v7279_v9, 7  ;;  %v5271_v55 = vor.u32 %v5513_v1, %v5268_v38  ;;  %v2039_v2 = vsel %vm420_vm7, %v5944_v54, %v7277_v17  ;;  %v5511_v1 = vld [vmem:[%s11022_s2 + $0x1e4] sm:$0xf] }
  0xf0   :  { %v7325_v61 = vrot.slane %v1718_v8, 1  ;;  %3146 = vmatpush.bf16.msrb.mxu2 %v5207_v15  ;;  %v7332_v60 = vsel %vm1656_vm9, %v1616_v53, %v1688_v29  ;;  %v1619_v51 = vadd.f32 %v1618_v45, %v1570_v62  ;;  %v1476_v56 = vpop.f32.mrf.mxu0  ;;  %v1882_v5 = vmul.f32 %v7299_v42, %v1873_v7  ;;  %v5260_v38 = vld [vmem:[%s11022_s2 + $0x1e8] sm:$0xf0]  ;;  %v5194_v7 = vld [vmem:[%s11022_s2 + $0x160] sm:$0xf] }
  0xf1   :  { %11274 = vst [vmem:[#allocation13_spill] sm:$0xff] %v7311_v12  ;;  %3195 = vmatpush.bf16.msrb.mxu3 %v5271_v55  ;;  %v1917_v46 = vmul.f32 %v7304_v18, %v1717_v25  ;;  %v7343_v27 = vmul.f32 %v7309_v48, %v1717_v25  ;;  %v1689_v32 = vmul.f32 0.2, %v1521_v30  ;;  %v7352_v22 = vmul.f32 %v7323_v0, %v2039_v2  ;;  %v5496_v55 = vld [vmem:[%s11022_s2 + $0x164] sm:$0xf0] }
  0xf2   :  { %1549 = vmatmul.bf16.gmra.mxu1 %v1258_v16  ;;  %1647 = vmatmul.bf16.gmra.mxu3 %v1258_v16  ;;  %11275 = vst [vmem:[#allocation15_spill] sm:$0xff] %v7325_v61  ;;  %v1874_v24 = vsel %vm254_vm6, %v5921_v40, %v7311_v12  ;;  %v7372_v35 = vsel %vm254_vm6, %v7269_v3, %v7314_v57  ;;  %vm1657_vm10 = vcmp.gt.f32.partialorder %v1521_v30, 0.0  ;;  %v1620_v26 = vpop.f32.mrf.mxu3  ;;  %v7384_v10 = vrot.slane %v7332_v60, 7 }
  0xf3   :  { %11276 = vst [vmem:[#allocation14_spill] sm:$0xff] %v7343_v27  ;;  %v2040_v31 = vsel %vm420_vm7, %v5944_v54, %v7325_v61  ;;  %v1690_v36 = vmul.f32 0.2, %v1619_v51  ;;  %v5203_v13 = vor.u32 %v5498_v58, %v5202_v19  ;;  %v1918_v14 = vmul.f32 %v7330_v20, %v1718_v8 }
  0xf4   :  { %11277 = vst [vmem:[#allocation12_spill] sm:$0xff] %v7352_v22  ;;  %vm1658_vm11 = vcmp.gt.f32.partialorder %v1619_v51, 0.0  ;;  %v1474_v44 = vadd.f32 %v7266_v47, %v7184_v6  ;;  %v5267_v49 = vor.u32 %v5514_v37, %v5266_v59  ;;  %v1883_v50 = vmul.f32 %v7361_v4, %v1874_v24  ;;  %v5188_v37 = vld [vmem:[%s11022_s2 + $0x158] sm:$0xf0]  ;;  %v5509_v24 = vld [vmem:[%s11022_s2 + $0x1d4] sm:$0xf] }
  0xf5   :  { %v7391_v16 = vmul.f32 %v7366_v43, %v1718_v8  ;;  %v1884_v25 = vmul.f32 %v7299_v42, %v7372_v35  ;;  %v7395_v23 = vsel %vm1657_vm10, %v1521_v30, %v1689_v32  ;;  %3048 = vmatpush.bf16.msrb.mxu0 %v5203_v13  ;;  %v7400_v53 = vadd.f32 %v1917_v46, %v1882_v5  ;;  %v5196_v8 = vld [vmem:[%s11022_s2 + $0x168] sm:$0xf0] }
  0xf6   :  { %v7403_v47 = vmul.f32 %v7381_v21, %v2040_v31  ;;  %v1919_v52 = vmul.f32 %v7304_v18, %v7279_v9  ;;  %3097 = vmatpush.bf16.msrb.mxu1 %v5267_v49  ;;  %v1477_v45 = vadd.f32 %v1476_v56, %v7184_v6  ;;  %v1574_v33 = vpop.f32.mrf.mxu2  ;;  %v7418_v29 = vrot.slane %v7279_v9, 1  ;;  %v5512_v56 = vld [vmem:[%s11022_s2 + $0x1e4] sm:$0xf0]  ;;  %v5252_v49 = vld [vmem:[%s11022_s2 + $0x1d8] sm:$0xf0] }
  0xf7   :  { %11278 = vst [vmem:[#allocation10_spill] sm:$0xff] %v7391_v16  ;;  %v7424_v30 = vsel %vm254_vm6, %v7311_v12, %v7384_v10  ;;  %v7427_v62 = vsel %vm1658_vm11, %v1619_v51, %v1690_v36  ;;  %v1572_v15 = vadd.f32 %v7289_v63, %v7236_v39  ;;  %v7439_v2 = vmul.f32 %v7309_v48, %v7279_v9  ;;  %v5258_v63 = vld [vmem:[%s11022_s2 + $0x1e0] sm:$0xf] }
  0xf8   :  { %11279 = vst [vmem:[#allocation11_spill] sm:$0xff] %v7403_v47  ;;  %v11050_v19 = vrot.slane %v7395_v23, 7  ;;  %v1523_v51 = vadd.f32 %v7287_v41, %v1474_v44  ;;  %v7451_v5 = vadd.f32 %v1918_v14, %v1883_v50  ;;  %v7453_v46 = vadd.f32 %v1919_v52, %v1884_v25  ;;  %v5493_v41 = vld [vmem:[%s11022_s2 + $0x154] sm:$0xf]  ;;  %v1478_v44 = vpop.f32.mrf.mxu0 }
  0xf9   :  { %11280 = vst [vmem:[#allocation18_spill] sm:$0xff] %v7418_v29  ;;  %v5199_v32 = vor.u32 %v5495_v11, %v5196_v8  ;;  %v5263_v59 = vor.u32 %v5511_v1, %v5260_v38  ;;  %v1885_v31 = vmul.f32 %v7361_v4, %v7424_v30  ;;  %v1920_v36 = vmul.f32 %v7330_v20, %v7332_v60  ;;  %v7630_v47 = vld [vmem:[%s11021_s1 + $0xf0] sm:$0xff] }
  0xfa   :  { %v11049_v13 = vrot.slane %v7427_v62, 7  ;;  %v1575_v14 = vadd.f32 %v1574_v33, %v7236_v39  ;;  %v11051_v50 = vrot.slane %v7395_v23, 1  ;;  %v1621_v25 = vadd.f32 %v1620_v26, %v1572_v15  ;;  %v5250_v15 = vld [vmem:[%s11022_s2 + $0x1d0] sm:$0xf] }
  0xfb   :  { %3147 = vmatpush.bf16.msrb.mxu2 %v5199_v32  ;;  %3196 = vmatpush.bf16.msrb.mxu3 %v5263_v59  ;;  %v5195_v11 = vor.u32 %v5496_v55, %v5194_v7  ;;  %v5259_v52 = vor.u32 %v5512_v56, %v5258_v63  ;;  %v7485_v33 = vsel %vm254_vm6, %v7314_v57, %v11050_v19  ;;  %v1691_v26 = vmul.f32 0.2, %v1523_v51  ;;  %v5510_v7 = vld [vmem:[%s11022_s2 + $0x1d4] sm:$0xf0]  ;;  %v7556_v19 = vld [vmem:[%s11021_s1 + $0xc0] sm:$0xff] }
  0xfc   :  { %v1525_v28 = vpop.f32.mrf.mxu1  ;;  %v5191_v1 = vor.u32 %v5493_v41, %v5188_v37  ;;  %v5255_v38 = vor.u32 %v5509_v24, %v5252_v49  ;;  %v7495_v55 = vmul.f32 %v7366_v43, %v7332_v60  ;;  %v1921_v63 = vmul.f32 %v7304_v18, %v7395_v23 }
  0xfd   :  { %v7443_v58 = vadd.f32 %v1525_v28, %v1477_v45  ;;  %v5186_v45 = vld [vmem:[%s11022_s2 + $0x150] sm:$0xf]  ;;  %v5494_v28 = vld [vmem:[%s11022_s2 + $0x154] sm:$0xf0]  ;;  %vm1659_vm12 = vcmp.gt.f32.partialorder %v1523_v51, 0.0  ;;  %3049 = vmatpush.bf16.msrb.mxu0 %v5195_v11  ;;  %3098 = vmatpush.bf16.msrb.mxu1 %v5259_v52  ;;  %v7501_v32 = vmul.f32 %v7309_v48, %v7395_v23  ;;  %v7508_v59 = vsel %vm254_vm6, %v7384_v10, %v11049_v13 }
  0xfe   :  { %v5187_v56 = vor.u32 %v5494_v28, %v5186_v45  ;;  %v5251_v37 = vor.u32 %v5510_v7, %v5250_v15  ;;  %v7512_v24 = vadd.f32 %v1920_v36, %v1885_v31  ;;  %v1886_v49 = vmul.f32 %v7299_v42, %v7485_v33 }
  0xff   :  { %11281 = vst [vmem:[#allocation16_spill] sm:$0xff] %v7501_v32  ;;  %v1692_v11 = vmul.f32 0.2, %v1621_v25  ;;  %v1479_v52 = vadd.f32 %v1478_v44, %v7184_v6  ;;  %3148 = vmatpush.bf16.msrb.mxu2 %v5191_v1  ;;  %3197 = vmatpush.bf16.msrb.mxu3 %v5255_v38  ;;  %v1922_v45 = vmul.f32 %v7330_v20, %v7427_v62  ;;  %vm1660_vm13 = vcmp.gt.f32.partialorder %v1621_v25, 0.0 }
 0x100   :  { %v7519_v28 = vsel %vm1659_vm12, %v1523_v51, %v1691_v26  ;;  %v7526_v31 = vsel %vm420_vm7, %v7418_v29, %v11051_v50  ;;  %v7529_v36 = vrot.slane %v7332_v60, 1  ;;  %v1887_v44 = vmul.f32 %v7361_v4, %v7508_v59 }
 0x101   :  { %3050 = vmatpush.bf16.msrb.mxu0 %v5187_v56  ;;  %3099 = vmatpush.bf16.msrb.mxu1 %v5251_v37  ;;  %v7537_v51 = vsel %vm420_vm7, %v7277_v17, %v7418_v29  ;;  %v2050_v26 = vmul.f32 %v7323_v0, %v7526_v31  ;;  %v7544_v1 = vmul.f32 %v7366_v43, %v7427_v62  ;;  %v1693_v38 = vmul.f32 0.2, %v7443_v58 }
 0x102   :  { %v1623_v8 = vpop.f32.mrf.mxu3  ;;  %11282 = vst [vmem:[#allocation19_spill] sm:$0xff] %v7529_v36  ;;  %v2048_v15 = vmul.f32 %v7323_v0, %v7537_v51  ;;  %v11054_v7 = vrot.slane %v7519_v28, 1  ;;  %v7550_v56 = vsel %vm1660_vm13, %v1621_v25, %v1692_v11  ;;  %vm1661_vm14 = vcmp.gt.f32.partialorder %v7443_v58, 0.0 }
 0x103   :  { %v7510_v41 = vadd.f32 %v1623_v8, %v1575_v14  ;;  %v1576_v14 = vpop.f32.mrf.mxu2  ;;  %11283 = vst [vmem:[#allocation17_spill] sm:$0xff] %v7544_v1  ;;  %v7558_v8 = vadd.f32 %v1921_v63, %v1886_v49  ;;  %v7563_v16 = vadd.f32 %v2050_v26, %v7453_v46  ;;  %v7565_v25 = vadd.f32 %v1922_v45, %v1887_v44 }
 0x104   :  { %v1527_v13 = vpop.f32.mrf.mxu1  ;;  %v2080_v17 = vadd.f32 %v2048_v15, %v7400_v53  ;;  %v7573_v11 = vmul.f32 %v7309_v48, %v7519_v28  ;;  %v1577_v63 = vadd.f32 %v1576_v14, %v7236_v39  ;;  %v7579_v53 = vmul.f32 %v7330_v20, %v7550_v56 }
 0x105   :  { %v1528_v37 = vadd.f32 %v1527_v13, %v1479_v52  ;;  %v7569_v13 = vmul.f32 %v7304_v18, %v7519_v28  ;;  %v7582_v46 = vsel %vm1661_vm14, %v7443_v58, %v1693_v38  ;;  %v2211_v45 = vmul.f32 %v7556_v19, %v7372_v35  ;;  %v7599_v58 = vld [vmem:[%s11021_s1 + $0xe0] sm:$0xff] }
 0x106   :  { %11284 = vst [vmem:[#allocation20_spill] sm:$0xff] %v7573_v11  ;;  %v1694_v44 = vmul.f32 0.2, %v7510_v41  ;;  %v11286_v14 = vrot.slane %v7395_v23, 1  ;;  %vm1662_vm15 = vcmp.gt.f32.partialorder %v7510_v41, 0.0  ;;  %v7607_v50 = vmul.f32 %v7366_v43, %v7550_v56 }
 0x107   :  { %11285 = vst [vmem:[#allocation21_spill] sm:$0xff] %v7579_v53  ;;  %v1695_v26 = vmul.f32 0.2, %v1528_v37  ;;  %vm1663_vm0 = vcmp.gt.f32.partialorder %v1528_v37, 0.0  ;;  %v2243_v35 = vadd.f32 %v2211_v45, %v2080_v17  ;;  %v7617_v17 = vmul.f32 %v7309_v48, %v7582_v46 }
 0x108   :  { %v1481_v29 = vpop.f32.mrf.mxu0  ;;  %v7594_v49 = vsel %vm420_vm7, %v11286_v14, %v11054_v7  ;;  %11287 = vst [vmem:[#allocation22_spill] sm:$0xff] %v7607_v50  ;;  %v7612_v7 = vmul.f32 %v7304_v18, %v7582_v46  ;;  %v7623_v22 = vsel %vm1662_vm15, %v7510_v41, %v1694_v44  ;;  %v7650_v44 = vsel %vm420_vm7, %v7325_v61, %v7529_v36 }
 0x109   :  { %v1482_v15 = vadd.f32 %v1481_v29, %v7184_v6  ;;  %v2409_v29 = vmul.f32 %v7599_v58, %v7526_v31  ;;  %11289 = vst [vmem:[#allocation24_spill] sm:$0xff] %v7617_v17  ;;  %v2052_v38 = vmul.f32 %v7323_v0, %v7594_v49  ;;  %v2310_v27 = vadd.f32 %v7439_v2, %v2243_v35  ;;  %v7642_v2 = vld [vmem:[%s11021_s1 + $0xc8] sm:$0xff] }
 0x10a   :  { %v1625_v52 = vpop.f32.mrf.mxu3  ;;  %11288 = vst [vmem:[#allocation23_spill] sm:$0xff] %v7612_v7  ;;  %v7625_v14 = vsel %vm1663_vm0, %v1528_v37, %v1695_v26  ;;  %v11290_v17 = vrot.slane %v7427_v62, 1  ;;  %v2572_v37 = vmul.f32 %v7630_v47, %v7485_v33  ;;  %v2212_v53 = vmul.f32 %v7642_v2, %v7424_v30  ;;  %v7695_v30 = vld [vmem:[%s11021_s1 + $0xe8] sm:$0xff] }
 0x10b   :  { %v2441_v41 = vadd.f32 %v2409_v29, %v2310_v27  ;;  %v7658_v27 = vld [vmem:[%s11021_s1 + $0x100] sm:$0xff]  ;;  %v7663_v29 = vld [vmem:[%s11021_s1 + $0x110] sm:$0xff]  ;;  %v1626_v54 = vadd.f32 %v1625_v52, %v1577_v63  ;;  %v7719_v11 = vmul.f32 0.0, %v7304_v18  ;;  %v11299_v63 = vrot.slane %v7550_v56, 1 }
 0x10c   :  { %v7637_v7 = vsel %vm420_vm7, %v7529_v36, %v11290_v17  ;;  %v2049_v17 = vmul.f32 %v7381_v21, %v7650_v44  ;;  %v2639_v36 = vmul.f32 %v7658_v27, %v7395_v23 }
 0x10d   :  { %v2051_v26 = vmul.f32 %v7381_v21, %v7637_v7  ;;  %vm1664_vm3 = vcmp.gt.f32.partialorder %v1626_v54, 0.0  ;;  %11298 = vst [vmem:[#allocation32_spill] sm:$0xff] %v7719_v11 }
 0x10e   :  { %v1579_v12 = vpop.f32.mrf.mxu2  ;;  %v2081_v1 = vadd.f32 %v2049_v17, %v7451_v5  ;;  %v2410_v17 = vmul.f32 %v7695_v30, %v7637_v7 }
 0x10f   :  { %v1580_v35 = vadd.f32 %v1579_v12, %v7236_v39  ;;  %v2770_v12 = vmul.f32 %v7663_v29, %v7594_v49  ;;  %v7672_v61 = vadd.f32 %v2051_v26, %v7512_v24 }
 0x110   :  { %v1530_v45 = vpop.f32.mrf.mxu1  ;;  %v2244_v52 = vadd.f32 %v2212_v53, %v2081_v1  ;;  %v7709_v53 = vmul.f32 %v7304_v18, %v7625_v14  ;;  %v1483_v26 = vpop.f32.mrf.mxu0 }
 0x111   :  { %v1531_v3 = vadd.f32 %v1530_v45, %v1482_v15  ;;  %v2604_v45 = vadd.f32 %v2572_v37, %v2441_v41  ;;  %v7682_v41 = vmul.f32 %v7330_v20, %v7623_v22 }
 0x112   :  { %11295 = vst [vmem:[#allocation29_spill] sm:$0xff] %v7709_v53 }
 0x113   :  { %vm1665_vm1 = vcmp.gt.f32.partialorder %v1531_v3, 0.0  ;;  %v1697_v15 = vmul.f32 0.2, %v1531_v3  ;;  %11291 = vst [vmem:[#allocation25_spill] sm:$0xff] %v7682_v41  ;;  %v2671_v24 = vadd.f32 %v2639_v36, %v2604_v45  ;;  %v1696_v45 = vmul.f32 0.2, %v1626_v54 }
 0x115   :  { %v7674_v50 = vsel %vm1665_vm1, %v1531_v3, %v1697_v15  ;;  %v7690_v3 = vmul.f32 %v7366_v43, %v7623_v22  ;;  %v7702_v15 = vadd.f32 %v2770_v12, %v2671_v24  ;;  %v2311_v12 = vadd.f32 %v7495_v55, %v2244_v52 }
 0x116   :  { %v7685_v37 = vrot.slane %v7674_v50, 7  ;;  %v1628_v32 = vpop.f32.mrf.mxu3  ;;  %v7735_v55 = vmul.f32 %v7599_v58, %v7537_v51 }
 0x117   :  { %11293 = vst [vmem:[#allocation27_spill] sm:$0xff] %v7690_v3  ;;  %v1629_v5 = vadd.f32 %v1628_v32, %v1580_v35  ;;  %v7713_v35 = vmul.f32 %v7309_v48, %v7625_v14 }
 0x118   :  { %11292 = vst [vmem:[#allocation26_spill] sm:$0xff] %v7685_v37  ;;  %v1859_v36 = vsel %vm254_vm6, %v7685_v37, %v5921_v40  ;;  %v11312_v37 = vrot.slane %v7582_v46, 1 }
 0x119   :  { %11294 = vst [vmem:[#allocation28_spill] sm:$0xff] %v7702_v15  ;;  %v1896_v32 = vmul.f32 %v7299_v42, %v1859_v36  ;;  %vm1666_vm2 = vcmp.gt.f32.partialorder %v1629_v5, 0.0  ;;  %v1698_v1 = vmul.f32 0.2, %v1629_v5  ;;  %v2084_v36 = vadd.f32 %v2052_v38, %v7558_v8 }
 0x11a   :  { %11296 = vst [vmem:[#allocation30_spill] sm:$0xff] %v7713_v35  ;;  %v11300_v15 = vrot.slane %v7427_v62, 1  ;;  %v2565_v8 = vsel %vm254_vm6, %v5921_v40, %v7314_v57  ;;  %v2442_v38 = vadd.f32 %v2410_v17, %v2311_v12  ;;  %v11306_v57 = vrot.slane %v7519_v28, 7 }
 0x11b   :  { %v7716_v24 = vsel %vm1666_vm2, %v1629_v5, %v1698_v1  ;;  %11302 = vst [vmem:[#allocation34_spill] sm:$0xff] %v7735_v55  ;;  %v7744_v5 = vld [vmem:[%s11021_s1 + $0xf8] sm:$0xff]  ;;  %v7749_v52 = vadd.f32 %v7719_v11, %v1896_v32  ;;  %v11307_v17 = vrot.slane %v7395_v23, 7  ;;  %v7785_v11 = vmul.f32 %v7630_v47, %v2565_v8 }
 0x11c   :  { %11297 = vst [vmem:[#allocation31_spill] sm:$0xff] %v7716_v24  ;;  %v7728_v3 = vsel %vm420_vm7, %v11300_v15, %v11299_v63  ;;  %v7731_v35 = vrot.slane %v7716_v24, 7  ;;  %v7746_v63 = vsel %vm1664_vm3, %v1626_v54, %v1696_v45  ;;  %v2573_v51 = vmul.f32 %v7744_v5, %v7508_v59  ;;  %v7756_v15 = vld [vmem:[%s11021_s1 + $0x108] sm:$0xff]  ;;  %v7776_v23 = vld [vmem:[%s11021_s1 + $0x118] sm:$0xff] }
 0x11d   :  { %11303 = vst [vmem:[#allocation35_spill] sm:$0xff] %v7744_v5  ;;  %v1867_v1 = vsel %vm254_vm6, %v11307_v17, %v11306_v57  ;;  %v1484_v45 = vadd.f32 %v1483_v26, %v7184_v6  ;;  %v2053_v32 = vmul.f32 %v7381_v21, %v7728_v3  ;;  %v2640_v12 = vmul.f32 %v7756_v15, %v7427_v62 }
 0x11e   :  { %11301 = vst [vmem:[#allocation33_spill] sm:$0xff] %v7731_v35  ;;  %v1860_v54 = vsel %vm254_vm6, %v7731_v35, %v5921_v40  ;;  %v7780_v17 = vmul.f32 0.0, %v7330_v20  ;;  %v2605_v55 = vadd.f32 %v2573_v51, %v2442_v38  ;;  %v2771_v26 = vmul.f32 %v7776_v23, %v7728_v3 }
 0x11f   :  { %11304 = vst [vmem:[#allocation36_spill] sm:$0xff] %v7749_v52  ;;  %v1897_v57 = vmul.f32 %v7361_v4, %v1860_v54  ;;  %v7789_v35 = vmul.f32 %v7658_v27, %v7279_v9  ;;  %v1888_v53 = vmul.f32 %v7299_v42, %v1867_v1  ;;  %v11313_v54 = vrot.slane %v7519_v28, 1  ;;  %v1532_v52 = vpop.f32.mrf.mxu1 }
 0x120   :  { %11305 = vst [vmem:[#allocation37_spill] sm:$0xff] %v7756_v15  ;;  %v7804_v8 = vmul.f32 %v7663_v29, %v7526_v31  ;;  %v2672_v9 = vadd.f32 %v2640_v12, %v2605_v55  ;;  %v2566_v31 = vsel %vm254_vm6, %v5921_v40, %v7384_v10  ;;  %v2213_v10 = vmul.f32 %v7556_v19, %v7485_v33 }
 0x121   :  { %11308 = vst [vmem:[#allocation38_spill] sm:$0xff] %v7776_v23  ;;  %v2031_v41 = vsel %vm420_vm7, %v11313_v54, %v11312_v37  ;;  %v7800_v51 = vadd.f32 %v7780_v17, %v1897_v57  ;;  %v1581_v37 = vpop.f32.mrf.mxu2  ;;  %v7815_v54 = vadd.f32 %v2053_v32, %v7565_v25  ;;  %v7821_v57 = vadd.f32 %v1532_v52, %v1484_v45 }
 0x122   :  { %11309 = vst [vmem:[#allocation39_spill] sm:$0xff] %v7780_v17  ;;  %v7823_v55 = vadd.f32 %v2771_v26, %v2672_v9  ;;  %v1955_v12 = vadd.f32 %v7569_v13, %v1888_v53  ;;  %v2054_v38 = vmul.f32 %v7323_v0, %v2031_v41  ;;  %v7833_v25 = vmul.f32 %v7695_v30, %v7650_v44  ;;  %v11328_v17 = vld [vmem:[#allocation20_spill] sm:$0xff] }
 0x123   :  { %11310 = vst [vmem:[#allocation40_spill] sm:$0xff] %v7785_v11  ;;  %v7812_v11 = vmul.f32 %v7366_v43, %v7746_v63  ;;  %v7840_v52 = vmul.f32 %v7309_v48, %v7674_v50  ;;  %v7843_v13 = vadd.f32 %v1581_v37, %v7236_v39  ;;  %v2215_v45 = vmul.f32 %v7556_v19, %v1867_v1 }
 0x124   :  { %11311 = vst [vmem:[#allocation41_spill] sm:$0xff] %v7789_v35  ;;  %v7808_v35 = vmul.f32 %v7330_v20, %v7746_v63  ;;  %v7845_v53 = vadd.f32 %v2054_v38, %v1955_v12  ;;  %v7849_v26 = vmul.f32 %v7744_v5, %v2566_v31  ;;  %v11321_v44 = vrot.slane %v7582_v46, 7 }
 0x125   :  { %11314 = vst [vmem:[#allocation42_spill] sm:$0xff] %v7804_v8  ;;  %v7829_v8 = vmul.f32 %v7304_v18, %v7674_v50  ;;  %v11322_v9 = vrot.slane %v7519_v28, 7  ;;  %v2245_v32 = vadd.f32 %v2213_v10, %v7563_v16  ;;  %v2411_v37 = vmul.f32 %v7599_v58, %v7594_v49  ;;  %v5180_v16 = vld [vmem:[%s11022_s2 + $0x148] sm:$0xf0]  ;;  %v5507_v49 = vld [vmem:[%s11022_s2 + $0x1c4] sm:$0xf] }
 0x126   :  { %11315 = vst [vmem:[#allocation43_spill] sm:$0xff] %v7808_v35  ;;  %vm1667_vm4 = vcmp.gt.f32.partialorder %v7821_v57, 0.0  ;;  %v7865_v38 = vmul.f32 %v7756_v15, %v7332_v60  ;;  %v2247_v31 = vadd.f32 %v2215_v45, %v2084_v36  ;;  %v2413_v12 = vmul.f32 %v7599_v58, %v2031_v41 }
 0x127   :  { %11316 = vst [vmem:[#allocation44_spill] sm:$0xff] %v7812_v11  ;;  %v7857_v33 = vsel %vm254_vm6, %v11322_v9, %v11321_v44  ;;  %v7879_v10 = vmul.f32 %v7776_v23, %v7637_v7  ;;  %v11325_v60 = vrot.slane %v7625_v14, 1  ;;  %v11326_v36 = vrot.slane %v7582_v46, 1  ;;  %v11327_v44 = vld [vmem:[#allocation16_spill] sm:$0xff]  ;;  %v5178_v7 = vld [vmem:[%s11022_s2 + $0x140] sm:$0xf] }
 0x128   :  { %11317 = vst [vmem:[#allocation45_spill] sm:$0xff] %v7823_v55  ;;  %v5491_v55 = vld [vmem:[%s11022_s2 + $0x144] sm:$0xf]  ;;  %v2312_v9 = vadd.f32 %v11327_v44, %v2245_v32  ;;  %v2576_v32 = vmul.f32 %v7630_v47, %v7857_v33  ;;  %v5508_v44 = vld [vmem:[%s11022_s2 + $0x1c4] sm:$0xf0]  ;;  %v2772_v35 = vmul.f32 %v7663_v29, %v2031_v41 }
 0x129   :  { %11318 = vst [vmem:[#allocation46_spill] sm:$0xff] %v7833_v25  ;;  %v7887_v45 = vsel %vm420_vm7, %v11326_v36, %v11325_v60  ;;  %v5244_v25 = vld [vmem:[%s11022_s2 + $0x1c8] sm:$0xf0]  ;;  %v2314_v60 = vadd.f32 %v11328_v17, %v2247_v31  ;;  %v5242_v36 = vld [vmem:[%s11022_s2 + $0x1c0] sm:$0xf]  ;;  %v2643_v17 = vmul.f32 %v7658_v27, %v7582_v46 }
 0x12a   :  { %11319 = vst [vmem:[#allocation47_spill] sm:$0xff] %v7840_v52  ;;  %v2443_v52 = vadd.f32 %v2411_v37, %v2312_v9  ;;  %v5243_v31 = vor.u32 %v5508_v44, %v5242_v36  ;;  %v11334_v44 = vld [vmem:[#allocation21_spill] sm:$0xff] }
 0x12b   :  { %11320 = vst [vmem:[#allocation48_spill] sm:$0xff] %v7849_v26  ;;  %v5183_v26 = vor.u32 %v5491_v55, %v5180_v16  ;;  %v5247_v55 = vor.u32 %v5507_v49, %v5244_v25  ;;  %v2445_v11 = vadd.f32 %v2413_v12, %v2314_v60  ;;  %v11330_v25 = vrot.slane %v7427_v62, 7 }
 0x12c   :  { %11323 = vst [vmem:[#allocation49_spill] sm:$0xff] %v7865_v38  ;;  %v2574_v38 = vmul.f32 %v7630_v47, %v1867_v1  ;;  %v2641_v1 = vmul.f32 %v7658_v27, %v7519_v28  ;;  %v11329_v28 = vrot.slane %v7550_v56, 7  ;;  %v11332_v12 = vrot.slane %v7550_v56, 1  ;;  %3100 = vmatpush.bf16.msrb.mxu1 %v5243_v31 }
 0x12d   :  { %11324 = vst [vmem:[#allocation50_spill] sm:$0xff] %v7879_v10  ;;  %v5492_v10 = vld [vmem:[%s11022_s2 + $0x144] sm:$0xf0]  ;;  %3149 = vmatpush.bf16.msrb.mxu2 %v5183_v26  ;;  %3198 = vmatpush.bf16.msrb.mxu3 %v5247_v55  ;;  %v11331_v26 = vrot.slane %v7623_v22, 1  ;;  %v2608_v62 = vadd.f32 %v2576_v32, %v2445_v11  ;;  %v2774_v60 = vmul.f32 %v7663_v29, %v7887_v45 }
 0x12e   :  { %v5179_v16 = vor.u32 %v5492_v10, %v5178_v7  ;;  %v1868_v49 = vsel %vm254_vm6, %v11330_v25, %v11329_v28  ;;  %v1699_v10 = vmul.f32 0.2, %v7821_v57  ;;  %v1486_v7 = vpop.f32.mrf.mxu0  ;;  %v2606_v37 = vadd.f32 %v2574_v38, %v2443_v52  ;;  %v1630_v38 = vpop.f32.mrf.mxu3 }
 0x12f   :  { %v1889_v9 = vmul.f32 %v7361_v4, %v1868_v49  ;;  %v2032_v41 = vsel %vm420_vm7, %v11332_v12, %v11331_v26  ;;  %v2214_v55 = vmul.f32 %v7642_v2, %v7508_v59  ;;  %v7935_v52 = vmul.f32 %v7330_v20, %v7716_v24 }
 0x130   :  { %3051 = vmatpush.bf16.msrb.mxu0 %v5179_v16  ;;  %v2055_v36 = vmul.f32 %v7381_v21, %v2032_v41  ;;  %v2673_v16 = vadd.f32 %v2641_v1, %v2606_v37  ;;  %v2216_v25 = vmul.f32 %v7642_v2, %v1868_v49  ;;  %v7941_v11 = vmul.f32 %v7366_v43, %v7716_v24 }
 0x131   :  { %11333 = vst [vmem:[#allocation16_spill] sm:$0xff] %v7935_v52  ;;  %v1956_v28 = vadd.f32 %v11334_v44, %v1889_v9  ;;  %v1487_v32 = vadd.f32 %v1486_v7, %v7184_v6  ;;  %v2675_v31 = vadd.f32 %v2643_v17, %v2608_v62  ;;  %v2246_v26 = vadd.f32 %v2214_v55, %v7672_v61  ;;  %v1584_v9 = vpop.f32.mrf.mxu2  ;;  %v11341_v55 = vld [vmem:[#allocation22_spill] sm:$0xff] }
 0x132   :  { %11335 = vst [vmem:[#allocation20_spill] sm:$0xff] %v7941_v11  ;;  %v2804_v59 = vadd.f32 %v2772_v35, %v2673_v16  ;;  %v2248_v52 = vadd.f32 %v2216_v25, %v7815_v54  ;;  %v2412_v1 = vmul.f32 %v7695_v30, %v7728_v3  ;;  %v7953_v37 = vsel %vm1667_vm4, %v7821_v57, %v1699_v10  ;;  %v11340_v35 = vld [vmem:[#allocation17_spill] sm:$0xff]  ;;  %v1535_v3 = vpop.f32.mrf.mxu1  ;;  %v5170_v11 = vld [vmem:[%s11022_s2 + $0x130] sm:$0xf] }
 0x133   :  { %v7945_v12 = vadd.f32 %v2055_v36, %v1956_v28  ;;  %11337 = vst [vmem:[#allocation51_spill] sm:$0xff] %v7953_v37  ;;  %v2806_v44 = vadd.f32 %v2774_v60, %v2675_v31  ;;  %v11338_v7 = vrot.slane %v7623_v22, 7  ;;  %v11339_v17 = vrot.slane %v7550_v56, 7 }
 0x134   :  { %v2313_v54 = vadd.f32 %v11340_v35, %v2246_v26  ;;  %v1631_v62 = vadd.f32 %v1630_v38, %v7843_v13  ;;  %v11067_v36 = vrot.slane %v7746_v63, 1  ;;  %v2315_v57 = vadd.f32 %v11341_v55, %v2248_v52 }
 0x135   :  { %11336 = vst [vmem:[#allocation21_spill] sm:$0xff] %v7945_v12  ;;  %v7961_v61 = vsel %vm254_vm6, %v11339_v17, %v11338_v7  ;;  %v2414_v10 = vmul.f32 %v7695_v30, %v2032_v41  ;;  %v1536_v60 = vadd.f32 %v1535_v3, %v1487_v32  ;;  %v7968_v16 = vpack.c.bf16 %v2806_v44, %v2804_v59 }
 0x136   :  { %v2444_v28 = vadd.f32 %v2412_v1, %v2313_v54  ;;  %v2575_v25 = vmul.f32 %v7744_v5, %v1868_v49  ;;  %v1585_v31 = vadd.f32 %v1584_v9, %v7236_v39  ;;  %v2577_v26 = vmul.f32 %v7744_v5, %v7961_v61  ;;  %v1488_v59 = vpop.f32.mrf.mxu0  ;;  %v5506_v5 = vld [vmem:[%s11022_s2 + $0x1b4] sm:$0xf0] }
 0x137   :  { %11342 = vst [vmem:[#allocation17_spill] sm:$0xff] %v7968_v16  ;;  %v2446_v7 = vadd.f32 %v2414_v10, %v2315_v57  ;;  %v2642_v13 = vmul.f32 %v7756_v15, %v7550_v56  ;;  %vm1669_vm5 = vcmp.gt.f32.partialorder %v1536_v60, 0.0  ;;  %v1701_v38 = vmul.f32 0.2, %v1536_v60  ;;  %v5236_v16 = vld [vmem:[%s11022_s2 + $0x1b8] sm:$0xf0] }
 0x138   :  { %v2607_v52 = vadd.f32 %v2575_v25, %v2444_v28  ;;  %v2773_v17 = vmul.f32 %v7776_v23, %v2032_v41  ;;  %v7978_v32 = vrot.slane %v7953_v37, 7  ;;  %v1890_v49 = vmul.f32 %v7299_v42, %v7857_v33  ;;  %v1633_v10 = vpop.f32.mrf.mxu3 }
 0x139   :  { %v11344_v1 = vrot.slane %v7623_v22, 1  ;;  %v2609_v56 = vadd.f32 %v2577_v26, %v2446_v7  ;;  %v1700_v44 = vmul.f32 0.2, %v1631_v62  ;;  %v7990_v35 = vsel %vm1669_vm5, %v1536_v60, %v1701_v38 }
 0x13a   :  { %11343 = vst [vmem:[#allocation22_spill] sm:$0xff] %v7978_v32  ;;  %v2644_v41 = vmul.f32 %v7756_v15, %v7623_v22  ;;  %v2674_v54 = vadd.f32 %v2642_v13, %v2607_v52  ;;  %v7995_v3 = vrot.slane %v7953_v37, 1  ;;  %vm1668_vm8 = vcmp.gt.f32.partialorder %v1631_v62, 0.0  ;;  %v11347_v13 = vld [vmem:[#allocation7_spill] sm:$0xff]  ;;  %v5234_v15 = vld [vmem:[%s11022_s2 + $0x1b0] sm:$0xf] }
 0x13b   :  { %v7988_v9 = vsel %vm420_vm7, %v11344_v1, %v11067_v36  ;;  %v7998_v55 = vrot.slane %v7990_v35, 7  ;;  %v8001_v57 = vrot.slane %v7990_v35, 1  ;;  %v1634_v28 = vadd.f32 %v1633_v10, %v1585_v31  ;;  %v5489_v31 = vld [vmem:[%s11022_s2 + $0x134] sm:$0xf]  ;;  %v1586_v36 = vpop.f32.mrf.mxu2 }
 0x13c   :  { %v2676_v25 = vadd.f32 %v2644_v41, %v2609_v56  ;;  %v2775_v60 = vmul.f32 %v7776_v23, %v7988_v9  ;;  %v2805_v7 = vadd.f32 %v2773_v17, %v2674_v54  ;;  %v8007_v26 = vmul.f32 %v7309_v48, %v7953_v37  ;;  %v5172_v17 = vld [vmem:[%s11022_s2 + $0x138] sm:$0xf0]  ;;  %v5505_v1 = vld [vmem:[%s11022_s2 + $0x1b4] sm:$0xf]  ;;  %v11348_v56 = vld [vmem:[#allocation23_spill] sm:$0xff] }
 0x13d   :  { %11345 = vst [vmem:[#allocation52_spill] sm:$0xff] %v8001_v57  ;;  %v2023_v38 = vsel %vm420_vm7, %v11347_v13, %v8001_v57  ;;  %v2188_v52 = vsel %vm254_vm6, %v7978_v32, %v7998_v55  ;;  %v1957_v41 = vadd.f32 %v11348_v56, %v1890_v49  ;;  %v8027_v54 = vsel %vm1668_vm8, %v1631_v62, %v1700_v44  ;;  %v11349_v56 = vld [vmem:[#allocation36_spill] sm:$0xff] }
 0x13e   :  { %11346 = vst [vmem:[#allocation53_spill] sm:$0xff] %v8007_v26  ;;  %v2062_v10 = vmul.f32 %v7323_v0, %v2023_v38  ;;  %vm1670_vm9 = vcmp.gt.f32.partialorder %v1634_v28, 0.0  ;;  %v2056_v37 = vmul.f32 %v7323_v0, %v7887_v45  ;;  %v1702_v26 = vmul.f32 0.2, %v1634_v28  ;;  %v5490_v38 = vld [vmem:[%s11022_s2 + $0x134] sm:$0xf0] }
 0x13f   :  { %v1489_v49 = vadd.f32 %v1488_v59, %v7184_v6  ;;  %v5175_v62 = vor.u32 %v5489_v31, %v5172_v17  ;;  %v5239_v44 = vor.u32 %v5505_v1, %v5236_v16  ;;  %v2225_v32 = vmul.f32 %v7556_v19, %v2188_v52 }
 0x140   :  { %v2094_v57 = vadd.f32 %v2062_v10, %v11349_v56  ;;  %v5171_v23 = vor.u32 %v5490_v38, %v5170_v11  ;;  %v2807_v59 = vadd.f32 %v2775_v60, %v2676_v25  ;;  %v8051_v16 = vrot.slane %v8027_v54, 7  ;;  %v1537_v60 = vpop.f32.mrf.mxu1  ;;  %v1635_v56 = vpop.f32.mrf.mxu3 }
 0x141   :  { %v8054_v31 = vsel %vm1670_vm9, %v1634_v28, %v1702_v26  ;;  %v1587_v17 = vadd.f32 %v1586_v36, %v7236_v39  ;;  %3150 = vmatpush.bf16.msrb.mxu2 %v5175_v62  ;;  %3199 = vmatpush.bf16.msrb.mxu3 %v5239_v44  ;;  %v1891_v11 = vmul.f32 %v7361_v4, %v7961_v61  ;;  %v1491_v28 = vpop.f32.mrf.mxu0  ;;  %v11353_v62 = vrot.slane %v7625_v14, 7 }
 0x142   :  { %11350 = vst [vmem:[#allocation23_spill] sm:$0xff] %v8051_v16  ;;  %v2257_v52 = vadd.f32 %v2225_v32, %v2094_v57  ;;  %v2292_v1 = vmul.f32 %v7309_v48, %v7990_v35  ;;  %v8062_v10 = vrot.slane %v8054_v31, 7  ;;  %v8065_v25 = vrot.slane %v8054_v31, 1  ;;  %3052 = vmatpush.bf16.msrb.mxu0 %v5171_v23 }
 0x143   :  { %v5235_v26 = vor.u32 %v5506_v5, %v5234_v15  ;;  %v8067_v36 = vpack.c.bf16 %v2807_v59, %v2805_v7  ;;  %v11354_v44 = vrot.slane %v7582_v46, 7  ;;  %v8076_v57 = vrot.slane %v7674_v50, 1 }
 0x144   :  { %11351 = vst [vmem:[#allocation36_spill] sm:$0xff] %v8065_v25  ;;  %v8078_v38 = vadd.f32 %v2292_v1, %v2257_v52  ;;  %v2024_v23 = vsel %vm420_vm7, %v11347_v13, %v8065_v25  ;;  %v2189_v5 = vsel %vm254_vm6, %v8051_v16, %v8062_v10  ;;  %v1538_v15 = vadd.f32 %v1537_v60, %v1489_v49 }
 0x145   :  { %11352 = vst [vmem:[#allocation54_spill] sm:$0xff] %v8067_v36  ;;  %v1863_v32 = vsel %vm254_vm6, %v11354_v44, %v11353_v62  ;;  %v8090_v46 = vmul.f32 %v7366_v43, %v8027_v54  ;;  %v2063_v7 = vmul.f32 %v7381_v21, %v2024_v23  ;;  %3101 = vmatpush.bf16.msrb.mxu1 %v5235_v26  ;;  %v11357_v44 = vld [vmem:[#allocation25_spill] sm:$0xff] }
 0x146   :  { %11355 = vst [vmem:[#allocation55_spill] sm:$0xff] %v8078_v38  ;;  %v2088_v59 = vadd.f32 %v2056_v37, %v1957_v41  ;;  %v2217_v52 = vmul.f32 %v7556_v19, %v7857_v33  ;;  %v1636_v1 = vadd.f32 %v1635_v56, %v1587_v17  ;;  %v2415_v62 = vmul.f32 %v7599_v58, %v7887_v45  ;;  %v11359_v17 = vld [vmem:[#allocation26_spill] sm:$0xff]  ;;  %v1589_v56 = vpop.f32.mrf.mxu2 }
 0x147   :  { %11356 = vst [vmem:[#allocation56_spill] sm:$0xff] %v8090_v46  ;;  %v1958_v36 = vadd.f32 %v11357_v44, %v1891_v11  ;;  %v1892_v49 = vmul.f32 %v7299_v42, %v1863_v32  ;;  %v2095_v60 = vadd.f32 %v2063_v7, %v7800_v51  ;;  %v2226_v38 = vmul.f32 %v7642_v2, %v2189_v5 }
 0x148   :  { %v2057_v23 = vmul.f32 %v7381_v21, %v7988_v9  ;;  %v11358_v37 = vrot.slane %v7625_v14, 1  ;;  %v1857_v45 = vsel %vm254_vm6, %v5921_v40, %v7998_v55  ;;  %v1703_v41 = vmul.f32 0.2, %v1538_v15 }
 0x149   :  { %v1492_v51 = vadd.f32 %v1491_v28, %v7184_v6  ;;  %v11360_v11 = vrot.slane %v7625_v14, 7  ;;  %v2258_v26 = vadd.f32 %v2226_v38, %v2095_v60  ;;  %v2293_v5 = vmul.f32 %v7366_v43, %v8054_v31 }
 0x14a   :  { %v8108_v33 = vsel %vm420_vm7, %v11358_v37, %v8076_v57  ;;  %v1704_v7 = vmul.f32 0.2, %v1636_v1  ;;  %vm1671_vm10 = vcmp.gt.f32.partialorder %v1538_v15, 0.0  ;;  %vm1672_vm11 = vcmp.gt.f32.partialorder %v1636_v1, 0.0  ;;  %v11361_v37 = vld [vmem:[#allocation29_spill] sm:$0xff] }
 0x14b   :  { %v8120_v21 = vsel %vm254_vm6, %v11360_v11, %v11359_v17  ;;  %v2058_v44 = vmul.f32 %v7323_v0, %v8108_v33  ;;  %v1959_v28 = vadd.f32 %v11361_v37, %v1892_v49  ;;  %v2219_v46 = vmul.f32 %v7556_v19, %v1863_v32  ;;  %v1540_v17 = vpop.f32.mrf.mxu1 }
 0x14c   :  { %v1933_v25 = vmul.f32 %v7304_v18, %v7990_v35  ;;  %v8130_v11 = vadd.f32 %v2293_v5, %v2258_v26  ;;  %v8134_v38 = vmul.f32 %v7642_v2, %v7961_v61  ;;  %v1894_v60 = vmul.f32 %v7299_v42, %v8120_v21  ;;  %v1493_v5 = vpop.f32.mrf.mxu0 }
 0x14d   :  { %v1898_v16 = vmul.f32 %v7299_v42, %v1857_v45  ;;  %v8139_v12 = vadd.f32 %v2058_v44, %v1959_v28  ;;  %v2249_v49 = vadd.f32 %v2217_v52, %v7845_v53  ;;  %v2251_v37 = vadd.f32 %v2219_v46, %v2088_v59  ;;  %v11364_v44 = vld [vmem:[#allocation24_spill] sm:$0xff] }
 0x14e   :  { %11362 = vst [vmem:[#allocation25_spill] sm:$0xff] %v8130_v11  ;;  %v8142_v24 = vsel %vm1671_vm10, %v1538_v15, %v1703_v41  ;;  %v8144_v35 = vsel %vm1672_vm11, %v1636_v1, %v1704_v7  ;;  %v1541_v26 = vadd.f32 %v1540_v17, %v1492_v51  ;;  %v2417_v61 = vmul.f32 %v7599_v58, %v8108_v33 }
 0x14f   :  { %11363 = vst [vmem:[#allocation29_spill] sm:$0xff] %v8139_v12  ;;  %v8148_v11 = vadd.f32 %v2057_v23, %v1958_v36  ;;  %v8152_v45 = vmul.f32 %v7695_v30, %v7988_v9  ;;  %v2316_v28 = vadd.f32 %v11364_v44, %v2249_v49  ;;  %v11365_v12 = vld [vmem:[#allocation30_spill] sm:$0xff]  ;;  %v1858_v15 = vsel %vm254_vm6, %v5921_v40, %v8062_v10 }
 0x150   :  { %v2318_v53 = vadd.f32 %v11365_v12, %v2251_v37  ;;  %vm1673_vm12 = vcmp.gt.f32.partialorder %v1541_v26, 0.0  ;;  %v1705_v46 = vmul.f32 0.2, %v1541_v26  ;;  %v1590_v59 = vadd.f32 %v1589_v56, %v7236_v39  ;;  %v1638_v49 = vpop.f32.mrf.mxu3  ;;  %v5162_v37 = vld [vmem:[%s11022_s2 + $0x120] sm:$0xf] }
 0x151   :  { %v8162_v36 = vrot.slane %v8142_v24, 7  ;;  %v8165_v52 = vrot.slane %v8144_v35, 7  ;;  %v2447_v9 = vadd.f32 %v2415_v62, %v2316_v28  ;;  %v8167_v23 = vadd.f32 %v1933_v25, %v1898_v16  ;;  %v5487_v16 = vld [vmem:[%s11022_s2 + $0x124] sm:$0xf] }
 0x152   :  { %v2449_v1 = vadd.f32 %v2417_v61, %v2318_v53  ;;  %v8170_v12 = vadd.f32 %v7829_v8, %v1894_v60  ;;  %v2578_v41 = vmul.f32 %v7630_v47, %v1863_v32  ;;  %v2580_v51 = vmul.f32 %v7630_v47, %v8120_v21  ;;  %v5164_v8 = vld [vmem:[%s11022_s2 + $0x128] sm:$0xf0]  ;;  %v1591_v32 = vpop.f32.mrf.mxu2 }
 0x153   :  { %11366 = vst [vmem:[#allocation24_spill] sm:$0xff] %v8165_v52  ;;  %v1899_v17 = vmul.f32 %v7361_v4, %v1858_v15  ;;  %v1934_v7 = vmul.f32 %v7330_v20, %v8054_v31  ;;  %v8178_v56 = vsel %vm1673_vm12, %v1541_v26, %v1705_v46  ;;  %v2388_v47 = vsel %vm420_vm7, %v8076_v57, %v7995_v3  ;;  %v5503_v31 = vld [vmem:[%s11022_s2 + $0x1a4] sm:$0xf]  ;;  %v5228_v60 = vld [vmem:[%s11022_s2 + $0x1a8] sm:$0xf0] }
 0x154   :  { %v1639_v25 = vadd.f32 %v1638_v49, %v1590_v59  ;;  %v5167_v62 = vor.u32 %v5487_v16, %v5164_v8  ;;  %v2610_v26 = vadd.f32 %v2578_v41, %v2447_v9  ;;  %v2612_v61 = vadd.f32 %v2580_v51, %v2449_v1  ;;  %v5488_v15 = vld [vmem:[%s11022_s2 + $0x124] sm:$0xf0]  ;;  %v5226_v46 = vld [vmem:[%s11022_s2 + $0x1a0] sm:$0xf] }
 0x155   :  { %v8203_v44 = vsel %vm254_vm6, %v7998_v55, %v8162_v36  ;;  %v8209_v28 = vsel %vm254_vm6, %v8062_v10, %v8165_v52  ;;  %v5231_v53 = vor.u32 %v5503_v31, %v5228_v60  ;;  %v5504_v55 = vld [vmem:[%s11022_s2 + $0x1a4] sm:$0xf0]  ;;  %v2647_v59 = vmul.f32 %v7658_v27, %v7674_v50  ;;  %v1542_v31 = vpop.f32.mrf.mxu1  ;;  %v1496_v60 = vpop.f32.mrf.mxu0 }
 0x156   :  { %11367 = vst [vmem:[#allocation30_spill] sm:$0xff] %v8209_v28  ;;  %v11087_v9 = vrot.slane %v8178_v56, 7  ;;  %3151 = vmatpush.bf16.msrb.mxu2 %v5167_v62  ;;  %v2645_v10 = vmul.f32 %v7658_v27, %v7625_v14  ;;  %v2776_v1 = vmul.f32 %v7663_v29, %v8108_v33  ;;  %v2778_v41 = vmul.f32 %v7663_v29, %v2388_v47 }
 0x157   :  { %v1494_v51 = vadd.f32 %v1493_v5, %v7184_v6  ;;  %3200 = vmatpush.bf16.msrb.mxu3 %v5231_v53  ;;  %v5163_v49 = vor.u32 %v5488_v15, %v5162_v37  ;;  %v5227_v16 = vor.u32 %v5504_v55, %v5226_v46  ;;  %v2679_v8 = vadd.f32 %v2647_v59, %v2612_v61 }
 0x158   :  { %v1900_v50 = vmul.f32 %v7299_v42, %v8203_v44  ;;  %v1935_v62 = vmul.f32 %v7304_v18, %v8142_v24  ;;  %v2025_v14 = vsel %vm420_vm7, %v8076_v57, %v11347_v13  ;;  %v2677_v27 = vadd.f32 %v2645_v10, %v2610_v26 }
 0x159   :  { %v8238_v29 = vrot.slane %v8027_v54, 1  ;;  %v8240_v33 = vadd.f32 %v1934_v7, %v1899_v17  ;;  %v8244_v5 = vmul.f32 %v7309_v48, %v8142_v24  ;;  %v1901_v42 = vmul.f32 %v7361_v4, %v8209_v28  ;;  %3053 = vmatpush.bf16.msrb.mxu0 %v5163_v49  ;;  %3102 = vmatpush.bf16.msrb.mxu1 %v5227_v16 }
 0x15a   :  { %v8253_v18 = vsel %vm254_vm6, %v8162_v36, %v11087_v9  ;;  %v1706_v57 = vmul.f32 0.2, %v1639_v25  ;;  %v2808_v37 = vadd.f32 %v2776_v1, %v2677_v27  ;;  %v2810_v17 = vadd.f32 %v2778_v41, %v2679_v8  ;;  %v11385_v9 = vld [vmem:[#allocation27_spill] sm:$0xff] }
 0x15b   :  { %11368 = vst [vmem:[#allocation57_spill] sm:$0xff] %v8240_v33  ;;  %vm1674_vm13 = vcmp.gt.f32.partialorder %v1639_v25, 0.0  ;;  %v1543_v7 = vadd.f32 %v1542_v31, %v1494_v51  ;;  %v8256_v48 = vmul.f32 %v7323_v0, %v2025_v14  ;;  %v11371_v26 = vrot.slane %v7746_v63, 7  ;;  %v1640_v51 = vpop.f32.mrf.mxu3  ;;  %v1594_v49 = vpop.f32.mrf.mxu2  ;;  %v11387_v33 = vld [vmem:[#allocation35_spill] sm:$0xff] }
 0x15c   :  { %11369 = vst [vmem:[#allocation58_spill] sm:$0xff] %v8244_v5  ;;  %v11372_v61 = vrot.slane %v7623_v22, 7  ;;  %v8264_v15 = vadd.f32 %v1935_v62, %v1900_v50  ;;  %v1936_v46 = vmul.f32 %v7330_v20, %v8144_v35  ;;  %v8270_v55 = vmul.f32 %v7556_v19, %v8120_v21  ;;  %v8281_v22 = vld [vmem:[%s11021_s1 + $0x90] sm:$0xff]  ;;  %v8288_v20 = vld [vmem:[%s11021_s1 + $0xa0] sm:$0xff]  ;;  %v11375_v21 = vld [vmem:[#allocation31_spill] sm:$0xff] }
 0x15d   :  { %11370 = vst [vmem:[#allocation59_spill] sm:$0xff] %v8253_v18  ;;  %v8272_v59 = vpack.c.bf16 %v2810_v17, %v2808_v37  ;;  %v8276_v0 = vmul.f32 %v7366_v43, %v8144_v35  ;;  %v1902_v10 = vmul.f32 %v8281_v22, %v8253_v18  ;;  %v1937_v19 = vmul.f32 %v8288_v20, %v8178_v56  ;;  %v8326_v37 = vpop.f32.mrf.mxu0  ;;  %v11382_v17 = vld [vmem:[#allocation33_spill] sm:$0xff] }
 0x15e   :  { %v1864_v53 = vsel %vm254_vm6, %v11372_v61, %v11371_v26  ;;  %v8293_v1 = vrot.slane %v11375_v21, 1  ;;  %v8295_v43 = vadd.f32 %v1936_v46, %v1901_v42  ;;  %v8297_v41 = vsel %vm1674_vm13, %v1639_v25, %v1706_v57  ;;  %v11383_v46 = vld [vmem:[#allocation43_spill] sm:$0xff] }
 0x15f   :  { %11373 = vst [vmem:[#allocation60_spill] sm:$0xff] %v8272_v59  ;;  %v8300_v16 = vmul.f32 %v7599_v58, %v2388_v47  ;;  %v1893_v8 = vmul.f32 %v7361_v4, %v1864_v53  ;;  %v1707_v62 = vmul.f32 0.2, %v1543_v7  ;;  %v1592_v31 = vadd.f32 %v1591_v32, %v7236_v39  ;;  %v11379_v58 = vld [vmem:[#allocation21_spill] sm:$0xff]  ;;  %v8319_v32 = vld [vmem:[%s11021_s1 + $0xd0] sm:$0xff]  ;;  %v1545_v61 = vpop.f32.mrf.mxu1 }
 0x160   :  { %11374 = vst [vmem:[#allocation61_spill] sm:$0xff] %v8276_v0  ;;  %v1497_v14 = vadd.f32 %v1496_v60, %v7184_v6  ;;  %vm1675_vm14 = vcmp.gt.f32.partialorder %v1543_v7, 0.0  ;;  %v11378_v27 = vrot.slane %v7746_v63, 1  ;;  %v2220_v42 = vmul.f32 %v7642_v2, %v1864_v53 }
 0x161   :  { %11376 = vst [vmem:[#allocation31_spill] sm:$0xff] %v8295_v43  ;;  %v2250_v47 = vadd.f32 %v8134_v38, %v11379_v58  ;;  %v8314_v4 = vadd.f32 %v1937_v19, %v1902_v10  ;;  %v8323_v60 = vmul.f32 %v8319_v32, %v8178_v56  ;;  %v8333_v38 = vsel %vm254_vm6, %v11371_v26, %v11382_v17  ;;  %v8339_v19 = vld [vmem:[%s11021_s1 + $0xb8] sm:$0xff]  ;;  %v5154_v43 = vld [vmem:[%s11022_s2 + $0x110] sm:$0xf] }
 0x162   :  { %11377 = vst [vmem:[#allocation62_spill] sm:$0xff] %v8297_v41  ;;  %v2028_v25 = vsel %vm420_vm7, %v11378_v27, %v8293_v1  ;;  %v1960_v10 = vadd.f32 %v11383_v46, %v1893_v8  ;;  %v2252_v58 = vadd.f32 %v2220_v42, %v8148_v11  ;;  %v8345_v57 = vsel %vm1675_vm14, %v1543_v7, %v1707_v62  ;;  %v11386_v8 = vld [vmem:[#allocation44_spill] sm:$0xff]  ;;  %v8356_v11 = vld [vmem:[%s11021_s1 + $0xa8] sm:$0xff]  ;;  %v5156_v42 = vld [vmem:[%s11022_s2 + $0x118] sm:$0xf0] }
 0x163   :  { %11380 = vst [vmem:[#allocation21_spill] sm:$0xff] %v8314_v4  ;;  %v2059_v27 = vmul.f32 %v8339_v19, %v2028_v25  ;;  %v2317_v50 = vadd.f32 %v11385_v9, %v2250_v47  ;;  %v1641_v59 = vadd.f32 %v1640_v51, %v1592_v31  ;;  %v1546_v26 = vadd.f32 %v1545_v61, %v1497_v14  ;;  %v8364_v51 = vld [vmem:[%s11021_s1 + $0xd8] sm:$0xff]  ;;  %v5485_v14 = vld [vmem:[%s11022_s2 + $0x114] sm:$0xf] }
 0x164   :  { %11381 = vst [vmem:[#allocation63_spill] sm:$0xff] %v8323_v60  ;;  %v2418_v60 = vmul.f32 %v7695_v30, %v2028_v25  ;;  %v2319_v46 = vadd.f32 %v11386_v8, %v2252_v58  ;;  %v2579_v4 = vmul.f32 %v11387_v33, %v1864_v53  ;;  %v1938_v9 = vmul.f32 %v8356_v11, %v8297_v41  ;;  %v5501_v7 = vld [vmem:[%s11022_s2 + $0x194] sm:$0xf]  ;;  %v5220_v31 = vld [vmem:[%s11022_s2 + $0x198] sm:$0xf0] }
 0x165   :  { %11384 = vst [vmem:[#allocation33_spill] sm:$0xff] %v8339_v19  ;;  %v8348_v0 = vadd.f32 %v2059_v27, %v1960_v10  ;;  %v2448_v28 = vadd.f32 %v8152_v45, %v2317_v50  ;;  %v8368_v45 = vmul.f32 %v8364_v51, %v8297_v41  ;;  %v1595_v53 = vadd.f32 %v1594_v49, %v7236_v39  ;;  %v1643_v8 = vpop.f32.mrf.mxu3 }
 0x166   :  { %11388 = vst [vmem:[#allocation43_spill] sm:$0xff] %v8356_v11  ;;  %v11391_v50 = vrot.slane %v8297_v41, 7  ;;  %v2450_v47 = vadd.f32 %v2418_v60, %v2319_v46  ;;  %v1708_v49 = vmul.f32 0.2, %v1641_v59  ;;  %v1709_v10 = vmul.f32 0.2, %v1546_v26  ;;  %v1501_v5 = vpop.f32.mrf.mxu0 }
 0x167   :  { %11389 = vst [vmem:[#allocation27_spill] sm:$0xff] %v8364_v51  ;;  %v2611_v61 = vadd.f32 %v2579_v4, %v2448_v28  ;;  %v5159_v27 = vor.u32 %v5485_v14, %v5156_v42  ;;  %v2581_v58 = vmul.f32 %v11387_v33, %v8333_v38  ;;  %vm1677_vm15 = vcmp.gt.f32.partialorder %v1546_v26, 0.0  ;;  %v11393_v4 = vld [vmem:[#allocation37_spill] sm:$0xff]  ;;  %v11394_v60 = vld [vmem:[#allocation38_spill] sm:$0xff]  ;;  %v1547_v18 = vpop.f32.mrf.mxu1 }
 0x168   :  { %11390 = vst [vmem:[#allocation44_spill] sm:$0xff] %v8368_v45  ;;  %v8376_v62 = vsel %vm254_vm6, %v8165_v52, %v11391_v50  ;;  %v1596_v50 = vpop.f32.mrf.mxu2  ;;  %v8397_v28 = vsel %vm420_vm7, %v8293_v1, %v8238_v29  ;;  %v2646_v33 = vmul.f32 %v11393_v4, %v7746_v63  ;;  %v2777_v46 = vmul.f32 %v11394_v60, %v2028_v25  ;;  %v8405_v14 = vld [vmem:[%s11021_s1 + $0x98] sm:$0xff]  ;;  %v5218_v25 = vld [vmem:[%s11022_s2 + $0x190] sm:$0xf] }
 0x169   :  { %11392 = vst [vmem:[#allocation35_spill] sm:$0xff] %v8376_v62  ;;  %v1903_v42 = vmul.f32 %v8405_v14, %v8376_v62  ;;  %v8409_v45 = vadd.f32 %v1643_v8, %v1595_v53  ;;  %3152 = vmatpush.bf16.msrb.mxu2 %v5159_v27  ;;  %v5223_v52 = vor.u32 %v5501_v7, %v5220_v31  ;;  %v5486_v63 = vld [vmem:[%s11022_s2 + $0x114] sm:$0xf0]  ;;  %vm1676_vm0 = vcmp.gt.f32.partialorder %v1641_v59, 0.0 }
 0x16a   :  { %11395 = vst [vmem:[#allocation37_spill] sm:$0xff] %v8405_v14  ;;  %v2613_v41 = vadd.f32 %v2581_v58, %v2450_v47  ;;  %v5155_v62 = vor.u32 %v5486_v63, %v5154_v43  ;;  %v5502_v7 = vld [vmem:[%s11022_s2 + $0x194] sm:$0xf0]  ;;  %v2648_v53 = vmul.f32 %v11393_v4, %v11375_v21  ;;  %v2678_v31 = vadd.f32 %v2646_v33, %v2611_v61  ;;  %v11405_v58 = vld [vmem:[#allocation26_spill] sm:$0xff] }
 0x16b   :  { %v8427_v27 = vmul.f32 %v8288_v20, %v8345_v57  ;;  %v8430_v8 = vsel %vm1677_vm15, %v1546_v26, %v1709_v10  ;;  %3201 = vmatpush.bf16.msrb.mxu3 %v5223_v52  ;;  %v1895_v43 = vmul.f32 %v8405_v14, %v8333_v38  ;;  %v2779_v47 = vmul.f32 %v11394_v60, %v8397_v28 }
 0x16c   :  { %11397 = vst [vmem:[#allocation64_spill] sm:$0xff] %v8430_v8  ;;  %3054 = vmatpush.bf16.msrb.mxu0 %v5155_v62  ;;  %v5219_v21 = vor.u32 %v5502_v7, %v5218_v25  ;;  %v2680_v61 = vadd.f32 %v2648_v53, %v2613_v41  ;;  %v2809_v4 = vadd.f32 %v2777_v46, %v2678_v31  ;;  %v1710_v62 = vmul.f32 0.2, %v8409_v45  ;;  %v5212_v53 = vld [vmem:[%s11022_s2 + $0x188] sm:$0xf0] }
 0x16d   :  { %11396 = vst [vmem:[#allocation38_spill] sm:$0xff] %v8427_v27  ;;  %v8439_v33 = vmul.f32 %v8319_v32, %v8345_v57  ;;  %v8442_v26 = vsel %vm1676_vm0, %v1641_v59, %v1708_v49  ;;  %v1499_v52 = vadd.f32 %v8326_v37, %v7184_v6  ;;  %v2026_v10 = vsel %vm420_vm7, %v8293_v1, %v11347_v13  ;;  %v5483_v37 = vld [vmem:[%s11022_s2 + $0x104] sm:$0xf]  ;;  %v5148_v1 = vld [vmem:[%s11022_s2 + $0x108] sm:$0xf0]  ;;  %v11400_v49 = vld [vmem:[#allocation16_spill] sm:$0xff]  ;;  %v1645_v7 = vpop.f32.mrf.mxu3 }
 0x16e   :  { %v8450_v60 = vadd.f32 %v1938_v9, %v1903_v42  ;;  %3103 = vmatpush.bf16.msrb.mxu1 %v5219_v21  ;;  %v8456_v46 = vmul.f32 %v7642_v2, %v8333_v38  ;;  %v1502_v59 = vadd.f32 %v1501_v5, %v7184_v6  ;;  %v5499_v9 = vld [vmem:[%s11022_s2 + $0x184] sm:$0xf]  ;;  %v8469_v42 = vadd.f32 %v11400_v49, %v1895_v43  ;;  %v11401_v2 = vld [vmem:[#allocation29_spill] sm:$0xff]  ;;  %v5146_v31 = vld [vmem:[%s11022_s2 + $0x100] sm:$0xf] }
 0x16f   :  { %11398 = vst [vmem:[#allocation65_spill] sm:$0xff] %v8439_v33  ;;  %v2811_v63 = vadd.f32 %v2779_v47, %v2680_v61  ;;  %v2253_v38 = vadd.f32 %v8270_v55, %v11401_v2  ;;  %v8476_v25 = vmul.f32 %v8356_v11, %v8442_v26  ;;  %vm1678_vm1 = vcmp.gt.f32.partialorder %v8409_v45, 0.0  ;;  %v5484_v61 = vld [vmem:[%s11022_s2 + $0x104] sm:$0xf0]  ;;  %v5210_v49 = vld [vmem:[%s11022_s2 + $0x180] sm:$0xf] }
 0x170   :  { %11399 = vst [vmem:[#allocation66_spill] sm:$0xff] %v8450_v60  ;;  %v8486_v43 = vmul.f32 %v8339_v19, %v2026_v10  ;;  %v8490_v55 = vmul.f32 %v8364_v51, %v8442_v26  ;;  %v1548_v47 = vadd.f32 %v1547_v18, %v1499_v52  ;;  %v1597_v21 = vadd.f32 %v1596_v50, %v7236_v39  ;;  %v5500_v10 = vld [vmem:[%s11022_s2 + $0x184] sm:$0xf0]  ;;  %v11404_v2 = vld [vmem:[#allocation22_spill] sm:$0xff]  ;;  %v1550_v18 = vpop.f32.mrf.mxu1  ;;  %v1599_v52 = vpop.f32.mrf.mxu2 }
 0x171   :  { %11402 = vst [vmem:[#allocation16_spill] sm:$0xff] %v8476_v25  ;;  %v2190_v5 = vsel %vm254_vm6, %v11405_v58, %v11404_v2  ;;  %v5151_v50 = vor.u32 %v5483_v37, %v5148_v1  ;;  %v5215_v41 = vor.u32 %v5499_v9, %v5212_v53  ;;  %v5211_v25 = vor.u32 %v5500_v10, %v5210_v49  ;;  %v11412_v49 = vld [vmem:[#allocation52_spill] sm:$0xff] }
 0x172   :  { %11403 = vst [vmem:[#allocation29_spill] sm:$0xff] %v8490_v55  ;;  %v5147_v55 = vor.u32 %v5484_v61, %v5146_v31  ;;  %v11406_v33 = vrot.slane %v8430_v8, 7  ;;  %v11407_v60 = vrot.slane %v8345_v57, 7  ;;  %v1941_v19 = vmul.f32 %v8288_v20, %v8430_v8 }
 0x173   :  { %v8519_v58 = vsel %vm1678_vm1, %v8409_v45, %v1710_v62  ;;  %v1551_v37 = vadd.f32 %v1550_v18, %v1502_v59  ;;  %3153 = vmatpush.bf16.msrb.mxu2 %v5151_v50  ;;  %3202 = vmatpush.bf16.msrb.mxu3 %v5215_v41  ;;  %v8522_v9 = vpack.c.bf16 %v2811_v63, %v2809_v4  ;;  %v1503_v59 = vpop.f32.mrf.mxu0  ;;  %v11411_v41 = vld [vmem:[#allocation47_spill] sm:$0xff]  ;;  %vm1679_vm3 = vcmp.gt.f32.partialorder %v1548_v47, 0.0 }
 0x174   :  { %v8512_v27 = vsel %vm254_vm6, %v11407_v60, %v11406_v33  ;;  %11409 = vst [vmem:[#allocation26_spill] sm:$0xff] %v8519_v58  ;;  %v2092_v53 = vadd.f32 %v8256_v48, %v8170_v12  ;;  %v8529_v33 = vld [vmem:[%s11021_s1 + $0xc0] sm:$0xff]  ;;  %v1600_v62 = vadd.f32 %v1599_v52, %v7236_v39  ;;  %3055 = vmatpush.bf16.msrb.mxu0 %v5147_v55  ;;  %v11099_v12 = vrot.slane %v8519_v58, 7 }
 0x175   :  { %11408 = vst [vmem:[#allocation22_spill] sm:$0xff] %v8512_v27  ;;  %v2223_v60 = vmul.f32 %v8529_v33, %v2190_v5  ;;  %vm1681_vm2 = vcmp.gt.f32.partialorder %v1551_v37, 0.0  ;;  %v1713_v45 = vmul.f32 0.2, %v1551_v37  ;;  %3104 = vmatpush.bf16.msrb.mxu1 %v5211_v25  ;;  %v2320_v4 = vadd.f32 %v11411_v41, %v2253_v38  ;;  %v1648_v18 = vpop.f32.mrf.mxu3 }
 0x176   :  { %11410 = vst [vmem:[#allocation67_spill] sm:$0xff] %v8522_v9  ;;  %v1906_v63 = vmul.f32 %v8281_v22, %v8512_v27  ;;  %v1711_v48 = vmul.f32 0.2, %v1548_v47  ;;  %v2386_v10 = vsel %vm420_vm7, %v7995_v3, %v11412_v49  ;;  %v1504_v52 = vadd.f32 %v1503_v59, %v7184_v6  ;;  %v11428_v9 = vld [vmem:[#allocation9_spill] sm:$0xff] }
 0x177   :  { %v8537_v31 = vsel %vm1681_vm2, %v1551_v37, %v1713_v45  ;;  %v2255_v61 = vadd.f32 %v2223_v60, %v2092_v53  ;;  %v2451_v55 = vadd.f32 %v8300_v16, %v2320_v4  ;;  %v8551_v50 = vmul.f32 %v7695_v30, %v8397_v28  ;;  %v8563_v16 = vld [vmem:[%s11021_s1 + $0xe0] sm:$0xff] }
 0x178   :  { %v8546_v38 = vrot.slane %v8537_v31, 7  ;;  %v8555_v37 = vmul.f32 %v8319_v32, %v8430_v8  ;;  %v1649_v53 = vadd.f32 %v1648_v18, %v1600_v62  ;;  %v8558_v60 = vrot.slane %v8142_v24, 1  ;;  %v11415_v62 = vld [vmem:[#allocation53_spill] sm:$0xff]  ;;  %v1601_v18 = vpop.f32.mrf.mxu2 }
 0x179   :  { %v2421_v45 = vmul.f32 %v8563_v16, %v2386_v10  ;;  %v8566_v6 = vadd.f32 %v1941_v19, %v1906_v63  ;;  %v8569_v30 = vsel %vm1679_vm3, %v1548_v47, %v1711_v48  ;;  %v2322_v59 = vadd.f32 %v11415_v62, %v2255_v61  ;;  %v1552_v47 = vpop.f32.mrf.mxu1  ;;  %v8588_v61 = vld [vmem:[%s11021_s1 + $0xf0] sm:$0xff] }
 0x17a   :  { %11413 = vst [vmem:[#allocation47_spill] sm:$0xff] %v8555_v37  ;;  %v1875_v28 = vsel %vm254_vm6, %v8546_v38, %v5921_v40  ;;  %v11416_v41 = vrot.slane %v8442_v26, 7  ;;  %v1646_v19 = vadd.f32 %v1645_v7, %v1597_v21  ;;  %vm1682_vm4 = vcmp.gt.f32.partialorder %v1649_v53, 0.0 }
 0x17b   :  { %11414 = vst [vmem:[#allocation52_spill] sm:$0xff] %v8566_v6  ;;  %v1880_v63 = vmul.f32 %v8281_v22, %v1875_v28  ;;  %v1714_v48 = vmul.f32 0.2, %v1649_v53  ;;  %v1553_v10 = vadd.f32 %v1552_v47, %v1504_v52  ;;  %v2453_v25 = vadd.f32 %v2421_v45, %v2322_v59  ;;  %v11431_v6 = vld [vmem:[#allocation51_spill] sm:$0xff] }
 0x17c   :  { %v8582_v4 = vsel %vm254_vm6, %v11416_v41, %v11099_v12  ;;  %v2582_v62 = vmul.f32 %v8588_v61, %v2190_v5  ;;  %v1942_v41 = vmul.f32 %v8356_v11, %v8519_v58  ;;  %v8595_v7 = vmul.f32 %v8364_v51, %v8519_v58 }
 0x17d   :  { %11417 = vst [vmem:[#allocation53_spill] sm:$0xff] %v8582_v4  ;;  %v11102_v21 = vrot.slane %v8569_v30, 7  ;;  %v8600_v52 = vmul.f32 %v8288_v20, %v8569_v30  ;;  %v8602_v45 = vsel %vm1682_vm4, %v1649_v53, %v1714_v48  ;;  %vm1683_vm5 = vcmp.gt.f32.partialorder %v1553_v10, 0.0  ;;  %v11423_v48 = vld [vmem:[#allocation32_spill] sm:$0xff] }
 0x17e   :  { %11418 = vst [vmem:[#allocation68_spill] sm:$0xff] %v8595_v7  ;;  %v1715_v28 = vmul.f32 0.2, %v1553_v10  ;;  %v2614_v59 = vadd.f32 %v2582_v62, %v2451_v55  ;;  %v1907_v5 = vmul.f32 %v8405_v14, %v8582_v4  ;;  %v8614_v12 = vrot.slane %v8602_v45, 7 }
 0x17f   :  { %11419 = vst [vmem:[#allocation69_spill] sm:$0xff] %v8600_v52  ;;  %v8611_v47 = vsel %vm254_vm6, %v11102_v21, %v8546_v38  ;;  %v1602_v1 = vadd.f32 %v1601_v18, %v7236_v39  ;;  %v1712_v53 = vmul.f32 0.2, %v1646_v19  ;;  %v1947_v11 = vadd.f32 %v11423_v48, %v1880_v63  ;;  %v1650_v48 = vpop.f32.mrf.mxu3 }
 0x180   :  { %11420 = vst [vmem:[#allocation70_spill] sm:$0xff] %v8602_v45  ;;  %v8619_v55 = vrot.slane %v8537_v31, 1  ;;  %v8621_v62 = vsel %vm1683_vm5, %v1553_v10, %v1715_v28  ;;  %vm1680_vm8 = vcmp.gt.f32.partialorder %v1646_v19, 0.0  ;;  %v1876_v21 = vsel %vm254_vm6, %v8614_v12, %v5921_v40  ;;  %v11430_v45 = vld [vmem:[#allocation12_spill] sm:$0xff] }
 0x181   :  { %11421 = vst [vmem:[#allocation71_spill] sm:$0xff] %v8611_v47  ;;  %v8628_v7 = vrot.slane %v8621_v62, 7  ;;  %v2551_v39 = vsel %vm254_vm6, %v11404_v2, %v5921_v40  ;;  %v1910_v63 = vmul.f32 %v8281_v22, %v8611_v47  ;;  %v1945_v10 = vmul.f32 %v8288_v20, %v8537_v31  ;;  %v8654_v20 = vld [vmem:[%s11021_s1 + $0x100] sm:$0xff] }
 0x182   :  { %11422 = vst [vmem:[#allocation72_spill] sm:$0xff] %v8614_v12  ;;  %v2041_v18 = vsel %vm420_vm7, %v8619_v55, %v11347_v13  ;;  %v1881_v28 = vmul.f32 %v8405_v14, %v1876_v21  ;;  %v8645_v52 = vmul.f32 %v8319_v32, %v8569_v30  ;;  %v1651_v47 = vadd.f32 %v1650_v48, %v1602_v1  ;;  %v8667_v1 = vld [vmem:[%s11021_s1 + $0xb0] sm:$0xff] }
 0x183   :  { %11424 = vst [vmem:[#allocation32_spill] sm:$0xff] %v8619_v55  ;;  %v2204_v2 = vsel %vm254_vm6, %v8628_v7, %v11428_v9  ;;  %v8657_v37 = vmul.f32 0.0, %v8654_v20  ;;  %v8659_v21 = vsel %vm1680_vm8, %v1646_v19, %v1712_v53  ;;  %v2584_v4 = vmul.f32 %v8588_v61, %v2551_v39  ;;  %v11432_v53 = vld [vmem:[#allocation39_spill] sm:$0xff] }
 0x184   :  { %11425 = vst [vmem:[#allocation73_spill] sm:$0xff] %v8621_v62  ;;  %v2209_v55 = vmul.f32 %v8529_v33, %v2204_v2  ;;  %v2076_v9 = vmul.f32 %v8667_v1, %v2041_v18  ;;  %vm1684_vm9 = vcmp.gt.f32.partialorder %v1651_v47, 0.0  ;;  %v1716_v48 = vmul.f32 0.2, %v1651_v47 }
 0x185   :  { %11426 = vst [vmem:[#allocation74_spill] sm:$0xff] %v8628_v7  ;;  %v2649_v14 = vmul.f32 %v8654_v20, %v11431_v6  ;;  %v1977_v19 = vadd.f32 %v1945_v10, %v1910_v63  ;;  %v1948_v27 = vadd.f32 %v11432_v53, %v1881_v28  ;;  %v2616_v8 = vadd.f32 %v2584_v4, %v2453_v25  ;;  %v11437_v63 = vld [vmem:[#allocation13_spill] sm:$0xff]  ;;  %v11441_v6 = vld [vmem:[#allocation36_spill] sm:$0xff] }
 0x186   :  { %11427 = vst [vmem:[#allocation75_spill] sm:$0xff] %v8645_v52  ;;  %v2078_v52 = vadd.f32 %v11430_v45, %v1947_v11  ;;  %v8673_v11 = vsel %vm1684_vm9, %v1651_v47, %v1716_v48  ;;  %v2747_v39 = vsel %vm420_vm7, %v11347_v13, %v8558_v60  ;;  %v2749_v18 = vsel %vm420_vm7, %v7995_v3, %v11347_v13  ;;  %v8701_v3 = vld [vmem:[%s11021_s1 + $0x110] sm:$0xff]  ;;  %v8721_v48 = vld [vmem:[%s11021_s1 + $0xc8] sm:$0xff] }
 0x187   :  { %11429 = vst [vmem:[#allocation9_spill] sm:$0xff] %v8657_v37  ;;  %v2681_v45 = vadd.f32 %v2649_v14, %v2614_v59  ;;  %v8683_v58 = vadd.f32 %v1942_v41, %v1907_v5  ;;  %v8688_v25 = vmul.f32 %v8364_v51, %v8659_v21  ;;  %v8691_v14 = vrot.slane %v8673_v11, 7 }
 0x188   :  { %v2241_v2 = vadd.f32 %v2209_v55, %v2078_v52  ;;  %v8695_v4 = vmul.f32 %v8319_v32, %v8537_v31  ;;  %v11435_v52 = vld [vmem:[#allocation14_spill] sm:$0xff]  ;;  %v2780_v41 = vmul.f32 %v8701_v3, %v2749_v18  ;;  %v2782_v5 = vmul.f32 %v8701_v3, %v2747_v39 }
 0x189   :  { %11433 = vst [vmem:[#allocation12_spill] sm:$0xff] %v8691_v14  ;;  %v8705_v47 = vadd.f32 %v2076_v9, %v1977_v19  ;;  %v8711_v55 = vsel %vm254_vm6, %v8546_v38, %v8628_v7  ;;  %v2205_v10 = vsel %vm254_vm6, %v8691_v14, %v11437_v63  ;;  %v2683_v28 = vadd.f32 %v8657_v37, %v2616_v8  ;;  %v11438_v19 = vld [vmem:[#allocation34_spill] sm:$0xff]  ;;  %v11500_v7 = vld [vmem:[#allocation16_spill] sm:$0xff] }
 0x18a   :  { %11434 = vst [vmem:[#allocation51_spill] sm:$0xff] %v8695_v4  ;;  %v2308_v59 = vadd.f32 %v11435_v52, %v2241_v2  ;;  %v2210_v9 = vmul.f32 %v8721_v48, %v2205_v10  ;;  %v11439_v2 = vld [vmem:[#allocation11_spill] sm:$0xff]  ;;  %v2812_v38 = vadd.f32 %v2780_v41, %v2681_v45  ;;  %v2254_v8 = vadd.f32 %v8456_v46, %v8348_v0  ;;  %v11442_v10 = vld [vmem:[#allocation40_spill] sm:$0xff] }
 0x18b   :  { %11436 = vst [vmem:[#allocation39_spill] sm:$0xff] %v8711_v55  ;;  %v2079_v39 = vadd.f32 %v11439_v2, %v1948_v27  ;;  %v2814_v18 = vadd.f32 %v2782_v5, %v2683_v28  ;;  %v11440_v52 = vld [vmem:[#allocation23_spill] sm:$0xff]  ;;  %v2387_v51 = vsel %vm420_vm7, %v8238_v29, %v11441_v6  ;;  %v2093_v27 = vadd.f32 %v8486_v43, %v8469_v42  ;;  %v11444_v5 = vld [vmem:[#allocation20_spill] sm:$0xff]  ;;  %v11445_v28 = vld [vmem:[#allocation41_spill] sm:$0xff] }
 0x18c   :  { %v2439_v53 = vadd.f32 %v11438_v19, %v2308_v59  ;;  %v2191_v63 = vsel %vm254_vm6, %v11382_v17, %v11440_v52  ;;  %v8743_v17 = vrot.slane %v8144_v35, 1  ;;  %v2321_v0 = vadd.f32 %v11444_v5, %v2254_v8  ;;  %v8755_v42 = vld [vmem:[%s11021_s1 + $0xe8] sm:$0xff] }
 0x18d   :  { %v2242_v59 = vadd.f32 %v2210_v9, %v2079_v39  ;;  %v2224_v45 = vmul.f32 %v8721_v48, %v2191_v63  ;;  %v8740_v41 = vpack.c.bf16 %v2814_v18, %v2812_v38  ;;  %v2552_v46 = vsel %vm254_vm6, %v11440_v52, %v5921_v40  ;;  %v11446_v9 = vld [vmem:[#allocation10_spill] sm:$0xff]  ;;  %v8771_v52 = vld [vmem:[%s11021_s1 + $0xf8] sm:$0xff] }
 0x18e   :  { %v2602_v14 = vadd.f32 %v11442_v10, %v2439_v53  ;;  %v2422_v43 = vmul.f32 %v8755_v42, %v2387_v51  ;;  %v11447_v39 = vrot.slane %v8659_v21, 7  ;;  %v2452_v18 = vadd.f32 %v8551_v50, %v2321_v0  ;;  %v11448_v51 = vld [vmem:[#allocation42_spill] sm:$0xff]  ;;  %v8781_v50 = vld [vmem:[%s11021_s1 + $0x108] sm:$0xff] }
 0x18f   :  { %11443 = vst [vmem:[#allocation14_spill] sm:$0xff] %v8740_v41  ;;  %v2309_v53 = vadd.f32 %v11446_v9, %v2242_v59  ;;  %v2256_v2 = vadd.f32 %v2224_v45, %v2093_v27  ;;  %v2583_v8 = vmul.f32 %v8771_v52, %v2191_v63  ;;  %v11449_v59 = vld [vmem:[#allocation46_spill] sm:$0xff]  ;;  %v11450_v45 = vld [vmem:[#allocation56_spill] sm:$0xff]  ;;  %v2650_v0 = vmul.f32 %v8781_v50, %v8027_v54  ;;  %v8801_v54 = vld [vmem:[%s11021_s1 + $0x118] sm:$0xff] }
 0x190   :  { %v2669_v19 = vadd.f32 %v11445_v28, %v2602_v14  ;;  %v8763_v38 = vsel %vm254_vm6, %v11447_v39, %v8614_v12  ;;  %v2239_v14 = vmul.f32 %v8529_v33, %v8711_v55  ;;  %v2585_v28 = vmul.f32 %v8771_v52, %v2552_v46  ;;  %v11453_v46 = vld [vmem:[#allocation48_spill] sm:$0xff] }
 0x191   :  { %v2440_v27 = vadd.f32 %v11449_v59, %v2309_v53  ;;  %v2323_v5 = vadd.f32 %v11450_v45, %v2256_v2  ;;  %v2615_v9 = vadd.f32 %v2583_v8, %v2452_v18  ;;  %v8786_v39 = vmul.f32 0.0, %v8781_v50  ;;  %v11476_v55 = vld [vmem:[#allocation24_spill] sm:$0xff] }
 0x192   :  { %v2800_v10 = vadd.f32 %v11448_v51, %v2669_v19  ;;  %v2748_v63 = vsel %vm420_vm7, %v11347_v13, %v8743_v17  ;;  %v11452_v19 = vld [vmem:[#allocation28_spill] sm:$0xff]  ;;  %v2750_v8 = vsel %vm420_vm7, %v8238_v29, %v11347_v13  ;;  %v11454_v45 = vrot.slane %v8178_v56, 1  ;;  %v11459_v13 = vld [vmem:[#allocation45_spill] sm:$0xff] }
 0x193   :  { %11451 = vst [vmem:[#allocation13_spill] sm:$0xff] %v8786_v39  ;;  %v2603_v2 = vadd.f32 %v11453_v46, %v2440_v27  ;;  %v2454_v18 = vadd.f32 %v2422_v43, %v2323_v5  ;;  %v2682_v51 = vadd.f32 %v2650_v0, %v2615_v9  ;;  %v2783_v59 = vmul.f32 %v8801_v54, %v2748_v63  ;;  %v11455_v27 = vld [vmem:[#allocation49_spill] sm:$0xff] }
 0x194   :  { %v2832_v53 = vpack.c.bf16 %v11452_v19, %v2800_v10  ;;  %v2019_v10 = vsel %vm420_vm7, %v8558_v60, %v11454_v45  ;;  %v2021_v43 = vsel %vm420_vm7, %v11412_v49, %v8558_v60  ;;  %v8814_v29 = vrot.slane %v8621_v62, 1 }
 0x195   :  { %v2670_v5 = vadd.f32 %v11455_v27, %v2603_v2  ;;  %v2617_v9 = vadd.f32 %v2585_v28, %v2454_v18  ;;  %v2064_v0 = vmul.f32 %v8667_v1, %v2021_v43  ;;  %v2781_v63 = vmul.f32 %v8801_v54, %v2750_v8 }
 0x196   :  { %3056 = vmatmul.bf16.vlgmr.msrb.gmra.mxu0 %v2832_v53  ;;  %3154 = vmatmul.bf16.vlgmr.msrb.gmra.mxu2 %v2832_v53  ;;  %v11456_v19 = vrot.slane %v8345_v57, 1  ;;  %v11457_v46 = vmov %v11454_v45  ;;  %v2066_v49 = vmul.f32 %v8667_v1, %v2019_v10  ;;  %v2227_v60 = vmul.f32 %v8529_v33, %v8203_v44  ;;  %v11458_v53 = vld [vmem:[#allocation50_spill] sm:$0xff] }
 0x197   :  { %v2801_v12 = vadd.f32 %v11458_v53, %v2670_v5  ;;  %v2684_v28 = vadd.f32 %v8786_v39, %v2617_v9  ;;  %v2096_v2 = vadd.f32 %v2064_v0, %v8167_v23  ;;  %v2423_v18 = vmul.f32 %v8563_v16, %v2021_v43  ;;  %v11460_v53 = vld [vmem:[#allocation55_spill] sm:$0xff]  ;;  %v11461_v43 = vld [vmem:[#allocation8_spill] sm:$0xff] }
 0x198   :  { %v2017_v45 = vsel %vm420_vm7, %v11457_v46, %v11456_v19  ;;  %v8834_v8 = vmul.f32 %v8319_v32, %v8621_v62  ;;  %v2813_v27 = vadd.f32 %v2781_v63, %v2682_v51  ;;  %v8837_v19 = vadd.f32 %v2066_v49, %v8264_v15  ;;  %v11465_v0 = vld [vmem:[#allocation59_spill] sm:$0xff]  ;;  %v11474_v62 = vld [vmem:[#allocation30_spill] sm:$0xff] }
 0x199   :  { %v2425_v46 = vmul.f32 %v8563_v16, %v2019_v10  ;;  %v2833_v44 = vpack.c.bf16 %v11459_v13, %v2801_v12  ;;  %v2815_v37 = vadd.f32 %v2783_v59, %v2684_v28  ;;  %v2259_v5 = vadd.f32 %v2227_v60, %v2096_v2  ;;  %v11466_v28 = vld [vmem:[#allocation62_spill] sm:$0xff]  ;;  %v11473_v12 = vld [vmem:[#allocation57_spill] sm:$0xff] }
 0x19a   :  { %v2455_v9 = vadd.f32 %v2423_v18, %v11460_v53  ;;  %v8843_v23 = vadd.f32 %v2239_v14, %v8705_v47  ;;  %v8849_v32 = vsel %vm420_vm7, %v8814_v29, %v11461_v43  ;;  %v2068_v15 = vmul.f32 %v8667_v1, %v2017_v45  ;;  %v11464_v47 = vld [vmem:[#allocation58_spill] sm:$0xff] }
 0x19b   :  { %11462 = vst [vmem:[#allocation34_spill] sm:$0xff] %v8849_v32  ;;  %v2549_v13 = vsel %vm254_vm6, %v5921_v40, %v8162_v36  ;;  %3105 = vmatmul.bf16.vlgmr.msrb.gmra.mxu1 %v2833_v44  ;;  %3203 = vmatmul.bf16.vlgmr.msrb.gmra.mxu3 %v2833_v44  ;;  %v8857_v51 = vpack.c.bf16 %v2815_v37, %v2813_v27  ;;  %v11467_v36 = vrot.slane %v11466_v28, 1  ;;  %v11468_v44 = vld [vmem:[#allocation33_spill] sm:$0xff] }
 0x19c   :  { %v2326_v14 = vadd.f32 %v11464_v47, %v2259_v5  ;;  %v2586_v59 = vmul.f32 %v8588_v61, %v2549_v13  ;;  %v2588_v63 = vmul.f32 %v8588_v61, %v11465_v0  ;;  %v2653_v49 = vmul.f32 %v8654_v20, %v8142_v24  ;;  %v11505_v32 = vld [vmem:[#allocation53_spill] sm:$0xff] }
 0x19d   :  { %11463 = vst [vmem:[#allocation11_spill] sm:$0xff] %v8857_v51  ;;  %v2784_v60 = vmul.f32 %v8701_v3, %v2019_v10  ;;  %v2020_v2 = vsel %vm420_vm7, %v8743_v17, %v11467_v36  ;;  %v2022_v27 = vsel %vm420_vm7, %v11441_v6, %v8743_v17  ;;  %v2655_v24 = vmul.f32 %v8654_v20, %v8178_v56  ;;  %v11471_v17 = vld [vmem:[#allocation31_spill] sm:$0xff] }
 0x19e   :  { %v2457_v37 = vadd.f32 %v2425_v46, %v2326_v14  ;;  %v2618_v18 = vadd.f32 %v2586_v59, %v2455_v9  ;;  %v2067_v5 = vmul.f32 %v11468_v44, %v2020_v2  ;;  %v2786_v10 = vmul.f32 %v8701_v3, %v2017_v45  ;;  %v11472_v59 = vld [vmem:[#allocation21_spill] sm:$0xff] }
 0x19f   :  { %v2065_v53 = vmul.f32 %v11468_v44, %v2022_v27  ;;  %v2424_v43 = vmul.f32 %v8755_v42, %v2022_v27  ;;  %v11469_v46 = vrot.slane %v8442_v26, 1  ;;  %v11470_v9 = vmov %v11467_v36 }
 0x1a0   :  { %v2620_v13 = vadd.f32 %v2588_v63, %v2457_v37  ;;  %v2685_v47 = vadd.f32 %v2653_v49, %v2618_v18  ;;  %v8890_v14 = vadd.f32 %v2067_v5, %v11471_v17  ;;  %v2100_v36 = vadd.f32 %v2068_v15, %v11472_v59  ;;  %v11475_v63 = vld [vmem:[#allocation25_spill] sm:$0xff]  ;;  %v11481_v59 = vld [vmem:[#allocation26_spill] sm:$0xff] }
 0x1a1   :  { %v8887_v6 = vsel %vm420_vm7, %v11470_v9, %v11469_v46  ;;  %v2097_v39 = vadd.f32 %v2065_v53, %v11473_v12  ;;  %v2228_v27 = vmul.f32 %v8721_v48, %v11474_v62  ;;  %v2456_v49 = vadd.f32 %v2424_v43, %v11475_v63  ;;  %v11477_v9 = vld [vmem:[#allocation35_spill] sm:$0xff]  ;;  %v11482_v63 = vld [vmem:[#allocation17_spill] sm:$0xff] }
 0x1a2   :  { %v2427_v37 = vmul.f32 %v8563_v16, %v2017_v45  ;;  %v2687_v18 = vadd.f32 %v2655_v24, %v2620_v13  ;;  %v2816_v51 = vadd.f32 %v2784_v60, %v2685_v47  ;;  %v2550_v46 = vsel %vm254_vm6, %v5921_v40, %v11476_v55  ;;  %v11480_v13 = vld [vmem:[#allocation61_spill] sm:$0xff] }
 0x1a3   :  { %v2069_v5 = vmul.f32 %v11468_v44, %v8887_v6  ;;  %v2260_v15 = vadd.f32 %v2228_v27, %v2097_v39  ;;  %v2426_v12 = vmul.f32 %v8755_v42, %v2020_v2  ;;  %v2587_v53 = vmul.f32 %v8771_v52, %v2550_v46 }
 0x1a4   :  { %v2818_v62 = vadd.f32 %v2786_v10, %v2687_v18  ;;  %v2589_v43 = vmul.f32 %v8771_v52, %v11477_v9  ;;  %v2654_v45 = vmul.f32 %v8781_v50, %v8144_v35  ;;  %v11478_v60 = vrot.slane %v8345_v57, 7  ;;  %v11485_v18 = vld [vmem:[#allocation64_spill] sm:$0xff] }
 0x1a5   :  { %v11479_v24 = vrot.slane %v8178_v56, 7  ;;  %v2327_v39 = vadd.f32 %v11480_v13, %v2260_v15  ;;  %v2619_v47 = vadd.f32 %v2587_v53, %v2456_v49  ;;  %v2785_v17 = vmul.f32 %v8801_v54, %v2020_v2  ;;  %v11489_v13 = vld [vmem:[#allocation38_spill] sm:$0xff] }
 0x1a6   :  { %v2006_v27 = vrot.slane %v11481_v59, 1  ;;  %3061 = vmatmul.bf16.gmra.mxu0 %v11482_v63  ;;  %3159 = vmatmul.bf16.gmra.mxu2 %v11482_v63  ;;  %v8922_v35 = vpack.c.bf16 %v2818_v62, %v2816_v51  ;;  %v11484_v56 = vrot.slane %v8569_v30, 1  ;;  %v11486_v46 = vrot.slane %v11485_v18, 1  ;;  %v11490_v63 = vld [vmem:[#allocation66_spill] sm:$0xff] }
 0x1a7   :  { %v1851_v55 = vsel %vm254_vm6, %v11479_v24, %v11478_v60  ;;  %v11488_v49 = vrot.slane %v8345_v57, 1  ;;  %v2458_v60 = vadd.f32 %v2426_v12, %v2327_v39  ;;  %v2686_v24 = vadd.f32 %v2654_v45, %v2619_v47 }
 0x1a8   :  { %v1904_v10 = vmul.f32 %v8281_v22, %v1851_v55  ;;  %11483 = vst [vmem:[#allocation23_spill] sm:$0xff] %v8922_v35  ;;  %v8930_v15 = vsel %vm420_vm7, %v11486_v46, %v11484_v56  ;;  %v11487_v2 = vmov %v11486_v46  ;;  %v2101_v35 = vadd.f32 %v2069_v5, %v11490_v63 }
 0x1a9   :  { %v2015_v53 = vsel %vm420_vm7, %v11488_v49, %v11487_v2  ;;  %v2656_v4 = vmul.f32 %v8781_v50, %v11466_v28  ;;  %v2229_v56 = vmul.f32 %v8529_v33, %v11465_v0  ;;  %v2231_v46 = vmul.f32 %v8529_v33, %v1851_v55 }
 0x1aa   :  { %v1971_v51 = vadd.f32 %v11489_v13, %v1904_v10  ;;  %v2070_v62 = vmul.f32 %v8667_v1, %v2015_v53  ;;  %v2621_v41 = vadd.f32 %v2589_v43, %v2458_v60  ;;  %v2787_v2 = vmul.f32 %v8801_v54, %v8887_v6  ;;  %v11491_v13 = vld [vmem:[#allocation22_spill] sm:$0xff] }
 0x1ab   :  { %v2817_v12 = vadd.f32 %v2785_v17, %v2686_v24  ;;  %v2072_v39 = vmul.f32 %v8667_v1, %v8930_v15  ;;  %v2261_v5 = vadd.f32 %v2229_v56, %v8837_v19  ;;  %v2263_v47 = vadd.f32 %v2231_v46, %v2100_v36  ;;  %v11492_v24 = vld [vmem:[#allocation54_spill] sm:$0xff]  ;;  %v11494_v36 = vld [vmem:[#allocation65_spill] sm:$0xff] }
 0x1ac   :  { %v8948_v45 = vadd.f32 %v2070_v62, %v1971_v51  ;;  %v2429_v10 = vmul.f32 %v8563_v16, %v2015_v53  ;;  %v2688_v49 = vadd.f32 %v2656_v4, %v2621_v41  ;;  %v2590_v0 = vmul.f32 %v8588_v61, %v1851_v55  ;;  %3110 = vmatmul.bf16.gmra.mxu1 %v11492_v24  ;;  %v11493_v51 = vld [vmem:[#allocation63_spill] sm:$0xff] }
 0x1ad   :  { %v2592_v43 = vmul.f32 %v8588_v61, %v11491_v13  ;;  %v2657_v60 = vmul.f32 %v8654_v20, %v8345_v57  ;;  %3208 = vmatmul.bf16.gmra.mxu3 %v11492_v24  ;;  %v2328_v19 = vadd.f32 %v11493_v51, %v2261_v5  ;;  %v2330_v62 = vadd.f32 %v11494_v36, %v2263_v47  ;;  %v11498_v51 = vld [vmem:[#allocation37_spill] sm:$0xff] }
 0x1ae   :  { %v2659_v4 = vmul.f32 %v8654_v20, %v11485_v18  ;;  %v2819_v41 = vadd.f32 %v2787_v2, %v2688_v49  ;;  %v2788_v55 = vmul.f32 %v8701_v3, %v2015_v53  ;;  %v11495_v63 = vrot.slane %v8442_v26, 7 }
 0x1af   :  { %v11496_v57 = vrot.slane %v11466_v28, 7  ;;  %v11497_v46 = vrot.slane %v8442_v26, 1  ;;  %v2459_v24 = vadd.f32 %v2427_v37, %v2328_v19  ;;  %v2461_v47 = vadd.f32 %v2429_v10, %v2330_v62 }
 0x1b0   :  { %v8979_v49 = vpack.c.bf16 %v2819_v41, %v2817_v12  ;;  %v2790_v53 = vmul.f32 %v8701_v3, %v8930_v15  ;;  %v2230_v28 = vmul.f32 %v8721_v48, %v11477_v9  ;;  %v11501_v37 = vrot.slane %v8659_v21, 1  ;;  %v11502_v9 = vld [vmem:[#allocation52_spill] sm:$0xff] }
 0x1b1   :  { %v1852_v56 = vsel %vm254_vm6, %v11496_v57, %v11495_v63  ;;  %v2016_v5 = vsel %vm420_vm7, %v11497_v46, %v2006_v27  ;;  %v2622_v57 = vadd.f32 %v2590_v0, %v2459_v24  ;;  %v2624_v17 = vadd.f32 %v2592_v43, %v2461_v47  ;;  %v11503_v24 = vld [vmem:[#allocation44_spill] sm:$0xff] }
 0x1b2   :  { %v1905_v36 = vmul.f32 %v11498_v51, %v1852_v56  ;;  %v2071_v2 = vmul.f32 %v11468_v44, %v2016_v5  ;;  %11499 = vst [vmem:[#allocation36_spill] sm:$0xff] %v8979_v49  ;;  %v2232_v63 = vmul.f32 %v8721_v48, %v1852_v56  ;;  %v2014_v10 = vsel %vm420_vm7, %v2006_v27, %v11501_v37 }
 0x1b3   :  { %v2428_v12 = vmul.f32 %v8755_v42, %v8887_v6  ;;  %v2262_v19 = vadd.f32 %v2230_v28, %v8890_v14  ;;  %v2430_v41 = vmul.f32 %v8755_v42, %v2016_v5  ;;  %v2104_v49 = vadd.f32 %v2072_v39, %v11502_v9 }
 0x1b4   :  { %v1972_v46 = vadd.f32 %v11500_v7, %v1905_v36  ;;  %v2264_v62 = vadd.f32 %v2232_v63, %v2101_v35  ;;  %v2689_v51 = vadd.f32 %v2657_v60, %v2622_v57  ;;  %v2691_v0 = vadd.f32 %v2659_v4, %v2624_v17  ;;  %v11504_v36 = vld [vmem:[#allocation29_spill] sm:$0xff] }
 0x1b5   :  { %v2073_v7 = vmul.f32 %v11468_v44, %v2014_v10  ;;  %v2329_v47 = vadd.f32 %v11503_v24, %v2262_v19  ;;  %v2591_v27 = vmul.f32 %v8771_v52, %v1852_v56  ;;  %v2593_v14 = vmul.f32 %v8771_v52, %v11505_v32 }
 0x1b6   :  { %v2103_v43 = vadd.f32 %v2071_v2, %v1972_v46  ;;  %v2331_v40 = vadd.f32 %v11504_v36, %v2264_v62  ;;  %v2820_v37 = vadd.f32 %v2788_v55, %v2689_v51  ;;  %v2822_v6 = vadd.f32 %v2790_v53, %v2691_v0  ;;  %v11508_v55 = vld [vmem:[#allocation70_spill] sm:$0xff]  ;;  %v11509_v53 = vld [vmem:[#allocation60_spill] sm:$0xff] }
 0x1b7   :  { %v2658_v35 = vmul.f32 %v8781_v50, %v8442_v26  ;;  %v2460_v39 = vadd.f32 %v2428_v12, %v2329_v47  ;;  %v2660_v17 = vmul.f32 %v8781_v50, %v11481_v59  ;;  %v11506_v4 = vrot.slane %v8569_v30, 7  ;;  %3066 = vmatmul.bf16.gmra.mxu0 %v11509_v53  ;;  %3164 = vmatmul.bf16.gmra.mxu2 %v11509_v53  ;;  %v11510_v46 = vld [vmem:[#allocation32_spill] sm:$0xff] }
 0x1b8   :  { %v2462_v60 = vadd.f32 %v2430_v41, %v2331_v40  ;;  %v11507_v2 = vrot.slane %v11485_v18, 7  ;;  %v9013_v51 = vrot.slane %v11508_v55, 1  ;;  %v9017_v26 = vpack.c.bf16 %v2822_v6, %v2820_v37  ;;  %v11512_v6 = vld [vmem:[#allocation47_spill] sm:$0xff] }
 0x1b9   :  { %v2789_v40 = vmul.f32 %v8801_v54, %v2016_v5  ;;  %v2791_v28 = vmul.f32 %v8801_v54, %v2014_v10  ;;  %v2623_v63 = vadd.f32 %v2591_v27, %v2460_v39  ;;  %v11511_v18 = vrot.slane %v8569_v30, 1  ;;  %v11514_v39 = vld [vmem:[#allocation69_spill] sm:$0xff] }
 0x1ba   :  { %v1847_v56 = vsel %vm254_vm6, %v11507_v2, %v11506_v4  ;;  %v2625_v57 = vadd.f32 %v2593_v14, %v2462_v60  ;;  %v2233_v19 = vmul.f32 %v8529_v33, %v11491_v13  ;;  %v9030_v62 = vadd.f32 %v8834_v8, %v8843_v23 }
 0x1bb   :  { %v2011_v12 = vsel %vm420_vm7, %v11511_v18, %v11510_v46  ;;  %v2431_v5 = vmul.f32 %v8563_v16, %v8930_v15  ;;  %v1908_v41 = vmul.f32 %v8281_v22, %v1847_v56  ;;  %v2235_v9 = vmul.f32 %v8529_v33, %v1847_v56 }
 0x1bc   :  { %v2690_v0 = vadd.f32 %v2658_v35, %v2623_v63  ;;  %v2692_v24 = vadd.f32 %v2660_v17, %v2625_v57  ;;  %v2265_v47 = vadd.f32 %v2233_v19, %v8948_v45  ;;  %v2372_v13 = vsel %vm420_vm7, %v11510_v46, %v8814_v29  ;;  %v11513_v35 = vld [vmem:[#allocation67_spill] sm:$0xff] }
 0x1bd   :  { %v2105_v36 = vadd.f32 %v2073_v7, %v8683_v58  ;;  %v2432_v8 = vmul.f32 %v8755_v42, %v2014_v10  ;;  %v2267_v23 = vadd.f32 %v2235_v9, %v2104_v49  ;;  %v2433_v15 = vmul.f32 %v8563_v16, %v2011_v12  ;;  %3115 = vmatmul.bf16.gmra.mxu1 %v11513_v35  ;;  %v11515_v7 = vld [vmem:[#allocation75_spill] sm:$0xff] }
 0x1be   :  { %v2821_v27 = vadd.f32 %v2789_v40, %v2690_v0  ;;  %v2823_v22 = vadd.f32 %v2791_v28, %v2692_v24  ;;  %v2074_v37 = vmul.f32 %v8667_v1, %v2011_v12  ;;  %v2332_v14 = vadd.f32 %v11512_v6, %v2265_v47  ;;  %3213 = vmatmul.bf16.gmra.mxu3 %v11513_v35  ;;  %v11518_v28 = vld [vmem:[#allocation71_spill] sm:$0xff] }
 0x1bf   :  { %v9047_v45 = vrot.slane %v8673_v11, 1  ;;  %v1975_v58 = vadd.f32 %v11514_v39, %v1908_v41  ;;  %v2334_v10 = vadd.f32 %v11515_v7, %v2267_v23  ;;  %v2435_v49 = vmul.f32 %v8563_v16, %v2372_v13 }
 0x1c0   :  { %v9054_v60 = vpack.c.bf16 %v2823_v22, %v2821_v27  ;;  %v2463_v17 = vadd.f32 %v2431_v5, %v2332_v14  ;;  %v2594_v1 = vmul.f32 %v8588_v61, %v1847_v56  ;;  %v11516_v4 = vrot.slane %v8659_v21, 7 }
 0x1c1   :  { %v11517_v2 = vrot.slane %v11481_v59, 7  ;;  %v2465_v40 = vadd.f32 %v2433_v15, %v2334_v10  ;;  %v2596_v63 = vmul.f32 %v8588_v61, %v11518_v28  ;;  %v11519_v57 = vrot.slane %v8659_v21, 1  ;;  %v11521_v10 = vld [vmem:[#allocation34_spill] sm:$0xff] }
 0x1c2   :  { %v2234_v56 = vmul.f32 %v8721_v48, %v11505_v32  ;;  %v2626_v18 = vadd.f32 %v2594_v1, %v2463_v17  ;;  %v2661_v59 = vmul.f32 %v8654_v20, %v8569_v30  ;;  %v2792_v19 = vmul.f32 %v8701_v3, %v2011_v12  ;;  %v11520_v30 = vld [vmem:[#allocation68_spill] sm:$0xff]  ;;  %v11522_v17 = vld [vmem:[#allocation6_spill] sm:$0xff] }
 0x1c3   :  { %v9063_v53 = vsel %vm254_vm6, %v11517_v2, %v11516_v4  ;;  %v9072_v46 = vsel %vm420_vm7, %v11519_v57, %v9013_v51  ;;  %v2628_v41 = vadd.f32 %v2596_v63, %v2465_v40  ;;  %v2663_v9 = vmul.f32 %v8654_v20, %v8537_v31  ;;  %v11523_v1 = vld [vmem:[#allocation74_spill] sm:$0xff] }
 0x1c4   :  { %v2236_v5 = vmul.f32 %v8721_v48, %v9063_v53  ;;  %v2794_v0 = vmul.f32 %v8701_v3, %v2372_v13  ;;  %v2266_v24 = vadd.f32 %v2234_v56, %v2103_v43  ;;  %v2106_v47 = vadd.f32 %v2074_v37, %v1975_v58  ;;  %v11524_v2 = vld [vmem:[#allocation14_spill] sm:$0xff] }
 0x1c5   :  { %v2693_v23 = vadd.f32 %v2661_v59, %v2626_v18  ;;  %v2434_v32 = vmul.f32 %v8755_v42, %v9072_v46  ;;  %v2695_v27 = vadd.f32 %v2663_v9, %v2628_v41  ;;  %v9091_v12 = vsel %vm420_vm7, %v9013_v51, %v9047_v45  ;;  %v11525_v59 = vld [vmem:[#allocation51_spill] sm:$0xff] }
 0x1c6   :  { %v2268_v15 = vadd.f32 %v2236_v5, %v2105_v36  ;;  %v2333_v22 = vadd.f32 %v11520_v30, %v2266_v24  ;;  %v2595_v31 = vmul.f32 %v8771_v52, %v9063_v53  ;;  %v2597_v36 = vmul.f32 %v8771_v52, %v8763_v38  ;;  %v11526_v41 = vld [vmem:[#allocation39_spill] sm:$0xff]  ;;  %v11529_v30 = vld [vmem:[#allocation37_spill] sm:$0xff] }
 0x1c7   :  { %v2824_v13 = vadd.f32 %v2792_v19, %v2693_v23  ;;  %v2662_v37 = vmul.f32 %v8781_v50, %v8659_v21  ;;  %v2826_v6 = vadd.f32 %v2794_v0, %v2695_v27  ;;  %v2664_v35 = vmul.f32 %v8781_v50, %v11508_v55  ;;  %3071 = vmatmul.bf16.gmra.mxu0 %v11524_v2  ;;  %v11528_v27 = vld [vmem:[#allocation11_spill] sm:$0xff] }
 0x1c8   :  { %v2335_v43 = vadd.f32 %v8688_v25, %v2268_v15  ;;  %v2464_v14 = vadd.f32 %v2432_v8, %v2333_v22  ;;  %v2793_v39 = vmul.f32 %v8801_v54, %v9072_v46  ;;  %v2237_v7 = vmul.f32 %v8529_v33, %v11518_v28  ;;  %3169 = vmatmul.bf16.gmra.mxu2 %v11524_v2  ;;  %v11527_v15 = vld [vmem:[#allocation9_spill] sm:$0xff]  ;;  %v11537_v2 = vld [vmem:[#allocation36_spill] sm:$0xff] }
 0x1c9   :  { %v2437_v25 = vmul.f32 %v8563_v16, %v11521_v10  ;;  %v2535_v4 = vsel %vm254_vm6, %v11523_v1, %v11522_v17  ;;  %v9114_v8 = vpack.c.bf16 %v2826_v6, %v2824_v13  ;;  %v2795_v63 = vmul.f32 %v8801_v54, %v9091_v12  ;;  %v11531_v13 = vld [vmem:[#allocation18_spill] sm:$0xff]  ;;  %v11534_v6 = vld [vmem:[#allocation73_spill] sm:$0xff] }
 0x1ca   :  { %v2466_v58 = vadd.f32 %v2434_v32, %v2335_v43  ;;  %v2627_v40 = vadd.f32 %v2595_v31, %v2464_v14  ;;  %v2269_v33 = vadd.f32 %v2237_v7, %v2106_v47  ;;  %v2600_v16 = vmul.f32 %v8588_v61, %v2535_v4  ;;  %v11530_v31 = vld [vmem:[#allocation23_spill] sm:$0xff] }
 0x1cb   :  { %v2469_v28 = vadd.f32 %v2437_v25, %v9030_v62  ;;  %v2598_v9 = vmul.f32 %v8588_v61, %v11526_v41  ;;  %v1911_v22 = vmul.f32 %v11529_v30, %v8763_v38  ;;  %v11532_v61 = vld [vmem:[#allocation7_spill] sm:$0xff]  ;;  %v2665_v14 = vmul.f32 %v8654_v20, %v11534_v6 }
 0x1cc   :  { %v2629_v57 = vadd.f32 %v2597_v36, %v2466_v58  ;;  %v2694_v56 = vadd.f32 %v2662_v37, %v2627_v40  ;;  %v2336_v19 = vadd.f32 %v11525_v59, %v2269_v33  ;;  %v11533_v43 = vld [vmem:[#allocation43_spill] sm:$0xff]  ;;  %v2042_v37 = vsel %vm420_vm7, %v9013_v51, %v11532_v61 }
 0x1cd   :  { %v2632_v5 = vadd.f32 %v2600_v16, %v2469_v28  ;;  %3120 = vmatmul.bf16.gmra.mxu1 %v11528_v27  ;;  %v1946_v36 = vmul.f32 %v11533_v43, %v11508_v55  ;;  %v2733_v7 = vsel %vm420_vm7, %v8814_v29, %v11532_v61  ;;  %v2077_v4 = vmul.f32 %v11468_v44, %v2042_v37 }
 0x1ce   :  { %v2696_v18 = vadd.f32 %v2664_v35, %v2629_v57  ;;  %v2825_v0 = vadd.f32 %v2793_v39, %v2694_v56  ;;  %v2467_v23 = vadd.f32 %v2435_v49, %v2336_v19  ;;  %3218 = vmatmul.bf16.gmra.mxu3 %v11528_v27  ;;  %v2763_v49 = vsel %vm420_vm7, %v11532_v61, %v11531_v13  ;;  %v11535_v35 = vld [vmem:[#allocation12_spill] sm:$0xff] }
 0x1cf   :  { %v2699_v32 = vadd.f32 %v11527_v15, %v2632_v5  ;;  %v11536_v39 = vld [vmem:[#allocation72_spill] sm:$0xff]  ;;  %v1978_v10 = vadd.f32 %v1946_v36, %v1911_v22  ;;  %v2798_v1 = vmul.f32 %v8701_v3, %v2763_v49  ;;  %v2796_v20 = vmul.f32 %v8701_v3, %v2733_v7  ;;  %v11539_v5 = vld [vmem:[#allocation15_spill] sm:$0xff] }
 0x1d0   :  { %v2827_v24 = vadd.f32 %v2795_v63, %v2696_v18  ;;  %v2630_v47 = vadd.f32 %v2598_v9, %v2467_v23  ;;  %v2175_v58 = vsel %vm254_vm6, %v11536_v39, %v11535_v35  ;;  %v1909_v57 = vmul.f32 %v11529_v30, %v9063_v53  ;;  %v11538_v18 = vld [vmem:[#allocation27_spill] sm:$0xff]  ;;  %v5383_v39 = vld [vmem:[%s11022_s2 + $0x278] sm:$0xf0] }
 0x1d1   :  { %v2240_v51 = vmul.f32 %v8721_v48, %v2175_v58  ;;  %v2830_v40 = vadd.f32 %v2798_v1, %v2699_v32  ;;  %v2109_v63 = vadd.f32 %v2077_v4, %v1978_v10  ;;  %v1944_v33 = vmul.f32 %v11533_v43, %v8659_v21 }
 0x1d2   :  { %v2845_v62 = vpack.c.bf16 %v2827_v24, %v2825_v0  ;;  %v2697_v25 = vadd.f32 %v2665_v14, %v2630_v47  ;;  %v2075_v16 = vmul.f32 %v11468_v44, %v9072_v46  ;;  %v2307_v59 = vmul.f32 %v11538_v18, %v8673_v11  ;;  %v11541_v47 = vld [vmem:[#allocation13_spill] sm:$0xff] }
 0x1d3   :  { %v2272_v28 = vadd.f32 %v2240_v51, %v2109_v63  ;;  %v1976_v19 = vadd.f32 %v1944_v33, %v1909_v57  ;;  %v2403_v3 = vsel %vm420_vm7, %v9047_v45, %v11539_v5  ;;  %v2238_v21 = vmul.f32 %v8721_v48, %v8763_v38  ;;  %v11540_v48 = vld [vmem:[#allocation19_spill] sm:$0xff] }
 0x1d4   :  { %v2828_v29 = vadd.f32 %v2796_v20, %v2697_v25  ;;  %v2438_v44 = vmul.f32 %v8755_v42, %v2403_v3  ;;  %v2536_v46 = vsel %vm254_vm6, %v11535_v35, %v11522_v17  ;;  %v2305_v9 = vmul.f32 %v11538_v18, %v11508_v55  ;;  %v5529_v35 = vld [vmem:[%s11022_s2 + $0x274] sm:$0xf]  ;;  %v9237_v18 = vld [vmem:[%s11021_s1 + $0x160] sm:$0xff] }
 0x1d5   :  { %v2339_v41 = vadd.f32 %v2307_v59, %v2272_v28  ;;  %v2107_v53 = vadd.f32 %v2075_v16, %v1976_v19  ;;  %v2436_v0 = vmul.f32 %v8755_v42, %v9091_v12  ;;  %v2764_v38 = vsel %vm420_vm7, %v11532_v61, %v11540_v48  ;;  %v9227_v28 = vld [vmem:[%s11021_s1 + $0x120] sm:$0xff] }
 0x1d6   :  { %v2846_v56 = vpack.c.bf16 %v2830_v40, %v2828_v29  ;;  %v2599_v55 = vmul.f32 %v8771_v52, %v2175_v58  ;;  %v2734_v12 = vsel %vm420_vm7, %v9047_v45, %v11532_v61  ;;  %v2666_v22 = vmul.f32 %v8781_v50, %v8673_v11  ;;  %v5143_v11 = vld [vmem:[%s11023_s3 + $0x2] sm:$0x3] }
 0x1d7   :  { %3076 = vmatmul.bf16.gmra.mxu0 %v11530_v31  ;;  %v2270_v24 = vadd.f32 %v2238_v21, %v2107_v53  ;;  %v2470_v23 = vadd.f32 %v2438_v44, %v2339_v41  ;;  %v2797_v49 = vmul.f32 %v8801_v54, %v2734_v12  ;;  %v9203_v50 = vperm.slane %v5143_v11, 0  ;;  %v9252_v21 = vld [vmem:[%s11021_s1 + $0x140] sm:$0xff] }
 0x1d8   :  { %3174 = vmatmul.bf16.gmra.mxu2 %v11530_v31  ;;  %v2799_v31 = vmul.f32 %v8801_v54, %v2764_v38  ;;  %v9206_v14 = vperm.slane %v5143_v11, 1  ;;  %v5386_v10 = vor.u32 %v5529_v35, %v5383_v39 }
 0x1d9   :  { %v2337_v15 = vadd.f32 %v2305_v9, %v2270_v24 }
 0x1da   :  { %4737 = vmatpush.bf16.msra.mxu2 %v5386_v10 }
 0x1db   :  { %v2468_v27 = vadd.f32 %v2436_v0, %v2337_v15  ;;  %v9270_v15 = vld [vmem:[%s11021_s1 + $0x138] sm:$0xff] }
 0x1dd   :  { %3125 = vmatmul.bf16.gmra.mxu1 %v11537_v2  ;;  %v2631_v30 = vadd.f32 %v2599_v55, %v2468_v27 }
 0x1de   :  { %3223 = vmatmul.bf16.gmra.mxu3 %v11537_v2 }
 0x1df   :  { %v2698_v13 = vadd.f32 %v2666_v22, %v2631_v30  ;;  %v9290_v30 = vld [vmem:[%s11021_s1 + $0x148] sm:$0xff] }
 0x1e1   :  { %v2829_v43 = vadd.f32 %v2797_v49, %v2698_v13 }
 0x1e7   :  { %3081 = vmatmul.bf16.gmra.mxu0 %v9017_v26 }
 0x1e8   :  { %3179 = vmatmul.bf16.gmra.mxu2 %v9017_v26  ;;  %v2601_v26 = vmul.f32 %v8771_v52, %v2536_v46 }
 0x1ea   :  { %v2633_v32 = vadd.f32 %v2601_v26, %v2470_v23  ;;  %v9265_v26 = vld [vmem:[%s11021_s1 + $0x128] sm:$0xff] }
 0x1ec   :  { %v2700_v42 = vadd.f32 %v11541_v47, %v2633_v32  ;;  %v9275_v32 = vld [vmem:[%s11021_s1 + $0x168] sm:$0xff] }
 0x1ed   :  { %3130 = vmatmul.bf16.gmra.mxu1 %v9054_v60 }
 0x1ee   :  { %3228 = vmatmul.bf16.gmra.mxu3 %v9054_v60  ;;  %v2831_v60 = vadd.f32 %v2799_v31, %v2700_v42 }
 0x1f0   :  { %v2847_v36 = vpack.c.bf16 %v2831_v60, %v2829_v43  ;;  %v9302_v60 = vld [vmem:[%s11021_s1 + $0x150] sm:$0xff] }
 0x1f7   :  { %3086 = vmatmul.bf16.gmra.mxu0 %v9114_v8 }
 0x1f8   :  { %3184 = vmatmul.bf16.gmra.mxu2 %v9114_v8 }
 0x1fd   :  { %3135 = vmatmul.bf16.gmra.mxu1 %v2845_v62 }
 0x1fe   :  { %3233 = vmatmul.bf16.gmra.mxu3 %v2845_v62 }
 0x207   :  { %3091 = vmatmul.bf16.gmra.mxu0 %v2846_v56 }
 0x208   :  { %3189 = vmatmul.bf16.gmra.mxu2 %v2846_v56  ;;  %v9232_v56 = vld [vmem:[%s11021_s1 + $0x130] sm:$0xff] }
 0x20d   :  { %3140 = vmatmul.bf16.gmra.mxu1 %v2847_v36 }
 0x20e   :  { %3238 = vmatmul.bf16.gmra.mxu3 %v2847_v36 }
 0x213   :  { %v3057_v52 = vpop.f32.mrf.mxu0 }
 0x214   :  { %v3058_v54 = vadd.f32 %v3057_v52, %v9203_v50 }
 0x218   :  { %v3106_v45 = vpop.f32.mrf.mxu1 }
 0x219   :  { %v3155_v37 = vpop.f32.mrf.mxu2  ;;  %v3107_v6 = vadd.f32 %v3106_v45, %v3058_v54 }
 0x21a   :  { %v3156_v7 = vadd.f32 %v3155_v37, %v9206_v14 }
 0x21b   :  { %v3059_v8 = vpop.f32.mrf.mxu0  ;;  %vm3244_vm10 = vcmp.gt.f32.partialorder %v3107_v6, 0.0  ;;  %v3276_v62 = vmul.f32 0.2, %v3107_v6 }
 0x21c   :  { %v3060_v51 = vadd.f32 %v3059_v8, %v9203_v50 }
 0x21d   :  { %v3308_v58 = vsel %vm3244_vm10, %v3107_v6, %v3276_v62 }
 0x21e   :  { %v3204_v25 = vpop.f32.mrf.mxu3  ;;  %v9215_v1 = vrot.slane %v3308_v58, 7  ;;  %v9218_v63 = vrot.slane %v3308_v58, 1  ;;  %v3508_v46 = vmul.f32 %v9232_v56, %v3308_v58  ;;  %v9256_v9 = vmul.f32 %v9237_v18, %v3308_v58  ;;  %v5282_v58 = vld [vmem:[%s11021_s1 + $0x170] sm:$0xff] }
 0x21f   :  { %v3205_v4 = vadd.f32 %v3204_v25, %v3156_v7  ;;  %v5286_v7 = vld [vmem:[%s11021_s1 + $0x190] sm:$0xff] }
 0x220   :  { %v3108_v2 = vpop.f32.mrf.mxu1  ;;  %11542 = vst [vmem:[#allocation40_spill] sm:$0xff] %v9218_v63  ;;  %v3464_v33 = vsel %vm254_vm6, %v11522_v17, %v9215_v1  ;;  %v3630_v53 = vsel %vm420_vm7, %v11532_v61, %v9218_v63 }
 0x221   :  { %v3157_v20 = vpop.f32.mrf.mxu2  ;;  %vm3245_vm11 = vcmp.gt.f32.partialorder %v3205_v4, 0.0  ;;  %v3277_v40 = vmul.f32 0.2, %v3205_v4  ;;  %v3109_v57 = vadd.f32 %v3108_v2, %v3060_v51  ;;  %v3473_v41 = vmul.f32 %v9227_v28, %v3464_v33  ;;  %11545 = vst [vmem:[#allocation10_spill] sm:$0xff] %v9256_v9  ;;  %v5284_v51 = vld [vmem:[%s11021_s1 + $0x180] sm:$0xff] }
 0x222   :  { %v3158_v3 = vadd.f32 %v3157_v20, %v9206_v14  ;;  %v9281_v42 = vmul.f32 %v9252_v21, %v3630_v53 }
 0x223   :  { %v3062_v29 = vpop.f32.mrf.mxu0  ;;  %v3309_v16 = vsel %vm3245_vm11, %v3205_v4, %v3277_v40  ;;  %vm3246_vm12 = vcmp.gt.f32.partialorder %v3109_v57, 0.0  ;;  %v3278_v5 = vmul.f32 0.2, %v3109_v57  ;;  %v3540_v31 = vadd.f32 %v3508_v46, %v3473_v41 }
 0x224   :  { %v9239_v59 = vrot.slane %v3309_v16, 7  ;;  %v9241_v19 = vrot.slane %v3309_v16, 1  ;;  %v3063_v27 = vadd.f32 %v3062_v29, %v9203_v50  ;;  %v3509_v52 = vmul.f32 %v9270_v15, %v3309_v16 }
 0x225   :  { %v3310_v0 = vsel %vm3246_vm12, %v3109_v57, %v3278_v5  ;;  %v9307_v54 = vmul.f32 %v9275_v32, %v3309_v16 }
 0x226   :  { %11543 = vst [vmem:[#allocation20_spill] sm:$0xff] %v9239_v59  ;;  %v3206_v44 = vpop.f32.mrf.mxu3  ;;  %v3465_v23 = vsel %vm254_vm6, %v11522_v17, %v9239_v59  ;;  %v3408_v48 = vrot.slane %v3310_v0, 7  ;;  %v9277_v38 = vrot.slane %v3310_v0, 1  ;;  %v3631_v12 = vsel %vm420_vm7, %v11532_v61, %v9241_v19 }
 0x227   :  { %11544 = vst [vmem:[#allocation41_spill] sm:$0xff] %v9241_v19  ;;  %v3207_v24 = vadd.f32 %v3206_v44, %v3158_v3  ;;  %v3474_v11 = vmul.f32 %v9265_v26, %v3465_v23  ;;  %v9311_v37 = vmul.f32 %v9290_v30, %v3631_v12  ;;  %v3510_v25 = vmul.f32 %v9232_v56, %v3310_v0  ;;  %v9357_v44 = vld [vmem:[%s11021_s1 + $0x158] sm:$0xff] }
 0x228   :  { %11546 = vst [vmem:[#allocation42_spill] sm:$0xff] %v9277_v38  ;;  %v3462_v13 = vsel %vm254_vm6, %v9215_v1, %v3408_v48  ;;  %v3628_v49 = vsel %vm420_vm7, %v9218_v63, %v9277_v38  ;;  %v4156_v4 = vsel %vm254_vm6, %v11522_v17, %v3408_v48  ;;  %v3869_v29 = vmul.f32 %v9237_v18, %v3310_v0 }
 0x229   :  { %v3111_v55 = vpop.f32.mrf.mxu1  ;;  %v3160_v47 = vpop.f32.mrf.mxu2  ;;  %vm3247_vm13 = vcmp.gt.f32.partialorder %v3207_v24, 0.0  ;;  %v3279_v22 = vmul.f32 0.2, %v3207_v24  ;;  %11547 = vst [vmem:[#allocation46_spill] sm:$0xff] %v9307_v54  ;;  %v3639_v45 = vmul.f32 %v9252_v21, %v3628_v49  ;;  %v3475_v62 = vmul.f32 %v9227_v28, %v3462_v13 }
 0x22a   :  { %v3112_v43 = vadd.f32 %v3111_v55, %v3063_v27  ;;  %11548 = vst [vmem:[#allocation56_spill] sm:$0xff] %v9311_v37  ;;  %v3802_v39 = vmul.f32 %v9302_v60, %v3462_v13  ;;  %v3541_v5 = vadd.f32 %v3509_v52, %v3474_v11  ;;  %v9344_v3 = vmul.f32 %v5282_v58, %v3628_v49 }
 0x22b   :  { %v3064_v36 = vpop.f32.mrf.mxu0  ;;  %v9313_v6 = vsel %vm3247_vm13, %v3207_v24, %v3279_v22  ;;  %v3671_v35 = vadd.f32 %v3639_v45, %v3540_v31  ;;  %v9346_v41 = vmul.f32 %v5286_v7, %v3310_v0  ;;  %v3542_v23 = vadd.f32 %v3510_v25, %v3475_v62  ;;  %v5545_v45 = vld [vmem:[%s11022_s2 + $0x2f4] sm:$0xf] }
 0x22c   :  { %vm3248_vm14 = vcmp.gt.f32.partialorder %v3112_v43, 0.0  ;;  %v3280_v8 = vmul.f32 0.2, %v3112_v43  ;;  %v9324_v10 = vrot.slane %v9313_v6, 7  ;;  %v9334_v2 = vrot.slane %v9313_v6, 1  ;;  %11550 = vst [vmem:[#allocation48_spill] sm:$0xff] %v9344_v3 }
 0x22d   :  { %v3834_v57 = vadd.f32 %v3802_v39, %v3671_v35  ;;  %11551 = vst [vmem:[#allocation49_spill] sm:$0xff] %v9346_v41  ;;  %v9359_v27 = vmul.f32 %v5284_v51, %v4156_v4  ;;  %v9372_v22 = vmul.f32 %v9270_v15, %v9313_v6  ;;  %v3161_v25 = vadd.f32 %v3160_v47, %v9206_v14  ;;  %v5381_v4 = vld [vmem:[%s11022_s2 + $0x270] sm:$0xf] }
 0x22e   :  { %11549 = vst [vmem:[#allocation28_spill] sm:$0xff] %v9334_v2  ;;  %v9336_v20 = vsel %vm3248_vm14, %v3112_v43, %v3280_v8  ;;  %v3463_v33 = vsel %vm254_vm6, %v9239_v59, %v9324_v10  ;;  %v9352_v53 = vsel %vm420_vm7, %v9241_v19, %v9334_v2  ;;  %v4157_v31 = vsel %vm254_vm6, %v11522_v17, %v9324_v10  ;;  %v5447_v8 = vld [vmem:[%s11022_s2 + $0x2f8] sm:$0xf0]  ;;  %v5445_v47 = vld [vmem:[%s11022_s2 + $0x2f0] sm:$0xf] }
 0x22f   :  { %v11137_v16 = vrot.slane %v9336_v20, 7  ;;  %11552 = vst [vmem:[#allocation50_spill] sm:$0xff] %v9359_v27  ;;  %v3640_v0 = vmul.f32 %v9290_v30, %v9352_v53  ;;  %v9368_v12 = vmul.f32 %v9265_v26, %v3463_v33  ;;  %v11138_v13 = vrot.slane %v9336_v20, 1 }
 0x230   :  { %v3209_v40 = vpop.f32.mrf.mxu3  ;;  %v3901_v43 = vadd.f32 %v3869_v29, %v3834_v57  ;;  %v3803_v52 = vmul.f32 %v9357_v44, %v3463_v33  ;;  %v3871_v39 = vmul.f32 %v9237_v18, %v9336_v20 }
 0x231   :  { %v3113_v46 = vpop.f32.mrf.mxu1  ;;  %v3162_v24 = vpop.f32.mrf.mxu2  ;;  %v3460_v55 = vsel %vm254_vm6, %v3408_v48, %v11137_v16  ;;  %v3672_v11 = vadd.f32 %v3640_v0, %v3541_v5  ;;  %v9392_v62 = vsel %vm420_vm7, %v9277_v38, %v11138_v13  ;;  %v3065_v5 = vadd.f32 %v3064_v36, %v9203_v50  ;;  %v5530_v0 = vld [vmem:[%s11022_s2 + $0x274] sm:$0xf0] }
 0x232   :  { %v3477_v48 = vmul.f32 %v9227_v28, %v3460_v55  ;;  %11553 = vst [vmem:[#allocation45_spill] sm:$0xff] %v9392_v62  ;;  %v3804_v35 = vmul.f32 %v9302_v60, %v3460_v55  ;;  %v3641_v57 = vmul.f32 %v9252_v21, %v9392_v62  ;;  %v4000_v29 = vmul.f32 %v5282_v58, %v9392_v62  ;;  %v5546_v16 = vld [vmem:[%s11022_s2 + $0x2f4] sm:$0xf0] }
 0x233   :  { %v4163_v33 = vmul.f32 %v5284_v51, %v3460_v55  ;;  %v3835_v13 = vadd.f32 %v3803_v52, %v3672_v11  ;;  %v4230_v38 = vmul.f32 %v5286_v7, %v9336_v20  ;;  %v3210_v19 = vadd.f32 %v3209_v40, %v3161_v25  ;;  %v5283_v7 = vld [vmem:[%s11021_s1 + $0x178] sm:$0xff]  ;;  %v5285_v40 = vld [vmem:[%s11021_s1 + $0x188] sm:$0xff] }
 0x234   :  { %v3067_v49 = vpop.f32.mrf.mxu0  ;;  %v5450_v58 = vor.u32 %v5545_v45, %v5447_v8  ;;  %v3673_v55 = vadd.f32 %v3641_v57, %v3542_v23  ;;  %v4032_v36 = vadd.f32 %v4000_v29, %v3901_v43  ;;  %v3114_v41 = vadd.f32 %v3113_v46, %v3065_v5  ;;  %v5287_v46 = vld [vmem:[%s11021_s1 + $0x198] sm:$0xff] }
 0x235   :  { %v3068_v54 = vadd.f32 %v3067_v49, %v9203_v50  ;;  %vm3249_vm15 = vcmp.gt.f32.partialorder %v3210_v19, 0.0  ;;  %v3281_v27 = vmul.f32 0.2, %v3210_v19  ;;  %v5382_v62 = vor.u32 %v5530_v0, %v5381_v4 }
 0x236   :  { %4786 = vmatpush.bf16.msra.mxu3 %v5450_v58  ;;  %v5446_v3 = vor.u32 %v5546_v16, %v5445_v47  ;;  %v3836_v37 = vadd.f32 %v3804_v35, %v3673_v55  ;;  %v4195_v63 = vadd.f32 %v4163_v33, %v4032_v36  ;;  %vm3250_vm0 = vcmp.gt.f32.partialorder %v3114_v41, 0.0 }
 0x237   :  { %v3282_v11 = vmul.f32 0.2, %v3114_v41  ;;  %v9425_v23 = vsel %vm3249_vm15, %v3210_v19, %v3281_v27  ;;  %v3163_v16 = vadd.f32 %v3162_v24, %v9206_v14  ;;  %4639 = vmatpush.bf16.msra.mxu0 %v5382_v62  ;;  %v3870_v52 = vmul.f32 %v9275_v32, %v9313_v6 }
 0x238   :  { %v3211_v51 = vpop.f32.mrf.mxu3  ;;  %11554 = vst [vmem:[#allocation55_spill] sm:$0xff] %v9425_v23  ;;  %4688 = vmatpush.bf16.msra.mxu1 %v5446_v3  ;;  %v9430_v45 = vadd.f32 %v3871_v39, %v3836_v37  ;;  %v9432_v8 = vadd.f32 %v4230_v38, %v4195_v63  ;;  %v11145_v35 = vrot.slane %v9425_v23, 7  ;;  %v3512_v25 = vmul.f32 %v9232_v56, %v9336_v20 }
 0x239   :  { %v3577_v19 = vrot.slane %v9425_v23, 1  ;;  %v9439_v24 = vsel %vm3250_vm0, %v3114_v41, %v3282_v11  ;;  %v3212_v3 = vadd.f32 %v3211_v51, %v3163_v16  ;;  %v9447_v37 = vmul.f32 %v5287_v46, %v9313_v6 }
 0x23a   :  { %v3116_v59 = vpop.f32.mrf.mxu1  ;;  %v3165_v9 = vpop.f32.mrf.mxu2  ;;  %11555 = vst [vmem:[#allocation8_spill] sm:$0xff] %v9430_v45  ;;  %v3461_v63 = vsel %vm254_vm6, %v9324_v10, %v11145_v35  ;;  %v3543_v38 = vadd.f32 %v9372_v22, %v9368_v12  ;;  %v3902_v41 = vadd.f32 %v3870_v52, %v3835_v13  ;;  %v9456_v27 = vadd.f32 %v3512_v25, %v3477_v48  ;;  %v5527_v22 = vld [vmem:[%s11022_s2 + $0x264] sm:$0xf]  ;;  %v5375_v13 = vld [vmem:[%s11022_s2 + $0x268] sm:$0xf0] }
 0x23b   :  { %v3117_v49 = vadd.f32 %v3116_v59, %v3068_v54  ;;  %v9442_v59 = vmul.f32 %v5283_v7, %v9352_v53  ;;  %v9444_v54 = vmul.f32 %v5285_v40, %v4157_v31  ;;  %11558 = vst [vmem:[#allocation62_spill] sm:$0xff] %v9447_v37  ;;  %v9463_v53 = vsel %vm420_vm7, %v9334_v2, %v3577_v19 }
 0x23c   :  { %v3069_v43 = vpop.f32.mrf.mxu0  ;;  %11559 = vst [vmem:[#allocation33_spill] sm:$0xff] %v9456_v27  ;;  %v3513_v31 = vmul.f32 %v9270_v15, %v9425_v23  ;;  %v3642_v10 = vmul.f32 %v9290_v30, %v9463_v53  ;;  %v4001_v62 = vmul.f32 %v5283_v7, %v9463_v53  ;;  %v11146_v12 = vrot.slane %v9439_v24, 1 }
 0x23d   :  { %11556 = vst [vmem:[#allocation58_spill] sm:$0xff] %v9442_v59  ;;  %v3805_v48 = vmul.f32 %v9357_v44, %v3461_v63  ;;  %v4164_v39 = vmul.f32 %v5285_v40, %v3461_v63  ;;  %vm3251_vm1 = vcmp.gt.f32.partialorder %v3212_v3, 0.0  ;;  %v3283_v4 = vmul.f32 0.2, %v3212_v3 }
 0x23e   :  { %11557 = vst [vmem:[#allocation59_spill] sm:$0xff] %v9444_v54  ;;  %v3674_v33 = vadd.f32 %v3642_v10, %v3543_v38  ;;  %v4033_v5 = vadd.f32 %v4001_v62, %v3902_v41  ;;  %vm3252_vm2 = vcmp.gt.f32.partialorder %v3117_v49, 0.0  ;;  %v3284_v0 = vmul.f32 0.2, %v3117_v49  ;;  %v5373_v62 = vld [vmem:[%s11022_s2 + $0x260] sm:$0xf] }
 0x23f   :  { %11560 = vst [vmem:[#allocation31_spill] sm:$0xff] %v9463_v53  ;;  %v3872_v47 = vmul.f32 %v9275_v32, %v9425_v23  ;;  %v4231_v58 = vmul.f32 %v5287_v46, %v9425_v23  ;;  %v3166_v51 = vadd.f32 %v3165_v9, %v9206_v14  ;;  %v5378_v55 = vor.u32 %v5527_v22, %v5375_v13  ;;  %v5543_v9 = vld [vmem:[%s11022_s2 + $0x2e4] sm:$0xf]  ;;  %v5528_v22 = vld [vmem:[%s11022_s2 + $0x264] sm:$0xf0] }
 0x240   :  { %v3478_v11 = vmul.f32 %v9265_v26, %v3461_v63  ;;  %v3837_v7 = vadd.f32 %v3805_v48, %v3674_v33  ;;  %v4196_v40 = vadd.f32 %v4164_v39, %v4033_v5  ;;  %v9484_v16 = vsel %vm3251_vm1, %v3212_v3, %v3283_v4  ;;  %v5439_v63 = vld [vmem:[%s11022_s2 + $0x2e8] sm:$0xf0]  ;;  %v5437_v4 = vld [vmem:[%s11022_s2 + $0x2e0] sm:$0xf]  ;;  %v5544_v33 = vld [vmem:[%s11022_s2 + $0x2e4] sm:$0xf0] }
 0x241   :  { %v3214_v6 = vpop.f32.mrf.mxu3  ;;  %11561 = vst [vmem:[#allocation21_spill] sm:$0xff] %v9484_v16  ;;  %v11148_v52 = vrot.slane %v9439_v24, 7  ;;  %v9489_v25 = vmul.f32 %v9232_v56, %v9439_v24  ;;  %v9491_v38 = vsel %vm3252_vm2, %v3117_v49, %v3284_v0  ;;  %4738 = vmatpush.bf16.msra.mxu2 %v5378_v55  ;;  %v11566_v10 = vrot.slane %v9336_v20, 1 }
 0x242   :  { %v3118_v57 = vpop.f32.mrf.mxu1  ;;  %v3167_v29 = vpop.f32.mrf.mxu2  ;;  %11563 = vst [vmem:[#allocation30_spill] sm:$0xff] %v9491_v38  ;;  %v3215_v46 = vadd.f32 %v3214_v6, %v3166_v51  ;;  %v9499_v3 = vadd.f32 %v3872_v47, %v3837_v7  ;;  %v9501_v41 = vadd.f32 %v4231_v58, %v4196_v40  ;;  %v11144_v6 = vrot.slane %v9491_v38, 7 }
 0x243   :  { %11562 = vst [vmem:[#allocation57_spill] sm:$0xff] %v9489_v25  ;;  %v9509_v49 = vsel %vm420_vm7, %v11566_v10, %v11146_v12  ;;  %v9520_v13 = vmul.f32 %v9237_v18, %v9439_v24  ;;  %v11147_v48 = vrot.slane %v9484_v16, 1  ;;  %v3070_v39 = vadd.f32 %v3069_v43, %v9203_v50  ;;  %v5367_v12 = vld [vmem:[%s11022_s2 + $0x258] sm:$0xf0] }
 0x244   :  { %v3072_v36 = vpop.f32.mrf.mxu0  ;;  %11564 = vst [vmem:[#allocation25_spill] sm:$0xff] %v9499_v3  ;;  %vm3253_vm3 = vcmp.gt.f32.partialorder %v3215_v46, 0.0  ;;  %v9530_v0 = vadd.f32 %v3513_v31, %v3478_v11  ;;  %v9538_v47 = vsel %vm254_vm6, %v11148_v52, %v11144_v6  ;;  %v3285_v43 = vmul.f32 0.2, %v3215_v46 }
 0x245   :  { %11565 = vst [vmem:[#allocation24_spill] sm:$0xff] %v9501_v41  ;;  %v5442_v58 = vor.u32 %v5543_v9, %v5439_v63  ;;  %v9542_v51 = vmul.f32 %v9252_v21, %v9509_v49  ;;  %v11150_v55 = vrot.slane %v9484_v16, 7  ;;  %v9547_v31 = vmul.f32 %v9270_v15, %v9484_v16  ;;  %v5525_v63 = vld [vmem:[%s11022_s2 + $0x254] sm:$0xf] }
 0x246   :  { %11567 = vst [vmem:[#allocation35_spill] sm:$0xff] %v9520_v13  ;;  %v3119_v11 = vadd.f32 %v3118_v57, %v3070_v39  ;;  %v9549_v10 = vsel %vm3253_vm3, %v3215_v46, %v3285_v43  ;;  %v3168_v6 = vadd.f32 %v3167_v29, %v9206_v14  ;;  %v5374_v35 = vor.u32 %v5528_v22, %v5373_v62 }
 0x247   :  { %11568 = vst [vmem:[#allocation61_spill] sm:$0xff] %v9530_v0  ;;  %4787 = vmatpush.bf16.msra.mxu3 %v5442_v58  ;;  %v5438_v9 = vor.u32 %v5544_v33, %v5437_v4  ;;  %v9564_v57 = vsel %vm420_vm7, %v3577_v19, %v11147_v48  ;;  %v3481_v29 = vmul.f32 %v9227_v28, %v9538_v47  ;;  %v11149_v46 = vrot.slane %v9549_v10, 7 }
 0x248   :  { %11569 = vst [vmem:[#allocation26_spill] sm:$0xff] %v9538_v47  ;;  %v3073_v62 = vadd.f32 %v3072_v36, %v9203_v50  ;;  %v9572_v39 = vmul.f32 %v9275_v32, %v9484_v16  ;;  %vm3254_vm4 = vcmp.gt.f32.partialorder %v3119_v11, 0.0  ;;  %v3286_v4 = vmul.f32 0.2, %v3119_v11  ;;  %4640 = vmatpush.bf16.msra.mxu0 %v5374_v35 }
 0x249   :  { %v3216_v5 = vpop.f32.mrf.mxu3  ;;  %11570 = vst [vmem:[#allocation17_spill] sm:$0xff] %v9542_v51  ;;  %4689 = vmatpush.bf16.msra.mxu1 %v5438_v9  ;;  %v3516_v19 = vmul.f32 %v9232_v56, %v9491_v38  ;;  %v5370_v48 = vor.u32 %v5525_v63, %v5367_v12  ;;  %v9579_v36 = vmul.f32 %v9290_v30, %v9564_v57  ;;  %v9725_v45 = vmul.f32 0.0, %v9232_v56 }
 0x24a   :  { %11571 = vst [vmem:[#allocation64_spill] sm:$0xff] %v9547_v31  ;;  %v3121_v7 = vpop.f32.mrf.mxu1  ;;  %v3217_v33 = vadd.f32 %v3216_v5, %v3168_v6  ;;  %v9583_v52 = vmul.f32 %v9237_v18, %v9491_v38  ;;  %v9591_v35 = vsel %vm254_vm6, %v11150_v55, %v11149_v46  ;;  %v9593_v6 = vsel %vm3254_vm4, %v3119_v11, %v3286_v4  ;;  %v5431_v46 = vld [vmem:[%s11022_s2 + $0x2d8] sm:$0xf0] }
 0x24b   :  { %v3170_v40 = vpop.f32.mrf.mxu2  ;;  %11572 = vst [vmem:[#allocation38_spill] sm:$0xff] %v9549_v10  ;;  %v3122_v58 = vadd.f32 %v3121_v7, %v3073_v62  ;;  %v9595_v5 = vadd.f32 %v3516_v19, %v3481_v29  ;;  %v3517_v12 = vmul.f32 %v9270_v15, %v9549_v10  ;;  %4739 = vmatpush.bf16.msra.mxu2 %v5370_v48  ;;  %v5541_v62 = vld [vmem:[%s11022_s2 + $0x2d4] sm:$0xf] }
 0x24c   :  { %v3074_v22 = vpop.f32.mrf.mxu0  ;;  %11573 = vst [vmem:[#allocation66_spill] sm:$0xff] %v9572_v39  ;;  %v3287_v7 = vmul.f32 0.2, %v3217_v33  ;;  %v3171_v9 = vadd.f32 %v3170_v40, %v9206_v14  ;;  %vm3255_vm5 = vcmp.gt.f32.partialorder %v3217_v33, 0.0  ;;  %v3482_v4 = vmul.f32 %v9265_v26, %v9591_v35 }
 0x24d   :  { %11574 = vst [vmem:[#allocation22_spill] sm:$0xff] %v9579_v36  ;;  %vm3256_vm8 = vcmp.gt.f32.partialorder %v3122_v58, 0.0  ;;  %v3288_v11 = vmul.f32 0.2, %v3122_v58  ;;  %v3075_v29 = vadd.f32 %v3074_v22, %v9203_v50  ;;  %v9612_v48 = vmul.f32 %v9275_v32, %v9549_v10 }
 0x24e   :  { %11575 = vst [vmem:[#allocation54_spill] sm:$0xff] %v9583_v52  ;;  %v5434_v39 = vor.u32 %v5541_v62, %v5431_v46  ;;  %v9619_v22 = vmul.f32 %v9232_v56, %v9593_v6  ;;  %v9628_v46 = vadd.f32 %v3517_v12, %v3482_v4 }
 0x24f   :  { %11576 = vst [vmem:[#allocation63_spill] sm:$0xff] %v9591_v35  ;;  %v9615_v2 = vsel %vm3256_vm8, %v3122_v58, %v3288_v11  ;;  %v9621_v35 = vsel %vm3255_vm5, %v3217_v33, %v3287_v7  ;;  %v11586_v33 = vrot.slane %v9593_v6, 7 }
 0x250   :  { %11577 = vst [vmem:[#allocation65_spill] sm:$0xff] %v9593_v6  ;;  %v3418_v40 = vrot.slane %v9615_v2, 7  ;;  %v9625_v36 = vrot.slane %v9615_v2, 1  ;;  %4788 = vmatpush.bf16.msra.mxu3 %v5434_v39  ;;  %v5526_v39 = vld [vmem:[%s11022_s2 + $0x254] sm:$0xf0]  ;;  %v9649_v62 = vmul.f32 %v9270_v15, %v9621_v35  ;;  %v11593_v0 = vrot.slane %v9621_v35, 7 }
 0x251   :  { %11578 = vst [vmem:[#allocation16_spill] sm:$0xff] %v9595_v5  ;;  %v3219_v63 = vpop.f32.mrf.mxu3 }
 0x252   :  { %11579 = vst [vmem:[#allocation52_spill] sm:$0xff] %v9612_v48  ;;  %v3123_v55 = vpop.f32.mrf.mxu1  ;;  %v3220_v52 = vadd.f32 %v3219_v63, %v3171_v9  ;;  %v9638_v7 = vsel %vm254_vm6, %v11586_v33, %v3418_v40  ;;  %v5365_v63 = vld [vmem:[%s11022_s2 + $0x250] sm:$0xf]  ;;  %v3450_v11 = vsel %vm254_vm6, %v3418_v40, %v11522_v17  ;;  %v9659_v33 = vmul.f32 %v9275_v32, %v9621_v35 }
 0x253   :  { %v3172_v43 = vpop.f32.mrf.mxu2  ;;  %11580 = vst [vmem:[#allocation44_spill] sm:$0xff] %v9615_v2  ;;  %v3124_v3 = vadd.f32 %v3123_v55, %v3075_v29  ;;  %v9632_v55 = vmul.f32 %v9237_v18, %v9593_v6  ;;  %v3616_v19 = vsel %vm420_vm7, %v9625_v36, %v11532_v61  ;;  %v5366_v4 = vor.u32 %v5526_v39, %v5365_v63 }
 0x254   :  { %11581 = vst [vmem:[#allocation29_spill] sm:$0xff] %v9619_v22  ;;  %v3077_v48 = vpop.f32.mrf.mxu0  ;;  %vm3257_vm9 = vcmp.gt.f32.partialorder %v3220_v52, 0.0  ;;  %v3289_v58 = vmul.f32 0.2, %v3220_v52  ;;  %v5542_v22 = vld [vmem:[%s11022_s2 + $0x2d4] sm:$0xf0]  ;;  %v3651_v10 = vmul.f32 %v9252_v21, %v3616_v19 }
 0x255   :  { %11582 = vst [vmem:[#allocation53_spill] sm:$0xff] %v9621_v35  ;;  %v3290_v9 = vmul.f32 0.2, %v3124_v3  ;;  %vm3258_vm10 = vcmp.gt.f32.partialorder %v3124_v3, 0.0  ;;  %4641 = vmatpush.bf16.msra.mxu0 %v5366_v4 }
 0x256   :  { %11583 = vst [vmem:[#allocation70_spill] sm:$0xff] %v9625_v36  ;;  %v9654_v29 = vsel %vm3257_vm9, %v3220_v52, %v3289_v58  ;;  %v3487_v36 = vmul.f32 %v9227_v28, %v3450_v11 }
 0x257   :  { %11584 = vst [vmem:[#allocation60_spill] sm:$0xff] %v9628_v46  ;;  %v9666_v12 = vrot.slane %v9654_v29, 7  ;;  %v9671_v52 = vrot.slane %v9654_v29, 1  ;;  %v9673_v58 = vsel %vm3258_vm10, %v3124_v3, %v3290_v9  ;;  %v3520_v46 = vmul.f32 %v9232_v56, %v9615_v2 }
 0x258   :  { %11585 = vst [vmem:[#allocation32_spill] sm:$0xff] %v9632_v55  ;;  %v3485_v55 = vmul.f32 %v9227_v28, %v9638_v7  ;;  %v3173_v3 = vadd.f32 %v3172_v43, %v9206_v14  ;;  %v9701_v31 = vrot.slane %v9673_v58, 7  ;;  %v5523_v43 = vld [vmem:[%s11022_s2 + $0x244] sm:$0xf]  ;;  %v9715_v35 = vmul.f32 %v9275_v32, %v9654_v29 }
 0x259   :  { %11587 = vst [vmem:[#allocation47_spill] sm:$0xff] %v9638_v7  ;;  %v9686_v7 = vmul.f32 %v9237_v18, %v9615_v2  ;;  %v3451_v39 = vsel %vm254_vm6, %v9666_v12, %v11522_v17  ;;  %v9698_v11 = vsel %vm254_vm6, %v11593_v0, %v9666_v12  ;;  %v5359_v2 = vld [vmem:[%s11022_s2 + $0x248] sm:$0xf0]  ;;  %v3521_v0 = vmul.f32 %v9270_v15, %v9654_v29 }
 0x25a   :  { %11588 = vst [vmem:[#allocation67_spill] sm:$0xff] %v9649_v62  ;;  %v3221_v62 = vpop.f32.mrf.mxu3  ;;  %v3126_v9 = vpop.f32.mrf.mxu1  ;;  %v3552_v4 = vadd.f32 %v3520_v46, %v3485_v55  ;;  %v3617_v16 = vsel %vm420_vm7, %v9671_v52, %v11532_v61  ;;  %v3486_v19 = vmul.f32 %v9265_v26, %v9698_v11  ;;  %v3488_v47 = vmul.f32 %v9265_v26, %v3451_v39  ;;  %v5423_v46 = vld [vmem:[%s11022_s2 + $0x2c8] sm:$0xf0] }
 0x25b   :  { %11589 = vst [vmem:[#allocation69_spill] sm:$0xff] %v9654_v29  ;;  %v3175_v63 = vpop.f32.mrf.mxu2  ;;  %v3222_v37 = vadd.f32 %v3221_v62, %v3173_v3  ;;  %v9736_v55 = vsel %vm254_vm6, %v3418_v40, %v9701_v31  ;;  %v9741_v3 = vmul.f32 0.0, %v9270_v15 }
 0x25c   :  { %11590 = vst [vmem:[#allocation75_spill] sm:$0xff] %v9659_v33  ;;  %v5429_v33 = vld [vmem:[%s11022_s2 + $0x2d0] sm:$0xf]  ;;  %v3553_v40 = vadd.f32 %v3521_v0, %v3486_v19 }
 0x25d   :  { %11591 = vst [vmem:[#allocation71_spill] sm:$0xff] %v9671_v52  ;;  %v5430_v23 = vor.u32 %v5542_v22, %v5429_v33  ;;  %v5539_v22 = vld [vmem:[%s11022_s2 + $0x2c4] sm:$0xf]  ;;  %vm3259_vm11 = vcmp.gt.f32.partialorder %v3222_v37, 0.0 }
 0x25e   :  { %11592 = vst [vmem:[#allocation68_spill] sm:$0xff] %v9686_v7  ;;  %v3078_v7 = vadd.f32 %v3077_v48, %v9203_v50  ;;  %v3079_v48 = vpop.f32.mrf.mxu0  ;;  %v5426_v29 = vor.u32 %v5539_v22, %v5423_v46 }
 0x25f   :  { %11594 = vst [vmem:[#allocation34_spill] sm:$0xff] %v9698_v11  ;;  %4690 = vmatpush.bf16.msra.mxu1 %v5430_v23  ;;  %v3176_v23 = vadd.f32 %v3175_v63, %v9206_v14  ;;  %v3814_v11 = vmul.f32 %v9302_v60, %v9736_v55 }
 0x260   :  { %11595 = vst [vmem:[#allocation6_spill] sm:$0xff] %v9701_v31  ;;  %v3127_v13 = vadd.f32 %v3126_v9, %v3078_v7  ;;  %v3291_v7 = vmul.f32 0.2, %v3222_v37  ;;  %v3683_v9 = vadd.f32 %v3651_v10, %v3552_v4  ;;  %4789 = vmatpush.bf16.msra.mxu3 %v5426_v29 }
 0x261   :  { %11596 = vst [vmem:[#allocation74_spill] sm:$0xff] %v9715_v35  ;;  %v5362_v35 = vor.u32 %v5523_v43, %v5359_v2  ;;  %v3554_v2 = vadd.f32 %v9725_v45, %v3487_v36 }
 0x262   :  { %11597 = vst [vmem:[#allocation14_spill] sm:$0xff] %v9736_v55  ;;  %vm3260_vm12 = vcmp.gt.f32.partialorder %v3127_v13, 0.0  ;;  %v3292_v62 = vmul.f32 0.2, %v3127_v13  ;;  %v3224_v33 = vpop.f32.mrf.mxu3  ;;  %v9743_v39 = vsel %vm3259_vm11, %v3222_v37, %v3291_v7  ;;  %v3128_v54 = vpop.f32.mrf.mxu1  ;;  %v3080_v37 = vadd.f32 %v3079_v48, %v9203_v50 }
 0x263   :  { %4740 = vmatpush.bf16.msra.mxu2 %v5362_v35  ;;  %v3225_v43 = vadd.f32 %v3224_v33, %v3176_v23  ;;  %v9748_v63 = vrot.slane %v9743_v39, 7  ;;  %v3177_v36 = vpop.f32.mrf.mxu2  ;;  %v3652_v35 = vmul.f32 %v9290_v30, %v3617_v16  ;;  %v9773_v22 = vadd.f32 %v3814_v11, %v3683_v9 }
 0x264   :  { %v3324_v52 = vsel %vm3260_vm12, %v3127_v13, %v3292_v62  ;;  %v3555_v13 = vadd.f32 %v9741_v3, %v3488_v47  ;;  %v9777_v47 = vmul.f32 %v9237_v18, %v9673_v58  ;;  %v3129_v33 = vadd.f32 %v3128_v54, %v3080_v37 }
 0x265   :  { %11598 = vst [vmem:[#allocation51_spill] sm:$0xff] %v9748_v63  ;;  %v3422_v5 = vrot.slane %v3324_v52, 7  ;;  %v9751_v59 = vrot.slane %v3324_v52, 1  ;;  %v9758_v10 = vsel %vm254_vm6, %v9666_v12, %v9748_v63  ;;  %vm3261_vm13 = vcmp.gt.f32.partialorder %v3225_v43, 0.0 }
 0x266   :  { %11599 = vst [vmem:[#allocation39_spill] sm:$0xff] %v9758_v10  ;;  %v3293_v0 = vmul.f32 0.2, %v3225_v43  ;;  %v3082_v4 = vpop.f32.mrf.mxu0  ;;  %v3815_v16 = vmul.f32 %v9357_v44, %v9758_v10  ;;  %v3684_v48 = vadd.f32 %v3652_v35, %v3553_v40  ;;  %v3524_v23 = vmul.f32 %v9232_v56, %v3324_v52 }
 0x267   :  { %v3448_v19 = vsel %vm254_vm6, %v11522_v17, %v3422_v5  ;;  %v3614_v29 = vsel %vm420_vm7, %v11532_v61, %v9751_v59  ;;  %v3779_v12 = vsel %vm254_vm6, %v9701_v31, %v3422_v5  ;;  %v3883_v31 = vmul.f32 %v9237_v18, %v3324_v52 }
 0x268   :  { %v3653_v46 = vmul.f32 %v9252_v21, %v3614_v29  ;;  %v3489_v7 = vmul.f32 %v9227_v28, %v3448_v19  ;;  %v3325_v62 = vsel %vm3261_vm13, %v3225_v43, %v3293_v0  ;;  %v3816_v55 = vmul.f32 %v9302_v60, %v3779_v12  ;;  %v5357_v43 = vld [vmem:[%s11022_s2 + $0x240] sm:$0xf]  ;;  %v5524_v12 = vld [vmem:[%s11022_s2 + $0x244] sm:$0xf0] }
 0x269   :  { %v9784_v40 = vrot.slane %v3325_v62, 7  ;;  %v9786_v9 = vadd.f32 %v3815_v16, %v3684_v48  ;;  %v9788_v35 = vrot.slane %v3325_v62, 1  ;;  %vm3262_vm14 = vcmp.gt.f32.partialorder %v3129_v33, 0.0  ;;  %v5421_v48 = vld [vmem:[%s11022_s2 + $0x2c0] sm:$0xf] }
 0x26a   :  { %v3685_v10 = vadd.f32 %v3653_v46, %v3554_v2  ;;  %v3226_v11 = vpop.f32.mrf.mxu3  ;;  %v3178_v29 = vadd.f32 %v3177_v36, %v9206_v14  ;;  %v3294_v2 = vmul.f32 0.2, %v3129_v33  ;;  %v3131_v37 = vpop.f32.mrf.mxu1  ;;  %v3556_v16 = vadd.f32 %v3524_v23, %v3489_v7  ;;  %v5540_v46 = vld [vmem:[%s11022_s2 + $0x2c4] sm:$0xf0] }
 0x26b   :  { %v3449_v54 = vsel %vm254_vm6, %v11522_v17, %v9784_v40  ;;  %v3780_v52 = vsel %vm254_vm6, %v9748_v63, %v9784_v40  ;;  %v3180_v0 = vpop.f32.mrf.mxu2  ;;  %v3525_v36 = vmul.f32 %v9270_v15, %v3325_v62  ;;  %v3083_v41 = vadd.f32 %v3082_v4, %v9203_v50 }
 0x26c   :  { %v3848_v19 = vadd.f32 %v3816_v55, %v3685_v10  ;;  %v3490_v55 = vmul.f32 %v9265_v26, %v3449_v54  ;;  %v3615_v10 = vsel %vm420_vm7, %v11532_v61, %v9788_v35  ;;  %v3884_v54 = vmul.f32 %v9275_v32, %v3325_v62 }
 0x26d   :  { %v3654_v23 = vmul.f32 %v9290_v30, %v3615_v10  ;;  %v9822_v63 = vsel %vm3262_vm14, %v3129_v33, %v3294_v2  ;;  %v3817_v27 = vmul.f32 %v9357_v44, %v3780_v52  ;;  %v5422_v10 = vor.u32 %v5540_v46, %v5421_v48 }
 0x26e   :  { %v9817_v7 = vadd.f32 %v3883_v31, %v3848_v19  ;;  %11601 = vst [vmem:[#allocation11_spill] sm:$0xff] %v9822_v63  ;;  %v3084_v51 = vpop.f32.mrf.mxu0  ;;  %v9826_v53 = vrot.slane %v9822_v63, 7  ;;  %v9829_v25 = vrot.slane %v9822_v63, 1  ;;  %v3557_v31 = vadd.f32 %v3525_v36, %v3490_v55 }
 0x26f   :  { %v3686_v19 = vadd.f32 %v3654_v23, %v3555_v13  ;;  %v3227_v52 = vadd.f32 %v3226_v11, %v3178_v29  ;;  %v3132_v2 = vadd.f32 %v3131_v37, %v3083_v41  ;;  %v3526_v13 = vmul.f32 %v9232_v56, %v9822_v63  ;;  %4691 = vmatpush.bf16.msra.mxu1 %v5422_v10 }
 0x270   :  { %11600 = vst [vmem:[#allocation9_spill] sm:$0xff] %v9817_v7  ;;  %v5358_v7 = vor.u32 %v5524_v12, %v5357_v43  ;;  %v3446_v62 = vsel %vm254_vm6, %v3422_v5, %v9826_v53  ;;  %v9839_v33 = vsel %vm420_vm7, %v9751_v59, %v9829_v25  ;;  %v5521_v5 = vld [vmem:[%s11022_s2 + $0x234] sm:$0xf]  ;;  %v5351_v43 = vld [vmem:[%s11022_s2 + $0x238] sm:$0xf0]  ;;  %v3885_v48 = vmul.f32 %v9237_v18, %v9822_v63 }
 0x271   :  { %11602 = vst [vmem:[#allocation37_spill] sm:$0xff] %v9826_v53  ;;  %v3849_v38 = vadd.f32 %v3817_v27, %v3686_v19  ;;  %v3491_v6 = vmul.f32 %v9227_v28, %v3446_v62  ;;  %v3655_v4 = vmul.f32 %v9252_v21, %v9839_v33  ;;  %vm3263_vm15 = vcmp.gt.f32.partialorder %v3227_v52, 0.0 }
 0x272   :  { %11603 = vst [vmem:[#allocation23_spill] sm:$0xff] %v9839_v33  ;;  %4642 = vmatpush.bf16.msra.mxu0 %v5358_v7  ;;  %v3229_v11 = vpop.f32.mrf.mxu3  ;;  %v3295_v27 = vmul.f32 0.2, %v3227_v52  ;;  %vm3264_vm0 = vcmp.gt.f32.partialorder %v3132_v2, 0.0  ;;  %v3296_v41 = vmul.f32 0.2, %v3132_v2  ;;  %v3818_v55 = vmul.f32 %v9302_v60, %v3446_v62  ;;  %v3133_v36 = vpop.f32.mrf.mxu1 }
 0x273   :  { %v9852_v29 = vadd.f32 %v3884_v54, %v3849_v38  ;;  %v9854_v37 = vadd.f32 %v3526_v13, %v3491_v6  ;;  %v3687_v21 = vadd.f32 %v3655_v4, %v3556_v16  ;;  %v3182_v12 = vpop.f32.mrf.mxu2  ;;  %v5354_v23 = vor.u32 %v5521_v5, %v5351_v43 }
 0x274   :  { %v9859_v46 = vsel %vm3263_vm15, %v3227_v52, %v3295_v27  ;;  %v9861_v7 = vsel %vm3264_vm0, %v3132_v2, %v3296_v41  ;;  %v3181_v6 = vadd.f32 %v3180_v0, %v9206_v14  ;;  %v3085_v52 = vadd.f32 %v3084_v51, %v9203_v50  ;;  %v5537_v2 = vld [vmem:[%s11022_s2 + $0x2b4] sm:$0xf]  ;;  %v5415_v0 = vld [vmem:[%s11022_s2 + $0x2b8] sm:$0xf0] }
 0x275   :  { %11604 = vst [vmem:[#allocation18_spill] sm:$0xff] %v9852_v29  ;;  %v3850_v19 = vadd.f32 %v3818_v55, %v3687_v21  ;;  %v9864_v10 = vrot.slane %v9859_v46, 7  ;;  %v9867_v38 = vrot.slane %v9859_v46, 1  ;;  %v3527_v16 = vmul.f32 %v9270_v15, %v9859_v46  ;;  %4741 = vmatpush.bf16.msra.mxu2 %v5354_v23  ;;  %v5349_v21 = vld [vmem:[%s11022_s2 + $0x230] sm:$0xf] }
 0x276   :  { %11605 = vst [vmem:[#allocation7_spill] sm:$0xff] %v9854_v37  ;;  %v3087_v60 = vpop.f32.mrf.mxu0  ;;  %v3886_v54 = vmul.f32 %v9275_v32, %v9859_v46  ;;  %v11182_v62 = vrot.slane %v9861_v7, 7  ;;  %v3528_v5 = vmul.f32 %v9232_v56, %v9861_v7  ;;  %v5418_v23 = vor.u32 %v5537_v2, %v5415_v0 }
 0x277   :  { %11606 = vst [vmem:[#allocation43_spill] sm:$0xff] %v9859_v46  ;;  %v9882_v13 = vadd.f32 %v3885_v48, %v3850_v19  ;;  %v3447_v4 = vsel %vm254_vm6, %v9784_v40, %v9864_v10  ;;  %v9892_v51 = vsel %vm420_vm7, %v9788_v35, %v9867_v38  ;;  %v3230_v48 = vadd.f32 %v3229_v11, %v3181_v6 }
 0x278   :  { %11607 = vst [vmem:[#allocation73_spill] sm:$0xff] %v9861_v7  ;;  %v3492_v43 = vmul.f32 %v9265_v26, %v3447_v4  ;;  %v3656_v27 = vmul.f32 %v9290_v30, %v9892_v51  ;;  %v3819_v41 = vmul.f32 %v9357_v44, %v3447_v4  ;;  %v9905_v40 = vsel %vm254_vm6, %v9826_v53, %v11182_v62  ;;  %v5522_v30 = vld [vmem:[%s11022_s2 + $0x234] sm:$0xf0]  ;;  %v5413_v44 = vld [vmem:[%s11022_s2 + $0x2b0] sm:$0xf] }
 0x279   :  { %11608 = vst [vmem:[#allocation12_spill] sm:$0xff] %v9864_v10  ;;  %v3493_v55 = vmul.f32 %v9227_v28, %v9905_v40  ;;  %v3134_v19 = vadd.f32 %v3133_v36, %v3085_v52  ;;  %v5538_v4 = vld [vmem:[%s11022_s2 + $0x2b4] sm:$0xf0]  ;;  %v3183_v11 = vadd.f32 %v3182_v12, %v9206_v14  ;;  %v3088_v36 = vadd.f32 %v3087_v60, %v9203_v50 }
 0x27a   :  { %11609 = vst [vmem:[#allocation72_spill] sm:$0xff] %v9882_v13  ;;  %v3231_v62 = vpop.f32.mrf.mxu3  ;;  %v9921_v46 = vadd.f32 %v3527_v16, %v3492_v43  ;;  %v3688_v29 = vadd.f32 %v3656_v27, %v3557_v31  ;;  %vm3265_vm1 = vcmp.gt.f32.partialorder %v3230_v48, 0.0  ;;  %v3297_v52 = vmul.f32 0.2, %v3230_v48  ;;  %4790 = vmatpush.bf16.msra.mxu3 %v5418_v23  ;;  %v3136_v2 = vpop.f32.mrf.mxu1 }
 0x27b   :  { %11610 = vst [vmem:[#allocation36_spill] sm:$0xff] %v9892_v51  ;;  %v9925_v6 = vadd.f32 %v3528_v5, %v3493_v55  ;;  %vm3266_vm2 = vcmp.gt.f32.partialorder %v3134_v19, 0.0  ;;  %v3185_v0 = vpop.f32.mrf.mxu2  ;;  %v3298_v63 = vmul.f32 0.2, %v3134_v19  ;;  %v5414_v53 = vor.u32 %v5538_v4, %v5413_v44 }
 0x27c   :  { %11611 = vst [vmem:[#allocation27_spill] sm:$0xff] %v9905_v40  ;;  %v3851_v51 = vadd.f32 %v3819_v41, %v3688_v29  ;;  %v5350_v40 = vor.u32 %v5522_v30, %v5349_v21  ;;  %v9928_v16 = vrot.slane %v9673_v58, 1  ;;  %v9930_v31 = vsel %vm3265_vm1, %v3230_v48, %v3297_v52  ;;  %v5343_v48 = vld [vmem:[%s11022_s2 + $0x228] sm:$0xf0] }
 0x27d   :  { %11612 = vst [vmem:[#allocation15_spill] sm:$0xff] %v9921_v46  ;;  %v3232_v12 = vadd.f32 %v3231_v62, %v3183_v11  ;;  %v3137_v43 = vadd.f32 %v3136_v2, %v3088_v36  ;;  %v9934_v5 = vadd.f32 %v9777_v47, %v9773_v22  ;;  %v3882_v27 = vmul.f32 %v9275_v32, %v9743_v39  ;;  %v5535_v11 = vld [vmem:[%s11022_s2 + $0x2a4] sm:$0xf]  ;;  %v5407_v36 = vld [vmem:[%s11022_s2 + $0x2a8] sm:$0xf0] }
 0x27e   :  { %11613 = vst [vmem:[#allocation19_spill] sm:$0xff] %v9925_v6  ;;  %v3089_v60 = vpop.f32.mrf.mxu0  ;;  %v9938_v55 = vadd.f32 %v3886_v54, %v3851_v51  ;;  %v3427_v29 = vrot.slane %v9930_v31, 7  ;;  %4643 = vmatpush.bf16.msra.mxu0 %v5350_v40  ;;  %4692 = vmatpush.bf16.msra.mxu1 %v5414_v53  ;;  %v9942_v41 = vrot.slane %v9743_v39, 1  ;;  %v9945_v62 = vsel %vm3266_vm2, %v3134_v19, %v3298_v63 }
 0x27f   :  { %11614 = vst [vmem:[#allocation13_spill] sm:$0xff] %v9930_v31  ;;  %vm3267_vm3 = vcmp.gt.f32.partialorder %v3232_v12, 0.0  ;;  %v3299_v21 = vmul.f32 0.2, %v3232_v12  ;;  %v9948_v22 = vadd.f32 %v3882_v27, %v9786_v9  ;;  %v9954_v47 = vsel %vm420_vm7, %v9928_v16, %v9751_v59  ;;  %v5519_v59 = vld [vmem:[%s11022_s2 + $0x224] sm:$0xf] }
 0x280   :  { %11615 = vst [vmem:[#allocation76_spill] sm:$0xff] %v9938_v55  ;;  %v9959_v53 = vsel %vm254_vm6, %v9864_v10, %v3427_v29  ;;  %v3428_v54 = vrot.slane %v9945_v62, 7  ;;  %v3529_v9 = vmul.f32 %v9270_v15, %v9930_v31  ;;  %v3186_v40 = vadd.f32 %v3185_v0, %v9206_v14 }
 0x281   :  { %11616 = vst [vmem:[#allocation77_spill] sm:$0xff] %v9945_v62  ;;  %v3494_v63 = vmul.f32 %v9265_v26, %v9959_v53  ;;  %v9966_v51 = vsel %vm3267_vm3, %v3232_v12, %v3299_v21  ;;  %v11619_v19 = vrot.slane %v9861_v7, 7  ;;  %v3530_v44 = vmul.f32 %v9232_v56, %v9945_v62 }
 0x282   :  { %11617 = vst [vmem:[#allocation78_spill] sm:$0xff] %v9959_v53  ;;  %v3234_v23 = vpop.f32.mrf.mxu3  ;;  %v3429_v4 = vrot.slane %v9966_v51, 7  ;;  %vm3268_vm4 = vcmp.gt.f32.partialorder %v3137_v43, 0.0  ;;  %v3531_v0 = vmul.f32 %v9270_v15, %v9966_v51  ;;  %v3300_v12 = vmul.f32 0.2, %v3137_v43  ;;  %v3138_v27 = vpop.f32.mrf.mxu1 }
 0x283   :  { %11618 = vst [vmem:[#allocation79_spill] sm:$0xff] %v9966_v51  ;;  %v9979_v30 = vsel %vm254_vm6, %v11619_v19, %v3428_v54  ;;  %v9990_v52 = vadd.f32 %v3529_v9, %v3494_v63  ;;  %v3187_v21 = vpop.f32.mrf.mxu2  ;;  %v3090_v53 = vadd.f32 %v3089_v60, %v9203_v50  ;;  %v5346_v55 = vor.u32 %v5519_v59, %v5343_v48 }
 0x284   :  { %11620 = vst [vmem:[#allocation80_spill] sm:$0xff] %v9979_v30  ;;  %v3495_v2 = vmul.f32 %v9227_v28, %v9979_v30  ;;  %v9998_v19 = vsel %vm254_vm6, %v3427_v29, %v3429_v4  ;;  %v3235_v10 = vadd.f32 %v3234_v23, %v3186_v40  ;;  %v10005_v28 = vsel %vm3268_vm4, %v3137_v43, %v3300_v12  ;;  %v5341_v30 = vld [vmem:[%s11022_s2 + $0x220] sm:$0xf]  ;;  %v5520_v29 = vld [vmem:[%s11022_s2 + $0x224] sm:$0xf0] }
 0x285   :  { %11621 = vst [vmem:[#allocation81_spill] sm:$0xff] %v9990_v52  ;;  %v3496_v63 = vmul.f32 %v9265_v26, %v9998_v19  ;;  %v5410_v9 = vor.u32 %v5535_v11, %v5407_v36  ;;  %v10017_v60 = vsel %vm420_vm7, %v9942_v41, %v9788_v35  ;;  %v10022_v43 = vmul.f32 %v9237_v18, %v9861_v7  ;;  %v5536_v36 = vld [vmem:[%s11022_s2 + $0x2a4] sm:$0xf0]  ;;  %v5517_v26 = vld [vmem:[%s11022_s2 + $0x214] sm:$0xf] }
 0x286   :  { %11622 = vst [vmem:[#allocation82_spill] sm:$0xff] %v9998_v19  ;;  %v10001_v46 = vadd.f32 %v3530_v44, %v3495_v2  ;;  %v3092_v15 = vpop.f32.mrf.mxu0  ;;  %v3430_v40 = vrot.slane %v10005_v28, 7  ;;  %4742 = vmatpush.bf16.msra.mxu2 %v5346_v55  ;;  %vm3269_vm5 = vcmp.gt.f32.partialorder %v3235_v10, 0.0  ;;  %v3301_v48 = vmul.f32 0.2, %v3235_v10 }
 0x287   :  { %11624 = vst [vmem:[#allocation84_spill] sm:$0xff] %v10005_v28  ;;  %v10025_v59 = vadd.f32 %v3531_v0, %v3496_v63  ;;  %4791 = vmatpush.bf16.msra.mxu3 %v5410_v9  ;;  %v3139_v23 = vadd.f32 %v3138_v27, %v3090_v53  ;;  %v3532_v35 = vmul.f32 %v9232_v56, %v10005_v28  ;;  %v5405_v55 = vld [vmem:[%s11022_s2 + $0x2a0] sm:$0xf]  ;;  %v5515_v52 = vld [vmem:[%s11022_s2 + $0x204] sm:$0xf] }
 0x288   :  { %11623 = vst [vmem:[#allocation83_spill] sm:$0xff] %v10001_v46  ;;  %v10029_v44 = vsel %vm254_vm6, %v3428_v54, %v3430_v40  ;;  %v3188_v11 = vadd.f32 %v3187_v21, %v9206_v14  ;;  %v5342_v18 = vor.u32 %v5520_v29, %v5341_v30  ;;  %v10043_v53 = vld [vmem:[%s11021_s1 + $0x120] sm:$0xff]  ;;  %v10047_v56 = vsel %vm3269_vm5, %v3235_v10, %v3301_v48 }
 0x289   :  { %11625 = vst [vmem:[#allocation85_spill] sm:$0xff] %v10022_v43  ;;  %v3497_v54 = vmul.f32 %v10043_v53, %v10029_v44  ;;  %vm3270_vm8 = vcmp.gt.f32.partialorder %v3139_v23, 0.0  ;;  %v3302_v30 = vmul.f32 0.2, %v3139_v23  ;;  %v10052_v12 = vmul.f32 %v9275_v32, %v9930_v31  ;;  %v10057_v27 = vld [vmem:[%s11021_s1 + $0x160] sm:$0xff] }
 0x28a   :  { %11626 = vst [vmem:[#allocation86_spill] sm:$0xff] %v10025_v59  ;;  %v3236_v2 = vpop.f32.mrf.mxu3  ;;  %v10061_v21 = vmul.f32 %v10057_v27, %v9945_v62  ;;  %v3431_v10 = vrot.slane %v10047_v56, 7  ;;  %4644 = vmatpush.bf16.msra.mxu0 %v5342_v18  ;;  %v5406_v29 = vor.u32 %v5536_v36, %v5405_v55  ;;  %v3141_v32 = vpop.f32.mrf.mxu1  ;;  %v5335_v55 = vld [vmem:[%s11022_s2 + $0x218] sm:$0xf0]  ;;  %v5533_v36 = vld [vmem:[%s11022_s2 + $0x294] sm:$0xf]  ;;  %v10111_v59 = vmul.f32 %v10057_v27, %v10005_v28 }
 0x28b   :  { %11627 = vst [vmem:[#allocation87_spill] sm:$0xff] %v10029_v44  ;;  %v10064_v63 = vadd.f32 %v3532_v35, %v3497_v54  ;;  %v10066_v9 = vsel %vm3270_vm8, %v3139_v23, %v3302_v30  ;;  %v3237_v48 = vadd.f32 %v3236_v2, %v3188_v11  ;;  %v3190_v0 = vpop.f32.mrf.mxu2  ;;  %v3093_v11 = vadd.f32 %v3092_v15, %v9203_v50  ;;  %v10095_v54 = vld [vmem:[%s11021_s1 + $0x128] sm:$0xff]  ;;  %v10102_v15 = vld [vmem:[%s11021_s1 + $0x138] sm:$0xff]  ;;  %v5333_v43 = vld [vmem:[%s11022_s2 + $0x210] sm:$0xf] }
 0x28c   :  { %11628 = vst [vmem:[#allocation88_spill] sm:$0xff] %v10052_v12  ;;  %v10074_v12 = vld [vmem:[%s11021_s1 + $0x168] sm:$0xff]  ;;  %v10082_v23 = vsel %vm254_vm6, %v3429_v4, %v3431_v10  ;;  %v3533_v30 = vmul.f32 %v10102_v15, %v10047_v56  ;;  %4693 = vmatpush.bf16.msra.mxu1 %v5406_v29  ;;  %v5592_v29 = vld [vmem:[%s11021_s1 + $0x130] sm:$0xff]  ;;  %v11716_v28 = vld [vmem:[#allocation54_spill] sm:$0xff] }
 0x28d   :  { %11629 = vst [vmem:[#allocation89_spill] sm:$0xff] %v10061_v21  ;;  %v10078_v18 = vmul.f32 %v10074_v12, %v9966_v51  ;;  %v3498_v4 = vmul.f32 %v10095_v54, %v10082_v23  ;;  %vm3271_vm9 = vcmp.gt.f32.partialorder %v3237_v48, 0.0  ;;  %v3303_v2 = vmul.f32 0.2, %v3237_v48  ;;  %v5327_v31 = vld [vmem:[%s11022_s2 + $0x208] sm:$0xf0] }
 0x28e   :  { %11630 = vst [vmem:[#allocation90_spill] sm:$0xff] %v10064_v63  ;;  %v3094_v35 = vpop.f32.mrf.mxu0  ;;  %v3534_v21 = vmul.f32 %v5592_v29, %v10066_v9  ;;  %v3142_v44 = vadd.f32 %v3141_v32, %v3093_v11  ;;  %v5338_v32 = vor.u32 %v5517_v26, %v5335_v55  ;;  %v5534_v11 = vld [vmem:[%s11022_s2 + $0x294] sm:$0xf0]  ;;  %v5531_v55 = vld [vmem:[%s11022_s2 + $0x284] sm:$0xf] }
 0x28f   :  { %11631 = vst [vmem:[#allocation91_spill] sm:$0xff] %v10066_v9  ;;  %v10136_v63 = vsel %vm3271_vm9, %v3237_v48, %v3303_v2  ;;  %v3191_v48 = vadd.f32 %v3190_v0, %v9206_v14  ;;  %v3095_v26 = vadd.f32 %v3094_v35, %v9203_v50  ;;  %v5391_v2 = vld [vmem:[%s11022_s2 + $0x288] sm:$0xf0]  ;;  %v11705_v51 = vld [vmem:[#allocation61_spill] sm:$0xff] }
 0x290   :  { %11632 = vst [vmem:[#allocation92_spill] sm:$0xff] %v10078_v18  ;;  %v5399_v18 = vld [vmem:[%s11022_s2 + $0x298] sm:$0xf0]  ;;  %vm3272_vm10 = vcmp.gt.f32.partialorder %v3142_v44, 0.0  ;;  %4743 = vmatpush.bf16.msra.mxu2 %v5338_v32  ;;  %v10170_v32 = vmul.f32 %v10074_v12, %v10047_v56 }
 0x291   :  { %11633 = vst [vmem:[#allocation93_spill] sm:$0xff] %v10082_v23  ;;  %v11635_v23 = vrot.slane %v10066_v9, 7  ;;  %v5402_v6 = vor.u32 %v5533_v36, %v5399_v18  ;;  %v11647_v18 = vrot.slane %v10066_v9, 7 }
 0x292   :  { %11634 = vst [vmem:[#allocation94_spill] sm:$0xff] %v10111_v59  ;;  %v5518_v59 = vld [vmem:[%s11022_s2 + $0x214] sm:$0xf0]  ;;  %v3239_v13 = vpop.f32.mrf.mxu3 }
 0x293   :  { %v10117_v19 = vsel %vm254_vm6, %v3430_v40, %v11635_v23  ;;  %v5397_v40 = vld [vmem:[%s11022_s2 + $0x290] sm:$0xf]  ;;  %v10132_v23 = vadd.f32 %v3533_v30, %v3498_v4  ;;  %11638 = vst [vmem:[#allocation97_spill] sm:$0xff] %v10136_v63  ;;  %v3433_v4 = vrot.slane %v10136_v63, 7  ;;  %v3535_v30 = vmul.f32 %v10102_v15, %v10136_v63  ;;  %4792 = vmatpush.bf16.msra.mxu3 %v5402_v6 }
 0x294   :  { %11636 = vst [vmem:[#allocation95_spill] sm:$0xff] %v10117_v19  ;;  %v3499_v46 = vmul.f32 %v10043_v53, %v10117_v19  ;;  %v3240_v50 = vadd.f32 %v3239_v13, %v3191_v48  ;;  %v5334_v35 = vor.u32 %v5518_v59, %v5333_v43  ;;  %v5398_v37 = vor.u32 %v5534_v11, %v5397_v40 }
 0x295   :  { %11637 = vst [vmem:[#allocation96_spill] sm:$0xff] %v10132_v23  ;;  %v3304_v23 = vmul.f32 0.2, %v3142_v44  ;;  %v10162_v0 = vsel %vm254_vm6, %v3431_v10, %v3433_v4  ;;  %v10174_v10 = vmul.f32 %v10057_v27, %v10066_v9  ;;  %v11706_v9 = vld [vmem:[#allocation22_spill] sm:$0xff] }
 0x296   :  { %v10158_v19 = vadd.f32 %v3534_v21, %v3499_v46  ;;  %11640 = vst [vmem:[#allocation99_spill] sm:$0xff] %v10162_v0  ;;  %v3500_v33 = vmul.f32 %v10095_v54, %v10162_v0  ;;  %v3143_v46 = vpop.f32.mrf.mxu1  ;;  %v5330_v21 = vor.u32 %v5515_v52, %v5327_v31  ;;  %4645 = vmatpush.bf16.msra.mxu0 %v5334_v35  ;;  %vm3273_vm11 = vcmp.gt.f32.partialorder %v3240_v50, 0.0  ;;  %v3192_v52 = vpop.f32.mrf.mxu2 }
 0x297   :  { %v10166_v7 = vsel %vm3272_vm10, %v3142_v44, %v3304_v23  ;;  %11642 = vst [vmem:[#allocation101_spill] sm:$0xff] %v10170_v32  ;;  %4694 = vmatpush.bf16.msra.mxu1 %v5398_v37  ;;  %v3305_v6 = vmul.f32 0.2, %v3240_v50  ;;  %v3144_v31 = vadd.f32 %v3143_v46, %v3095_v26  ;;  %v10184_v44 = vmul.f32 %v10074_v12, %v10136_v63 }
 0x298   :  { %11639 = vst [vmem:[#allocation98_spill] sm:$0xff] %v10158_v19  ;;  %v5394_v19 = vor.u32 %v5531_v55, %v5391_v2  ;;  %v3434_v13 = vrot.slane %v10166_v7, 7  ;;  %v10178_v43 = vrot.slane %v10166_v7, 1  ;;  %v10180_v59 = vadd.f32 %v3535_v30, %v3500_v33  ;;  %4744 = vmatpush.bf16.msra.mxu2 %v5330_v21 }
 0x299   :  { %11641 = vst [vmem:[#allocation100_spill] sm:$0xff] %v10166_v7  ;;  %v3536_v37 = vmul.f32 %v5592_v29, %v10166_v7  ;;  %v10201_v11 = vmul.f32 %v10057_v27, %v10166_v7  ;;  %v10203_v30 = vsel %vm3273_vm11, %v3240_v50, %v3305_v6  ;;  %v3193_v55 = vadd.f32 %v3192_v52, %v9206_v14  ;;  %v11686_v7 = vld [vmem:[#allocation17_spill] sm:$0xff] }
 0x29a   :  { %11643 = vst [vmem:[#allocation102_spill] sm:$0xff] %v10174_v10  ;;  %v10190_v36 = vsel %vm254_vm6, %v11647_v18, %v3434_v13  ;;  %v3466_v33 = vsel %vm254_vm6, %v3434_v13, %v11522_v17  ;;  %4793 = vmatpush.bf16.msra.mxu3 %v5394_v19  ;;  %v3632_v48 = vsel %vm420_vm7, %v10178_v43, %v11532_v61  ;;  %v3435_v26 = vrot.slane %v10203_v30, 7  ;;  %v3241_v19 = vpop.f32.mrf.mxu3 }
 0x29b   :  { %11644 = vst [vmem:[#allocation103_spill] sm:$0xff] %v10178_v43  ;;  %v3471_v40 = vmul.f32 %v10043_v53, %v3466_v33  ;;  %v3501_v23 = vmul.f32 %v10043_v53, %v10190_v36  ;;  %v10211_v29 = vrot.slane %v10203_v30, 1  ;;  %v3537_v35 = vmul.f32 %v10102_v15, %v10203_v30 }
 0x29c   :  { %11645 = vst [vmem:[#allocation104_spill] sm:$0xff] %v10180_v59  ;;  %vm3274_vm12 = vcmp.gt.f32.partialorder %v3144_v31, 0.0  ;;  %v3306_v50 = vmul.f32 0.2, %v3144_v31  ;;  %v10219_v46 = vsel %vm254_vm6, %v3433_v4, %v3435_v26  ;;  %v3467_v21 = vsel %vm254_vm6, %v3435_v26, %v11522_v17  ;;  %v10234_v4 = vld [vmem:[%s11021_s1 + $0x140] sm:$0xff] }
 0x29d   :  { %11646 = vst [vmem:[#allocation105_spill] sm:$0xff] %v10184_v44  ;;  %v3538_v2 = vadd.f32 %v9725_v45, %v3471_v40  ;;  %v3633_v14 = vsel %vm420_vm7, %v10211_v29, %v11532_v61  ;;  %v3242_v45 = vadd.f32 %v3241_v19, %v3193_v55  ;;  %v3568_v6 = vadd.f32 %v3536_v37, %v3501_v23  ;;  %v10240_v40 = vld [vmem:[%s11021_s1 + $0x148] sm:$0xff] }
 0x29e   :  { %11648 = vst [vmem:[#allocation106_spill] sm:$0xff] %v10190_v36  ;;  %v3472_v15 = vmul.f32 %v10095_v54, %v3467_v21  ;;  %v3502_v52 = vmul.f32 %v10095_v54, %v10219_v46  ;;  %v3338_v18 = vsel %vm3274_vm12, %v3144_v31, %v3306_v50  ;;  %v3667_v33 = vmul.f32 %v10234_v4, %v3632_v48  ;;  %v5325_v31 = vld [vmem:[%s11022_s2 + $0x200] sm:$0xf]  ;;  %v5516_v48 = vld [vmem:[%s11022_s2 + $0x204] sm:$0xf0] }
 0x29f   :  { %11649 = vst [vmem:[#allocation107_spill] sm:$0xff] %v10201_v11  ;;  %v3668_v37 = vmul.f32 %v10240_v40, %v3633_v14  ;;  %v10245_v23 = vmul.f32 %v10074_v12, %v10203_v30  ;;  %v10247_v55 = vrot.slane %v3338_v18, 7  ;;  %v3669_v21 = vadd.f32 %v9281_v42, %v3538_v2  ;;  %v5532_v11 = vld [vmem:[%s11022_s2 + $0x284] sm:$0xf0] }
 0x2a0   :  { %11650 = vst [vmem:[#allocation108_spill] sm:$0xff] %v10203_v30  ;;  %v3539_v50 = vadd.f32 %v9741_v3, %v3472_v15  ;;  %v3569_v19 = vadd.f32 %v3537_v35, %v3502_v52  ;;  %v10257_v14 = vrot.slane %v3338_v18, 1  ;;  %vm3275_vm13 = vcmp.gt.f32.partialorder %v3242_v45, 0.0  ;;  %v10277_v35 = vld [vmem:[%s11021_s1 + $0x150] sm:$0xff] }
 0x2a1   :  { %11651 = vst [vmem:[#allocation109_spill] sm:$0xff] %v10211_v29  ;;  %v10268_v30 = vsel %vm254_vm6, %v3434_v13, %v10247_v55  ;;  %v3795_v42 = vsel %vm254_vm6, %v10247_v55, %v9215_v1  ;;  %v3307_v3 = vmul.f32 0.2, %v3242_v45  ;;  %v3699_v2 = vadd.f32 %v3667_v33, %v3568_v6 }
 0x2a2   :  { %11652 = vst [vmem:[#allocation110_spill] sm:$0xff] %v10219_v46  ;;  %v3800_v15 = vmul.f32 %v10277_v35, %v3795_v42  ;;  %v3830_v52 = vmul.f32 %v10277_v35, %v10268_v30  ;;  %v3897_v13 = vmul.f32 %v10057_v27, %v3338_v18  ;;  %v10286_v46 = vld [vmem:[%s11021_s1 + $0x190] sm:$0xff]  ;;  %v5326_v33 = vor.u32 %v5516_v48, %v5325_v31 }
 0x2a3   :  { %11653 = vst [vmem:[#allocation111_spill] sm:$0xff] %v10234_v4  ;;  %v10289_v1 = vmul.f32 %v10286_v46, %v3338_v18  ;;  %v10291_v6 = vsel %vm3275_vm13, %v3242_v45, %v3307_v3  ;;  %v11660_v42 = vld [vmem:[#allocation40_spill] sm:$0xff]  ;;  %v10305_v18 = vld [vmem:[%s11021_s1 + $0x1a0] sm:$0xff]  ;;  %v11679_v0 = vrot.slane %v9439_v24, 1  ;;  %v3676_v62 = vadd.f32 %v11706_v9, %v11705_v51 }
 0x2a4   :  { %11654 = vst [vmem:[#allocation112_spill] sm:$0xff] %v10245_v23  ;;  %v5389_v23 = vld [vmem:[%s11022_s2 + $0x280] sm:$0xf]  ;;  %v3832_v44 = vadd.f32 %v3800_v15, %v3669_v21  ;;  %v3862_v32 = vadd.f32 %v3830_v52, %v3699_v2  ;;  %v10300_v27 = vrot.slane %v10291_v6, 7  ;;  %v11663_v31 = vld [vmem:[#allocation56_spill] sm:$0xff]  ;;  %4646 = vmatpush.bf16.msra.mxu0 %v5326_v33  ;;  %v4361_v48 = vmul.f32 %v10305_v18, %v9509_v49 }
 0x2a5   :  { %11655 = vst [vmem:[#allocation113_spill] sm:$0xff] %v10247_v55  ;;  %v5390_v55 = vor.u32 %v5532_v11, %v5389_v23  ;;  %v3670_v11 = vadd.f32 %v11663_v31, %v3539_v50  ;;  %v3700_v23 = vadd.f32 %v3668_v37, %v3569_v19  ;;  %v11664_v21 = vld [vmem:[#allocation10_spill] sm:$0xff]  ;;  %v11667_v52 = vld [vmem:[#allocation20_spill] sm:$0xff]  ;;  %v10326_v37 = vld [vmem:[%s11021_s1 + $0x158] sm:$0xff] }
 0x2a6   :  { %11656 = vst [vmem:[#allocation114_spill] sm:$0xff] %v10257_v14  ;;  %v3899_v3 = vadd.f32 %v11664_v21, %v3832_v44  ;;  %v10312_v2 = vadd.f32 %v3897_v13, %v3862_v32  ;;  %v10317_v15 = vsel %vm254_vm6, %v3435_v26, %v10300_v27  ;;  %v3796_v50 = vsel %vm254_vm6, %v10300_v27, %v11667_v52  ;;  %v10337_v19 = vld [vmem:[%s11021_s1 + $0x1a8] sm:$0xff]  ;;  %v11668_v13 = vld [vmem:[#allocation48_spill] sm:$0xff] }
 0x2a7   :  { %11657 = vst [vmem:[#allocation115_spill] sm:$0xff] %v10268_v30  ;;  %v10297_v30 = vsel %vm420_vm7, %v10257_v14, %v11660_v42  ;;  %4695 = vmatpush.bf16.msra.mxu1 %v5390_v55  ;;  %v3801_v55 = vmul.f32 %v10326_v37, %v3796_v50  ;;  %v3831_v32 = vmul.f32 %v10326_v37, %v10317_v15  ;;  %v11669_v42 = vld [vmem:[#allocation45_spill] sm:$0xff]  ;;  %v11670_v52 = vrot.slane %v9439_v24, 7 }
 0x2a8   :  { %11658 = vst [vmem:[#allocation116_spill] sm:$0xff] %v10289_v1  ;;  %v3898_v44 = vmul.f32 %v10074_v12, %v10291_v6  ;;  %v4393_v26 = vadd.f32 %v4361_v48, %v9432_v8  ;;  %v4030_v33 = vadd.f32 %v11668_v13, %v3899_v3  ;;  %v4359_v31 = vmul.f32 %v10305_v18, %v11669_v42  ;;  %v11674_v3 = vld [vmem:[#allocation30_spill] sm:$0xff] }
 0x2a9   :  { %11659 = vst [vmem:[#allocation117_spill] sm:$0xff] %v10291_v6  ;;  %v4362_v21 = vmul.f32 %v10337_v19, %v9564_v57  ;;  %v11671_v50 = vrot.slane %v9336_v20, 7  ;;  %v3833_v12 = vadd.f32 %v3801_v55, %v3670_v11  ;;  %v3863_v48 = vadd.f32 %v3831_v32, %v3700_v23  ;;  %v11680_v55 = vld [vmem:[#allocation46_spill] sm:$0xff] }
 0x2aa   :  { %11661 = vst [vmem:[#allocation40_spill] sm:$0xff] %v10297_v30  ;;  %v11675_v13 = vrot.slane %v11674_v3, 1  ;;  %v11677_v30 = vld [vmem:[#allocation24_spill] sm:$0xff] }
 0x2ab   :  { %11662 = vst [vmem:[#allocation118_spill] sm:$0xff] %v10300_v27  ;;  %v3458_v8 = vsel %vm254_vm6, %v11671_v50, %v11670_v52  ;;  %v11676_v27 = vld [vmem:[#allocation50_spill] sm:$0xff]  ;;  %v4394_v59 = vadd.f32 %v4362_v21, %v11677_v30  ;;  %v3900_v32 = vadd.f32 %v11680_v55, %v3833_v12  ;;  %v10367_v52 = vadd.f32 %v3898_v44, %v3863_v48  ;;  %v11682_v50 = vld [vmem:[#allocation57_spill] sm:$0xff]  ;;  %v11684_v30 = vld [vmem:[#allocation31_spill] sm:$0xff] }
 0x2ac   :  { %11665 = vst [vmem:[#allocation56_spill] sm:$0xff] %v10312_v2  ;;  %v3479_v45 = vmul.f32 %v10043_v53, %v3458_v8  ;;  %v4193_v2 = vadd.f32 %v11676_v27, %v4030_v33  ;;  %v11678_v20 = vmov %v11675_v13  ;;  %v11683_v27 = vld [vmem:[#allocation49_spill] sm:$0xff]  ;;  %v4360_v21 = vmul.f32 %v10337_v19, %v11684_v30  ;;  %v11688_v44 = vld [vmem:[#allocation16_spill] sm:$0xff]  ;;  %v11691_v30 = vld [vmem:[#allocation26_spill] sm:$0xff] }
 0x2ad   :  { %11666 = vst [vmem:[#allocation10_spill] sm:$0xff] %v10317_v15  ;;  %v11672_v15 = vld [vmem:[#allocation65_spill] sm:$0xff]  ;;  %v3622_v11 = vsel %vm420_vm7, %v11679_v0, %v11678_v20  ;;  %v3806_v0 = vmul.f32 %v10277_v35, %v3458_v8  ;;  %v11687_v20 = vld [vmem:[#allocation58_spill] sm:$0xff] }
 0x2ae   :  { %v11673_v1 = vrot.slane %v11672_v15, 1  ;;  %11681 = vst [vmem:[#allocation20_spill] sm:$0xff] %v10367_v52  ;;  %v3546_v29 = vadd.f32 %v11682_v50, %v3479_v45  ;;  %v4260_v33 = vadd.f32 %v11683_v27, %v4193_v2  ;;  %v4031_v10 = vadd.f32 %v11687_v20, %v3900_v32  ;;  %v10386_v45 = vld [vmem:[%s11021_s1 + $0x170] sm:$0xff]  ;;  %v11689_v32 = vld [vmem:[#allocation59_spill] sm:$0xff] }
 0x2af   :  { %v4002_v2 = vmul.f32 %v10386_v45, %v9509_v49  ;;  %v4232_v49 = vmul.f32 %v10286_v46, %v9439_v24  ;;  %v4363_v20 = vmul.f32 %v10305_v18, %v3622_v11 }
 0x2b0   :  { %v3620_v42 = vsel %vm420_vm7, %v11675_v13, %v11673_v1  ;;  %v3645_v1 = vmul.f32 %v10234_v4, %v3622_v11  ;;  %v11685_v13 = vld [vmem:[#allocation33_spill] sm:$0xff]  ;;  %v4391_v48 = vadd.f32 %v4359_v31, %v4260_v33  ;;  %v4194_v50 = vadd.f32 %v11689_v32, %v4031_v10  ;;  %v11692_v31 = vld [vmem:[#allocation35_spill] sm:$0xff] }
 0x2b1   :  { %v3647_v23 = vmul.f32 %v10234_v4, %v3620_v42  ;;  %v3675_v36 = vadd.f32 %v11686_v7, %v11685_v13  ;;  %v4004_v7 = vmul.f32 %v10386_v45, %v3622_v11  ;;  %v4365_v10 = vmul.f32 %v10305_v18, %v3620_v42  ;;  %v11698_v11 = vld [vmem:[#allocation53_spill] sm:$0xff] }
 0x2b2   :  { %v10378_v14 = vadd.f32 %v3645_v1, %v3546_v29  ;;  %v10394_v29 = vld [vmem:[%s11021_s1 + $0x180] sm:$0xff]  ;;  %v11690_v1 = vld [vmem:[#allocation8_spill] sm:$0xff] }
 0x2b3   :  { %v10381_v12 = vadd.f32 %v3647_v23, %v11688_v44  ;;  %v3838_v55 = vadd.f32 %v3806_v0, %v3675_v36  ;;  %v4165_v23 = vmul.f32 %v10394_v29, %v3458_v8  ;;  %v4034_v27 = vadd.f32 %v4002_v2, %v11690_v1  ;;  %v11693_v44 = vld [vmem:[#allocation62_spill] sm:$0xff]  ;;  %v11694_v2 = vld [vmem:[#allocation21_spill] sm:$0xff]  ;;  %v11696_v1 = vld [vmem:[#allocation55_spill] sm:$0xff] }
 0x2b4   :  { %v4167_v13 = vmul.f32 %v10394_v29, %v11691_v30  ;;  %v4423_v36 = vpack.c.bf16 %v4393_v26, %v4391_v48  ;;  %v4234_v0 = vmul.f32 %v10286_v46, %v11674_v3  ;;  %v4261_v8 = vadd.f32 %v11693_v44, %v4194_v50  ;;  %v11700_v50 = vld [vmem:[#allocation38_spill] sm:$0xff] }
 0x2b5   :  { %v3905_v33 = vadd.f32 %v11692_v31, %v3838_v55  ;;  %v4197_v52 = vadd.f32 %v4165_v23, %v4034_v27  ;;  %v11695_v32 = vrot.slane %v11694_v2, 7  ;;  %v11697_v43 = vrot.slane %v11696_v1, 7 }
 0x2b6   :  { %4647 = vmatmul.bf16.vlgmr.msra.gmra.mxu0 %v4423_v36  ;;  %4745 = vmatmul.bf16.vlgmr.msra.gmra.mxu2 %v4423_v36  ;;  %v11699_v31 = vrot.slane %v11698_v11, 1  ;;  %v11701_v23 = vrot.slane %v11700_v50, 1  ;;  %v4392_v44 = vadd.f32 %v4360_v21, %v4261_v8 }
 0x2b7   :  { %v3459_v24 = vsel %vm254_vm6, %v11697_v43, %v11695_v32  ;;  %v4036_v48 = vadd.f32 %v4004_v7, %v3905_v33  ;;  %v4264_v63 = vadd.f32 %v4232_v49, %v4197_v52  ;;  %v11703_v43 = vrot.slane %v11694_v2, 1  ;;  %v11704_v33 = vld [vmem:[#allocation64_spill] sm:$0xff] }
 0x2b8   :  { %v3480_v55 = vmul.f32 %v10095_v54, %v3459_v24  ;;  %v3621_v27 = vsel %vm420_vm7, %v11701_v23, %v11699_v31  ;;  %v11702_v1 = vmov %v11701_v23  ;;  %v4424_v31 = vpack.c.bf16 %v4394_v59, %v4392_v44  ;;  %v11710_v44 = vld [vmem:[#allocation66_spill] sm:$0xff] }
 0x2b9   :  { %v3623_v32 = vsel %vm420_vm7, %v11703_v43, %v11702_v1  ;;  %v3648_v7 = vmul.f32 %v10240_v40, %v3621_v27  ;;  %v4199_v36 = vadd.f32 %v4167_v13, %v4036_v48  ;;  %v4006_v52 = vmul.f32 %v10386_v45, %v3620_v42  ;;  %v11707_v1 = vld [vmem:[#allocation60_spill] sm:$0xff]  ;;  %v10444_v13 = vld [vmem:[%s11021_s1 + $0x178] sm:$0xff]  ;;  %v11709_v48 = vld [vmem:[#allocation63_spill] sm:$0xff] }
 0x2ba   :  { %v3547_v26 = vadd.f32 %v11704_v33, %v3480_v55  ;;  %v3646_v6 = vmul.f32 %v10240_v40, %v3623_v32  ;;  %v4395_v21 = vadd.f32 %v4363_v20, %v4264_v63  ;;  %v3807_v49 = vmul.f32 %v10326_v37, %v3459_v24  ;;  %4696 = vmatmul.bf16.vlgmr.msra.gmra.mxu1 %v4424_v31 }
 0x2bb   :  { %v4266_v8 = vadd.f32 %v4234_v0, %v4199_v36  ;;  %v10439_v43 = vadd.f32 %v3648_v7, %v11707_v1  ;;  %v4003_v51 = vmul.f32 %v10444_v13, %v9564_v57  ;;  %4794 = vmatmul.bf16.vlgmr.msra.gmra.mxu3 %v4424_v31  ;;  %v4005_v59 = vmul.f32 %v10444_v13, %v3623_v32  ;;  %v11708_v0 = vld [vmem:[#allocation25_spill] sm:$0xff] }
 0x2bc   :  { %v10436_v23 = vadd.f32 %v3646_v6, %v3547_v26  ;;  %v3839_v63 = vadd.f32 %v3807_v49, %v3676_v62  ;;  %v10451_v6 = vmul.f32 %v10444_v13, %v3621_v27  ;;  %v10457_v26 = vld [vmem:[%s11021_s1 + $0x188] sm:$0xff]  ;;  %v10466_v7 = vld [vmem:[%s11021_s1 + $0x198] sm:$0xff]  ;;  %v4364_v33 = vmul.f32 %v10337_v19, %v3623_v32 }
 0x2bd   :  { %v4397_v42 = vadd.f32 %v4365_v10, %v4266_v8  ;;  %v4035_v20 = vadd.f32 %v4003_v51, %v11708_v0  ;;  %v4166_v57 = vmul.f32 %v10457_v26, %v3459_v24  ;;  %v4168_v55 = vmul.f32 %v10457_v26, %v11709_v48  ;;  %v11713_v51 = vld [vmem:[#allocation70_spill] sm:$0xff] }
 0x2be   :  { %v3906_v62 = vadd.f32 %v11710_v44, %v3839_v63  ;;  %v4233_v10 = vmul.f32 %v10466_v7, %v11694_v2  ;;  %v4235_v36 = vmul.f32 %v10466_v7, %v11700_v50  ;;  %v11711_v49 = vrot.slane %v11672_v15, 7 }
 0x2bf   :  { %v4425_v31 = vpack.c.bf16 %v4397_v42, %v4395_v21  ;;  %v4198_v24 = vadd.f32 %v4166_v57, %v4035_v20  ;;  %v11712_v8 = vrot.slane %v11674_v3, 7  ;;  %v11714_v63 = vrot.slane %v11672_v15, 1 }
 0x2c0   :  { %v4037_v0 = vadd.f32 %v4005_v59, %v3906_v62  ;;  %v3808_v21 = vmul.f32 %v10277_v35, %v11691_v30  ;;  %v4366_v3 = vmul.f32 %v10337_v19, %v3621_v27  ;;  %v3979_v57 = vsel %vm420_vm7, %v11713_v51, %v9928_v16 }
 0x2c1   :  { %v3454_v1 = vsel %vm254_vm6, %v11712_v8, %v11711_v49  ;;  %v3618_v2 = vsel %vm420_vm7, %v11714_v63, %v11713_v51  ;;  %v4265_v42 = vadd.f32 %v4233_v10, %v4198_v24  ;;  %v11715_v8 = vld [vmem:[#allocation29_spill] sm:$0xff]  ;;  %v10499_v10 = vmul.f32 %v10386_v45, %v3979_v57  ;;  %v11717_v51 = vld [vmem:[#allocation47_spill] sm:$0xff] }
 0x2c2   :  { %v3483_v44 = vmul.f32 %v10043_v53, %v3454_v1  ;;  %v3649_v32 = vmul.f32 %v10234_v4, %v3618_v2  ;;  %v3810_v20 = vmul.f32 %v10277_v35, %v3454_v1  ;;  %v4200_v49 = vadd.f32 %v4168_v55, %v4037_v0  ;;  %v11718_v0 = vld [vmem:[#allocation32_spill] sm:$0xff] }
 0x2c3   :  { %v3840_v53 = vadd.f32 %v3808_v21, %v10378_v14  ;;  %v4008_v62 = vmul.f32 %v10386_v45, %v3618_v2  ;;  %v4396_v63 = vadd.f32 %v4364_v33, %v4265_v42  ;;  %v4169_v27 = vmul.f32 %v10394_v29, %v3454_v1  ;;  %v11719_v33 = vld [vmem:[#allocation44_spill] sm:$0xff] }
 0x2c4   :  { %v3550_v59 = vadd.f32 %v11715_v8, %v3483_v44  ;;  %v3842_v30 = vadd.f32 %v3810_v20, %v10381_v12  ;;  %v4267_v24 = vadd.f32 %v4235_v36, %v4200_v49  ;;  %v4171_v55 = vmul.f32 %v10394_v29, %v11717_v51 }
 0x2c5   :  { %v3907_v4 = vadd.f32 %v11716_v28, %v3840_v53  ;;  %v4236_v14 = vmul.f32 %v10286_v46, %v11672_v15  ;;  %v4238_v12 = vmul.f32 %v10286_v46, %v11719_v33  ;;  %v4367_v21 = vmul.f32 %v10305_v18, %v3618_v2 }
 0x2c6   :  { %v3681_v9 = vadd.f32 %v3649_v32, %v3550_v59  ;;  %v3909_v44 = vadd.f32 %v11718_v0, %v3842_v30  ;;  %v4398_v42 = vadd.f32 %v4366_v3, %v4267_v24  ;;  %v11720_v36 = vrot.slane %v11698_v11, 7  ;;  %v11722_v32 = vld [vmem:[#allocation71_spill] sm:$0xff]  ;;  %4652 = vmatmul.bf16.gmra.mxu0 %v4425_v31  ;;  %4750 = vmatmul.bf16.gmra.mxu2 %v4425_v31 }
 0x2c7   :  { %v4038_v20 = vadd.f32 %v4006_v52, %v3907_v4  ;;  %v11721_v1 = vrot.slane %v11700_v50, 7  ;;  %v11723_v49 = vrot.slane %v11698_v11, 1  ;;  %v10525_v52 = vmul.f32 0.0, %v10286_v46  ;;  %v11724_v0 = vld [vmem:[#allocation67_spill] sm:$0xff] }
 0x2c8   :  { %v4040_v8 = vadd.f32 %v4008_v62, %v3909_v44  ;;  %v4426_v50 = vpack.c.bf16 %v4398_v42, %v4396_v63  ;;  %v3809_v59 = vmul.f32 %v10326_v37, %v11709_v48  ;;  %v4369_v24 = vmul.f32 %v10305_v18, %v3979_v57 }
 0x2c9   :  { %v3455_v28 = vsel %vm254_vm6, %v11721_v1, %v11720_v36  ;;  %v3619_v15 = vsel %vm420_vm7, %v11723_v49, %v11722_v32  ;;  %v4201_v3 = vadd.f32 %v4169_v27, %v4038_v20  ;;  %v11725_v20 = vld [vmem:[#allocation52_spill] sm:$0xff]  ;;  %v11726_v1 = vld [vmem:[#allocation75_spill] sm:$0xff] }
 0x2ca   :  { %v3484_v2 = vmul.f32 %v10095_v54, %v3455_v28  ;;  %v3650_v4 = vmul.f32 %v10240_v40, %v3619_v15  ;;  %v3811_v53 = vmul.f32 %v10326_v37, %v3455_v28  ;;  %v4203_v30 = vadd.f32 %v4171_v55, %v4040_v8  ;;  %4701 = vmatmul.bf16.gmra.mxu1 %v4426_v50  ;;  %v11728_v8 = vld [vmem:[#allocation69_spill] sm:$0xff] }
 0x2cb   :  { %v3980_v54 = vsel %vm420_vm7, %v11722_v32, %v9942_v41  ;;  %v4268_v62 = vadd.f32 %v4236_v14, %v4201_v3  ;;  %v3841_v44 = vadd.f32 %v3809_v59, %v10436_v23  ;;  %v4009_v27 = vmul.f32 %v10444_v13, %v3619_v15  ;;  %4799 = vmatmul.bf16.gmra.mxu3 %v4426_v50 }
 0x2cc   :  { %v3551_v31 = vadd.f32 %v11724_v0, %v3484_v2  ;;  %v3843_v63 = vadd.f32 %v3811_v53, %v10439_v43  ;;  %v4270_v48 = vadd.f32 %v4238_v12, %v4203_v30  ;;  %v4011_v55 = vmul.f32 %v10444_v13, %v3980_v54  ;;  %v11727_v43 = vld [vmem:[#allocation34_spill] sm:$0xff] }
 0x2cd   :  { %v4170_v57 = vmul.f32 %v10457_v26, %v3455_v28  ;;  %v4399_v42 = vadd.f32 %v4367_v21, %v4268_v62  ;;  %v3908_v36 = vadd.f32 %v11725_v20, %v3841_v44  ;;  %v10544_v14 = vmul.f32 0.0, %v10466_v7  ;;  %v11729_v30 = vld [vmem:[#allocation6_spill] sm:$0xff] }
 0x2ce   :  { %v3682_v33 = vadd.f32 %v3650_v4, %v3551_v31  ;;  %v3910_v32 = vadd.f32 %v11726_v1, %v3843_v63  ;;  %v4401_v23 = vadd.f32 %v4369_v24, %v4270_v48  ;;  %v4172_v49 = vmul.f32 %v10457_v26, %v11727_v43  ;;  %v11730_v31 = vld [vmem:[#allocation14_spill] sm:$0xff] }
 0x2cf   :  { %v4237_v12 = vmul.f32 %v10466_v7, %v11698_v11  ;;  %v4239_v28 = vmul.f32 %v10466_v7, %v11728_v8  ;;  %v4039_v2 = vadd.f32 %v10451_v6, %v3908_v36  ;;  %v4368_v4 = vmul.f32 %v10337_v19, %v3619_v15 }
 0x2d0   :  { %v4041_v21 = vadd.f32 %v4009_v27, %v3910_v32  ;;  %v3812_v50 = vmul.f32 %v10277_v35, %v11717_v51  ;;  %v4427_v3 = vpack.c.bf16 %v4401_v23, %v4399_v42  ;;  %v4370_v59 = vmul.f32 %v10337_v19, %v3980_v54  ;;  %v11731_v27 = vld [vmem:[#allocation68_spill] sm:$0xff]  ;;  %v11732_v32 = vld [vmem:[#allocation51_spill] sm:$0xff] }
 0x2d1   :  { %v4012_v53 = vmul.f32 %v10386_v45, %v9954_v47  ;;  %v4142_v11 = vsel %vm254_vm6, %v11729_v30, %v11522_v17  ;;  %v4202_v24 = vadd.f32 %v4170_v57, %v4039_v2  ;;  %v4173_v15 = vmul.f32 %v10394_v29, %v11730_v31  ;;  %v11733_v2 = vld [vmem:[#allocation39_spill] sm:$0xff]  ;;  %v11737_v31 = vld [vmem:[#allocation73_spill] sm:$0xff] }
 0x2d2   :  { %v4204_v0 = vadd.f32 %v4172_v49, %v4041_v21  ;;  %v3844_v6 = vadd.f32 %v3812_v50, %v3681_v9  ;;  %v4175_v51 = vmul.f32 %v10394_v29, %v4142_v11  ;;  %v4240_v54 = vmul.f32 %v10286_v46, %v9673_v58  ;;  %v11734_v50 = vld [vmem:[#allocation74_spill] sm:$0xff] }
 0x2d3   :  { %v4044_v62 = vadd.f32 %v4012_v53, %v9934_v5  ;;  %v4338_v47 = vsel %vm420_vm7, %v11532_v61, %v9829_v25  ;;  %v4269_v44 = vadd.f32 %v4237_v12, %v4202_v24  ;;  %v4340_v9 = vsel %vm420_vm7, %v9928_v16, %v11532_v61 }
 0x2d4   :  { %v4271_v63 = vadd.f32 %v4239_v28, %v4204_v0  ;;  %v3911_v48 = vadd.f32 %v11731_v27, %v3844_v6  ;;  %v4373_v57 = vmul.f32 %v10305_v18, %v4338_v47  ;;  %v3813_v58 = vmul.f32 %v10326_v37, %v11727_v43  ;;  %v11735_v0 = vld [vmem:[#allocation77_spill] sm:$0xff]  ;;  %v11740_v47 = vld [vmem:[#allocation111_spill] sm:$0xff] }
 0x2d5   :  { %v4207_v5 = vadd.f32 %v4175_v51, %v4044_v62  ;;  %v4013_v42 = vmul.f32 %v10444_v13, %v10017_v60  ;;  %v4400_v20 = vadd.f32 %v4368_v4, %v4269_v44  ;;  %v4143_v23 = vsel %vm254_vm6, %v11732_v32, %v11522_v17  ;;  %v11744_v32 = vld [vmem:[#allocation19_spill] sm:$0xff] }
 0x2d6   :  { %v4402_v36 = vadd.f32 %v4370_v59, %v4271_v63  ;;  %v4042_v1 = vadd.f32 %v10499_v10, %v3911_v48  ;;  %v4371_v49 = vmul.f32 %v10305_v18, %v4340_v9  ;;  %v3845_v12 = vadd.f32 %v3813_v58, %v3682_v33  ;;  %4657 = vmatmul.bf16.gmra.mxu0 %v4427_v3  ;;  %v11741_v48 = vld [vmem:[#allocation23_spill] sm:$0xff] }
 0x2d7   :  { %v4274_v16 = vadd.f32 %v10525_v52, %v4207_v5  ;;  %v4045_v8 = vadd.f32 %v4013_v42, %v9948_v22  ;;  %v4174_v60 = vmul.f32 %v10457_v26, %v11733_v2  ;;  %v4176_v21 = vmul.f32 %v10457_v26, %v4143_v23  ;;  %4755 = vmatmul.bf16.gmra.mxu2 %v4427_v3 }
 0x2d8   :  { %v4428_v43 = vpack.c.bf16 %v4402_v36, %v4400_v20  ;;  %v4205_v28 = vadd.f32 %v4173_v15, %v4042_v1  ;;  %v3597_v10 = vrot.slane %v10047_v56, 1  ;;  %v3912_v59 = vadd.f32 %v11734_v50, %v3845_v12  ;;  %v11743_v20 = vld [vmem:[#allocation7_spill] sm:$0xff]  ;;  %v11746_v12 = vld [vmem:[#allocation72_spill] sm:$0xff] }
 0x2d9   :  { %v4405_v4 = vadd.f32 %v4373_v57, %v4274_v16  ;;  %v4339_v33 = vsel %vm420_vm7, %v11532_v61, %v9867_v38  ;;  %v4208_v53 = vadd.f32 %v4176_v21, %v4045_v8  ;;  %v4341_v30 = vsel %vm420_vm7, %v9942_v41, %v11532_v61  ;;  %v11742_v57 = vld [vmem:[#allocation91_spill] sm:$0xff]  ;;  %v11745_v16 = vld [vmem:[#allocation9_spill] sm:$0xff] }
 0x2da   :  { %v4272_v22 = vadd.f32 %v4240_v54, %v4205_v28  ;;  %v4374_v11 = vmul.f32 %v10337_v19, %v4339_v33  ;;  %v4043_v24 = vadd.f32 %v4011_v55, %v3912_v59  ;;  %v4241_v3 = vmul.f32 %v10466_v7, %v9743_v39  ;;  %4706 = vmatmul.bf16.gmra.mxu1 %v4428_v43  ;;  %v11747_v28 = vld [vmem:[#allocation37_spill] sm:$0xff] }
 0x2db   :  { %v11736_v6 = vrot.slane %v11735_v0, 1  ;;  %v11738_v15 = vrot.slane %v11737_v31, 1  ;;  %v4275_v55 = vadd.f32 %v10544_v14, %v4208_v53  ;;  %v4372_v27 = vmul.f32 %v10337_v19, %v4341_v30  ;;  %4804 = vmatmul.bf16.gmra.mxu3 %v4428_v43  ;;  %v11749_v43 = vld [vmem:[#allocation11_spill] sm:$0xff] }
 0x2dc   :  { %v4403_v54 = vadd.f32 %v4371_v49, %v4272_v22  ;;  %v4206_v63 = vadd.f32 %v4174_v60, %v4043_v24  ;;  %v4014_v9 = vmul.f32 %v10386_v45, %v11741_v48  ;;  %v11240_v58 = vrot.slane %v11742_v57, 1  ;;  %v11748_v60 = vld [vmem:[#allocation27_spill] sm:$0xff] }
 0x2dd   :  { %v10613_v62 = vsel %vm420_vm7, %v11738_v15, %v11736_v6  ;;  %v11739_v51 = vmov %v11738_v15  ;;  %v4406_v42 = vadd.f32 %v4374_v11, %v4275_v55  ;;  %v4140_v2 = vsel %vm254_vm6, %v11522_v17, %v11747_v28  ;;  %v11750_v11 = vld [vmem:[#allocation79_spill] sm:$0xff]  ;;  %v11760_v28 = vld [vmem:[#allocation12_spill] sm:$0xff] }
 0x2de   :  { %v3610_v41 = vsel %vm420_vm7, %v9829_v25, %v11739_v51  ;;  %v3659_v39 = vmul.f32 %v11740_v47, %v10613_v62  ;;  %v4429_v25 = vpack.c.bf16 %v4405_v4, %v4403_v54  ;;  %v4273_v1 = vadd.f32 %v4241_v3, %v4206_v63  ;;  %v11752_v3 = vld [vmem:[#allocation13_spill] sm:$0xff]  ;;  %v11755_v54 = vld [vmem:[#allocation36_spill] sm:$0xff] }
 0x2df   :  { %v3657_v44 = vmul.f32 %v11740_v47, %v3610_v41  ;;  %v4016_v5 = vmul.f32 %v10386_v45, %v3610_v41  ;;  %v4046_v49 = vadd.f32 %v4014_v9, %v11745_v16  ;;  %v4179_v21 = vmul.f32 %v10394_v29, %v11748_v60  ;;  %v11758_v16 = vld [vmem:[#allocation15_spill] sm:$0xff] }
 0x2e0   :  { %v3691_v23 = vadd.f32 %v3659_v39, %v11744_v32  ;;  %v4244_v4 = vmul.f32 %v10286_v46, %v11749_v43  ;;  %v4246_v50 = vmul.f32 %v10286_v46, %v11737_v31  ;;  %v4404_v59 = vadd.f32 %v4372_v27, %v4273_v1  ;;  %v11756_v27 = vld [vmem:[#allocation117_spill] sm:$0xff] }
 0x2e1   :  { %v3689_v36 = vadd.f32 %v3657_v44, %v11743_v20  ;;  %v4048_v8 = vadd.f32 %v4016_v5, %v11746_v12  ;;  %v4177_v33 = vmul.f32 %v10394_v29, %v4140_v2  ;;  %v4375_v22 = vmul.f32 %v10305_v18, %v3610_v41  ;;  %v11757_v20 = vld [vmem:[#allocation18_spill] sm:$0xff]  ;;  %v11759_v12 = vld [vmem:[#allocation81_spill] sm:$0xff]  ;;  %v11761_v2 = vld [vmem:[#allocation76_spill] sm:$0xff] }
 0x2e2   :  { %v4377_v53 = vmul.f32 %v10305_v18, %v10613_v62  ;;  %v11751_v24 = vrot.slane %v11750_v11, 1  ;;  %v11753_v6 = vrot.slane %v11752_v3, 1  ;;  %v4015_v41 = vmul.f32 %v10444_v13, %v11755_v54 }
 0x2e3   :  { %v4211_v30 = vadd.f32 %v4179_v21, %v4048_v8  ;;  %v4430_v55 = vpack.c.bf16 %v4406_v42, %v4404_v59  ;;  %v4209_v44 = vadd.f32 %v4177_v33, %v4046_v49  ;;  %v10663_v48 = vrot.slane %v11756_v27, 1 }
 0x2e4   :  { %v3609_v15 = vsel %vm420_vm7, %v11753_v6, %v11751_v24  ;;  %v11754_v51 = vmov %v11753_v6  ;;  %v4047_v1 = vadd.f32 %v4015_v41, %v11757_v20  ;;  %v4141_v42 = vsel %vm254_vm6, %v11522_v17, %v11760_v28  ;;  %v11764_v41 = vld [vmem:[#allocation84_spill] sm:$0xff]  ;;  %v11769_v28 = vld [vmem:[#allocation41_spill] sm:$0xff] }
 0x2e5   :  { %v3611_v31 = vsel %vm420_vm7, %v9867_v38, %v11754_v51  ;;  %v3660_v63 = vmul.f32 %v10240_v40, %v3609_v15  ;;  %v4278_v9 = vadd.f32 %v4246_v50, %v4211_v30  ;;  %v4276_v32 = vadd.f32 %v4244_v4, %v4209_v44  ;;  %v11762_v50 = vld [vmem:[#allocation78_spill] sm:$0xff]  ;;  %v11763_v30 = vld [vmem:[#allocation43_spill] sm:$0xff] }
 0x2e6   :  { %v3658_v39 = vmul.f32 %v10240_v40, %v3611_v31  ;;  %v4017_v5 = vmul.f32 %v10444_v13, %v3611_v31  ;;  %v4178_v43 = vmul.f32 %v10457_v26, %v4141_v42  ;;  %v4180_v59 = vmul.f32 %v10457_v26, %v11762_v50  ;;  %4662 = vmatmul.bf16.gmra.mxu0 %v4429_v25 }
 0x2e7   :  { %v3692_v8 = vadd.f32 %v3660_v63, %v11759_v12  ;;  %v4409_v49 = vadd.f32 %v4377_v53, %v4278_v9  ;;  %v4407_v33 = vadd.f32 %v4375_v22, %v4276_v32  ;;  %v4245_v4 = vmul.f32 %v10466_v7, %v11763_v30  ;;  %v11766_v22 = vld [vmem:[#allocation97_spill] sm:$0xff]  ;;  %4760 = vmatmul.bf16.gmra.mxu2 %v4429_v25  ;;  %v11772_v30 = vld [vmem:[#allocation83_spill] sm:$0xff] }
 0x2e8   :  { %v3690_v38 = vadd.f32 %v3658_v39, %v11758_v16  ;;  %v4049_v21 = vadd.f32 %v4017_v5, %v11761_v2  ;;  %v4247_v24 = vmul.f32 %v10466_v7, %v11752_v3  ;;  %v4376_v6 = vmul.f32 %v10337_v19, %v3611_v31 }
 0x2e9   :  { %v4210_v51 = vadd.f32 %v4178_v43, %v4047_v1  ;;  %v4378_v53 = vmul.f32 %v10337_v19, %v3609_v15  ;;  %v11765_v44 = vrot.slane %v11764_v41, 1  ;;  %v11239_v63 = vrot.slane %v11766_v22, 1 }
 0x2ea   :  { %v4212_v54 = vadd.f32 %v4180_v59, %v4049_v21  ;;  %v10690_v9 = vpack.c.bf16 %v4409_v49, %v4407_v33  ;;  %v11768_v31 = vrot.slane %v11735_v0, 1  ;;  %v3820_v12 = vmul.f32 %v10277_v35, %v11748_v60  ;;  %v11770_v49 = vld [vmem:[#allocation90_spill] sm:$0xff]  ;;  %v11771_v21 = vld [vmem:[#allocation80_spill] sm:$0xff]  ;;  %4711 = vmatmul.bf16.gmra.mxu1 %v4430_v55 }
 0x2eb   :  { %v3604_v39 = vsel %vm420_vm7, %v11765_v44, %v11240_v58  ;;  %v11767_v3 = vmov %v11765_v44  ;;  %v4277_v1 = vadd.f32 %v4245_v4, %v4210_v51  ;;  %v10706_v25 = vsel %vm420_vm7, %v10663_v48, %v11769_v28  ;;  %4809 = vmatmul.bf16.gmra.mxu3 %v4430_v55  ;;  %v11782_v58 = vld [vmem:[#allocation93_spill] sm:$0xff] }
 0x2ec   :  { %v3606_v5 = vsel %vm420_vm7, %v11768_v31, %v11767_v3  ;;  %v3663_v20 = vmul.f32 %v11740_v47, %v3604_v39  ;;  %v4279_v32 = vadd.f32 %v4247_v24, %v4212_v54  ;;  %v4018_v42 = vmul.f32 %v10386_v45, %v10613_v62  ;;  %v11773_v3 = vld [vmem:[#allocation85_spill] sm:$0xff] }
 0x2ed   :  { %v3661_v16 = vmul.f32 %v11740_v47, %v3606_v5  ;;  %v3822_v43 = vmul.f32 %v10277_v35, %v11771_v21  ;;  %v4408_v59 = vadd.f32 %v4376_v6, %v4277_v1  ;;  %v3852_v24 = vadd.f32 %v3820_v12, %v3689_v36 }
 0x2ee   :  { %v3695_v2 = vadd.f32 %v3663_v20, %v11770_v49  ;;  %v4410_v33 = vadd.f32 %v4378_v53, %v4279_v32  ;;  %v4019_v60 = vmul.f32 %v10444_v13, %v3609_v15  ;;  %v4020_v54 = vmul.f32 %v10386_v45, %v3606_v5  ;;  %v11774_v20 = vld [vmem:[#allocation87_spill] sm:$0xff]  ;;  %v11775_v53 = vld [vmem:[#allocation89_spill] sm:$0xff] }
 0x2ef   :  { %v3693_v4 = vadd.f32 %v3661_v16, %v11772_v30  ;;  %v3854_v51 = vadd.f32 %v3822_v43, %v3691_v23  ;;  %v4181_v44 = vmul.f32 %v10394_v29, %v11771_v21  ;;  %v3919_v31 = vadd.f32 %v11773_v3, %v3852_v24  ;;  %v11777_v21 = vld [vmem:[#allocation82_spill] sm:$0xff] }
 0x2f0   :  { %v10718_v62 = vpack.c.bf16 %v4410_v33, %v4408_v59  ;;  %v4183_v6 = vmul.f32 %v10394_v29, %v11774_v20  ;;  %v4248_v36 = vmul.f32 %v10286_v46, %v11735_v0  ;;  %v4250_v23 = vmul.f32 %v10286_v46, %v11764_v41  ;;  %v11778_v33 = vld [vmem:[#allocation96_spill] sm:$0xff] }
 0x2f1   :  { %v3921_v1 = vadd.f32 %v11775_v53, %v3854_v51  ;;  %v3605_v15 = vsel %vm420_vm7, %v3597_v10, %v11239_v63  ;;  %v4050_v55 = vadd.f32 %v4018_v42, %v3919_v31  ;;  %v11776_v32 = vrot.slane %v11750_v11, 1  ;;  %v11779_v51 = vld [vmem:[#allocation86_spill] sm:$0xff]  ;;  %v11780_v53 = vld [vmem:[#allocation88_spill] sm:$0xff] }
 0x2f2   :  { %v3664_v0 = vmul.f32 %v10240_v40, %v3605_v15  ;;  %v3821_v41 = vmul.f32 %v10326_v37, %v11762_v50  ;;  %v4379_v28 = vmul.f32 %v10305_v18, %v3606_v5  ;;  %v3823_v42 = vmul.f32 %v10326_v37, %v11777_v21 }
 0x2f3   :  { %v3607_v16 = vsel %vm420_vm7, %v11776_v32, %v3597_v10  ;;  %v4052_v12 = vadd.f32 %v4020_v54, %v3921_v1  ;;  %v4213_v43 = vadd.f32 %v4181_v44, %v4050_v55  ;;  %v4381_v59 = vmul.f32 %v10305_v18, %v3604_v39  ;;  %v11781_v55 = vld [vmem:[#allocation92_spill] sm:$0xff] }
 0x2f4   :  { %v3662_v49 = vmul.f32 %v10240_v40, %v3607_v16  ;;  %v3696_v30 = vadd.f32 %v3664_v0, %v11778_v33  ;;  %v3853_v24 = vadd.f32 %v3821_v41, %v3690_v38  ;;  %v3855_v31 = vadd.f32 %v3823_v42, %v3692_v8 }
 0x2f5   :  { %v4215_v10 = vadd.f32 %v4183_v6, %v4052_v12  ;;  %v4021_v50 = vmul.f32 %v10444_v13, %v3607_v16  ;;  %v4022_v54 = vmul.f32 %v10386_v45, %v3604_v39  ;;  %v4280_v5 = vadd.f32 %v4248_v36, %v4213_v43  ;;  %v11783_v36 = vld [vmem:[#allocation103_spill] sm:$0xff] }
 0x2f6   :  { %v3694_v3 = vadd.f32 %v3662_v49, %v11779_v51  ;;  %v3920_v1 = vadd.f32 %v11780_v53, %v3853_v24  ;;  %v4182_v32 = vmul.f32 %v10457_v26, %v11777_v21  ;;  %v3922_v63 = vadd.f32 %v11781_v55, %v3855_v31  ;;  %4667 = vmatmul.bf16.gmra.mxu0 %v10690_v9 }
 0x2f7   :  { %v4282_v44 = vadd.f32 %v4250_v23, %v4215_v10  ;;  %v4184_v38 = vmul.f32 %v10457_v26, %v11782_v58  ;;  %v4249_v6 = vmul.f32 %v10466_v7, %v11750_v11  ;;  %v4411_v8 = vadd.f32 %v4379_v28, %v4280_v5  ;;  %v11785_v28 = vld [vmem:[#allocation95_spill] sm:$0xff]  ;;  %4765 = vmatmul.bf16.gmra.mxu2 %v10690_v9 }
 0x2f8   :  { %v4051_v0 = vadd.f32 %v4019_v60, %v3920_v1  ;;  %v4251_v39 = vmul.f32 %v10466_v7, %v10047_v56  ;;  %v11784_v41 = vrot.slane %v11742_v57, 1  ;;  %v4053_v49 = vadd.f32 %v4021_v50, %v3922_v63  ;;  %v11787_v50 = vld [vmem:[#allocation114_spill] sm:$0xff] }
 0x2f9   :  { %v4413_v23 = vadd.f32 %v4381_v59, %v4282_v44  ;;  %v4380_v21 = vmul.f32 %v10337_v19, %v3607_v16  ;;  %v4382_v11 = vmul.f32 %v10337_v19, %v3605_v15  ;;  %v3824_v60 = vmul.f32 %v10277_v35, %v11774_v20  ;;  %v11786_v59 = vld [vmem:[#allocation98_spill] sm:$0xff] }
 0x2fa   :  { %v3602_v12 = vsel %vm420_vm7, %v11784_v41, %v11783_v36  ;;  %v4214_v43 = vadd.f32 %v4182_v32, %v4051_v0  ;;  %v3826_v56 = vmul.f32 %v10277_v35, %v11785_v28  ;;  %v4216_v63 = vadd.f32 %v4184_v38, %v4053_v49  ;;  %v11788_v1 = vld [vmem:[#allocation94_spill] sm:$0xff]  ;;  %v11792_v0 = vld [vmem:[#allocation109_spill] sm:$0xff]  ;;  %4716 = vmatmul.bf16.gmra.mxu1 %v10718_v62 }
 0x2fb   :  { %v3665_v42 = vmul.f32 %v11740_v47, %v3602_v12  ;;  %v10776_v33 = vpack.c.bf16 %v4413_v23, %v4411_v8  ;;  %v3856_v47 = vadd.f32 %v3824_v60, %v3693_v4  ;;  %v4024_v51 = vmul.f32 %v10386_v45, %v3602_v12  ;;  %v11789_v44 = vld [vmem:[#allocation102_spill] sm:$0xff]  ;;  %4814 = vmatmul.bf16.gmra.mxu3 %v10718_v62 }
 0x2fc   :  { %v4281_v24 = vadd.f32 %v4249_v6, %v4214_v43  ;;  %v3858_v10 = vadd.f32 %v3826_v56, %v3695_v2  ;;  %v4023_v31 = vmul.f32 %v10444_v13, %v3605_v15  ;;  %v4283_v20 = vadd.f32 %v4251_v39, %v4216_v63  ;;  %v11790_v4 = vld [vmem:[#allocation106_spill] sm:$0xff]  ;;  %v11791_v6 = vld [vmem:[#allocation100_spill] sm:$0xff] }
 0x2fd   :  { %v3697_v16 = vadd.f32 %v3665_v42, %v11786_v59  ;;  %v3963_v5 = vsel %vm420_vm7, %v11783_v36, %v11787_v50  ;;  %v4185_v9 = vmul.f32 %v10394_v29, %v11785_v28  ;;  %v3923_v32 = vadd.f32 %v11788_v1, %v3856_v47  ;;  %v11794_v42 = vld [vmem:[#allocation99_spill] sm:$0xff]  ;;  %v11795_v56 = vld [vmem:[#allocation104_spill] sm:$0xff] }
 0x2fe   :  { %v4412_v53 = vadd.f32 %v4380_v21, %v4281_v24  ;;  %v3925_v55 = vadd.f32 %v11789_v44, %v3858_v10  ;;  %v4187_v2 = vmul.f32 %v10394_v29, %v11790_v4  ;;  %v4414_v38 = vadd.f32 %v4382_v11, %v4283_v20  ;;  %v11796_v10 = vld [vmem:[#allocation101_spill] sm:$0xff] }
 0x2ff   :  { %v4252_v15 = vmul.f32 %v10286_v46, %v11742_v57  ;;  %v4254_v8 = vmul.f32 %v10286_v46, %v11791_v6  ;;  %v11793_v39 = vrot.slane %v11766_v22, 1  ;;  %v4054_v41 = vadd.f32 %v4022_v54, %v3923_v32  ;;  %v11797_v20 = vld [vmem:[#allocation105_spill] sm:$0xff]  ;;  %v11799_v32 = vld [vmem:[#allocation108_spill] sm:$0xff] }
 0x300   :  { %v4056_v23 = vadd.f32 %v4024_v51, %v3925_v55  ;;  %v4434_v21 = vpack.c.bf16 %v4414_v38, %v4412_v53  ;;  %v4383_v57 = vmul.f32 %v10305_v18, %v3602_v12  ;;  %v3825_v46 = vmul.f32 %v10326_v37, %v11782_v58  ;;  %v11798_v53 = vld [vmem:[#allocation110_spill] sm:$0xff] }
 0x301   :  { %v3603_v36 = vsel %vm420_vm7, %v11793_v39, %v11792_v0  ;;  %v3827_v43 = vmul.f32 %v10326_v37, %v11794_v42  ;;  %v4217_v11 = vadd.f32 %v4185_v9, %v4054_v41  ;;  %v4385_v28 = vmul.f32 %v10305_v18, %v3963_v5 }
 0x302   :  { %v3666_v49 = vmul.f32 %v10240_v40, %v3603_v36  ;;  %v4219_v60 = vadd.f32 %v4187_v2, %v4056_v23  ;;  %v4026_v62 = vmul.f32 %v10386_v45, %v3963_v5  ;;  %v3857_v54 = vadd.f32 %v3825_v46, %v3694_v3  ;;  %v11802_v46 = vld [vmem:[#allocation56_spill] sm:$0xff] }
 0x303   :  { %v3859_v59 = vadd.f32 %v3827_v43, %v3696_v30  ;;  %v4025_v40 = vmul.f32 %v10444_v13, %v3603_v36  ;;  %v4284_v24 = vadd.f32 %v4252_v15, %v4217_v11  ;;  %v3964_v58 = vsel %vm420_vm7, %v11792_v0, %v10663_v48  ;;  %v11800_v15 = vld [vmem:[#allocation40_spill] sm:$0xff]  ;;  %v11804_v43 = vld [vmem:[#allocation115_spill] sm:$0xff] }
 0x304   :  { %v3698_v63 = vadd.f32 %v3666_v49, %v11795_v56  ;;  %v4286_v12 = vadd.f32 %v4254_v8, %v4219_v60  ;;  %v4186_v47 = vmul.f32 %v10457_v26, %v11794_v42  ;;  %v3924_v51 = vadd.f32 %v11796_v10, %v3857_v54  ;;  %v11801_v8 = vld [vmem:[#allocation113_spill] sm:$0xff]  ;;  %v11805_v60 = vld [vmem:[#allocation42_spill] sm:$0xff] }
 0x305   :  { %v3926_v9 = vadd.f32 %v11797_v20, %v3859_v59  ;;  %v4188_v3 = vmul.f32 %v10457_v26, %v11798_v53  ;;  %v4253_v30 = vmul.f32 %v10466_v7, %v11766_v22  ;;  %v4415_v5 = vadd.f32 %v4383_v57, %v4284_v24 }
 0x306   :  { %v4417_v1 = vadd.f32 %v4385_v28, %v4286_v12  ;;  %v4255_v44 = vmul.f32 %v10466_v7, %v11799_v32  ;;  %v3828_v55 = vmul.f32 %v10277_v35, %v11790_v4  ;;  %v4055_v2 = vadd.f32 %v4023_v31, %v3924_v51  ;;  %4672 = vmatmul.bf16.gmra.mxu0 %v10776_v33 }
 0x307   :  { %v4057_v38 = vadd.f32 %v4025_v40, %v3926_v9  ;;  %v4028_v6 = vmul.f32 %v10386_v45, %v11800_v15  ;;  %v4126_v0 = vsel %vm254_vm6, %v11801_v8, %v11522_v17  ;;  %v4384_v22 = vmul.f32 %v10337_v19, %v3603_v36  ;;  %v11803_v45 = vld [vmem:[#allocation107_spill] sm:$0xff]  ;;  %4770 = vmatmul.bf16.gmra.mxu2 %v10776_v33  ;;  %v11806_v33 = vld [vmem:[#allocation118_spill] sm:$0xff] }
 0x308   :  { %v4435_v39 = vpack.c.bf16 %v4417_v1, %v4415_v5  ;;  %v4386_v41 = vmul.f32 %v10337_v19, %v3964_v58  ;;  %v3860_v23 = vadd.f32 %v3828_v55, %v3697_v16  ;;  %v4218_v49 = vadd.f32 %v4186_v47, %v4055_v2 }
 0x309   :  { %v4220_v57 = vadd.f32 %v4188_v3, %v4057_v38  ;;  %v4060_v35 = vadd.f32 %v4028_v6, %v11802_v46  ;;  %v4191_v31 = vmul.f32 %v10394_v29, %v4126_v0  ;;  %v4027_v4 = vmul.f32 %v10444_v13, %v3964_v58  ;;  %v11809_v3 = vld [vmem:[#allocation112_spill] sm:$0xff] }
 0x30a   :  { %v3927_v42 = vadd.f32 %v11803_v45, %v3860_v23  ;;  %v4189_v11 = vmul.f32 %v10394_v29, %v11804_v43  ;;  %v4354_v36 = vsel %vm420_vm7, %v11532_v61, %v11805_v60  ;;  %v4285_v16 = vadd.f32 %v4253_v30, %v4218_v49  ;;  %4721 = vmatmul.bf16.gmra.mxu1 %v4434_v21  ;;  %v4837_v43 = vld [vmem:[%s11020_s0 + $0x10] sm:$0xff] }
 0x30b   :  { %v4287_v28 = vadd.f32 %v4255_v44, %v4220_v57  ;;  %v4223_v56 = vadd.f32 %v4191_v31, %v4060_v35  ;;  %v4324_v59 = vsel %vm420_vm7, %v11787_v50, %v11532_v61  ;;  %v3829_v29 = vmul.f32 %v10326_v37, %v11798_v53  ;;  %v11807_v50 = vld [vmem:[#allocation20_spill] sm:$0xff]  ;;  %4819 = vmatmul.bf16.gmra.mxu3 %v4434_v21  ;;  %v11811_v44 = vld [vmem:[#allocation10_spill] sm:$0xff]  ;;  %v4836_v31 = vld [vmem:[%s11020_s0 + $0x8] sm:$0xff] }
 0x30c   :  { %v4058_v54 = vadd.f32 %v4026_v62, %v3927_v42  ;;  %v4029_v40 = vmul.f32 %v10444_v13, %v10706_v25  ;;  %v4416_v24 = vadd.f32 %v4384_v22, %v4285_v16  ;;  %v4127_v62 = vsel %vm254_vm6, %v11806_v33, %v11522_v17  ;;  %v11808_v25 = vld [vmem:[#allocation116_spill] sm:$0xff] }
 0x30d   :  { %v4418_v12 = vadd.f32 %v4386_v41, %v4287_v28  ;;  %v4290_v58 = vadd.f32 %v10525_v52, %v4223_v56  ;;  %v4389_v10 = vmul.f32 %v10305_v18, %v4354_v36  ;;  %v3861_v51 = vadd.f32 %v3829_v29, %v3698_v63  ;;  %v11810_v17 = vld [vmem:[#allocation28_spill] sm:$0xff] }
 0x30e   :  { %v4221_v47 = vadd.f32 %v4189_v11, %v4058_v54  ;;  %v4061_v20 = vadd.f32 %v4029_v40, %v11807_v50  ;;  %v4387_v37 = vmul.f32 %v10305_v18, %v4324_v59  ;;  %v4192_v13 = vmul.f32 %v10457_v26, %v4127_v62  ;;  %v4838_v59 = vld [vmem:[%s11020_s0 + $0x18] sm:$0xff] }
 0x30f   :  { %v4436_v9 = vpack.c.bf16 %v4418_v12, %v4416_v24  ;;  %v4421_v53 = vadd.f32 %v4389_v10, %v4290_v58  ;;  %v3928_v30 = vadd.f32 %v11809_v3, %v3861_v51  ;;  %v4355_v63 = vsel %vm420_vm7, %v11532_v61, %v11810_v17  ;;  %v4839_v12 = vld [vmem:[%s11020_s0 + $0x20] sm:$0xff] }
 0x310   :  { %v4288_v52 = vadd.f32 %v11808_v25, %v4221_v47  ;;  %v4224_v5 = vadd.f32 %v4192_v13, %v4061_v20  ;;  %v4190_v18 = vmul.f32 %v10457_v26, %v11811_v44  ;;  %v4325_v21 = vsel %vm420_vm7, %v10663_v48, %v11532_v61  ;;  %v4840_v20 = vld [vmem:[%s11020_s0 + $0x28] sm:$0xff]  ;;  %v4841_v25 = vld [vmem:[%s11020_s0 + $0x30] sm:$0xff] }
 0x311   :  { %v4059_v32 = vadd.f32 %v4027_v4, %v3928_v30  ;;  %v4257_v2 = vmul.f32 %v10466_v7, %v11756_v27  ;;  %v4390_v6 = vmul.f32 %v10337_v19, %v4355_v63  ;;  %v4388_v0 = vmul.f32 %v10337_v19, %v4325_v21  ;;  %v4835_v27 = vld [vmem:[%s11020_s0] sm:$0xff] }
 0x312   :  { %v4419_v1 = vadd.f32 %v4387_v37, %v4288_v52  ;;  %v4291_v55 = vadd.f32 %v10544_v14, %v4224_v5  ;;  %v10885_v61 = vperm.slane %v5322_v34, 0 }
 0x313   :  { %v4222_v15 = vadd.f32 %v4190_v18, %v4059_v32 }
 0x314   :  { %v4437_v38 = vpack.c.bf16 %v4421_v53, %v4419_v1  ;;  %v4422_v22 = vadd.f32 %v4390_v6, %v4291_v55  ;;  %v4842_v1 = vld [vmem:[%s11020_s0 + $0x38] sm:$0xff]  ;;  %v4843_v55 = vld [vmem:[%s11020_s0 + $0x40] sm:$0xff] }
 0x315   :  { %v4289_v8 = vadd.f32 %v4257_v2, %v4222_v15 }
 0x316   :  { %4677 = vmatmul.bf16.gmra.mxu0 %v4435_v39 }
 0x317   :  { %v4420_v41 = vadd.f32 %v4388_v0, %v4289_v8  ;;  %4775 = vmatmul.bf16.gmra.mxu2 %v4435_v39  ;;  %v10891_v39 = vperm.slane %v5322_v34, 1 }
 0x319   :  { %v4438_v26 = vpack.c.bf16 %v4422_v22, %v4420_v41  ;;  %v4844_v22 = vld [vmem:[%s11020_s0 + $0x48] sm:$0xff] }
 0x31a   :  { %4726 = vmatmul.bf16.gmra.mxu1 %v4436_v9 }
 0x31b   :  { %4824 = vmatmul.bf16.gmra.mxu3 %v4436_v9 }
 0x326   :  { %4682 = vmatmul.bf16.gmra.mxu0 %v4437_v38 }
 0x327   :  { %4780 = vmatmul.bf16.gmra.mxu2 %v4437_v38 }
 0x32a   :  { %4731 = vmatmul.bf16.gmra.mxu1 %v4438_v26 }
 0x32b   :  { %4829 = vmatmul.bf16.gmra.mxu3 %v4438_v26 }
 0x333   :  { %v4648_v7 = vpop.f32.mrf.mxu0 }
 0x334   :  { %v4649_v19 = vadd.f32 %v4648_v7, %v10885_v61  ;;  %v4845_v7 = vld [vmem:[%s11020_s0 + $0x50] sm:$0xff] }
 0x337   :  { %v4697_v14 = vpop.f32.mrf.mxu1 }
 0x338   :  { %v4698_v48 = vadd.f32 %v4697_v14, %v4649_v19 }
 0x339   :  { %v4746_v23 = vpop.f32.mrf.mxu2 }
 0x33a   :  { %v4867_v49 = vadd.f32 %v4835_v27, %v4698_v48  ;;  %v4747_v46 = vadd.f32 %v4746_v23, %v10891_v39 }
 0x33b   :  { %v4650_v57 = vpop.f32.mrf.mxu0 }
 0x33c   :  { %4899 = vst [vmem:[#allocation3] sm:$0xff] %v4867_v49  ;;  %v4651_v4 = vadd.f32 %v4650_v57, %v10885_v61 }
 0x33e   :  { %v4795_v35 = vpop.f32.mrf.mxu3 }
 0x33f   :  { %v4796_v45 = vadd.f32 %v4795_v35, %v4747_v46  ;;  %v4699_v42 = vpop.f32.mrf.mxu1  ;;  %v4846_v46 = vld [vmem:[%s11020_s0 + $0x58] sm:$0xff] }
 0x340   :  { %v4700_v60 = vadd.f32 %v4699_v42, %v4651_v4 }
 0x341   :  { %v4868_v11 = vadd.f32 %v4836_v31, %v4796_v45  ;;  %v4748_v36 = vpop.f32.mrf.mxu2  ;;  %v4847_v45 = vld [vmem:[%s11020_s0 + $0x60] sm:$0xff] }
 0x342   :  { %v4869_v16 = vadd.f32 %v4837_v43, %v4700_v60  ;;  %v4749_v56 = vadd.f32 %v4748_v36, %v10891_v39 }
 0x343   :  { %4900 = vst [vmem:[#allocation3 + $0x8] sm:$0xff] %v4868_v11  ;;  %v4653_v28 = vpop.f32.mrf.mxu0 }
 0x344   :  { %4901 = vst [vmem:[#allocation3 + $0x10] sm:$0xff] %v4869_v16  ;;  %v4654_v29 = vadd.f32 %v4653_v28, %v10885_v61 }
 0x346   :  { %v4797_v54 = vpop.f32.mrf.mxu3 }
 0x347   :  { %v4798_v40 = vadd.f32 %v4797_v54, %v4749_v56  ;;  %v4702_v24 = vpop.f32.mrf.mxu1  ;;  %v4848_v56 = vld [vmem:[%s11020_s0 + $0x68] sm:$0xff] }
 0x348   :  { %v4703_v33 = vadd.f32 %v4702_v24, %v4654_v29 }
 0x349   :  { %v4870_v58 = vadd.f32 %v4838_v59, %v4798_v40  ;;  %v4751_v62 = vpop.f32.mrf.mxu2  ;;  %v4849_v40 = vld [vmem:[%s11020_s0 + $0x70] sm:$0xff] }
 0x34a   :  { %v4871_v47 = vadd.f32 %v4839_v12, %v4703_v33  ;;  %v4752_v51 = vadd.f32 %v4751_v62, %v10891_v39 }
 0x34b   :  { %4902 = vst [vmem:[#allocation3 + $0x18] sm:$0xff] %v4870_v58  ;;  %v4655_v10 = vpop.f32.mrf.mxu0 }
 0x34c   :  { %4903 = vst [vmem:[#allocation3 + $0x20] sm:$0xff] %v4871_v47  ;;  %v4656_v9 = vadd.f32 %v4655_v10, %v10885_v61 }
 0x34e   :  { %v4800_v50 = vpop.f32.mrf.mxu3 }
 0x34f   :  { %v4801_v37 = vadd.f32 %v4800_v50, %v4752_v51  ;;  %v4704_v13 = vpop.f32.mrf.mxu1  ;;  %v4850_v51 = vld [vmem:[%s11020_s0 + $0x78] sm:$0xff] }
 0x350   :  { %v4705_v53 = vadd.f32 %v4704_v13, %v4656_v9 }
 0x351   :  { %v4872_v52 = vadd.f32 %v4840_v20, %v4801_v37  ;;  %v4753_v3 = vpop.f32.mrf.mxu2  ;;  %v4851_v37 = vld [vmem:[%s11020_s0 + $0x80] sm:$0xff] }
 0x352   :  { %v4873_v30 = vadd.f32 %v4841_v25, %v4705_v53  ;;  %v4754_v17 = vadd.f32 %v4753_v3, %v10891_v39 }
 0x353   :  { %4904 = vst [vmem:[#allocation3 + $0x28] sm:$0xff] %v4872_v52  ;;  %v4658_v5 = vpop.f32.mrf.mxu0 }
 0x354   :  { %4905 = vst [vmem:[#allocation3 + $0x30] sm:$0xff] %v4873_v30  ;;  %v4659_v32 = vadd.f32 %v4658_v5, %v10885_v61 }
 0x356   :  { %v4802_v63 = vpop.f32.mrf.mxu3 }
 0x357   :  { %v4803_v44 = vadd.f32 %v4802_v63, %v4754_v17  ;;  %v4707_v18 = vpop.f32.mrf.mxu1  ;;  %v4852_v17 = vld [vmem:[%s11020_s0 + $0x88] sm:$0xff] }
 0x358   :  { %v4708_v2 = vadd.f32 %v4707_v18, %v4659_v32 }
 0x359   :  { %v4874_v21 = vadd.f32 %v4842_v1, %v4803_v44  ;;  %v4853_v44 = vld [vmem:[%s11020_s0 + $0x90] sm:$0xff] }
 0x35a   :  { %v4756_v38 = vpop.f32.mrf.mxu2  ;;  %v4875_v15 = vadd.f32 %v4843_v55, %v4708_v2 }
 0x35b   :  { %4906 = vst [vmem:[#allocation3 + $0x38] sm:$0xff] %v4874_v21  ;;  %v4660_v6 = vpop.f32.mrf.mxu0  ;;  %v4757_v8 = vadd.f32 %v4756_v38, %v10891_v39 }
 0x35c   :  { %4907 = vst [vmem:[#allocation3 + $0x40] sm:$0xff] %v4875_v15  ;;  %v4661_v41 = vadd.f32 %v4660_v6, %v10885_v61 }
 0x35e   :  { %v4805_v0 = vpop.f32.mrf.mxu3 }
 0x35f   :  { %v4806_v26 = vadd.f32 %v4805_v0, %v4757_v8  ;;  %v4709_v34 = vpop.f32.mrf.mxu1  ;;  %v4854_v8 = vld [vmem:[%s11020_s0 + $0x98] sm:$0xff] }
 0x360   :  { %v4710_v14 = vadd.f32 %v4709_v34, %v4661_v41 }
 0x361   :  { %v4876_v19 = vadd.f32 %v4844_v22, %v4806_v26  ;;  %v4855_v26 = vld [vmem:[%s11020_s0 + $0xa0] sm:$0xff] }
 0x362   :  { %v4758_v27 = vpop.f32.mrf.mxu2  ;;  %v4877_v48 = vadd.f32 %v4845_v7, %v4710_v14 }
 0x363   :  { %4908 = vst [vmem:[#allocation3 + $0x48] sm:$0xff] %v4876_v19  ;;  %v4663_v23 = vpop.f32.mrf.mxu0  ;;  %v4759_v49 = vadd.f32 %v4758_v27, %v10891_v39 }
 0x364   :  { %4909 = vst [vmem:[#allocation3 + $0x50] sm:$0xff] %v4877_v48  ;;  %v4664_v35 = vadd.f32 %v4663_v23, %v10885_v61 }
 0x366   :  { %v4807_v57 = vpop.f32.mrf.mxu3 }
 0x367   :  { %v4808_v31 = vadd.f32 %v4807_v57, %v4759_v49  ;;  %v4712_v4 = vpop.f32.mrf.mxu1  ;;  %v4856_v49 = vld [vmem:[%s11020_s0 + $0xa8] sm:$0xff] }
 0x368   :  { %v4713_v43 = vadd.f32 %v4712_v4, %v4664_v35 }
 0x369   :  { %v4878_v42 = vadd.f32 %v4846_v46, %v4808_v31  ;;  %v4857_v31 = vld [vmem:[%s11020_s0 + $0xb0] sm:$0xff] }
 0x36a   :  { %v4761_v11 = vpop.f32.mrf.mxu2  ;;  %v4879_v60 = vadd.f32 %v4847_v45, %v4713_v43 }
 0x36b   :  { %4910 = vst [vmem:[#allocation3 + $0x58] sm:$0xff] %v4878_v42  ;;  %v4665_v36 = vpop.f32.mrf.mxu0  ;;  %v4762_v16 = vadd.f32 %v4761_v11, %v10891_v39 }
 0x36c   :  { %4911 = vst [vmem:[#allocation3 + $0x60] sm:$0xff] %v4879_v60  ;;  %v4666_v54 = vadd.f32 %v4665_v36, %v10885_v61 }
 0x36e   :  { %v4810_v28 = vpop.f32.mrf.mxu3 }
 0x36f   :  { %v4811_v59 = vadd.f32 %v4810_v28, %v4762_v16  ;;  %v4714_v29 = vpop.f32.mrf.mxu1  ;;  %v4858_v16 = vld [vmem:[%s11020_s0 + $0xb8] sm:$0xff] }
 0x370   :  { %v4715_v12 = vadd.f32 %v4714_v29, %v4666_v54 }
 0x371   :  { %v4880_v24 = vadd.f32 %v4848_v56, %v4811_v59  ;;  %v4859_v59 = vld [vmem:[%s11020_s0 + $0xc0] sm:$0xff] }
 0x372   :  { %v4763_v58 = vpop.f32.mrf.mxu2  ;;  %v4881_v33 = vadd.f32 %v4849_v40, %v4715_v12 }
 0x373   :  { %4912 = vst [vmem:[#allocation3 + $0x68] sm:$0xff] %v4880_v24  ;;  %v4668_v62 = vpop.f32.mrf.mxu0  ;;  %v4764_v47 = vadd.f32 %v4763_v58, %v10891_v39 }
 0x374   :  { %4913 = vst [vmem:[#allocation3 + $0x70] sm:$0xff] %v4881_v33  ;;  %v4669_v50 = vadd.f32 %v4668_v62, %v10885_v61 }
 0x376   :  { %v4812_v10 = vpop.f32.mrf.mxu3 }
 0x377   :  { %v4813_v20 = vadd.f32 %v4812_v10, %v4764_v47  ;;  %v4717_v9 = vpop.f32.mrf.mxu1  ;;  %v4860_v47 = vld [vmem:[%s11020_s0 + $0xc8] sm:$0xff] }
 0x378   :  { %v4718_v25 = vadd.f32 %v4717_v9, %v4669_v50 }
 0x379   :  { %v4882_v13 = vadd.f32 %v4850_v51, %v4813_v20  ;;  %v4861_v20 = vld [vmem:[%s11020_s0 + $0xd0] sm:$0xff] }
 0x37a   :  { %v4766_v52 = vpop.f32.mrf.mxu2  ;;  %v4883_v53 = vadd.f32 %v4851_v37, %v4718_v25 }
 0x37b   :  { %4914 = vst [vmem:[#allocation3 + $0x78] sm:$0xff] %v4882_v13  ;;  %v4670_v3 = vpop.f32.mrf.mxu0  ;;  %v4767_v30 = vadd.f32 %v4766_v52, %v10891_v39 }
 0x37c   :  { %4915 = vst [vmem:[#allocation3 + $0x80] sm:$0xff] %v4883_v53  ;;  %v4671_v63 = vadd.f32 %v4670_v3, %v10885_v61 }
 0x37e   :  { %v4815_v5 = vpop.f32.mrf.mxu3 }
 0x37f   :  { %v4816_v1 = vadd.f32 %v4815_v5, %v4767_v30  ;;  %v4719_v32 = vpop.f32.mrf.mxu1  ;;  %v4862_v30 = vld [vmem:[%s11020_s0 + $0xd8] sm:$0xff] }
 0x380   :  { %v4720_v55 = vadd.f32 %v4719_v32, %v4671_v63 }
 0x381   :  { %v4884_v18 = vadd.f32 %v4852_v17, %v4816_v1  ;;  %v4863_v1 = vld [vmem:[%s11020_s0 + $0xe0] sm:$0xff] }
 0x382   :  { %v4768_v21 = vpop.f32.mrf.mxu2  ;;  %v4885_v2 = vadd.f32 %v4853_v44, %v4720_v55 }
 0x383   :  { %4916 = vst [vmem:[#allocation3 + $0x88] sm:$0xff] %v4884_v18  ;;  %v4673_v38 = vpop.f32.mrf.mxu0  ;;  %v4769_v15 = vadd.f32 %v4768_v21, %v10891_v39 }
 0x384   :  { %4917 = vst [vmem:[#allocation3 + $0x90] sm:$0xff] %v4885_v2  ;;  %v4674_v0 = vadd.f32 %v4673_v38, %v10885_v61 }
 0x386   :  { %v4817_v6 = vpop.f32.mrf.mxu3 }
 0x387   :  { %v4818_v22 = vadd.f32 %v4817_v6, %v4769_v15  ;;  %v4722_v41 = vpop.f32.mrf.mxu1  ;;  %v4864_v15 = vld [vmem:[%s11020_s0 + $0xe8] sm:$0xff] }
 0x388   :  { %v4723_v7 = vadd.f32 %v4722_v41, %v4674_v0 }
 0x389   :  { %v4886_v34 = vadd.f32 %v4854_v8, %v4818_v22  ;;  %v4865_v22 = vld [vmem:[%s11020_s0 + $0xf0] sm:$0xff] }
 0x38a   :  { %v4771_v19 = vpop.f32.mrf.mxu2  ;;  %v4887_v14 = vadd.f32 %v4855_v26, %v4723_v7 }
 0x38b   :  { %4918 = vst [vmem:[#allocation3 + $0x98] sm:$0xff] %v4886_v34  ;;  %v4675_v27 = vpop.f32.mrf.mxu0  ;;  %v4772_v48 = vadd.f32 %v4771_v19, %v10891_v39 }
 0x38c   :  { %4919 = vst [vmem:[#allocation3 + $0xa0] sm:$0xff] %v4887_v14  ;;  %v4676_v57 = vadd.f32 %v4675_v27, %v10885_v61  ;;  %v4866_v14 = vld [vmem:[%s11020_s0 + $0xf8] sm:$0xff] }
 0x38e   :  { %v4820_v23 = vpop.f32.mrf.mxu3 }
 0x38f   :  { %v4821_v46 = vadd.f32 %v4820_v23, %v4772_v48  ;;  %v4724_v35 = vpop.f32.mrf.mxu1 }
 0x390   :  { %v4725_v45 = vadd.f32 %v4724_v35, %v4676_v57 }
 0x391   :  { %v4888_v4 = vadd.f32 %v4856_v49, %v4821_v46 }
 0x392   :  { %v4773_v42 = vpop.f32.mrf.mxu2  ;;  %v4889_v43 = vadd.f32 %v4857_v31, %v4725_v45 }
 0x393   :  { %4920 = vst [vmem:[#allocation3 + $0xa8] sm:$0xff] %v4888_v4  ;;  %v4678_v11 = vpop.f32.mrf.mxu0  ;;  %v4774_v60 = vadd.f32 %v4773_v42, %v10891_v39 }
 0x394   :  { %4921 = vst [vmem:[#allocation3 + $0xb0] sm:$0xff] %v4889_v43  ;;  %v4679_v28 = vadd.f32 %v4678_v11, %v10885_v61 }
 0x396   :  { %v4822_v36 = vpop.f32.mrf.mxu3 }
 0x397   :  { %v4823_v56 = vadd.f32 %v4822_v36, %v4774_v60  ;;  %v4727_v54 = vpop.f32.mrf.mxu1 }
 0x398   :  { %v4728_v40 = vadd.f32 %v4727_v54, %v4679_v28 }
 0x399   :  { %v4890_v29 = vadd.f32 %v4858_v16, %v4823_v56 }
 0x39a   :  { %v4776_v24 = vpop.f32.mrf.mxu2  ;;  %v4891_v12 = vadd.f32 %v4859_v59, %v4728_v40 }
 0x39b   :  { %4922 = vst [vmem:[#allocation3 + $0xb8] sm:$0xff] %v4890_v29  ;;  %v4680_v58 = vpop.f32.mrf.mxu0  ;;  %v4777_v33 = vadd.f32 %v4776_v24, %v10891_v39 }
 0x39c   :  { %4923 = vst [vmem:[#allocation3 + $0xc0] sm:$0xff] %v4891_v12  ;;  %v4681_v10 = vadd.f32 %v4680_v58, %v10885_v61 }
 0x39e   :  { %v4825_v62 = vpop.f32.mrf.mxu3 }
 0x39f   :  { %v4826_v51 = vadd.f32 %v4825_v62, %v4777_v33  ;;  %v4729_v50 = vpop.f32.mrf.mxu1 }
 0x3a0   :  { %v4730_v37 = vadd.f32 %v4729_v50, %v4681_v10 }
 0x3a1   :  { %v4892_v9 = vadd.f32 %v4860_v47, %v4826_v51 }
 0x3a2   :  { %v4778_v13 = vpop.f32.mrf.mxu2  ;;  %v4893_v25 = vadd.f32 %v4861_v20, %v4730_v37 }
 0x3a3   :  { %4924 = vst [vmem:[#allocation3 + $0xc8] sm:$0xff] %v4892_v9  ;;  %v4683_v52 = vpop.f32.mrf.mxu0  ;;  %v4779_v53 = vadd.f32 %v4778_v13, %v10891_v39 }
 0x3a4   :  { %4925 = vst [vmem:[#allocation3 + $0xd0] sm:$0xff] %v4893_v25  ;;  %v4684_v5 = vadd.f32 %v4683_v52, %v10885_v61 }
 0x3a6   :  { %v4827_v3 = vpop.f32.mrf.mxu3 }
 0x3a7   :  { %v4828_v17 = vadd.f32 %v4827_v3, %v4779_v53  ;;  %v4732_v63 = vpop.f32.mrf.mxu1 }
 0x3a8   :  { %v4733_v44 = vadd.f32 %v4732_v63, %v4684_v5 }
 0x3a9   :  { %v4894_v32 = vadd.f32 %v4862_v30, %v4828_v17 }
 0x3aa   :  { %v4781_v18 = vpop.f32.mrf.mxu2  ;;  %v4895_v55 = vadd.f32 %v4863_v1, %v4733_v44 }
 0x3ab   :  { %4926 = vst [vmem:[#allocation3 + $0xd8] sm:$0xff] %v4894_v32  ;;  %v4685_v21 = vpop.f32.mrf.mxu0  ;;  %v4782_v2 = vadd.f32 %v4781_v18, %v10891_v39 }
 0x3ac   :  { %4927 = vst [vmem:[#allocation3 + $0xe0] sm:$0xff] %v4895_v55  ;;  %v4686_v6 = vadd.f32 %v4685_v21, %v10885_v61 }
 0x3ae   :  { %v4830_v38 = vpop.f32.mrf.mxu3 }
 0x3af   :  { %v4831_v8 = vadd.f32 %v4830_v38, %v4782_v2  ;;  %v4734_v0 = vpop.f32.mrf.mxu1 }
 0x3b0   :  { %v4735_v26 = vadd.f32 %v4734_v0, %v4686_v6 }
 0x3b1   :  { %v4896_v41 = vadd.f32 %v4864_v15, %v4831_v8 }
 0x3b2   :  { %v4783_v34 = vpop.f32.mrf.mxu2  ;;  %v4897_v7 = vadd.f32 %v4865_v22, %v4735_v26 }
 0x3b3   :  { %4928 = vst [vmem:[#allocation3 + $0xe8] sm:$0xff] %v4896_v41  ;;  %v4784_v19 = vadd.f32 %v4783_v34, %v10891_v39 }
 0x3b4   :  { %4929 = vst [vmem:[#allocation3 + $0xf0] sm:$0xff] %v4897_v7 }
 0x3b6   :  { %v4832_v61 = vpop.f32.mrf.mxu3 }
 0x3b7   :  { %v4833_v27 = vadd.f32 %v4832_v61, %v4784_v19 }
 0x3b9   :  { %v4898_v48 = vadd.f32 %v4866_v14, %v4833_v27 }
 0x3bb   :  { %4930 = vst [vmem:[#allocation3 + $0xf8] sm:$0xff] %v4898_v48 }
 0x3bc   :  { %4943 = dma.vmem_to_hbm [thread:$0]  %s4936_s7, 4096, %s4938_s10, [#allocation4], %s5631_s12, %s5631_s12, %s5632_s13  }
 0x3bd   :  { %5627 = dma.done.wait [#allocation4], 4096  }
 0x3be   :  { %5628 = vsyncadd [#allocation4], 4294963200 }
 0x3bf   :  { %4948 = vsyncpa [#allocation4], 1 }

</bundles_post_ra>
